<compile_context>
chip_gen: v6e
topology: v6e:2x2x1
jax: 0.10.0
libtpu: 0.0.40
codegen_flags: <defaults>
</compile_context>

<pallas_src>
import functools

import jax
import jax.numpy as jnp
from jax.experimental import pallas as pl
from jax.experimental.pallas import tpu as pltpu

HIDDEN = 64
NUM_LAYERS = 2
NUM_CLASSES = 5
BATCH_TILE = 8  # pad batch to a full sublane tile so every slab is (8,128)-aligned


# -----------------------------------------------------------------------------
# One-time weight packing (model-load time, NOT in the per-call path).
# -----------------------------------------------------------------------------
def _spread_gate_cols(w, direction, H=HIDDEN):
    """(K, 4H) -> (K, 8H): place each gate's H columns in the `direction` half
    (0=fwd, 1=bwd) of its interleaved 2H gate group; zeros elsewhere.
    Resulting column order: [i_f i_b | f_f f_b | g_f g_b | o_f o_b]."""
    K = w.shape[0]
    w4 = w.reshape(K, 4, 1, H)
    z = jnp.zeros_like(w4)
    parts = (w4, z) if direction == 0 else (z, w4)
    return jnp.concatenate(parts, axis=2).reshape(K, 8 * H)


def prepare_params(params):
    """Pack all model weights into 4 kernel inputs. Call ONCE at model-load time."""
    H = HIDDEN
    G = 8 * H  # 512
    l1, l2 = params["lstm"][0], params["lstm"][1]

    w1f = _spread_gate_cols(l1["wih_f"], 0)                                   # (1, G)
    w1b = _spread_gate_cols(l1["wih_b"], 1)                                   # (1, G)
    b1 = _spread_gate_cols(l1["b_f"], 0) + _spread_gate_cols(l1["b_b"], 1)    # (1, G)
    whh1 = jnp.concatenate([_spread_gate_cols(l1["whh_f"], 0),
                            _spread_gate_cols(l1["whh_b"], 1)], axis=0)       # (2H, G)

    w2f = _spread_gate_cols(l2["wih_f"], 0)                                   # (2H, G)
    w2b = _spread_gate_cols(l2["wih_b"], 1)                                   # (2H, G)
    b2 = _spread_gate_cols(l2["b_f"], 0) + _spread_gate_cols(l2["b_b"], 1)    # (1, G)
    whh2 = jnp.concatenate([_spread_gate_cols(l2["whh_f"], 0),
                            _spread_gate_cols(l2["whh_b"], 1)], axis=0)       # (2H, G)

    # Small f32 row-vectors packed into one array.
    vec = jnp.zeros((4, 2 * G), jnp.float32)
    vec = vec.at[0, 0:G].set(w1f[0]).at[0, G:2 * G].set(w1b[0])
    vec = vec.at[1, 0:G].set(b1[0])
    vec = vec.at[2, 0:G].set(b2[0])                        # [b2 | 0] — added to the P half
    vec = vec.at[3, 0:2 * H].set(params["fc1_b"][0])
    vec = vec.at[3, 2 * H:3 * H].set(params["fc2_b"][0])
    vec = vec.at[3, 4 * H:4 * H + NUM_CLASSES].set(params["fc3_b"][0])

    # Block-diagonal recurrent weights, bf16 MXU operands.
    whh = jnp.stack([whh1, whh2]).astype(jnp.bfloat16)     # (2, 2H, G)

    # Layer-2 projection with the backward-time reversal folded into the weights:
    #   seq_raw[r] = [h_fwd(r) | h_bwd(T-1-r)]
    #   P[r] = seq_raw[r] @ M_P,  Q[r] = seq_raw[r] @ M_Q,  gin2[t] = P[t] + b2 + Q[T-1-t]
    m_p = jnp.concatenate([w2f[0:H], w2b[H:2 * H]], axis=0)   # (2H, G)
    m_q = jnp.concatenate([w2b[0:H], w2f[H:2 * H]], axis=0)   # (2H, G)
    w2 = jnp.concatenate([m_p, m_q], axis=1).astype(jnp.bfloat16)   # (2H, 2G)

    # MLP head weights packed (fc3 padded to 128 lanes -> lane-dense output slab).
    fcw = jnp.zeros((2 * H, 5 * H), jnp.float32)
    fcw = fcw.at[:, 0:2 * H].set(params["fc1_w"])
    fcw = fcw.at[:, 2 * H:3 * H].set(params["fc2_w"])
    fcw = fcw.at[0:H, 3 * H:3 * H + NUM_CLASSES].set(params["fc3_w"])
    fcw = fcw.astype(jnp.bfloat16)

    return {"vec": vec, "whh": whh, "w2": w2, "fcw": fcw}


# -----------------------------------------------------------------------------
# Fused kernel: layer1 (bidir) -> layer2 (bidir, last position only) -> MLP head.
# -----------------------------------------------------------------------------
def _bilstm_fused_kernel(T, B, H,
                         x_ref, vec_ref, whh_ref, w2_ref, fcw_ref,
                         out_ref,
                         gin1_scr, seq_scr, pq_scr):
    G = 8 * H        # 512: fused gate width [i|f|g|o], each group 2H wide
    H2 = 2 * H       # 128: fused fwd+bwd state width
    NCH = 4
    RC = (T * B) // NCH   # rows per precompute chunk (multiple of 8)

    def sigmoid(v):  # exact identity; tanh (EUP) + 2 cheap VPU ops instead of exp + divide
        return 0.5 * jnp.tanh(0.5 * v) + 0.5

    def recurrence(gates_in, w_hh, seq):
        """Fused fwd+bwd recurrence, statically unrolled over T.
        gates_in(t) -> (B, G) precomputed input-side gate pre-activations for loop step t.
        seq (optional VMEM ref): seq[t] = h (raw loop order, single full-width store).
        Returns (h_fwd at pos T-1, h_bwd at pos T-1)."""
        h = jnp.zeros((B, H2), jnp.float32)
        c = jnp.zeros((B, H2), jnp.float32)
        h_bwd_last = None
        for t in range(T):
            # NOTE: w_hh is loaded once per layer; if the bundle dump shows Mosaic re-pushing
            # the RHS each step, switch to explicit pltpu.matmul_push_rhs weight-stationarity.
            g = gates_in(t) + jnp.dot(h.astype(jnp.bfloat16), w_hh,
                                      preferred_element_type=jnp.float32)
            i_g = sigmoid(g[:, 0 * H2:1 * H2])   # 128-lane-aligned slices
            f_g = sigmoid(g[:, 1 * H2:2 * H2])
            g_g = jnp.tanh(g[:, 2 * H2:3 * H2])
            o_g = sigmoid(g[:, 3 * H2:4 * H2])
            c = f_g * c + i_g * g_g
            h = o_g * jnp.tanh(c)
            if seq is not None:
                seq[t * B:(t + 1) * B, :] = h          # one aligned 128-lane store per step
            if t == 0:
                h_bwd_last = h[:, H:H2]                # bwd output for sequence position T-1
        return h[:, 0:H], h_bwd_last

    # ---------------- layer 1: precompute all input gates (input_size == 1) ----------------
    w1f = vec_ref[0:1, 0:G]
    w1b = vec_ref[0:1, G:2 * G]
    b1 = vec_ref[1:2, 0:G]
    for ch in range(NCH):
        r0 = ch * RC
        xs = x_ref[r0:r0 + RC, :]                      # (RC, 2): col0 = x(t), col1 = x(T-1-t)
        gin1_scr[r0:r0 + RC, :] = xs[:, 0:1] * w1f + xs[:, 1:2] * w1b + b1

    recurrence(lambda t: gin1_scr[t * B:(t + 1) * B, :], whh_ref[0], seq_scr)

    # ---------------- layer 2: chunked projection of the raw layer-1 sequence ---------------
    b2p = vec_ref[2:3, :]                              # (1, 2G): [b2 | 0]
    w2 = w2_ref[...]                                   # (2H, 2G) = [M_P | M_Q], bf16
    for ch in range(NCH):
        r0 = ch * RC
        s = seq_scr[r0:r0 + RC, :].astype(jnp.bfloat16)
        pq_scr[r0:r0 + RC, :] = jnp.dot(s, w2, preferred_element_type=jnp.float32) + b2p

    def gin2(t):   # P[t] + b2 + Q[T-1-t]; slab loads sublane-aligned, slices lane-aligned
        return (pq_scr[t * B:(t + 1) * B, 0:G]
                + pq_scr[(T - 1 - t) * B:(T - t) * B, G:2 * G])

    h_f_last, h_b_last = recurrence(gin2, whh_ref[1], None)
    last = jnp.concatenate([h_f_last, h_b_last], axis=-1)     # (B, 2H) == lstm_out[:, -1, :]

    # ---------------- MLP head (dropout = identity in eval) ----------------
    fc1b = vec_ref[3:4, 0:2 * H]
    fc2b = vec_ref[3:4, 2 * H:3 * H]
    fc3b = vec_ref[3:4, 4 * H:6 * H]
    h1 = jnp.maximum(
        jnp.dot(last.astype(jnp.bfloat16), fcw_ref[:, 0:2 * H],
                preferred_element_type=jnp.float32) + fc1b, 0.0)
    h2 = jnp.maximum(
        jnp.dot(h1.astype(jnp.bfloat16), fcw_ref[:, 2 * H:3 * H],
                preferred_element_type=jnp.float32) + fc2b, 0.0)
    h2p = jnp.concatenate([h2, jnp.zeros((B, H), jnp.float32)], axis=-1)   # pad to 128 lanes
    out_ref[...] = (
        jnp.dot(h2p.astype(jnp.bfloat16), fcw_ref[:, 3 * H:5 * H],
                preferred_element_type=jnp.float32) + fc3b)


# -----------------------------------------------------------------------------
# Forward wrapper (matches the PyTorch module in eval mode).
# -----------------------------------------------------------------------------
def bilstm_forward(x, packed):
    if x.ndim == 3 and x.shape[1] == 1:                # PyTorch: (B, 1, T) -> (B, T, 1)
        x = jnp.transpose(x, (0, 2, 1))
    B, T, I = x.shape
    assert I == 1, "kernel is specialised for input_size == 1 (single ECG lead)"
    BK = max(BATCH_TILE, ((B + 7) // 8) * 8)           # pad batch to a full sublane tile

    xt = jnp.transpose(x[:, :, 0], (1, 0))             # (T, B) time-major
    xt = jnp.pad(xt, ((0, 0), (0, BK - B)))            # (T, BK)
    # col 0 = x at position t, col 1 = x at position T-1-t  (no flips inside the kernel)
    x_pack = jnp.stack([xt, xt[::-1]], axis=-1).reshape(T * BK, 2)

    kernel = functools.partial(_bilstm_fused_kernel, T, BK, HIDDEN)
    out = pl.pallas_call(
        kernel,
        out_shape=jax.ShapeDtypeStruct((BK, 2 * HIDDEN), jnp.float32),
        scratch_shapes=[
            pltpu.VMEM((T * BK, 8 * HIDDEN), jnp.float32),    # layer-1 precomputed input gates
            pltpu.VMEM((T * BK, 2 * HIDDEN), jnp.float32),    # layer-1 hidden sequence (raw order)
            pltpu.VMEM((T * BK, 16 * HIDDEN), jnp.float32),   # layer-2 [P | Q] projections
        ],
    )(x_pack, packed["vec"], packed["whh"], packed["w2"], packed["fcw"])
    return out[:B, :NUM_CLASSES]


# -----------------------------------------------------------------------------
# Pure-JAX f32 reference (for correctness verification).
# -----------------------------------------------------------------------------
def bilstm_reference(x, params):
    if x.ndim == 3 and x.shape[1] == 1:
        x = jnp.transpose(x, (0, 2, 1))
    B, T, _ = x.shape
    H = HIDDEN
    seq = x
    for layer in range(NUM_LAYERS):
        p = params["lstm"][layer]

        def run(seq_dir, wih, whh, b):
            def cell(carry, x_t):
                h, c = carry
                g = x_t @ wih + h @ whh + b
                i = jax.nn.sigmoid(g[:, 0:H])
                f = jax.nn.sigmoid(g[:, H:2 * H])
                gg = jnp.tanh(g[:, 2 * H:3 * H])
                o = jax.nn.sigmoid(g[:, 3 * H:4 * H])
                c = f * c + i * gg
                h = o * jnp.tanh(c)
                return (h, c), h
            init = (jnp.zeros((B, H), jnp.float32), jnp.zeros((B, H), jnp.float32))
            _, hs = jax.lax.scan(cell, init, jnp.transpose(seq_dir, (1, 0, 2)))
            return jnp.transpose(hs, (1, 0, 2))

        out_f = run(seq, p["wih_f"], p["whh_f"], p["b_f"])
        out_b = run(seq[:, ::-1, :], p["wih_b"], p["whh_b"], p["b_b"])[:, ::-1, :]
        seq = jnp.concatenate([out_f, out_b], axis=-1)
    last = seq[:, -1, :]
    h1 = jnp.maximum(last @ params["fc1_w"] + params["fc1_b"], 0.0)
    h2 = jnp.maximum(h1 @ params["fc2_w"] + params["fc2_b"], 0.0)
    return h2 @ params["fc3_w"] + params["fc3_b"]


# -----------------------------------------------------------------------------
# Deterministic synthetic parameters (shapes from BiLSTM.__init__).
# -----------------------------------------------------------------------------
def _init(key, shape, scale=0.1):
    return scale * jax.random.normal(key, shape, dtype=jnp.float32)


def init_params(key):
    params = {"lstm": []}
    for layer in range(NUM_LAYERS):
        in_size = 1 if layer == 0 else 2 * HIDDEN
        layer_p = {}
        for d in ("f", "b"):
            key, k1, k2, k3 = jax.random.split(key, 4)
            layer_p[f"wih_{d}"] = _init(k1, (in_size, 4 * HIDDEN))   # transposed (in, 4H)
            layer_p[f"whh_{d}"] = _init(k2, (HIDDEN, 4 * HIDDEN))    # transposed (H, 4H)
            layer_p[f"b_{d}"] = _init(k3, (1, 4 * HIDDEN))           # b_ih + b_hh combined
        params["lstm"].append(layer_p)

    key, k1, k2, k3, k4, k5, k6 = jax.random.split(key, 7)
    params["fc1_w"] = _init(k1, (2 * HIDDEN, 128))
    params["fc1_b"] = _init(k2, (1, 128))
    params["fc2_w"] = _init(k3, (128, 64))
    params["fc2_b"] = _init(k4, (1, 64))
    params["fc3_w"] = _init(k5, (64, NUM_CLASSES))
    params["fc3_b"] = _init(k6, (1, NUM_CLASSES))
    return params


if __name__ == "__main__":
    key = jax.random.PRNGKey(0)
    k_x, k_p = jax.random.split(key)

    B, T = 2, 16
    x = jax.random.normal(k_x, (B, 1, T), dtype=jnp.float32)   # (batch, 1 lead, seq)
    params = init_params(k_p)

    packed = jax.tree.map(jax.block_until_ready, prepare_params(params))  # one-time prep

    logits = jax.block_until_ready(jax.jit(bilstm_forward)(x, packed))
    ref = jax.block_until_ready(jax.jit(bilstm_reference)(x, params))

    assert logits.shape == (B, NUM_CLASSES)
    assert bool(jnp.all(jnp.isfinite(logits)))
    # bf16 MXU operands (f32 accumulation) vs the f32 reference: loose-ish tolerance.
    max_err = float(jnp.max(jnp.abs(logits - ref)))
    assert max_err < 2e-2, f"kernel/reference mismatch: {max_err}"
    print("KERNEL_OK")
</pallas_src>

<mosaic_0001>
module attributes {stable_mosaic.version = 11 : i64} {
  func.func @_bilstm_fused_kernel(%arg0: memref<128x2xf32, #tpu.memory_space<vmem>>, %arg1: memref<4x1024xf32, #tpu.memory_space<vmem>>, %arg2: memref<2x128x512xbf16, #tpu.memory_space<vmem>>, %arg3: memref<128x1024xbf16, #tpu.memory_space<vmem>>, %arg4: memref<128x320xbf16, #tpu.memory_space<vmem>>, %arg5: memref<8x128xf32, #tpu.memory_space<vmem>>, %arg6: memref<128x512xf32, #tpu.memory_space<vmem>>, %arg7: memref<128x128xf32, #tpu.memory_space<vmem>>, %arg8: memref<128x1024xf32, #tpu.memory_space<vmem>>) attributes {dimension_semantics = [], scalar_prefetch = 0 : i64, scratch_operands = 3 : i64, tpu.core_type = #tpu.core_type<tc>} {
    %c0 = arith.constant 0 : index
    %c0_0 = arith.constant 0 : index
    %0 = vector.load %arg1[%c0, %c0_0] : memref<4x1024xf32, #tpu.memory_space<vmem>>, vector<1x512xf32>
    %c0_1 = arith.constant 0 : index
    %c512 = arith.constant 512 : index
    %1 = vector.load %arg1[%c0_1, %c512] : memref<4x1024xf32, #tpu.memory_space<vmem>>, vector<1x512xf32>
    %c1 = arith.constant 1 : index
    %c0_2 = arith.constant 0 : index
    %2 = vector.load %arg1[%c1, %c0_2] : memref<4x1024xf32, #tpu.memory_space<vmem>>, vector<1x512xf32>
    %c0_3 = arith.constant 0 : index
    %c0_4 = arith.constant 0 : index
    %3 = vector.load %arg0[%c0_3, %c0_4] : memref<128x2xf32, #tpu.memory_space<vmem>>, vector<32x2xf32>
    %4 = vector.extract_strided_slice %3 {offsets = [0, 0], sizes = [32, 1], strides = [1, 1]} : vector<32x2xf32> to vector<32x1xf32>
    %5 = vector.broadcast %4 : vector<32x1xf32> to vector<32x512xf32>
    %6 = vector.broadcast %0 : vector<1x512xf32> to vector<32x512xf32>
    %7 = arith.mulf %5, %6 : vector<32x512xf32>
    %8 = vector.extract_strided_slice %3 {offsets = [0, 1], sizes = [32, 1], strides = [1, 1]} : vector<32x2xf32> to vector<32x1xf32>
    %9 = vector.broadcast %8 : vector<32x1xf32> to vector<32x512xf32>
    %10 = vector.broadcast %1 : vector<1x512xf32> to vector<32x512xf32>
    %11 = arith.mulf %9, %10 : vector<32x512xf32>
    %12 = arith.addf %7, %11 : vector<32x512xf32>
    %13 = vector.broadcast %2 : vector<1x512xf32> to vector<32x512xf32>
    %14 = arith.addf %12, %13 : vector<32x512xf32>
    %c0_5 = arith.constant 0 : index
    %c0_6 = arith.constant 0 : index
    %15 = vector.load %arg6[%c0_5, %c0_6] : memref<128x512xf32, #tpu.memory_space<vmem>>, vector<32x512xf32>
    tpu.vector_store %arg6[%c0_5, %c0_6], %14 {strides = array<i32>} : memref<128x512xf32, #tpu.memory_space<vmem>>, vector<32x512xf32>,
    %c32 = arith.constant 32 : index
    %c0_7 = arith.constant 0 : index
    %16 = vector.load %arg0[%c32, %c0_7] : memref<128x2xf32, #tpu.memory_space<vmem>>, vector<32x2xf32>
    %17 = vector.extract_strided_slice %16 {offsets = [0, 0], sizes = [32, 1], strides = [1, 1]} : vector<32x2xf32> to vector<32x1xf32>
    %18 = vector.broadcast %17 : vector<32x1xf32> to vector<32x512xf32>
    %19 = vector.broadcast %0 : vector<1x512xf32> to vector<32x512xf32>
    %20 = arith.mulf %18, %19 : vector<32x512xf32>
    %21 = vector.extract_strided_slice %16 {offsets = [0, 1], sizes = [32, 1], strides = [1, 1]} : vector<32x2xf32> to vector<32x1xf32>
    %22 = vector.broadcast %21 : vector<32x1xf32> to vector<32x512xf32>
    %23 = vector.broadcast %1 : vector<1x512xf32> to vector<32x512xf32>
    %24 = arith.mulf %22, %23 : vector<32x512xf32>
    %25 = arith.addf %20, %24 : vector<32x512xf32>
    %26 = vector.broadcast %2 : vector<1x512xf32> to vector<32x512xf32>
    %27 = arith.addf %25, %26 : vector<32x512xf32>
    %c32_8 = arith.constant 32 : index
    %c0_9 = arith.constant 0 : index
    %28 = vector.load %arg6[%c32_8, %c0_9] : memref<128x512xf32, #tpu.memory_space<vmem>>, vector<32x512xf32>
    tpu.vector_store %arg6[%c32_8, %c0_9], %27 {strides = array<i32>} : memref<128x512xf32, #tpu.memory_space<vmem>>, vector<32x512xf32>,
    %c64 = arith.constant 64 : index
    %c0_10 = arith.constant 0 : index
    %29 = vector.load %arg0[%c64, %c0_10] : memref<128x2xf32, #tpu.memory_space<vmem>>, vector<32x2xf32>
    %30 = vector.extract_strided_slice %29 {offsets = [0, 0], sizes = [32, 1], strides = [1, 1]} : vector<32x2xf32> to vector<32x1xf32>
    %31 = vector.broadcast %30 : vector<32x1xf32> to vector<32x512xf32>
    %32 = vector.broadcast %0 : vector<1x512xf32> to vector<32x512xf32>
    %33 = arith.mulf %31, %32 : vector<32x512xf32>
    %34 = vector.extract_strided_slice %29 {offsets = [0, 1], sizes = [32, 1], strides = [1, 1]} : vector<32x2xf32> to vector<32x1xf32>
    %35 = vector.broadcast %34 : vector<32x1xf32> to vector<32x512xf32>
    %36 = vector.broadcast %1 : vector<1x512xf32> to vector<32x512xf32>
    %37 = arith.mulf %35, %36 : vector<32x512xf32>
    %38 = arith.addf %33, %37 : vector<32x512xf32>
    %39 = vector.broadcast %2 : vector<1x512xf32> to vector<32x512xf32>
    %40 = arith.addf %38, %39 : vector<32x512xf32>
    %c64_11 = arith.constant 64 : index
    %c0_12 = arith.constant 0 : index
    %41 = vector.load %arg6[%c64_11, %c0_12] : memref<128x512xf32, #tpu.memory_space<vmem>>, vector<32x512xf32>
    tpu.vector_store %arg6[%c64_11, %c0_12], %40 {strides = array<i32>} : memref<128x512xf32, #tpu.memory_space<vmem>>, vector<32x512xf32>,
    %c96 = arith.constant 96 : index
    %c0_13 = arith.constant 0 : index
    %42 = vector.load %arg0[%c96, %c0_13] : memref<128x2xf32, #tpu.memory_space<vmem>>, vector<32x2xf32>
    %43 = vector.extract_strided_slice %42 {offsets = [0, 0], sizes = [32, 1], strides = [1, 1]} : vector<32x2xf32> to vector<32x1xf32>
    %44 = vector.broadcast %43 : vector<32x1xf32> to vector<32x512xf32>
    %45 = vector.broadcast %0 : vector<1x512xf32> to vector<32x512xf32>
    %46 = arith.mulf %44, %45 : vector<32x512xf32>
    %47 = vector.extract_strided_slice %42 {offsets = [0, 1], sizes = [32, 1], strides = [1, 1]} : vector<32x2xf32> to vector<32x1xf32>
    %48 = vector.broadcast %47 : vector<32x1xf32> to vector<32x512xf32>
    %49 = vector.broadcast %1 : vector<1x512xf32> to vector<32x512xf32>
    %50 = arith.mulf %48, %49 : vector<32x512xf32>
    %51 = arith.addf %46, %50 : vector<32x512xf32>
    %52 = vector.broadcast %2 : vector<1x512xf32> to vector<32x512xf32>
    %53 = arith.addf %51, %52 : vector<32x512xf32>
    %c96_14 = arith.constant 96 : index
    %c0_15 = arith.constant 0 : index
    %54 = vector.load %arg6[%c96_14, %c0_15] : memref<128x512xf32, #tpu.memory_space<vmem>>, vector<32x512xf32>
    tpu.vector_store %arg6[%c96_14, %c0_15], %53 {strides = array<i32>} : memref<128x512xf32, #tpu.memory_space<vmem>>, vector<32x512xf32>,
    %c0_16 = arith.constant 0 : index
    %c0_17 = arith.constant 0 : index
    %c0_18 = arith.constant 0 : index
    %55 = vector.load %arg2[%c0_16, %c0_17, %c0_18] : memref<2x128x512xbf16, #tpu.memory_space<vmem>>, vector<1x128x512xbf16>
    %56 = vector.shape_cast %55 : vector<1x128x512xbf16> to vector<128x512xbf16>
    %cst = arith.constant 0.000000e+00 : f32
    %57 = vector.broadcast %cst : f32 to vector<8x128xf32>
    %cst_19 = arith.constant 0.000000e+00 : f32
    %58 = vector.broadcast %cst_19 : f32 to vector<8x128xf32>
    %c0_20 = arith.constant 0 : index
    %c0_21 = arith.constant 0 : index
    %59 = vector.load %arg6[%c0_20, %c0_21] : memref<128x512xf32, #tpu.memory_space<vmem>>, vector<8x512xf32>
    %60 = arith.truncf %57 : vector<8x128xf32> to vector<8x128xbf16>
    %cst_22 = arith.constant dense<0.000000e+00> : vector<8x512xf32>
    %61 = tpu.matmul %60, %56, %cst_22 {dimension_numbers = #tpu.dot_dimension_numbers<[1], [0], [0], [1], [0, 0, 1, 1], [], []>} : vector<8x128xbf16>, vector<128x512xbf16>, vector<8x512xf32> -> vector<8x512xf32>
    %62 = arith.addf %59, %61 : vector<8x512xf32>
    %63 = vector.extract_strided_slice %62 {offsets = [0, 0], sizes = [8, 128], strides = [1, 1]} : vector<8x512xf32> to vector<8x128xf32>
    %cst_23 = arith.constant 5.000000e-01 : f32
    %64 = vector.broadcast %cst_23 : f32 to vector<8x128xf32>
    %65 = arith.mulf %64, %63 : vector<8x128xf32>
    %66 = math.tanh %65 : vector<8x128xf32>
    %cst_24 = arith.constant 5.000000e-01 : f32
    %67 = vector.broadcast %cst_24 : f32 to vector<8x128xf32>
    %68 = arith.mulf %67, %66 : vector<8x128xf32>
    %cst_25 = arith.constant 5.000000e-01 : f32
    %69 = vector.broadcast %cst_25 : f32 to vector<8x128xf32>
    %70 = arith.addf %68, %69 : vector<8x128xf32>
    %71 = vector.extract_strided_slice %62 {offsets = [0, 128], sizes = [8, 128], strides = [1, 1]} : vector<8x512xf32> to vector<8x128xf32>
    %cst_26 = arith.constant 5.000000e-01 : f32
    %72 = vector.broadcast %cst_26 : f32 to vector<8x128xf32>
    %73 = arith.mulf %72, %71 : vector<8x128xf32>
    %74 = math.tanh %73 : vector<8x128xf32>
    %cst_27 = arith.constant 5.000000e-01 : f32
    %75 = vector.broadcast %cst_27 : f32 to vector<8x128xf32>
    %76 = arith.mulf %75, %74 : vector<8x128xf32>
    %cst_28 = arith.constant 5.000000e-01 : f32
    %77 = vector.broadcast %cst_28 : f32 to vector<8x128xf32>
    %78 = arith.addf %76, %77 : vector<8x128xf32>
    %79 = vector.extract_strided_slice %62 {offsets = [0, 256], sizes = [8, 128], strides = [1, 1]} : vector<8x512xf32> to vector<8x128xf32>
    %80 = math.tanh %79 : vector<8x128xf32>
    %81 = vector.extract_strided_slice %62 {offsets = [0, 384], sizes = [8, 128], strides = [1, 1]} : vector<8x512xf32> to vector<8x128xf32>
    %cst_29 = arith.constant 5.000000e-01 : f32
    %82 = vector.broadcast %cst_29 : f32 to vector<8x128xf32>
    %83 = arith.mulf %82, %81 : vector<8x128xf32>
    %84 = math.tanh %83 : vector<8x128xf32>
    %cst_30 = arith.constant 5.000000e-01 : f32
    %85 = vector.broadcast %cst_30 : f32 to vector<8x128xf32>
    %86 = arith.mulf %85, %84 : vector<8x128xf32>
    %cst_31 = arith.constant 5.000000e-01 : f32
    %87 = vector.broadcast %cst_31 : f32 to vector<8x128xf32>
    %88 = arith.addf %86, %87 : vector<8x128xf32>
    %89 = arith.mulf %78, %58 : vector<8x128xf32>
    %90 = arith.mulf %70, %80 : vector<8x128xf32>
    %91 = arith.addf %89, %90 : vector<8x128xf32>
    %92 = math.tanh %91 : vector<8x128xf32>
    %93 = arith.mulf %88, %92 : vector<8x128xf32>
    %c0_32 = arith.constant 0 : index
    %c0_33 = arith.constant 0 : index
    %94 = vector.load %arg7[%c0_32, %c0_33] : memref<128x128xf32, #tpu.memory_space<vmem>>, vector<8x128xf32>
    tpu.vector_store %arg7[%c0_32, %c0_33], %93 {strides = array<i32>} : memref<128x128xf32, #tpu.memory_space<vmem>>, vector<8x128xf32>,
    %c8 = arith.constant 8 : index
    %c0_34 = arith.constant 0 : index
    %95 = vector.load %arg6[%c8, %c0_34] : memref<128x512xf32, #tpu.memory_space<vmem>>, vector<8x512xf32>
    %96 = arith.truncf %93 : vector<8x128xf32> to vector<8x128xbf16>
    %cst_35 = arith.constant dense<0.000000e+00> : vector<8x512xf32>
    %97 = tpu.matmul %96, %56, %cst_35 {dimension_numbers = #tpu.dot_dimension_numbers<[1], [0], [0], [1], [0, 0, 1, 1], [], []>} : vector<8x128xbf16>, vector<128x512xbf16>, vector<8x512xf32> -> vector<8x512xf32>
    %98 = arith.addf %95, %97 : vector<8x512xf32>
    %99 = vector.extract_strided_slice %98 {offsets = [0, 0], sizes = [8, 128], strides = [1, 1]} : vector<8x512xf32> to vector<8x128xf32>
    %cst_36 = arith.constant 5.000000e-01 : f32
    %100 = vector.broadcast %cst_36 : f32 to vector<8x128xf32>
    %101 = arith.mulf %100, %99 : vector<8x128xf32>
    %102 = math.tanh %101 : vector<8x128xf32>
    %cst_37 = arith.constant 5.000000e-01 : f32
    %103 = vector.broadcast %cst_37 : f32 to vector<8x128xf32>
    %104 = arith.mulf %103, %102 : vector<8x128xf32>
    %cst_38 = arith.constant 5.000000e-01 : f32
    %105 = vector.broadcast %cst_38 : f32 to vector<8x128xf32>
    %106 = arith.addf %104, %105 : vector<8x128xf32>
    %107 = vector.extract_strided_slice %98 {offsets = [0, 128], sizes = [8, 128], strides = [1, 1]} : vector<8x512xf32> to vector<8x128xf32>
    %cst_39 = arith.constant 5.000000e-01 : f32
    %108 = vector.broadcast %cst_39 : f32 to vector<8x128xf32>
    %109 = arith.mulf %108, %107 : vector<8x128xf32>
    %110 = math.tanh %109 : vector<8x128xf32>
    %cst_40 = arith.constant 5.000000e-01 : f32
    %111 = vector.broadcast %cst_40 : f32 to vector<8x128xf32>
    %112 = arith.mulf %111, %110 : vector<8x128xf32>
    %cst_41 = arith.constant 5.000000e-01 : f32
    %113 = vector.broadcast %cst_41 : f32 to vector<8x128xf32>
    %114 = arith.addf %112, %113 : vector<8x128xf32>
    %115 = vector.extract_strided_slice %98 {offsets = [0, 256], sizes = [8, 128], strides = [1, 1]} : vector<8x512xf32> to vector<8x128xf32>
    %116 = math.tanh %115 : vector<8x128xf32>
    %117 = vector.extract_strided_slice %98 {offsets = [0, 384], sizes = [8, 128], strides = [1, 1]} : vector<8x512xf32> to vector<8x128xf32>
    %cst_42 = arith.constant 5.000000e-01 : f32
    %118 = vector.broadcast %cst_42 : f32 to vector<8x128xf32>
    %119 = arith.mulf %118, %117 : vector<8x128xf32>
    %120 = math.tanh %119 : vector<8x128xf32>
    %cst_43 = arith.constant 5.000000e-01 : f32
    %121 = vector.broadcast %cst_43 : f32 to vector<8x128xf32>
    %122 = arith.mulf %121, %120 : vector<8x128xf32>
    %cst_44 = arith.constant 5.000000e-01 : f32
    %123 = vector.broadcast %cst_44 : f32 to vector<8x128xf32>
    %124 = arith.addf %122, %123 : vector<8x128xf32>
    %125 = arith.mulf %114, %91 : vector<8x128xf32>
    %126 = arith.mulf %106, %116 : vector<8x128xf32>
    %127 = arith.addf %125, %126 : vector<8x128xf32>
    %128 = math.tanh %127 : vector<8x128xf32>
    %129 = arith.mulf %124, %128 : vector<8x128xf32>
    %c8_45 = arith.constant 8 : index
    %c0_46 = arith.constant 0 : index
    %130 = vector.load %arg7[%c8_45, %c0_46] : memref<128x128xf32, #tpu.memory_space<vmem>>, vector<8x128xf32>
    tpu.vector_store %arg7[%c8_45, %c0_46], %129 {strides = array<i32>} : memref<128x128xf32, #tpu.memory_space<vmem>>, vector<8x128xf32>,
    %c16 = arith.constant 16 : index
    %c0_47 = arith.constant 0 : index
    %131 = vector.load %arg6[%c16, %c0_47] : memref<128x512xf32, #tpu.memory_space<vmem>>, vector<8x512xf32>
    %132 = arith.truncf %129 : vector<8x128xf32> to vector<8x128xbf16>
    %cst_48 = arith.constant dense<0.000000e+00> : vector<8x512xf32>
    %133 = tpu.matmul %132, %56, %cst_48 {dimension_numbers = #tpu.dot_dimension_numbers<[1], [0], [0], [1], [0, 0, 1, 1], [], []>} : vector<8x128xbf16>, vector<128x512xbf16>, vector<8x512xf32> -> vector<8x512xf32>
    %134 = arith.addf %131, %133 : vector<8x512xf32>
    %135 = vector.extract_strided_slice %134 {offsets = [0, 0], sizes = [8, 128], strides = [1, 1]} : vector<8x512xf32> to vector<8x128xf32>
    %cst_49 = arith.constant 5.000000e-01 : f32
    %136 = vector.broadcast %cst_49 : f32 to vector<8x128xf32>
    %137 = arith.mulf %136, %135 : vector<8x128xf32>
    %138 = math.tanh %137 : vector<8x128xf32>
    %cst_50 = arith.constant 5.000000e-01 : f32
    %139 = vector.broadcast %cst_50 : f32 to vector<8x128xf32>
    %140 = arith.mulf %139, %138 : vector<8x128xf32>
    %cst_51 = arith.constant 5.000000e-01 : f32
    %141 = vector.broadcast %cst_51 : f32 to vector<8x128xf32>
    %142 = arith.addf %140, %141 : vector<8x128xf32>
    %143 = vector.extract_strided_slice %134 {offsets = [0, 128], sizes = [8, 128], strides = [1, 1]} : vector<8x512xf32> to vector<8x128xf32>
    %cst_52 = arith.constant 5.000000e-01 : f32
    %144 = vector.broadcast %cst_52 : f32 to vector<8x128xf32>
    %145 = arith.mulf %144, %143 : vector<8x128xf32>
    %146 = math.tanh %145 : vector<8x128xf32>
    %cst_53 = arith.constant 5.000000e-01 : f32
    %147 = vector.broadcast %cst_53 : f32 to vector<8x128xf32>
    %148 = arith.mulf %147, %146 : vector<8x128xf32>
    %cst_54 = arith.constant 5.000000e-01 : f32
    %149 = vector.broadcast %cst_54 : f32 to vector<8x128xf32>
    %150 = arith.addf %148, %149 : vector<8x128xf32>
    %151 = vector.extract_strided_slice %134 {offsets = [0, 256], sizes = [8, 128], strides = [1, 1]} : vector<8x512xf32> to vector<8x128xf32>
    %152 = math.tanh %151 : vector<8x128xf32>
    %153 = vector.extract_strided_slice %134 {offsets = [0, 384], sizes = [8, 128], strides = [1, 1]} : vector<8x512xf32> to vector<8x128xf32>
    %cst_55 = arith.constant 5.000000e-01 : f32
    %154 = vector.broadcast %cst_55 : f32 to vector<8x128xf32>
    %155 = arith.mulf %154, %153 : vector<8x128xf32>
    %156 = math.tanh %155 : vector<8x128xf32>
    %cst_56 = arith.constant 5.000000e-01 : f32
    %157 = vector.broadcast %cst_56 : f32 to vector<8x128xf32>
    %158 = arith.mulf %157, %156 : vector<8x128xf32>
    %cst_57 = arith.constant 5.000000e-01 : f32
    %159 = vector.broadcast %cst_57 : f32 to vector<8x128xf32>
    %160 = arith.addf %158, %159 : vector<8x128xf32>
    %161 = arith.mulf %150, %127 : vector<8x128xf32>
    %162 = arith.mulf %142, %152 : vector<8x128xf32>
    %163 = arith.addf %161, %162 : vector<8x128xf32>
    %164 = math.tanh %163 : vector<8x128xf32>
    %165 = arith.mulf %160, %164 : vector<8x128xf32>
    %c16_58 = arith.constant 16 : index
    %c0_59 = arith.constant 0 : index
    %166 = vector.load %arg7[%c16_58, %c0_59] : memref<128x128xf32, #tpu.memory_space<vmem>>, vector<8x128xf32>
    tpu.vector_store %arg7[%c16_58, %c0_59], %165 {strides = array<i32>} : memref<128x128xf32, #tpu.memory_space<vmem>>, vector<8x128xf32>,
    %c24 = arith.constant 24 : index
    %c0_60 = arith.constant 0 : index
    %167 = vector.load %arg6[%c24, %c0_60] : memref<128x512xf32, #tpu.memory_space<vmem>>, vector<8x512xf32>
    %168 = arith.truncf %165 : vector<8x128xf32> to vector<8x128xbf16>
    %cst_61 = arith.constant dense<0.000000e+00> : vector<8x512xf32>
    %169 = tpu.matmul %168, %56, %cst_61 {dimension_numbers = #tpu.dot_dimension_numbers<[1], [0], [0], [1], [0, 0, 1, 1], [], []>} : vector<8x128xbf16>, vector<128x512xbf16>, vector<8x512xf32> -> vector<8x512xf32>
    %170 = arith.addf %167, %169 : vector<8x512xf32>
    %171 = vector.extract_strided_slice %170 {offsets = [0, 0], sizes = [8, 128], strides = [1, 1]} : vector<8x512xf32> to vector<8x128xf32>
    %cst_62 = arith.constant 5.000000e-01 : f32
    %172 = vector.broadcast %cst_62 : f32 to vector<8x128xf32>
    %173 = arith.mulf %172, %171 : vector<8x128xf32>
    %174 = math.tanh %173 : vector<8x128xf32>
    %cst_63 = arith.constant 5.000000e-01 : f32
    %175 = vector.broadcast %cst_63 : f32 to vector<8x128xf32>
    %176 = arith.mulf %175, %174 : vector<8x128xf32>
    %cst_64 = arith.constant 5.000000e-01 : f32
    %177 = vector.broadcast %cst_64 : f32 to vector<8x128xf32>
    %178 = arith.addf %176, %177 : vector<8x128xf32>
    %179 = vector.extract_strided_slice %170 {offsets = [0, 128], sizes = [8, 128], strides = [1, 1]} : vector<8x512xf32> to vector<8x128xf32>
    %cst_65 = arith.constant 5.000000e-01 : f32
    %180 = vector.broadcast %cst_65 : f32 to vector<8x128xf32>
    %181 = arith.mulf %180, %179 : vector<8x128xf32>
    %182 = math.tanh %181 : vector<8x128xf32>
    %cst_66 = arith.constant 5.000000e-01 : f32
    %183 = vector.broadcast %cst_66 : f32 to vector<8x128xf32>
    %184 = arith.mulf %183, %182 : vector<8x128xf32>
    %cst_67 = arith.constant 5.000000e-01 : f32
    %185 = vector.broadcast %cst_67 : f32 to vector<8x128xf32>
    %186 = arith.addf %184, %185 : vector<8x128xf32>
    %187 = vector.extract_strided_slice %170 {offsets = [0, 256], sizes = [8, 128], strides = [1, 1]} : vector<8x512xf32> to vector<8x128xf32>
    %188 = math.tanh %187 : vector<8x128xf32>
    %189 = vector.extract_strided_slice %170 {offsets = [0, 384], sizes = [8, 128], strides = [1, 1]} : vector<8x512xf32> to vector<8x128xf32>
    %cst_68 = arith.constant 5.000000e-01 : f32
    %190 = vector.broadcast %cst_68 : f32 to vector<8x128xf32>
    %191 = arith.mulf %190, %189 : vector<8x128xf32>
    %192 = math.tanh %191 : vector<8x128xf32>
    %cst_69 = arith.constant 5.000000e-01 : f32
    %193 = vector.broadcast %cst_69 : f32 to vector<8x128xf32>
    %194 = arith.mulf %193, %192 : vector<8x128xf32>
    %cst_70 = arith.constant 5.000000e-01 : f32
    %195 = vector.broadcast %cst_70 : f32 to vector<8x128xf32>
    %196 = arith.addf %194, %195 : vector<8x128xf32>
    %197 = arith.mulf %186, %163 : vector<8x128xf32>
    %198 = arith.mulf %178, %188 : vector<8x128xf32>
    %199 = arith.addf %197, %198 : vector<8x128xf32>
    %200 = math.tanh %199 : vector<8x128xf32>
    %201 = arith.mulf %196, %200 : vector<8x128xf32>
    %c24_71 = arith.constant 24 : index
    %c0_72 = arith.constant 0 : index
    %202 = vector.load %arg7[%c24_71, %c0_72] : memref<128x128xf32, #tpu.memory_space<vmem>>, vector<8x128xf32>
    tpu.vector_store %arg7[%c24_71, %c0_72], %201 {strides = array<i32>} : memref<128x128xf32, #tpu.memory_space<vmem>>, vector<8x128xf32>,
    %c32_73 = arith.constant 32 : index
    %c0_74 = arith.constant 0 : index
    %203 = vector.load %arg6[%c32_73, %c0_74] : memref<128x512xf32, #tpu.memory_space<vmem>>, vector<8x512xf32>
    %204 = arith.truncf %201 : vector<8x128xf32> to vector<8x128xbf16>
    %cst_75 = arith.constant dense<0.000000e+00> : vector<8x512xf32>
    %205 = tpu.matmul %204, %56, %cst_75 {dimension_numbers = #tpu.dot_dimension_numbers<[1], [0], [0], [1], [0, 0, 1, 1], [], []>} : vector<8x128xbf16>, vector<128x512xbf16>, vector<8x512xf32> -> vector<8x512xf32>
    %206 = arith.addf %203, %205 : vector<8x512xf32>
    %207 = vector.extract_strided_slice %206 {offsets = [0, 0], sizes = [8, 128], strides = [1, 1]} : vector<8x512xf32> to vector<8x128xf32>
    %cst_76 = arith.constant 5.000000e-01 : f32
    %208 = vector.broadcast %cst_76 : f32 to vector<8x128xf32>
    %209 = arith.mulf %208, %207 : vector<8x128xf32>
    %210 = math.tanh %209 : vector<8x128xf32>
    %cst_77 = arith.constant 5.000000e-01 : f32
    %211 = vector.broadcast %cst_77 : f32 to vector<8x128xf32>
    %212 = arith.mulf %211, %210 : vector<8x128xf32>
    %cst_78 = arith.constant 5.000000e-01 : f32
    %213 = vector.broadcast %cst_78 : f32 to vector<8x128xf32>
    %214 = arith.addf %212, %213 : vector<8x128xf32>
    %215 = vector.extract_strided_slice %206 {offsets = [0, 128], sizes = [8, 128], strides = [1, 1]} : vector<8x512xf32> to vector<8x128xf32>
    %cst_79 = arith.constant 5.000000e-01 : f32
    %216 = vector.broadcast %cst_79 : f32 to vector<8x128xf32>
    %217 = arith.mulf %216, %215 : vector<8x128xf32>
    %218 = math.tanh %217 : vector<8x128xf32>
    %cst_80 = arith.constant 5.000000e-01 : f32
    %219 = vector.broadcast %cst_80 : f32 to vector<8x128xf32>
    %220 = arith.mulf %219, %218 : vector<8x128xf32>
    %cst_81 = arith.constant 5.000000e-01 : f32
    %221 = vector.broadcast %cst_81 : f32 to vector<8x128xf32>
    %222 = arith.addf %220, %221 : vector<8x128xf32>
    %223 = vector.extract_strided_slice %206 {offsets = [0, 256], sizes = [8, 128], strides = [1, 1]} : vector<8x512xf32> to vector<8x128xf32>
    %224 = math.tanh %223 : vector<8x128xf32>
    %225 = vector.extract_strided_slice %206 {offsets = [0, 384], sizes = [8, 128], strides = [1, 1]} : vector<8x512xf32> to vector<8x128xf32>
    %cst_82 = arith.constant 5.000000e-01 : f32
    %226 = vector.broadcast %cst_82 : f32 to vector<8x128xf32>
    %227 = arith.mulf %226, %225 : vector<8x128xf32>
    %228 = math.tanh %227 : vector<8x128xf32>
    %cst_83 = arith.constant 5.000000e-01 : f32
    %229 = vector.broadcast %cst_83 : f32 to vector<8x128xf32>
    %230 = arith.mulf %229, %228 : vector<8x128xf32>
    %cst_84 = arith.constant 5.000000e-01 : f32
    %231 = vector.broadcast %cst_84 : f32 to vector<8x128xf32>
    %232 = arith.addf %230, %231 : vector<8x128xf32>
    %233 = arith.mulf %222, %199 : vector<8x128xf32>
    %234 = arith.mulf %214, %224 : vector<8x128xf32>
    %235 = arith.addf %233, %234 : vector<8x128xf32>
    %236 = math.tanh %235 : vector<8x128xf32>
    %237 = arith.mulf %232, %236 : vector<8x128xf32>
    %c32_85 = arith.constant 32 : index
    %c0_86 = arith.constant 0 : index
    %238 = vector.load %arg7[%c32_85, %c0_86] : memref<128x128xf32, #tpu.memory_space<vmem>>, vector<8x128xf32>
    tpu.vector_store %arg7[%c32_85, %c0_86], %237 {strides = array<i32>} : memref<128x128xf32, #tpu.memory_space<vmem>>, vector<8x128xf32>,
    %c40 = arith.constant 40 : index
    %c0_87 = arith.constant 0 : index
    %239 = vector.load %arg6[%c40, %c0_87] : memref<128x512xf32, #tpu.memory_space<vmem>>, vector<8x512xf32>
    %240 = arith.truncf %237 : vector<8x128xf32> to vector<8x128xbf16>
    %cst_88 = arith.constant dense<0.000000e+00> : vector<8x512xf32>
    %241 = tpu.matmul %240, %56, %cst_88 {dimension_numbers = #tpu.dot_dimension_numbers<[1], [0], [0], [1], [0, 0, 1, 1], [], []>} : vector<8x128xbf16>, vector<128x512xbf16>, vector<8x512xf32> -> vector<8x512xf32>
    %242 = arith.addf %239, %241 : vector<8x512xf32>
    %243 = vector.extract_strided_slice %242 {offsets = [0, 0], sizes = [8, 128], strides = [1, 1]} : vector<8x512xf32> to vector<8x128xf32>
    %cst_89 = arith.constant 5.000000e-01 : f32
    %244 = vector.broadcast %cst_89 : f32 to vector<8x128xf32>
    %245 = arith.mulf %244, %243 : vector<8x128xf32>
    %246 = math.tanh %245 : vector<8x128xf32>
    %cst_90 = arith.constant 5.000000e-01 : f32
    %247 = vector.broadcast %cst_90 : f32 to vector<8x128xf32>
    %248 = arith.mulf %247, %246 : vector<8x128xf32>
    %cst_91 = arith.constant 5.000000e-01 : f32
    %249 = vector.broadcast %cst_91 : f32 to vector<8x128xf32>
    %250 = arith.addf %248, %249 : vector<8x128xf32>
    %251 = vector.extract_strided_slice %242 {offsets = [0, 128], sizes = [8, 128], strides = [1, 1]} : vector<8x512xf32> to vector<8x128xf32>
    %cst_92 = arith.constant 5.000000e-01 : f32
    %252 = vector.broadcast %cst_92 : f32 to vector<8x128xf32>
    %253 = arith.mulf %252, %251 : vector<8x128xf32>
    %254 = math.tanh %253 : vector<8x128xf32>
    %cst_93 = arith.constant 5.000000e-01 : f32
    %255 = vector.broadcast %cst_93 : f32 to vector<8x128xf32>
    %256 = arith.mulf %255, %254 : vector<8x128xf32>
    %cst_94 = arith.constant 5.000000e-01 : f32
    %257 = vector.broadcast %cst_94 : f32 to vector<8x128xf32>
    %258 = arith.addf %256, %257 : vector<8x128xf32>
    %259 = vector.extract_strided_slice %242 {offsets = [0, 256], sizes = [8, 128], strides = [1, 1]} : vector<8x512xf32> to vector<8x128xf32>
    %260 = math.tanh %259 : vector<8x128xf32>
    %261 = vector.extract_strided_slice %242 {offsets = [0, 384], sizes = [8, 128], strides = [1, 1]} : vector<8x512xf32> to vector<8x128xf32>
    %cst_95 = arith.constant 5.000000e-01 : f32
    %262 = vector.broadcast %cst_95 : f32 to vector<8x128xf32>
    %263 = arith.mulf %262, %261 : vector<8x128xf32>
    %264 = math.tanh %263 : vector<8x128xf32>
    %cst_96 = arith.constant 5.000000e-01 : f32
    %265 = vector.broadcast %cst_96 : f32 to vector<8x128xf32>
    %266 = arith.mulf %265, %264 : vector<8x128xf32>
    %cst_97 = arith.constant 5.000000e-01 : f32
    %267 = vector.broadcast %cst_97 : f32 to vector<8x128xf32>
    %268 = arith.addf %266, %267 : vector<8x128xf32>
    %269 = arith.mulf %258, %235 : vector<8x128xf32>
    %270 = arith.mulf %250, %260 : vector<8x128xf32>
    %271 = arith.addf %269, %270 : vector<8x128xf32>
    %272 = math.tanh %271 : vector<8x128xf32>
    %273 = arith.mulf %268, %272 : vector<8x128xf32>
    %c40_98 = arith.constant 40 : index
    %c0_99 = arith.constant 0 : index
    %274 = vector.load %arg7[%c40_98, %c0_99] : memref<128x128xf32, #tpu.memory_space<vmem>>, vector<8x128xf32>
    tpu.vector_store %arg7[%c40_98, %c0_99], %273 {strides = array<i32>} : memref<128x128xf32, #tpu.memory_space<vmem>>, vector<8x128xf32>,
    %c48 = arith.constant 48 : index
    %c0_100 = arith.constant 0 : index
    %275 = vector.load %arg6[%c48, %c0_100] : memref<128x512xf32, #tpu.memory_space<vmem>>, vector<8x512xf32>
    %276 = arith.truncf %273 : vector<8x128xf32> to vector<8x128xbf16>
    %cst_101 = arith.constant dense<0.000000e+00> : vector<8x512xf32>
    %277 = tpu.matmul %276, %56, %cst_101 {dimension_numbers = #tpu.dot_dimension_numbers<[1], [0], [0], [1], [0, 0, 1, 1], [], []>} : vector<8x128xbf16>, vector<128x512xbf16>, vector<8x512xf32> -> vector<8x512xf32>
    %278 = arith.addf %275, %277 : vector<8x512xf32>
    %279 = vector.extract_strided_slice %278 {offsets = [0, 0], sizes = [8, 128], strides = [1, 1]} : vector<8x512xf32> to vector<8x128xf32>
    %cst_102 = arith.constant 5.000000e-01 : f32
    %280 = vector.broadcast %cst_102 : f32 to vector<8x128xf32>
    %281 = arith.mulf %280, %279 : vector<8x128xf32>
    %282 = math.tanh %281 : vector<8x128xf32>
    %cst_103 = arith.constant 5.000000e-01 : f32
    %283 = vector.broadcast %cst_103 : f32 to vector<8x128xf32>
    %284 = arith.mulf %283, %282 : vector<8x128xf32>
    %cst_104 = arith.constant 5.000000e-01 : f32
    %285 = vector.broadcast %cst_104 : f32 to vector<8x128xf32>
    %286 = arith.addf %284, %285 : vector<8x128xf32>
    %287 = vector.extract_strided_slice %278 {offsets = [0, 128], sizes = [8, 128], strides = [1, 1]} : vector<8x512xf32> to vector<8x128xf32>
    %cst_105 = arith.constant 5.000000e-01 : f32
    %288 = vector.broadcast %cst_105 : f32 to vector<8x128xf32>
    %289 = arith.mulf %288, %287 : vector<8x128xf32>
    %290 = math.tanh %289 : vector<8x128xf32>
    %cst_106 = arith.constant 5.000000e-01 : f32
    %291 = vector.broadcast %cst_106 : f32 to vector<8x128xf32>
    %292 = arith.mulf %291, %290 : vector<8x128xf32>
    %cst_107 = arith.constant 5.000000e-01 : f32
    %293 = vector.broadcast %cst_107 : f32 to vector<8x128xf32>
    %294 = arith.addf %292, %293 : vector<8x128xf32>
    %295 = vector.extract_strided_slice %278 {offsets = [0, 256], sizes = [8, 128], strides = [1, 1]} : vector<8x512xf32> to vector<8x128xf32>
    %296 = math.tanh %295 : vector<8x128xf32>
    %297 = vector.extract_strided_slice %278 {offsets = [0, 384], sizes = [8, 128], strides = [1, 1]} : vector<8x512xf32> to vector<8x128xf32>
    %cst_108 = arith.constant 5.000000e-01 : f32
    %298 = vector.broadcast %cst_108 : f32 to vector<8x128xf32>
    %299 = arith.mulf %298, %297 : vector<8x128xf32>
    %300 = math.tanh %299 : vector<8x128xf32>
    %cst_109 = arith.constant 5.000000e-01 : f32
    %301 = vector.broadcast %cst_109 : f32 to vector<8x128xf32>
    %302 = arith.mulf %301, %300 : vector<8x128xf32>
    %cst_110 = arith.constant 5.000000e-01 : f32
    %303 = vector.broadcast %cst_110 : f32 to vector<8x128xf32>
    %304 = arith.addf %302, %303 : vector<8x128xf32>
    %305 = arith.mulf %294, %271 : vector<8x128xf32>
    %306 = arith.mulf %286, %296 : vector<8x128xf32>
    %307 = arith.addf %305, %306 : vector<8x128xf32>
    %308 = math.tanh %307 : vector<8x128xf32>
    %309 = arith.mulf %304, %308 : vector<8x128xf32>
    %c48_111 = arith.constant 48 : index
    %c0_112 = arith.constant 0 : index
    %310 = vector.load %arg7[%c48_111, %c0_112] : memref<128x128xf32, #tpu.memory_space<vmem>>, vector<8x128xf32>
    tpu.vector_store %arg7[%c48_111, %c0_112], %309 {strides = array<i32>} : memref<128x128xf32, #tpu.memory_space<vmem>>, vector<8x128xf32>,
    %c56 = arith.constant 56 : index
    %c0_113 = arith.constant 0 : index
    %311 = vector.load %arg6[%c56, %c0_113] : memref<128x512xf32, #tpu.memory_space<vmem>>, vector<8x512xf32>
    %312 = arith.truncf %309 : vector<8x128xf32> to vector<8x128xbf16>
    %cst_114 = arith.constant dense<0.000000e+00> : vector<8x512xf32>
    %313 = tpu.matmul %312, %56, %cst_114 {dimension_numbers = #tpu.dot_dimension_numbers<[1], [0], [0], [1], [0, 0, 1, 1], [], []>} : vector<8x128xbf16>, vector<128x512xbf16>, vector<8x512xf32> -> vector<8x512xf32>
    %314 = arith.addf %311, %313 : vector<8x512xf32>
    %315 = vector.extract_strided_slice %314 {offsets = [0, 0], sizes = [8, 128], strides = [1, 1]} : vector<8x512xf32> to vector<8x128xf32>
    %cst_115 = arith.constant 5.000000e-01 : f32
    %316 = vector.broadcast %cst_115 : f32 to vector<8x128xf32>
    %317 = arith.mulf %316, %315 : vector<8x128xf32>
    %318 = math.tanh %317 : vector<8x128xf32>
    %cst_116 = arith.constant 5.000000e-01 : f32
    %319 = vector.broadcast %cst_116 : f32 to vector<8x128xf32>
    %320 = arith.mulf %319, %318 : vector<8x128xf32>
    %cst_117 = arith.constant 5.000000e-01 : f32
    %321 = vector.broadcast %cst_117 : f32 to vector<8x128xf32>
    %322 = arith.addf %320, %321 : vector<8x128xf32>
    %323 = vector.extract_strided_slice %314 {offsets = [0, 128], sizes = [8, 128], strides = [1, 1]} : vector<8x512xf32> to vector<8x128xf32>
    %cst_118 = arith.constant 5.000000e-01 : f32
    %324 = vector.broadcast %cst_118 : f32 to vector<8x128xf32>
    %325 = arith.mulf %324, %323 : vector<8x128xf32>
    %326 = math.tanh %325 : vector<8x128xf32>
    %cst_119 = arith.constant 5.000000e-01 : f32
    %327 = vector.broadcast %cst_119 : f32 to vector<8x128xf32>
    %328 = arith.mulf %327, %326 : vector<8x128xf32>
    %cst_120 = arith.constant 5.000000e-01 : f32
    %329 = vector.broadcast %cst_120 : f32 to vector<8x128xf32>
    %330 = arith.addf %328, %329 : vector<8x128xf32>
    %331 = vector.extract_strided_slice %314 {offsets = [0, 256], sizes = [8, 128], strides = [1, 1]} : vector<8x512xf32> to vector<8x128xf32>
    %332 = math.tanh %331 : vector<8x128xf32>
    %333 = vector.extract_strided_slice %314 {offsets = [0, 384], sizes = [8, 128], strides = [1, 1]} : vector<8x512xf32> to vector<8x128xf32>
    %cst_121 = arith.constant 5.000000e-01 : f32
    %334 = vector.broadcast %cst_121 : f32 to vector<8x128xf32>
    %335 = arith.mulf %334, %333 : vector<8x128xf32>
    %336 = math.tanh %335 : vector<8x128xf32>
    %cst_122 = arith.constant 5.000000e-01 : f32
    %337 = vector.broadcast %cst_122 : f32 to vector<8x128xf32>
    %338 = arith.mulf %337, %336 : vector<8x128xf32>
    %cst_123 = arith.constant 5.000000e-01 : f32
    %339 = vector.broadcast %cst_123 : f32 to vector<8x128xf32>
    %340 = arith.addf %338, %339 : vector<8x128xf32>
    %341 = arith.mulf %330, %307 : vector<8x128xf32>
    %342 = arith.mulf %322, %332 : vector<8x128xf32>
    %343 = arith.addf %341, %342 : vector<8x128xf32>
    %344 = math.tanh %343 : vector<8x128xf32>
    %345 = arith.mulf %340, %344 : vector<8x128xf32>
    %c56_124 = arith.constant 56 : index
    %c0_125 = arith.constant 0 : index
    %346 = vector.load %arg7[%c56_124, %c0_125] : memref<128x128xf32, #tpu.memory_space<vmem>>, vector<8x128xf32>
    tpu.vector_store %arg7[%c56_124, %c0_125], %345 {strides = array<i32>} : memref<128x128xf32, #tpu.memory_space<vmem>>, vector<8x128xf32>,
    %c64_126 = arith.constant 64 : index
    %c0_127 = arith.constant 0 : index
    %347 = vector.load %arg6[%c64_126, %c0_127] : memref<128x512xf32, #tpu.memory_space<vmem>>, vector<8x512xf32>
    %348 = arith.truncf %345 : vector<8x128xf32> to vector<8x128xbf16>
    %cst_128 = arith.constant dense<0.000000e+00> : vector<8x512xf32>
    %349 = tpu.matmul %348, %56, %cst_128 {dimension_numbers = #tpu.dot_dimension_numbers<[1], [0], [0], [1], [0, 0, 1, 1], [], []>} : vector<8x128xbf16>, vector<128x512xbf16>, vector<8x512xf32> -> vector<8x512xf32>
    %350 = arith.addf %347, %349 : vector<8x512xf32>
    %351 = vector.extract_strided_slice %350 {offsets = [0, 0], sizes = [8, 128], strides = [1, 1]} : vector<8x512xf32> to vector<8x128xf32>
    %cst_129 = arith.constant 5.000000e-01 : f32
    %352 = vector.broadcast %cst_129 : f32 to vector<8x128xf32>
    %353 = arith.mulf %352, %351 : vector<8x128xf32>
    %354 = math.tanh %353 : vector<8x128xf32>
    %cst_130 = arith.constant 5.000000e-01 : f32
    %355 = vector.broadcast %cst_130 : f32 to vector<8x128xf32>
    %356 = arith.mulf %355, %354 : vector<8x128xf32>
    %cst_131 = arith.constant 5.000000e-01 : f32
    %357 = vector.broadcast %cst_131 : f32 to vector<8x128xf32>
    %358 = arith.addf %356, %357 : vector<8x128xf32>
    %359 = vector.extract_strided_slice %350 {offsets = [0, 128], sizes = [8, 128], strides = [1, 1]} : vector<8x512xf32> to vector<8x128xf32>
    %cst_132 = arith.constant 5.000000e-01 : f32
    %360 = vector.broadcast %cst_132 : f32 to vector<8x128xf32>
    %361 = arith.mulf %360, %359 : vector<8x128xf32>
    %362 = math.tanh %361 : vector<8x128xf32>
    %cst_133 = arith.constant 5.000000e-01 : f32
    %363 = vector.broadcast %cst_133 : f32 to vector<8x128xf32>
    %364 = arith.mulf %363, %362 : vector<8x128xf32>
    %cst_134 = arith.constant 5.000000e-01 : f32
    %365 = vector.broadcast %cst_134 : f32 to vector<8x128xf32>
    %366 = arith.addf %364, %365 : vector<8x128xf32>
    %367 = vector.extract_strided_slice %350 {offsets = [0, 256], sizes = [8, 128], strides = [1, 1]} : vector<8x512xf32> to vector<8x128xf32>
    %368 = math.tanh %367 : vector<8x128xf32>
    %369 = vector.extract_strided_slice %350 {offsets = [0, 384], sizes = [8, 128], strides = [1, 1]} : vector<8x512xf32> to vector<8x128xf32>
    %cst_135 = arith.constant 5.000000e-01 : f32
    %370 = vector.broadcast %cst_135 : f32 to vector<8x128xf32>
    %371 = arith.mulf %370, %369 : vector<8x128xf32>
    %372 = math.tanh %371 : vector<8x128xf32>
    %cst_136 = arith.constant 5.000000e-01 : f32
    %373 = vector.broadcast %cst_136 : f32 to vector<8x128xf32>
    %374 = arith.mulf %373, %372 : vector<8x128xf32>
    %cst_137 = arith.constant 5.000000e-01 : f32
    %375 = vector.broadcast %cst_137 : f32 to vector<8x128xf32>
    %376 = arith.addf %374, %375 : vector<8x128xf32>
    %377 = arith.mulf %366, %343 : vector<8x128xf32>
    %378 = arith.mulf %358, %368 : vector<8x128xf32>
    %379 = arith.addf %377, %378 : vector<8x128xf32>
    %380 = math.tanh %379 : vector<8x128xf32>
    %381 = arith.mulf %376, %380 : vector<8x128xf32>
    %c64_138 = arith.constant 64 : index
    %c0_139 = arith.constant 0 : index
    %382 = vector.load %arg7[%c64_138, %c0_139] : memref<128x128xf32, #tpu.memory_space<vmem>>, vector<8x128xf32>
    tpu.vector_store %arg7[%c64_138, %c0_139], %381 {strides = array<i32>} : memref<128x128xf32, #tpu.memory_space<vmem>>, vector<8x128xf32>,
    %c72 = arith.constant 72 : index
    %c0_140 = arith.constant 0 : index
    %383 = vector.load %arg6[%c72, %c0_140] : memref<128x512xf32, #tpu.memory_space<vmem>>, vector<8x512xf32>
    %384 = arith.truncf %381 : vector<8x128xf32> to vector<8x128xbf16>
    %cst_141 = arith.constant dense<0.000000e+00> : vector<8x512xf32>
    %385 = tpu.matmul %384, %56, %cst_141 {dimension_numbers = #tpu.dot_dimension_numbers<[1], [0], [0], [1], [0, 0, 1, 1], [], []>} : vector<8x128xbf16>, vector<128x512xbf16>, vector<8x512xf32> -> vector<8x512xf32>
    %386 = arith.addf %383, %385 : vector<8x512xf32>
    %387 = vector.extract_strided_slice %386 {offsets = [0, 0], sizes = [8, 128], strides = [1, 1]} : vector<8x512xf32> to vector<8x128xf32>
    %cst_142 = arith.constant 5.000000e-01 : f32
    %388 = vector.broadcast %cst_142 : f32 to vector<8x128xf32>
    %389 = arith.mulf %388, %387 : vector<8x128xf32>
    %390 = math.tanh %389 : vector<8x128xf32>
    %cst_143 = arith.constant 5.000000e-01 : f32
    %391 = vector.broadcast %cst_143 : f32 to vector<8x128xf32>
    %392 = arith.mulf %391, %390 : vector<8x128xf32>
    %cst_144 = arith.constant 5.000000e-01 : f32
    %393 = vector.broadcast %cst_144 : f32 to vector<8x128xf32>
    %394 = arith.addf %392, %393 : vector<8x128xf32>
    %395 = vector.extract_strided_slice %386 {offsets = [0, 128], sizes = [8, 128], strides = [1, 1]} : vector<8x512xf32> to vector<8x128xf32>
    %cst_145 = arith.constant 5.000000e-01 : f32
    %396 = vector.broadcast %cst_145 : f32 to vector<8x128xf32>
    %397 = arith.mulf %396, %395 : vector<8x128xf32>
    %398 = math.tanh %397 : vector<8x128xf32>
    %cst_146 = arith.constant 5.000000e-01 : f32
    %399 = vector.broadcast %cst_146 : f32 to vector<8x128xf32>
    %400 = arith.mulf %399, %398 : vector<8x128xf32>
    %cst_147 = arith.constant 5.000000e-01 : f32
    %401 = vector.broadcast %cst_147 : f32 to vector<8x128xf32>
    %402 = arith.addf %400, %401 : vector<8x128xf32>
    %403 = vector.extract_strided_slice %386 {offsets = [0, 256], sizes = [8, 128], strides = [1, 1]} : vector<8x512xf32> to vector<8x128xf32>
    %404 = math.tanh %403 : vector<8x128xf32>
    %405 = vector.extract_strided_slice %386 {offsets = [0, 384], sizes = [8, 128], strides = [1, 1]} : vector<8x512xf32> to vector<8x128xf32>
    %cst_148 = arith.constant 5.000000e-01 : f32
    %406 = vector.broadcast %cst_148 : f32 to vector<8x128xf32>
    %407 = arith.mulf %406, %405 : vector<8x128xf32>
    %408 = math.tanh %407 : vector<8x128xf32>
    %cst_149 = arith.constant 5.000000e-01 : f32
    %409 = vector.broadcast %cst_149 : f32 to vector<8x128xf32>
    %410 = arith.mulf %409, %408 : vector<8x128xf32>
    %cst_150 = arith.constant 5.000000e-01 : f32
    %411 = vector.broadcast %cst_150 : f32 to vector<8x128xf32>
    %412 = arith.addf %410, %411 : vector<8x128xf32>
    %413 = arith.mulf %402, %379 : vector<8x128xf32>
    %414 = arith.mulf %394, %404 : vector<8x128xf32>
    %415 = arith.addf %413, %414 : vector<8x128xf32>
    %416 = math.tanh %415 : vector<8x128xf32>
    %417 = arith.mulf %412, %416 : vector<8x128xf32>
    %c72_151 = arith.constant 72 : index
    %c0_152 = arith.constant 0 : index
    %418 = vector.load %arg7[%c72_151, %c0_152] : memref<128x128xf32, #tpu.memory_space<vmem>>, vector<8x128xf32>
    tpu.vector_store %arg7[%c72_151, %c0_152], %417 {strides = array<i32>} : memref<128x128xf32, #tpu.memory_space<vmem>>, vector<8x128xf32>,
    %c80 = arith.constant 80 : index
    %c0_153 = arith.constant 0 : index
    %419 = vector.load %arg6[%c80, %c0_153] : memref<128x512xf32, #tpu.memory_space<vmem>>, vector<8x512xf32>
    %420 = arith.truncf %417 : vector<8x128xf32> to vector<8x128xbf16>
    %cst_154 = arith.constant dense<0.000000e+00> : vector<8x512xf32>
    %421 = tpu.matmul %420, %56, %cst_154 {dimension_numbers = #tpu.dot_dimension_numbers<[1], [0], [0], [1], [0, 0, 1, 1], [], []>} : vector<8x128xbf16>, vector<128x512xbf16>, vector<8x512xf32> -> vector<8x512xf32>
    %422 = arith.addf %419, %421 : vector<8x512xf32>
    %423 = vector.extract_strided_slice %422 {offsets = [0, 0], sizes = [8, 128], strides = [1, 1]} : vector<8x512xf32> to vector<8x128xf32>
    %cst_155 = arith.constant 5.000000e-01 : f32
    %424 = vector.broadcast %cst_155 : f32 to vector<8x128xf32>
    %425 = arith.mulf %424, %423 : vector<8x128xf32>
    %426 = math.tanh %425 : vector<8x128xf32>
    %cst_156 = arith.constant 5.000000e-01 : f32
    %427 = vector.broadcast %cst_156 : f32 to vector<8x128xf32>
    %428 = arith.mulf %427, %426 : vector<8x128xf32>
    %cst_157 = arith.constant 5.000000e-01 : f32
    %429 = vector.broadcast %cst_157 : f32 to vector<8x128xf32>
    %430 = arith.addf %428, %429 : vector<8x128xf32>
    %431 = vector.extract_strided_slice %422 {offsets = [0, 128], sizes = [8, 128], strides = [1, 1]} : vector<8x512xf32> to vector<8x128xf32>
    %cst_158 = arith.constant 5.000000e-01 : f32
    %432 = vector.broadcast %cst_158 : f32 to vector<8x128xf32>
    %433 = arith.mulf %432, %431 : vector<8x128xf32>
    %434 = math.tanh %433 : vector<8x128xf32>
    %cst_159 = arith.constant 5.000000e-01 : f32
    %435 = vector.broadcast %cst_159 : f32 to vector<8x128xf32>
    %436 = arith.mulf %435, %434 : vector<8x128xf32>
    %cst_160 = arith.constant 5.000000e-01 : f32
    %437 = vector.broadcast %cst_160 : f32 to vector<8x128xf32>
    %438 = arith.addf %436, %437 : vector<8x128xf32>
    %439 = vector.extract_strided_slice %422 {offsets = [0, 256], sizes = [8, 128], strides = [1, 1]} : vector<8x512xf32> to vector<8x128xf32>
    %440 = math.tanh %439 : vector<8x128xf32>
    %441 = vector.extract_strided_slice %422 {offsets = [0, 384], sizes = [8, 128], strides = [1, 1]} : vector<8x512xf32> to vector<8x128xf32>
    %cst_161 = arith.constant 5.000000e-01 : f32
    %442 = vector.broadcast %cst_161 : f32 to vector<8x128xf32>
    %443 = arith.mulf %442, %441 : vector<8x128xf32>
    %444 = math.tanh %443 : vector<8x128xf32>
    %cst_162 = arith.constant 5.000000e-01 : f32
    %445 = vector.broadcast %cst_162 : f32 to vector<8x128xf32>
    %446 = arith.mulf %445, %444 : vector<8x128xf32>
    %cst_163 = arith.constant 5.000000e-01 : f32
    %447 = vector.broadcast %cst_163 : f32 to vector<8x128xf32>
    %448 = arith.addf %446, %447 : vector<8x128xf32>
    %449 = arith.mulf %438, %415 : vector<8x128xf32>
    %450 = arith.mulf %430, %440 : vector<8x128xf32>
    %451 = arith.addf %449, %450 : vector<8x128xf32>
    %452 = math.tanh %451 : vector<8x128xf32>
    %453 = arith.mulf %448, %452 : vector<8x128xf32>
    %c80_164 = arith.constant 80 : index
    %c0_165 = arith.constant 0 : index
    %454 = vector.load %arg7[%c80_164, %c0_165] : memref<128x128xf32, #tpu.memory_space<vmem>>, vector<8x128xf32>
    tpu.vector_store %arg7[%c80_164, %c0_165], %453 {strides = array<i32>} : memref<128x128xf32, #tpu.memory_space<vmem>>, vector<8x128xf32>,
    %c88 = arith.constant 88 : index
    %c0_166 = arith.constant 0 : index
    %455 = vector.load %arg6[%c88, %c0_166] : memref<128x512xf32, #tpu.memory_space<vmem>>, vector<8x512xf32>
    %456 = arith.truncf %453 : vector<8x128xf32> to vector<8x128xbf16>
    %cst_167 = arith.constant dense<0.000000e+00> : vector<8x512xf32>
    %457 = tpu.matmul %456, %56, %cst_167 {dimension_numbers = #tpu.dot_dimension_numbers<[1], [0], [0], [1], [0, 0, 1, 1], [], []>} : vector<8x128xbf16>, vector<128x512xbf16>, vector<8x512xf32> -> vector<8x512xf32>
    %458 = arith.addf %455, %457 : vector<8x512xf32>
    %459 = vector.extract_strided_slice %458 {offsets = [0, 0], sizes = [8, 128], strides = [1, 1]} : vector<8x512xf32> to vector<8x128xf32>
    %cst_168 = arith.constant 5.000000e-01 : f32
    %460 = vector.broadcast %cst_168 : f32 to vector<8x128xf32>
    %461 = arith.mulf %460, %459 : vector<8x128xf32>
    %462 = math.tanh %461 : vector<8x128xf32>
    %cst_169 = arith.constant 5.000000e-01 : f32
    %463 = vector.broadcast %cst_169 : f32 to vector<8x128xf32>
    %464 = arith.mulf %463, %462 : vector<8x128xf32>
    %cst_170 = arith.constant 5.000000e-01 : f32
    %465 = vector.broadcast %cst_170 : f32 to vector<8x128xf32>
    %466 = arith.addf %464, %465 : vector<8x128xf32>
    %467 = vector.extract_strided_slice %458 {offsets = [0, 128], sizes = [8, 128], strides = [1, 1]} : vector<8x512xf32> to vector<8x128xf32>
    %cst_171 = arith.constant 5.000000e-01 : f32
    %468 = vector.broadcast %cst_171 : f32 to vector<8x128xf32>
    %469 = arith.mulf %468, %467 : vector<8x128xf32>
    %470 = math.tanh %469 : vector<8x128xf32>
    %cst_172 = arith.constant 5.000000e-01 : f32
    %471 = vector.broadcast %cst_172 : f32 to vector<8x128xf32>
    %472 = arith.mulf %471, %470 : vector<8x128xf32>
    %cst_173 = arith.constant 5.000000e-01 : f32
    %473 = vector.broadcast %cst_173 : f32 to vector<8x128xf32>
    %474 = arith.addf %472, %473 : vector<8x128xf32>
    %475 = vector.extract_strided_slice %458 {offsets = [0, 256], sizes = [8, 128], strides = [1, 1]} : vector<8x512xf32> to vector<8x128xf32>
    %476 = math.tanh %475 : vector<8x128xf32>
    %477 = vector.extract_strided_slice %458 {offsets = [0, 384], sizes = [8, 128], strides = [1, 1]} : vector<8x512xf32> to vector<8x128xf32>
    %cst_174 = arith.constant 5.000000e-01 : f32
    %478 = vector.broadcast %cst_174 : f32 to vector<8x128xf32>
    %479 = arith.mulf %478, %477 : vector<8x128xf32>
    %480 = math.tanh %479 : vector<8x128xf32>
    %cst_175 = arith.constant 5.000000e-01 : f32
    %481 = vector.broadcast %cst_175 : f32 to vector<8x128xf32>
    %482 = arith.mulf %481, %480 : vector<8x128xf32>
    %cst_176 = arith.constant 5.000000e-01 : f32
    %483 = vector.broadcast %cst_176 : f32 to vector<8x128xf32>
    %484 = arith.addf %482, %483 : vector<8x128xf32>
    %485 = arith.mulf %474, %451 : vector<8x128xf32>
    %486 = arith.mulf %466, %476 : vector<8x128xf32>
    %487 = arith.addf %485, %486 : vector<8x128xf32>
    %488 = math.tanh %487 : vector<8x128xf32>
    %489 = arith.mulf %484, %488 : vector<8x128xf32>
    %c88_177 = arith.constant 88 : index
    %c0_178 = arith.constant 0 : index
    %490 = vector.load %arg7[%c88_177, %c0_178] : memref<128x128xf32, #tpu.memory_space<vmem>>, vector<8x128xf32>
    tpu.vector_store %arg7[%c88_177, %c0_178], %489 {strides = array<i32>} : memref<128x128xf32, #tpu.memory_space<vmem>>, vector<8x128xf32>,
    %c96_179 = arith.constant 96 : index
    %c0_180 = arith.constant 0 : index
    %491 = vector.load %arg6[%c96_179, %c0_180] : memref<128x512xf32, #tpu.memory_space<vmem>>, vector<8x512xf32>
    %492 = arith.truncf %489 : vector<8x128xf32> to vector<8x128xbf16>
    %cst_181 = arith.constant dense<0.000000e+00> : vector<8x512xf32>
    %493 = tpu.matmul %492, %56, %cst_181 {dimension_numbers = #tpu.dot_dimension_numbers<[1], [0], [0], [1], [0, 0, 1, 1], [], []>} : vector<8x128xbf16>, vector<128x512xbf16>, vector<8x512xf32> -> vector<8x512xf32>
    %494 = arith.addf %491, %493 : vector<8x512xf32>
    %495 = vector.extract_strided_slice %494 {offsets = [0, 0], sizes = [8, 128], strides = [1, 1]} : vector<8x512xf32> to vector<8x128xf32>
    %cst_182 = arith.constant 5.000000e-01 : f32
    %496 = vector.broadcast %cst_182 : f32 to vector<8x128xf32>
    %497 = arith.mulf %496, %495 : vector<8x128xf32>
    %498 = math.tanh %497 : vector<8x128xf32>
    %cst_183 = arith.constant 5.000000e-01 : f32
    %499 = vector.broadcast %cst_183 : f32 to vector<8x128xf32>
    %500 = arith.mulf %499, %498 : vector<8x128xf32>
    %cst_184 = arith.constant 5.000000e-01 : f32
    %501 = vector.broadcast %cst_184 : f32 to vector<8x128xf32>
    %502 = arith.addf %500, %501 : vector<8x128xf32>
    %503 = vector.extract_strided_slice %494 {offsets = [0, 128], sizes = [8, 128], strides = [1, 1]} : vector<8x512xf32> to vector<8x128xf32>
    %cst_185 = arith.constant 5.000000e-01 : f32
    %504 = vector.broadcast %cst_185 : f32 to vector<8x128xf32>
    %505 = arith.mulf %504, %503 : vector<8x128xf32>
    %506 = math.tanh %505 : vector<8x128xf32>
    %cst_186 = arith.constant 5.000000e-01 : f32
    %507 = vector.broadcast %cst_186 : f32 to vector<8x128xf32>
    %508 = arith.mulf %507, %506 : vector<8x128xf32>
    %cst_187 = arith.constant 5.000000e-01 : f32
    %509 = vector.broadcast %cst_187 : f32 to vector<8x128xf32>
    %510 = arith.addf %508, %509 : vector<8x128xf32>
    %511 = vector.extract_strided_slice %494 {offsets = [0, 256], sizes = [8, 128], strides = [1, 1]} : vector<8x512xf32> to vector<8x128xf32>
    %512 = math.tanh %511 : vector<8x128xf32>
    %513 = vector.extract_strided_slice %494 {offsets = [0, 384], sizes = [8, 128], strides = [1, 1]} : vector<8x512xf32> to vector<8x128xf32>
    %cst_188 = arith.constant 5.000000e-01 : f32
    %514 = vector.broadcast %cst_188 : f32 to vector<8x128xf32>
    %515 = arith.mulf %514, %513 : vector<8x128xf32>
    %516 = math.tanh %515 : vector<8x128xf32>
    %cst_189 = arith.constant 5.000000e-01 : f32
    %517 = vector.broadcast %cst_189 : f32 to vector<8x128xf32>
    %518 = arith.mulf %517, %516 : vector<8x128xf32>
    %cst_190 = arith.constant 5.000000e-01 : f32
    %519 = vector.broadcast %cst_190 : f32 to vector<8x128xf32>
    %520 = arith.addf %518, %519 : vector<8x128xf32>
    %521 = arith.mulf %510, %487 : vector<8x128xf32>
    %522 = arith.mulf %502, %512 : vector<8x128xf32>
    %523 = arith.addf %521, %522 : vector<8x128xf32>
    %524 = math.tanh %523 : vector<8x128xf32>
    %525 = arith.mulf %520, %524 : vector<8x128xf32>
    %c96_191 = arith.constant 96 : index
    %c0_192 = arith.constant 0 : index
    %526 = vector.load %arg7[%c96_191, %c0_192] : memref<128x128xf32, #tpu.memory_space<vmem>>, vector<8x128xf32>
    tpu.vector_store %arg7[%c96_191, %c0_192], %525 {strides = array<i32>} : memref<128x128xf32, #tpu.memory_space<vmem>>, vector<8x128xf32>,
    %c104 = arith.constant 104 : index
    %c0_193 = arith.constant 0 : index
    %527 = vector.load %arg6[%c104, %c0_193] : memref<128x512xf32, #tpu.memory_space<vmem>>, vector<8x512xf32>
    %528 = arith.truncf %525 : vector<8x128xf32> to vector<8x128xbf16>
    %cst_194 = arith.constant dense<0.000000e+00> : vector<8x512xf32>
    %529 = tpu.matmul %528, %56, %cst_194 {dimension_numbers = #tpu.dot_dimension_numbers<[1], [0], [0], [1], [0, 0, 1, 1], [], []>} : vector<8x128xbf16>, vector<128x512xbf16>, vector<8x512xf32> -> vector<8x512xf32>
    %530 = arith.addf %527, %529 : vector<8x512xf32>
    %531 = vector.extract_strided_slice %530 {offsets = [0, 0], sizes = [8, 128], strides = [1, 1]} : vector<8x512xf32> to vector<8x128xf32>
    %cst_195 = arith.constant 5.000000e-01 : f32
    %532 = vector.broadcast %cst_195 : f32 to vector<8x128xf32>
    %533 = arith.mulf %532, %531 : vector<8x128xf32>
    %534 = math.tanh %533 : vector<8x128xf32>
    %cst_196 = arith.constant 5.000000e-01 : f32
    %535 = vector.broadcast %cst_196 : f32 to vector<8x128xf32>
    %536 = arith.mulf %535, %534 : vector<8x128xf32>
    %cst_197 = arith.constant 5.000000e-01 : f32
    %537 = vector.broadcast %cst_197 : f32 to vector<8x128xf32>
    %538 = arith.addf %536, %537 : vector<8x128xf32>
    %539 = vector.extract_strided_slice %530 {offsets = [0, 128], sizes = [8, 128], strides = [1, 1]} : vector<8x512xf32> to vector<8x128xf32>
    %cst_198 = arith.constant 5.000000e-01 : f32
    %540 = vector.broadcast %cst_198 : f32 to vector<8x128xf32>
    %541 = arith.mulf %540, %539 : vector<8x128xf32>
    %542 = math.tanh %541 : vector<8x128xf32>
    %cst_199 = arith.constant 5.000000e-01 : f32
    %543 = vector.broadcast %cst_199 : f32 to vector<8x128xf32>
    %544 = arith.mulf %543, %542 : vector<8x128xf32>
    %cst_200 = arith.constant 5.000000e-01 : f32
    %545 = vector.broadcast %cst_200 : f32 to vector<8x128xf32>
    %546 = arith.addf %544, %545 : vector<8x128xf32>
    %547 = vector.extract_strided_slice %530 {offsets = [0, 256], sizes = [8, 128], strides = [1, 1]} : vector<8x512xf32> to vector<8x128xf32>
    %548 = math.tanh %547 : vector<8x128xf32>
    %549 = vector.extract_strided_slice %530 {offsets = [0, 384], sizes = [8, 128], strides = [1, 1]} : vector<8x512xf32> to vector<8x128xf32>
    %cst_201 = arith.constant 5.000000e-01 : f32
    %550 = vector.broadcast %cst_201 : f32 to vector<8x128xf32>
    %551 = arith.mulf %550, %549 : vector<8x128xf32>
    %552 = math.tanh %551 : vector<8x128xf32>
    %cst_202 = arith.constant 5.000000e-01 : f32
    %553 = vector.broadcast %cst_202 : f32 to vector<8x128xf32>
    %554 = arith.mulf %553, %552 : vector<8x128xf32>
    %cst_203 = arith.constant 5.000000e-01 : f32
    %555 = vector.broadcast %cst_203 : f32 to vector<8x128xf32>
    %556 = arith.addf %554, %555 : vector<8x128xf32>
    %557 = arith.mulf %546, %523 : vector<8x128xf32>
    %558 = arith.mulf %538, %548 : vector<8x128xf32>
    %559 = arith.addf %557, %558 : vector<8x128xf32>
    %560 = math.tanh %559 : vector<8x128xf32>
    %561 = arith.mulf %556, %560 : vector<8x128xf32>
    %c104_204 = arith.constant 104 : index
    %c0_205 = arith.constant 0 : index
    %562 = vector.load %arg7[%c104_204, %c0_205] : memref<128x128xf32, #tpu.memory_space<vmem>>, vector<8x128xf32>
    tpu.vector_store %arg7[%c104_204, %c0_205], %561 {strides = array<i32>} : memref<128x128xf32, #tpu.memory_space<vmem>>, vector<8x128xf32>,
    %c112 = arith.constant 112 : index
    %c0_206 = arith.constant 0 : index
    %563 = vector.load %arg6[%c112, %c0_206] : memref<128x512xf32, #tpu.memory_space<vmem>>, vector<8x512xf32>
    %564 = arith.truncf %561 : vector<8x128xf32> to vector<8x128xbf16>
    %cst_207 = arith.constant dense<0.000000e+00> : vector<8x512xf32>
    %565 = tpu.matmul %564, %56, %cst_207 {dimension_numbers = #tpu.dot_dimension_numbers<[1], [0], [0], [1], [0, 0, 1, 1], [], []>} : vector<8x128xbf16>, vector<128x512xbf16>, vector<8x512xf32> -> vector<8x512xf32>
    %566 = arith.addf %563, %565 : vector<8x512xf32>
    %567 = vector.extract_strided_slice %566 {offsets = [0, 0], sizes = [8, 128], strides = [1, 1]} : vector<8x512xf32> to vector<8x128xf32>
    %cst_208 = arith.constant 5.000000e-01 : f32
    %568 = vector.broadcast %cst_208 : f32 to vector<8x128xf32>
    %569 = arith.mulf %568, %567 : vector<8x128xf32>
    %570 = math.tanh %569 : vector<8x128xf32>
    %cst_209 = arith.constant 5.000000e-01 : f32
    %571 = vector.broadcast %cst_209 : f32 to vector<8x128xf32>
    %572 = arith.mulf %571, %570 : vector<8x128xf32>
    %cst_210 = arith.constant 5.000000e-01 : f32
    %573 = vector.broadcast %cst_210 : f32 to vector<8x128xf32>
    %574 = arith.addf %572, %573 : vector<8x128xf32>
    %575 = vector.extract_strided_slice %566 {offsets = [0, 128], sizes = [8, 128], strides = [1, 1]} : vector<8x512xf32> to vector<8x128xf32>
    %cst_211 = arith.constant 5.000000e-01 : f32
    %576 = vector.broadcast %cst_211 : f32 to vector<8x128xf32>
    %577 = arith.mulf %576, %575 : vector<8x128xf32>
    %578 = math.tanh %577 : vector<8x128xf32>
    %cst_212 = arith.constant 5.000000e-01 : f32
    %579 = vector.broadcast %cst_212 : f32 to vector<8x128xf32>
    %580 = arith.mulf %579, %578 : vector<8x128xf32>
    %cst_213 = arith.constant 5.000000e-01 : f32
    %581 = vector.broadcast %cst_213 : f32 to vector<8x128xf32>
    %582 = arith.addf %580, %581 : vector<8x128xf32>
    %583 = vector.extract_strided_slice %566 {offsets = [0, 256], sizes = [8, 128], strides = [1, 1]} : vector<8x512xf32> to vector<8x128xf32>
    %584 = math.tanh %583 : vector<8x128xf32>
    %585 = vector.extract_strided_slice %566 {offsets = [0, 384], sizes = [8, 128], strides = [1, 1]} : vector<8x512xf32> to vector<8x128xf32>
    %cst_214 = arith.constant 5.000000e-01 : f32
    %586 = vector.broadcast %cst_214 : f32 to vector<8x128xf32>
    %587 = arith.mulf %586, %585 : vector<8x128xf32>
    %588 = math.tanh %587 : vector<8x128xf32>
    %cst_215 = arith.constant 5.000000e-01 : f32
    %589 = vector.broadcast %cst_215 : f32 to vector<8x128xf32>
    %590 = arith.mulf %589, %588 : vector<8x128xf32>
    %cst_216 = arith.constant 5.000000e-01 : f32
    %591 = vector.broadcast %cst_216 : f32 to vector<8x128xf32>
    %592 = arith.addf %590, %591 : vector<8x128xf32>
    %593 = arith.mulf %582, %559 : vector<8x128xf32>
    %594 = arith.mulf %574, %584 : vector<8x128xf32>
    %595 = arith.addf %593, %594 : vector<8x128xf32>
    %596 = math.tanh %595 : vector<8x128xf32>
    %597 = arith.mulf %592, %596 : vector<8x128xf32>
    %c112_217 = arith.constant 112 : index
    %c0_218 = arith.constant 0 : index
    %598 = vector.load %arg7[%c112_217, %c0_218] : memref<128x128xf32, #tpu.memory_space<vmem>>, vector<8x128xf32>
    tpu.vector_store %arg7[%c112_217, %c0_218], %597 {strides = array<i32>} : memref<128x128xf32, #tpu.memory_space<vmem>>, vector<8x128xf32>,
    %c120 = arith.constant 120 : index
    %c0_219 = arith.constant 0 : index
    %599 = vector.load %arg6[%c120, %c0_219] : memref<128x512xf32, #tpu.memory_space<vmem>>, vector<8x512xf32>
    %600 = arith.truncf %597 : vector<8x128xf32> to vector<8x128xbf16>
    %cst_220 = arith.constant dense<0.000000e+00> : vector<8x512xf32>
    %601 = tpu.matmul %600, %56, %cst_220 {dimension_numbers = #tpu.dot_dimension_numbers<[1], [0], [0], [1], [0, 0, 1, 1], [], []>} : vector<8x128xbf16>, vector<128x512xbf16>, vector<8x512xf32> -> vector<8x512xf32>
    %602 = arith.addf %599, %601 : vector<8x512xf32>
    %603 = vector.extract_strided_slice %602 {offsets = [0, 0], sizes = [8, 128], strides = [1, 1]} : vector<8x512xf32> to vector<8x128xf32>
    %cst_221 = arith.constant 5.000000e-01 : f32
    %604 = vector.broadcast %cst_221 : f32 to vector<8x128xf32>
    %605 = arith.mulf %604, %603 : vector<8x128xf32>
    %606 = math.tanh %605 : vector<8x128xf32>
    %cst_222 = arith.constant 5.000000e-01 : f32
    %607 = vector.broadcast %cst_222 : f32 to vector<8x128xf32>
    %608 = arith.mulf %607, %606 : vector<8x128xf32>
    %cst_223 = arith.constant 5.000000e-01 : f32
    %609 = vector.broadcast %cst_223 : f32 to vector<8x128xf32>
    %610 = arith.addf %608, %609 : vector<8x128xf32>
    %611 = vector.extract_strided_slice %602 {offsets = [0, 128], sizes = [8, 128], strides = [1, 1]} : vector<8x512xf32> to vector<8x128xf32>
    %cst_224 = arith.constant 5.000000e-01 : f32
    %612 = vector.broadcast %cst_224 : f32 to vector<8x128xf32>
    %613 = arith.mulf %612, %611 : vector<8x128xf32>
    %614 = math.tanh %613 : vector<8x128xf32>
    %cst_225 = arith.constant 5.000000e-01 : f32
    %615 = vector.broadcast %cst_225 : f32 to vector<8x128xf32>
    %616 = arith.mulf %615, %614 : vector<8x128xf32>
    %cst_226 = arith.constant 5.000000e-01 : f32
    %617 = vector.broadcast %cst_226 : f32 to vector<8x128xf32>
    %618 = arith.addf %616, %617 : vector<8x128xf32>
    %619 = vector.extract_strided_slice %602 {offsets = [0, 256], sizes = [8, 128], strides = [1, 1]} : vector<8x512xf32> to vector<8x128xf32>
    %620 = math.tanh %619 : vector<8x128xf32>
    %621 = vector.extract_strided_slice %602 {offsets = [0, 384], sizes = [8, 128], strides = [1, 1]} : vector<8x512xf32> to vector<8x128xf32>
    %cst_227 = arith.constant 5.000000e-01 : f32
    %622 = vector.broadcast %cst_227 : f32 to vector<8x128xf32>
    %623 = arith.mulf %622, %621 : vector<8x128xf32>
    %624 = math.tanh %623 : vector<8x128xf32>
    %cst_228 = arith.constant 5.000000e-01 : f32
    %625 = vector.broadcast %cst_228 : f32 to vector<8x128xf32>
    %626 = arith.mulf %625, %624 : vector<8x128xf32>
    %cst_229 = arith.constant 5.000000e-01 : f32
    %627 = vector.broadcast %cst_229 : f32 to vector<8x128xf32>
    %628 = arith.addf %626, %627 : vector<8x128xf32>
    %629 = arith.mulf %618, %595 : vector<8x128xf32>
    %630 = arith.mulf %610, %620 : vector<8x128xf32>
    %631 = arith.addf %629, %630 : vector<8x128xf32>
    %632 = math.tanh %631 : vector<8x128xf32>
    %633 = arith.mulf %628, %632 : vector<8x128xf32>
    %c120_230 = arith.constant 120 : index
    %c0_231 = arith.constant 0 : index
    %634 = vector.load %arg7[%c120_230, %c0_231] : memref<128x128xf32, #tpu.memory_space<vmem>>, vector<8x128xf32>
    tpu.vector_store %arg7[%c120_230, %c0_231], %633 {strides = array<i32>} : memref<128x128xf32, #tpu.memory_space<vmem>>, vector<8x128xf32>,
    %c2 = arith.constant 2 : index
    %c0_232 = arith.constant 0 : index
    %635 = vector.load %arg1[%c2, %c0_232] : memref<4x1024xf32, #tpu.memory_space<vmem>>, vector<1x1024xf32>
    %c0_233 = arith.constant 0 : index
    %c0_234 = arith.constant 0 : index
    %636 = vector.load %arg3[%c0_233, %c0_234] : memref<128x1024xbf16, #tpu.memory_space<vmem>>, vector<128x1024xbf16>
    %c0_235 = arith.constant 0 : index
    %c0_236 = arith.constant 0 : index
    %637 = vector.load %arg7[%c0_235, %c0_236] : memref<128x128xf32, #tpu.memory_space<vmem>>, vector<32x128xf32>
    %638 = arith.truncf %637 : vector<32x128xf32> to vector<32x128xbf16>
    %cst_237 = arith.constant dense<0.000000e+00> : vector<32x1024xf32>
    %639 = tpu.matmul %638, %636, %cst_237 {dimension_numbers = #tpu.dot_dimension_numbers<[1], [0], [0], [1], [0, 0, 1, 1], [], []>} : vector<32x128xbf16>, vector<128x1024xbf16>, vector<32x1024xf32> -> vector<32x1024xf32>
    %640 = vector.broadcast %635 : vector<1x1024xf32> to vector<32x1024xf32>
    %641 = arith.addf %639, %640 : vector<32x1024xf32>
    %c0_238 = arith.constant 0 : index
    %c0_239 = arith.constant 0 : index
    %642 = vector.load %arg8[%c0_238, %c0_239] : memref<128x1024xf32, #tpu.memory_space<vmem>>, vector<32x1024xf32>
    tpu.vector_store %arg8[%c0_238, %c0_239], %641 {strides = array<i32>} : memref<128x1024xf32, #tpu.memory_space<vmem>>, vector<32x1024xf32>,
    %c32_240 = arith.constant 32 : index
    %c0_241 = arith.constant 0 : index
    %643 = vector.load %arg7[%c32_240, %c0_241] : memref<128x128xf32, #tpu.memory_space<vmem>>, vector<32x128xf32>
    %644 = arith.truncf %643 : vector<32x128xf32> to vector<32x128xbf16>
    %cst_242 = arith.constant dense<0.000000e+00> : vector<32x1024xf32>
    %645 = tpu.matmul %644, %636, %cst_242 {dimension_numbers = #tpu.dot_dimension_numbers<[1], [0], [0], [1], [0, 0, 1, 1], [], []>} : vector<32x128xbf16>, vector<128x1024xbf16>, vector<32x1024xf32> -> vector<32x1024xf32>
    %646 = vector.broadcast %635 : vector<1x1024xf32> to vector<32x1024xf32>
    %647 = arith.addf %645, %646 : vector<32x1024xf32>
    %c32_243 = arith.constant 32 : index
    %c0_244 = arith.constant 0 : index
    %648 = vector.load %arg8[%c32_243, %c0_244] : memref<128x1024xf32, #tpu.memory_space<vmem>>, vector<32x1024xf32>
    tpu.vector_store %arg8[%c32_243, %c0_244], %647 {strides = array<i32>} : memref<128x1024xf32, #tpu.memory_space<vmem>>, vector<32x1024xf32>,
    %c64_245 = arith.constant 64 : index
    %c0_246 = arith.constant 0 : index
    %649 = vector.load %arg7[%c64_245, %c0_246] : memref<128x128xf32, #tpu.memory_space<vmem>>, vector<32x128xf32>
    %650 = arith.truncf %649 : vector<32x128xf32> to vector<32x128xbf16>
    %cst_247 = arith.constant dense<0.000000e+00> : vector<32x1024xf32>
    %651 = tpu.matmul %650, %636, %cst_247 {dimension_numbers = #tpu.dot_dimension_numbers<[1], [0], [0], [1], [0, 0, 1, 1], [], []>} : vector<32x128xbf16>, vector<128x1024xbf16>, vector<32x1024xf32> -> vector<32x1024xf32>
    %652 = vector.broadcast %635 : vector<1x1024xf32> to vector<32x1024xf32>
    %653 = arith.addf %651, %652 : vector<32x1024xf32>
    %c64_248 = arith.constant 64 : index
    %c0_249 = arith.constant 0 : index
    %654 = vector.load %arg8[%c64_248, %c0_249] : memref<128x1024xf32, #tpu.memory_space<vmem>>, vector<32x1024xf32>
    tpu.vector_store %arg8[%c64_248, %c0_249], %653 {strides = array<i32>} : memref<128x1024xf32, #tpu.memory_space<vmem>>, vector<32x1024xf32>,
    %c96_250 = arith.constant 96 : index
    %c0_251 = arith.constant 0 : index
    %655 = vector.load %arg7[%c96_250, %c0_251] : memref<128x128xf32, #tpu.memory_space<vmem>>, vector<32x128xf32>
    %656 = arith.truncf %655 : vector<32x128xf32> to vector<32x128xbf16>
    %cst_252 = arith.constant dense<0.000000e+00> : vector<32x1024xf32>
    %657 = tpu.matmul %656, %636, %cst_252 {dimension_numbers = #tpu.dot_dimension_numbers<[1], [0], [0], [1], [0, 0, 1, 1], [], []>} : vector<32x128xbf16>, vector<128x1024xbf16>, vector<32x1024xf32> -> vector<32x1024xf32>
    %658 = vector.broadcast %635 : vector<1x1024xf32> to vector<32x1024xf32>
    %659 = arith.addf %657, %658 : vector<32x1024xf32>
    %c96_253 = arith.constant 96 : index
    %c0_254 = arith.constant 0 : index
    %660 = vector.load %arg8[%c96_253, %c0_254] : memref<128x1024xf32, #tpu.memory_space<vmem>>, vector<32x1024xf32>
    tpu.vector_store %arg8[%c96_253, %c0_254], %659 {strides = array<i32>} : memref<128x1024xf32, #tpu.memory_space<vmem>>, vector<32x1024xf32>,
    %c1_255 = arith.constant 1 : index
    %c0_256 = arith.constant 0 : index
    %c0_257 = arith.constant 0 : index
    %661 = vector.load %arg2[%c1_255, %c0_256, %c0_257] : memref<2x128x512xbf16, #tpu.memory_space<vmem>>, vector<1x128x512xbf16>
    %662 = vector.shape_cast %661 : vector<1x128x512xbf16> to vector<128x512xbf16>
    %cst_258 = arith.constant 0.000000e+00 : f32
    %663 = vector.broadcast %cst_258 : f32 to vector<8x128xf32>
    %cst_259 = arith.constant 0.000000e+00 : f32
    %664 = vector.broadcast %cst_259 : f32 to vector<8x128xf32>
    %c0_260 = arith.constant 0 : index
    %c0_261 = arith.constant 0 : index
    %665 = vector.load %arg8[%c0_260, %c0_261] : memref<128x1024xf32, #tpu.memory_space<vmem>>, vector<8x512xf32>
    %c120_262 = arith.constant 120 : index
    %c512_263 = arith.constant 512 : index
    %666 = vector.load %arg8[%c120_262, %c512_263] : memref<128x1024xf32, #tpu.memory_space<vmem>>, vector<8x512xf32>
    %667 = arith.addf %665, %666 : vector<8x512xf32>
    %668 = arith.truncf %663 : vector<8x128xf32> to vector<8x128xbf16>
    %cst_264 = arith.constant dense<0.000000e+00> : vector<8x512xf32>
    %669 = tpu.matmul %668, %662, %cst_264 {dimension_numbers = #tpu.dot_dimension_numbers<[1], [0], [0], [1], [0, 0, 1, 1], [], []>} : vector<8x128xbf16>, vector<128x512xbf16>, vector<8x512xf32> -> vector<8x512xf32>
    %670 = arith.addf %667, %669 : vector<8x512xf32>
    %671 = vector.extract_strided_slice %670 {offsets = [0, 0], sizes = [8, 128], strides = [1, 1]} : vector<8x512xf32> to vector<8x128xf32>
    %cst_265 = arith.constant 5.000000e-01 : f32
    %672 = vector.broadcast %cst_265 : f32 to vector<8x128xf32>
    %673 = arith.mulf %672, %671 : vector<8x128xf32>
    %674 = math.tanh %673 : vector<8x128xf32>
    %cst_266 = arith.constant 5.000000e-01 : f32
    %675 = vector.broadcast %cst_266 : f32 to vector<8x128xf32>
    %676 = arith.mulf %675, %674 : vector<8x128xf32>
    %cst_267 = arith.constant 5.000000e-01 : f32
    %677 = vector.broadcast %cst_267 : f32 to vector<8x128xf32>
    %678 = arith.addf %676, %677 : vector<8x128xf32>
    %679 = vector.extract_strided_slice %670 {offsets = [0, 128], sizes = [8, 128], strides = [1, 1]} : vector<8x512xf32> to vector<8x128xf32>
    %cst_268 = arith.constant 5.000000e-01 : f32
    %680 = vector.broadcast %cst_268 : f32 to vector<8x128xf32>
    %681 = arith.mulf %680, %679 : vector<8x128xf32>
    %682 = math.tanh %681 : vector<8x128xf32>
    %cst_269 = arith.constant 5.000000e-01 : f32
    %683 = vector.broadcast %cst_269 : f32 to vector<8x128xf32>
    %684 = arith.mulf %683, %682 : vector<8x128xf32>
    %cst_270 = arith.constant 5.000000e-01 : f32
    %685 = vector.broadcast %cst_270 : f32 to vector<8x128xf32>
    %686 = arith.addf %684, %685 : vector<8x128xf32>
    %687 = vector.extract_strided_slice %670 {offsets = [0, 256], sizes = [8, 128], strides = [1, 1]} : vector<8x512xf32> to vector<8x128xf32>
    %688 = math.tanh %687 : vector<8x128xf32>
    %689 = vector.extract_strided_slice %670 {offsets = [0, 384], sizes = [8, 128], strides = [1, 1]} : vector<8x512xf32> to vector<8x128xf32>
    %cst_271 = arith.constant 5.000000e-01 : f32
    %690 = vector.broadcast %cst_271 : f32 to vector<8x128xf32>
    %691 = arith.mulf %690, %689 : vector<8x128xf32>
    %692 = math.tanh %691 : vector<8x128xf32>
    %cst_272 = arith.constant 5.000000e-01 : f32
    %693 = vector.broadcast %cst_272 : f32 to vector<8x128xf32>
    %694 = arith.mulf %693, %692 : vector<8x128xf32>
    %cst_273 = arith.constant 5.000000e-01 : f32
    %695 = vector.broadcast %cst_273 : f32 to vector<8x128xf32>
    %696 = arith.addf %694, %695 : vector<8x128xf32>
    %697 = arith.mulf %686, %664 : vector<8x128xf32>
    %698 = arith.mulf %678, %688 : vector<8x128xf32>
    %699 = arith.addf %697, %698 : vector<8x128xf32>
    %700 = math.tanh %699 : vector<8x128xf32>
    %701 = arith.mulf %696, %700 : vector<8x128xf32>
    %702 = vector.extract_strided_slice %701 {offsets = [0, 64], sizes = [8, 64], strides = [1, 1]} : vector<8x128xf32> to vector<8x64xf32>
    %c8_274 = arith.constant 8 : index
    %c0_275 = arith.constant 0 : index
    %703 = vector.load %arg8[%c8_274, %c0_275] : memref<128x1024xf32, #tpu.memory_space<vmem>>, vector<8x512xf32>
    %c112_276 = arith.constant 112 : index
    %c512_277 = arith.constant 512 : index
    %704 = vector.load %arg8[%c112_276, %c512_277] : memref<128x1024xf32, #tpu.memory_space<vmem>>, vector<8x512xf32>
    %705 = arith.addf %703, %704 : vector<8x512xf32>
    %706 = arith.truncf %701 : vector<8x128xf32> to vector<8x128xbf16>
    %cst_278 = arith.constant dense<0.000000e+00> : vector<8x512xf32>
    %707 = tpu.matmul %706, %662, %cst_278 {dimension_numbers = #tpu.dot_dimension_numbers<[1], [0], [0], [1], [0, 0, 1, 1], [], []>} : vector<8x128xbf16>, vector<128x512xbf16>, vector<8x512xf32> -> vector<8x512xf32>
    %708 = arith.addf %705, %707 : vector<8x512xf32>
    %709 = vector.extract_strided_slice %708 {offsets = [0, 0], sizes = [8, 128], strides = [1, 1]} : vector<8x512xf32> to vector<8x128xf32>
    %cst_279 = arith.constant 5.000000e-01 : f32
    %710 = vector.broadcast %cst_279 : f32 to vector<8x128xf32>
    %711 = arith.mulf %710, %709 : vector<8x128xf32>
    %712 = math.tanh %711 : vector<8x128xf32>
    %cst_280 = arith.constant 5.000000e-01 : f32
    %713 = vector.broadcast %cst_280 : f32 to vector<8x128xf32>
    %714 = arith.mulf %713, %712 : vector<8x128xf32>
    %cst_281 = arith.constant 5.000000e-01 : f32
    %715 = vector.broadcast %cst_281 : f32 to vector<8x128xf32>
    %716 = arith.addf %714, %715 : vector<8x128xf32>
    %717 = vector.extract_strided_slice %708 {offsets = [0, 128], sizes = [8, 128], strides = [1, 1]} : vector<8x512xf32> to vector<8x128xf32>
    %cst_282 = arith.constant 5.000000e-01 : f32
    %718 = vector.broadcast %cst_282 : f32 to vector<8x128xf32>
    %719 = arith.mulf %718, %717 : vector<8x128xf32>
    %720 = math.tanh %719 : vector<8x128xf32>
    %cst_283 = arith.constant 5.000000e-01 : f32
    %721 = vector.broadcast %cst_283 : f32 to vector<8x128xf32>
    %722 = arith.mulf %721, %720 : vector<8x128xf32>
    %cst_284 = arith.constant 5.000000e-01 : f32
    %723 = vector.broadcast %cst_284 : f32 to vector<8x128xf32>
    %724 = arith.addf %722, %723 : vector<8x128xf32>
    %725 = vector.extract_strided_slice %708 {offsets = [0, 256], sizes = [8, 128], strides = [1, 1]} : vector<8x512xf32> to vector<8x128xf32>
    %726 = math.tanh %725 : vector<8x128xf32>
    %727 = vector.extract_strided_slice %708 {offsets = [0, 384], sizes = [8, 128], strides = [1, 1]} : vector<8x512xf32> to vector<8x128xf32>
    %cst_285 = arith.constant 5.000000e-01 : f32
    %728 = vector.broadcast %cst_285 : f32 to vector<8x128xf32>
    %729 = arith.mulf %728, %727 : vector<8x128xf32>
    %730 = math.tanh %729 : vector<8x128xf32>
    %cst_286 = arith.constant 5.000000e-01 : f32
    %731 = vector.broadcast %cst_286 : f32 to vector<8x128xf32>
    %732 = arith.mulf %731, %730 : vector<8x128xf32>
    %cst_287 = arith.constant 5.000000e-01 : f32
    %733 = vector.broadcast %cst_287 : f32 to vector<8x128xf32>
    %734 = arith.addf %732, %733 : vector<8x128xf32>
    %735 = arith.mulf %724, %699 : vector<8x128xf32>
    %736 = arith.mulf %716, %726 : vector<8x128xf32>
    %737 = arith.addf %735, %736 : vector<8x128xf32>
    %738 = math.tanh %737 : vector<8x128xf32>
    %739 = arith.mulf %734, %738 : vector<8x128xf32>
    %c16_288 = arith.constant 16 : index
    %c0_289 = arith.constant 0 : index
    %740 = vector.load %arg8[%c16_288, %c0_289] : memref<128x1024xf32, #tpu.memory_space<vmem>>, vector<8x512xf32>
    %c104_290 = arith.constant 104 : index
    %c512_291 = arith.constant 512 : index
    %741 = vector.load %arg8[%c104_290, %c512_291] : memref<128x1024xf32, #tpu.memory_space<vmem>>, vector<8x512xf32>
    %742 = arith.addf %740, %741 : vector<8x512xf32>
    %743 = arith.truncf %739 : vector<8x128xf32> to vector<8x128xbf16>
    %cst_292 = arith.constant dense<0.000000e+00> : vector<8x512xf32>
    %744 = tpu.matmul %743, %662, %cst_292 {dimension_numbers = #tpu.dot_dimension_numbers<[1], [0], [0], [1], [0, 0, 1, 1], [], []>} : vector<8x128xbf16>, vector<128x512xbf16>, vector<8x512xf32> -> vector<8x512xf32>
    %745 = arith.addf %742, %744 : vector<8x512xf32>
    %746 = vector.extract_strided_slice %745 {offsets = [0, 0], sizes = [8, 128], strides = [1, 1]} : vector<8x512xf32> to vector<8x128xf32>
    %cst_293 = arith.constant 5.000000e-01 : f32
    %747 = vector.broadcast %cst_293 : f32 to vector<8x128xf32>
    %748 = arith.mulf %747, %746 : vector<8x128xf32>
    %749 = math.tanh %748 : vector<8x128xf32>
    %cst_294 = arith.constant 5.000000e-01 : f32
    %750 = vector.broadcast %cst_294 : f32 to vector<8x128xf32>
    %751 = arith.mulf %750, %749 : vector<8x128xf32>
    %cst_295 = arith.constant 5.000000e-01 : f32
    %752 = vector.broadcast %cst_295 : f32 to vector<8x128xf32>
    %753 = arith.addf %751, %752 : vector<8x128xf32>
    %754 = vector.extract_strided_slice %745 {offsets = [0, 128], sizes = [8, 128], strides = [1, 1]} : vector<8x512xf32> to vector<8x128xf32>
    %cst_296 = arith.constant 5.000000e-01 : f32
    %755 = vector.broadcast %cst_296 : f32 to vector<8x128xf32>
    %756 = arith.mulf %755, %754 : vector<8x128xf32>
    %757 = math.tanh %756 : vector<8x128xf32>
    %cst_297 = arith.constant 5.000000e-01 : f32
    %758 = vector.broadcast %cst_297 : f32 to vector<8x128xf32>
    %759 = arith.mulf %758, %757 : vector<8x128xf32>
    %cst_298 = arith.constant 5.000000e-01 : f32
    %760 = vector.broadcast %cst_298 : f32 to vector<8x128xf32>
    %761 = arith.addf %759, %760 : vector<8x128xf32>
    %762 = vector.extract_strided_slice %745 {offsets = [0, 256], sizes = [8, 128], strides = [1, 1]} : vector<8x512xf32> to vector<8x128xf32>
    %763 = math.tanh %762 : vector<8x128xf32>
    %764 = vector.extract_strided_slice %745 {offsets = [0, 384], sizes = [8, 128], strides = [1, 1]} : vector<8x512xf32> to vector<8x128xf32>
    %cst_299 = arith.constant 5.000000e-01 : f32
    %765 = vector.broadcast %cst_299 : f32 to vector<8x128xf32>
    %766 = arith.mulf %765, %764 : vector<8x128xf32>
    %767 = math.tanh %766 : vector<8x128xf32>
    %cst_300 = arith.constant 5.000000e-01 : f32
    %768 = vector.broadcast %cst_300 : f32 to vector<8x128xf32>
    %769 = arith.mulf %768, %767 : vector<8x128xf32>
    %cst_301 = arith.constant 5.000000e-01 : f32
    %770 = vector.broadcast %cst_301 : f32 to vector<8x128xf32>
    %771 = arith.addf %769, %770 : vector<8x128xf32>
    %772 = arith.mulf %761, %737 : vector<8x128xf32>
    %773 = arith.mulf %753, %763 : vector<8x128xf32>
    %774 = arith.addf %772, %773 : vector<8x128xf32>
    %775 = math.tanh %774 : vector<8x128xf32>
    %776 = arith.mulf %771, %775 : vector<8x128xf32>
    %c24_302 = arith.constant 24 : index
    %c0_303 = arith.constant 0 : index
    %777 = vector.load %arg8[%c24_302, %c0_303] : memref<128x1024xf32, #tpu.memory_space<vmem>>, vector<8x512xf32>
    %c96_304 = arith.constant 96 : index
    %c512_305 = arith.constant 512 : index
    %778 = vector.load %arg8[%c96_304, %c512_305] : memref<128x1024xf32, #tpu.memory_space<vmem>>, vector<8x512xf32>
    %779 = arith.addf %777, %778 : vector<8x512xf32>
    %780 = arith.truncf %776 : vector<8x128xf32> to vector<8x128xbf16>
    %cst_306 = arith.constant dense<0.000000e+00> : vector<8x512xf32>
    %781 = tpu.matmul %780, %662, %cst_306 {dimension_numbers = #tpu.dot_dimension_numbers<[1], [0], [0], [1], [0, 0, 1, 1], [], []>} : vector<8x128xbf16>, vector<128x512xbf16>, vector<8x512xf32> -> vector<8x512xf32>
    %782 = arith.addf %779, %781 : vector<8x512xf32>
    %783 = vector.extract_strided_slice %782 {offsets = [0, 0], sizes = [8, 128], strides = [1, 1]} : vector<8x512xf32> to vector<8x128xf32>
    %cst_307 = arith.constant 5.000000e-01 : f32
    %784 = vector.broadcast %cst_307 : f32 to vector<8x128xf32>
    %785 = arith.mulf %784, %783 : vector<8x128xf32>
    %786 = math.tanh %785 : vector<8x128xf32>
    %cst_308 = arith.constant 5.000000e-01 : f32
    %787 = vector.broadcast %cst_308 : f32 to vector<8x128xf32>
    %788 = arith.mulf %787, %786 : vector<8x128xf32>
    %cst_309 = arith.constant 5.000000e-01 : f32
    %789 = vector.broadcast %cst_309 : f32 to vector<8x128xf32>
    %790 = arith.addf %788, %789 : vector<8x128xf32>
    %791 = vector.extract_strided_slice %782 {offsets = [0, 128], sizes = [8, 128], strides = [1, 1]} : vector<8x512xf32> to vector<8x128xf32>
    %cst_310 = arith.constant 5.000000e-01 : f32
    %792 = vector.broadcast %cst_310 : f32 to vector<8x128xf32>
    %793 = arith.mulf %792, %791 : vector<8x128xf32>
    %794 = math.tanh %793 : vector<8x128xf32>
    %cst_311 = arith.constant 5.000000e-01 : f32
    %795 = vector.broadcast %cst_311 : f32 to vector<8x128xf32>
    %796 = arith.mulf %795, %794 : vector<8x128xf32>
    %cst_312 = arith.constant 5.000000e-01 : f32
    %797 = vector.broadcast %cst_312 : f32 to vector<8x128xf32>
    %798 = arith.addf %796, %797 : vector<8x128xf32>
    %799 = vector.extract_strided_slice %782 {offsets = [0, 256], sizes = [8, 128], strides = [1, 1]} : vector<8x512xf32> to vector<8x128xf32>
    %800 = math.tanh %799 : vector<8x128xf32>
    %801 = vector.extract_strided_slice %782 {offsets = [0, 384], sizes = [8, 128], strides = [1, 1]} : vector<8x512xf32> to vector<8x128xf32>
    %cst_313 = arith.constant 5.000000e-01 : f32
    %802 = vector.broadcast %cst_313 : f32 to vector<8x128xf32>
    %803 = arith.mulf %802, %801 : vector<8x128xf32>
    %804 = math.tanh %803 : vector<8x128xf32>
    %cst_314 = arith.constant 5.000000e-01 : f32
    %805 = vector.broadcast %cst_314 : f32 to vector<8x128xf32>
    %806 = arith.mulf %805, %804 : vector<8x128xf32>
    %cst_315 = arith.constant 5.000000e-01 : f32
    %807 = vector.broadcast %cst_315 : f32 to vector<8x128xf32>
    %808 = arith.addf %806, %807 : vector<8x128xf32>
    %809 = arith.mulf %798, %774 : vector<8x128xf32>
    %810 = arith.mulf %790, %800 : vector<8x128xf32>
    %811 = arith.addf %809, %810 : vector<8x128xf32>
    %812 = math.tanh %811 : vector<8x128xf32>
    %813 = arith.mulf %808, %812 : vector<8x128xf32>
    %c32_316 = arith.constant 32 : index
    %c0_317 = arith.constant 0 : index
    %814 = vector.load %arg8[%c32_316, %c0_317] : memref<128x1024xf32, #tpu.memory_space<vmem>>, vector<8x512xf32>
    %c88_318 = arith.constant 88 : index
    %c512_319 = arith.constant 512 : index
    %815 = vector.load %arg8[%c88_318, %c512_319] : memref<128x1024xf32, #tpu.memory_space<vmem>>, vector<8x512xf32>
    %816 = arith.addf %814, %815 : vector<8x512xf32>
    %817 = arith.truncf %813 : vector<8x128xf32> to vector<8x128xbf16>
    %cst_320 = arith.constant dense<0.000000e+00> : vector<8x512xf32>
    %818 = tpu.matmul %817, %662, %cst_320 {dimension_numbers = #tpu.dot_dimension_numbers<[1], [0], [0], [1], [0, 0, 1, 1], [], []>} : vector<8x128xbf16>, vector<128x512xbf16>, vector<8x512xf32> -> vector<8x512xf32>
    %819 = arith.addf %816, %818 : vector<8x512xf32>
    %820 = vector.extract_strided_slice %819 {offsets = [0, 0], sizes = [8, 128], strides = [1, 1]} : vector<8x512xf32> to vector<8x128xf32>
    %cst_321 = arith.constant 5.000000e-01 : f32
    %821 = vector.broadcast %cst_321 : f32 to vector<8x128xf32>
    %822 = arith.mulf %821, %820 : vector<8x128xf32>
    %823 = math.tanh %822 : vector<8x128xf32>
    %cst_322 = arith.constant 5.000000e-01 : f32
    %824 = vector.broadcast %cst_322 : f32 to vector<8x128xf32>
    %825 = arith.mulf %824, %823 : vector<8x128xf32>
    %cst_323 = arith.constant 5.000000e-01 : f32
    %826 = vector.broadcast %cst_323 : f32 to vector<8x128xf32>
    %827 = arith.addf %825, %826 : vector<8x128xf32>
    %828 = vector.extract_strided_slice %819 {offsets = [0, 128], sizes = [8, 128], strides = [1, 1]} : vector<8x512xf32> to vector<8x128xf32>
    %cst_324 = arith.constant 5.000000e-01 : f32
    %829 = vector.broadcast %cst_324 : f32 to vector<8x128xf32>
    %830 = arith.mulf %829, %828 : vector<8x128xf32>
    %831 = math.tanh %830 : vector<8x128xf32>
    %cst_325 = arith.constant 5.000000e-01 : f32
    %832 = vector.broadcast %cst_325 : f32 to vector<8x128xf32>
    %833 = arith.mulf %832, %831 : vector<8x128xf32>
    %cst_326 = arith.constant 5.000000e-01 : f32
    %834 = vector.broadcast %cst_326 : f32 to vector<8x128xf32>
    %835 = arith.addf %833, %834 : vector<8x128xf32>
    %836 = vector.extract_strided_slice %819 {offsets = [0, 256], sizes = [8, 128], strides = [1, 1]} : vector<8x512xf32> to vector<8x128xf32>
    %837 = math.tanh %836 : vector<8x128xf32>
    %838 = vector.extract_strided_slice %819 {offsets = [0, 384], sizes = [8, 128], strides = [1, 1]} : vector<8x512xf32> to vector<8x128xf32>
    %cst_327 = arith.constant 5.000000e-01 : f32
    %839 = vector.broadcast %cst_327 : f32 to vector<8x128xf32>
    %840 = arith.mulf %839, %838 : vector<8x128xf32>
    %841 = math.tanh %840 : vector<8x128xf32>
    %cst_328 = arith.constant 5.000000e-01 : f32
    %842 = vector.broadcast %cst_328 : f32 to vector<8x128xf32>
    %843 = arith.mulf %842, %841 : vector<8x128xf32>
    %cst_329 = arith.constant 5.000000e-01 : f32
    %844 = vector.broadcast %cst_329 : f32 to vector<8x128xf32>
    %845 = arith.addf %843, %844 : vector<8x128xf32>
    %846 = arith.mulf %835, %811 : vector<8x128xf32>
    %847 = arith.mulf %827, %837 : vector<8x128xf32>
    %848 = arith.addf %846, %847 : vector<8x128xf32>
    %849 = math.tanh %848 : vector<8x128xf32>
    %850 = arith.mulf %845, %849 : vector<8x128xf32>
    %c40_330 = arith.constant 40 : index
    %c0_331 = arith.constant 0 : index
    %851 = vector.load %arg8[%c40_330, %c0_331] : memref<128x1024xf32, #tpu.memory_space<vmem>>, vector<8x512xf32>
    %c80_332 = arith.constant 80 : index
    %c512_333 = arith.constant 512 : index
    %852 = vector.load %arg8[%c80_332, %c512_333] : memref<128x1024xf32, #tpu.memory_space<vmem>>, vector<8x512xf32>
    %853 = arith.addf %851, %852 : vector<8x512xf32>
    %854 = arith.truncf %850 : vector<8x128xf32> to vector<8x128xbf16>
    %cst_334 = arith.constant dense<0.000000e+00> : vector<8x512xf32>
    %855 = tpu.matmul %854, %662, %cst_334 {dimension_numbers = #tpu.dot_dimension_numbers<[1], [0], [0], [1], [0, 0, 1, 1], [], []>} : vector<8x128xbf16>, vector<128x512xbf16>, vector<8x512xf32> -> vector<8x512xf32>
    %856 = arith.addf %853, %855 : vector<8x512xf32>
    %857 = vector.extract_strided_slice %856 {offsets = [0, 0], sizes = [8, 128], strides = [1, 1]} : vector<8x512xf32> to vector<8x128xf32>
    %cst_335 = arith.constant 5.000000e-01 : f32
    %858 = vector.broadcast %cst_335 : f32 to vector<8x128xf32>
    %859 = arith.mulf %858, %857 : vector<8x128xf32>
    %860 = math.tanh %859 : vector<8x128xf32>
    %cst_336 = arith.constant 5.000000e-01 : f32
    %861 = vector.broadcast %cst_336 : f32 to vector<8x128xf32>
    %862 = arith.mulf %861, %860 : vector<8x128xf32>
    %cst_337 = arith.constant 5.000000e-01 : f32
    %863 = vector.broadcast %cst_337 : f32 to vector<8x128xf32>
    %864 = arith.addf %862, %863 : vector<8x128xf32>
    %865 = vector.extract_strided_slice %856 {offsets = [0, 128], sizes = [8, 128], strides = [1, 1]} : vector<8x512xf32> to vector<8x128xf32>
    %cst_338 = arith.constant 5.000000e-01 : f32
    %866 = vector.broadcast %cst_338 : f32 to vector<8x128xf32>
    %867 = arith.mulf %866, %865 : vector<8x128xf32>
    %868 = math.tanh %867 : vector<8x128xf32>
    %cst_339 = arith.constant 5.000000e-01 : f32
    %869 = vector.broadcast %cst_339 : f32 to vector<8x128xf32>
    %870 = arith.mulf %869, %868 : vector<8x128xf32>
    %cst_340 = arith.constant 5.000000e-01 : f32
    %871 = vector.broadcast %cst_340 : f32 to vector<8x128xf32>
    %872 = arith.addf %870, %871 : vector<8x128xf32>
    %873 = vector.extract_strided_slice %856 {offsets = [0, 256], sizes = [8, 128], strides = [1, 1]} : vector<8x512xf32> to vector<8x128xf32>
    %874 = math.tanh %873 : vector<8x128xf32>
    %875 = vector.extract_strided_slice %856 {offsets = [0, 384], sizes = [8, 128], strides = [1, 1]} : vector<8x512xf32> to vector<8x128xf32>
    %cst_341 = arith.constant 5.000000e-01 : f32
    %876 = vector.broadcast %cst_341 : f32 to vector<8x128xf32>
    %877 = arith.mulf %876, %875 : vector<8x128xf32>
    %878 = math.tanh %877 : vector<8x128xf32>
    %cst_342 = arith.constant 5.000000e-01 : f32
    %879 = vector.broadcast %cst_342 : f32 to vector<8x128xf32>
    %880 = arith.mulf %879, %878 : vector<8x128xf32>
    %cst_343 = arith.constant 5.000000e-01 : f32
    %881 = vector.broadcast %cst_343 : f32 to vector<8x128xf32>
    %882 = arith.addf %880, %881 : vector<8x128xf32>
    %883 = arith.mulf %872, %848 : vector<8x128xf32>
    %884 = arith.mulf %864, %874 : vector<8x128xf32>
    %885 = arith.addf %883, %884 : vector<8x128xf32>
    %886 = math.tanh %885 : vector<8x128xf32>
    %887 = arith.mulf %882, %886 : vector<8x128xf32>
    %c48_344 = arith.constant 48 : index
    %c0_345 = arith.constant 0 : index
    %888 = vector.load %arg8[%c48_344, %c0_345] : memref<128x1024xf32, #tpu.memory_space<vmem>>, vector<8x512xf32>
    %c72_346 = arith.constant 72 : index
    %c512_347 = arith.constant 512 : index
    %889 = vector.load %arg8[%c72_346, %c512_347] : memref<128x1024xf32, #tpu.memory_space<vmem>>, vector<8x512xf32>
    %890 = arith.addf %888, %889 : vector<8x512xf32>
    %891 = arith.truncf %887 : vector<8x128xf32> to vector<8x128xbf16>
    %cst_348 = arith.constant dense<0.000000e+00> : vector<8x512xf32>
    %892 = tpu.matmul %891, %662, %cst_348 {dimension_numbers = #tpu.dot_dimension_numbers<[1], [0], [0], [1], [0, 0, 1, 1], [], []>} : vector<8x128xbf16>, vector<128x512xbf16>, vector<8x512xf32> -> vector<8x512xf32>
    %893 = arith.addf %890, %892 : vector<8x512xf32>
    %894 = vector.extract_strided_slice %893 {offsets = [0, 0], sizes = [8, 128], strides = [1, 1]} : vector<8x512xf32> to vector<8x128xf32>
    %cst_349 = arith.constant 5.000000e-01 : f32
    %895 = vector.broadcast %cst_349 : f32 to vector<8x128xf32>
    %896 = arith.mulf %895, %894 : vector<8x128xf32>
    %897 = math.tanh %896 : vector<8x128xf32>
    %cst_350 = arith.constant 5.000000e-01 : f32
    %898 = vector.broadcast %cst_350 : f32 to vector<8x128xf32>
    %899 = arith.mulf %898, %897 : vector<8x128xf32>
    %cst_351 = arith.constant 5.000000e-01 : f32
    %900 = vector.broadcast %cst_351 : f32 to vector<8x128xf32>
    %901 = arith.addf %899, %900 : vector<8x128xf32>
    %902 = vector.extract_strided_slice %893 {offsets = [0, 128], sizes = [8, 128], strides = [1, 1]} : vector<8x512xf32> to vector<8x128xf32>
    %cst_352 = arith.constant 5.000000e-01 : f32
    %903 = vector.broadcast %cst_352 : f32 to vector<8x128xf32>
    %904 = arith.mulf %903, %902 : vector<8x128xf32>
    %905 = math.tanh %904 : vector<8x128xf32>
    %cst_353 = arith.constant 5.000000e-01 : f32
    %906 = vector.broadcast %cst_353 : f32 to vector<8x128xf32>
    %907 = arith.mulf %906, %905 : vector<8x128xf32>
    %cst_354 = arith.constant 5.000000e-01 : f32
    %908 = vector.broadcast %cst_354 : f32 to vector<8x128xf32>
    %909 = arith.addf %907, %908 : vector<8x128xf32>
    %910 = vector.extract_strided_slice %893 {offsets = [0, 256], sizes = [8, 128], strides = [1, 1]} : vector<8x512xf32> to vector<8x128xf32>
    %911 = math.tanh %910 : vector<8x128xf32>
    %912 = vector.extract_strided_slice %893 {offsets = [0, 384], sizes = [8, 128], strides = [1, 1]} : vector<8x512xf32> to vector<8x128xf32>
    %cst_355 = arith.constant 5.000000e-01 : f32
    %913 = vector.broadcast %cst_355 : f32 to vector<8x128xf32>
    %914 = arith.mulf %913, %912 : vector<8x128xf32>
    %915 = math.tanh %914 : vector<8x128xf32>
    %cst_356 = arith.constant 5.000000e-01 : f32
    %916 = vector.broadcast %cst_356 : f32 to vector<8x128xf32>
    %917 = arith.mulf %916, %915 : vector<8x128xf32>
    %cst_357 = arith.constant 5.000000e-01 : f32
    %918 = vector.broadcast %cst_357 : f32 to vector<8x128xf32>
    %919 = arith.addf %917, %918 : vector<8x128xf32>
    %920 = arith.mulf %909, %885 : vector<8x128xf32>
    %921 = arith.mulf %901, %911 : vector<8x128xf32>
    %922 = arith.addf %920, %921 : vector<8x128xf32>
    %923 = math.tanh %922 : vector<8x128xf32>
    %924 = arith.mulf %919, %923 : vector<8x128xf32>
    %c56_358 = arith.constant 56 : index
    %c0_359 = arith.constant 0 : index
    %925 = vector.load %arg8[%c56_358, %c0_359] : memref<128x1024xf32, #tpu.memory_space<vmem>>, vector<8x512xf32>
    %c64_360 = arith.constant 64 : index
    %c512_361 = arith.constant 512 : index
    %926 = vector.load %arg8[%c64_360, %c512_361] : memref<128x1024xf32, #tpu.memory_space<vmem>>, vector<8x512xf32>
    %927 = arith.addf %925, %926 : vector<8x512xf32>
    %928 = arith.truncf %924 : vector<8x128xf32> to vector<8x128xbf16>
    %cst_362 = arith.constant dense<0.000000e+00> : vector<8x512xf32>
    %929 = tpu.matmul %928, %662, %cst_362 {dimension_numbers = #tpu.dot_dimension_numbers<[1], [0], [0], [1], [0, 0, 1, 1], [], []>} : vector<8x128xbf16>, vector<128x512xbf16>, vector<8x512xf32> -> vector<8x512xf32>
    %930 = arith.addf %927, %929 : vector<8x512xf32>
    %931 = vector.extract_strided_slice %930 {offsets = [0, 0], sizes = [8, 128], strides = [1, 1]} : vector<8x512xf32> to vector<8x128xf32>
    %cst_363 = arith.constant 5.000000e-01 : f32
    %932 = vector.broadcast %cst_363 : f32 to vector<8x128xf32>
    %933 = arith.mulf %932, %931 : vector<8x128xf32>
    %934 = math.tanh %933 : vector<8x128xf32>
    %cst_364 = arith.constant 5.000000e-01 : f32
    %935 = vector.broadcast %cst_364 : f32 to vector<8x128xf32>
    %936 = arith.mulf %935, %934 : vector<8x128xf32>
    %cst_365 = arith.constant 5.000000e-01 : f32
    %937 = vector.broadcast %cst_365 : f32 to vector<8x128xf32>
    %938 = arith.addf %936, %937 : vector<8x128xf32>
    %939 = vector.extract_strided_slice %930 {offsets = [0, 128], sizes = [8, 128], strides = [1, 1]} : vector<8x512xf32> to vector<8x128xf32>
    %cst_366 = arith.constant 5.000000e-01 : f32
    %940 = vector.broadcast %cst_366 : f32 to vector<8x128xf32>
    %941 = arith.mulf %940, %939 : vector<8x128xf32>
    %942 = math.tanh %941 : vector<8x128xf32>
    %cst_367 = arith.constant 5.000000e-01 : f32
    %943 = vector.broadcast %cst_367 : f32 to vector<8x128xf32>
    %944 = arith.mulf %943, %942 : vector<8x128xf32>
    %cst_368 = arith.constant 5.000000e-01 : f32
    %945 = vector.broadcast %cst_368 : f32 to vector<8x128xf32>
    %946 = arith.addf %944, %945 : vector<8x128xf32>
    %947 = vector.extract_strided_slice %930 {offsets = [0, 256], sizes = [8, 128], strides = [1, 1]} : vector<8x512xf32> to vector<8x128xf32>
    %948 = math.tanh %947 : vector<8x128xf32>
    %949 = vector.extract_strided_slice %930 {offsets = [0, 384], sizes = [8, 128], strides = [1, 1]} : vector<8x512xf32> to vector<8x128xf32>
    %cst_369 = arith.constant 5.000000e-01 : f32
    %950 = vector.broadcast %cst_369 : f32 to vector<8x128xf32>
    %951 = arith.mulf %950, %949 : vector<8x128xf32>
    %952 = math.tanh %951 : vector<8x128xf32>
    %cst_370 = arith.constant 5.000000e-01 : f32
    %953 = vector.broadcast %cst_370 : f32 to vector<8x128xf32>
    %954 = arith.mulf %953, %952 : vector<8x128xf32>
    %cst_371 = arith.constant 5.000000e-01 : f32
    %955 = vector.broadcast %cst_371 : f32 to vector<8x128xf32>
    %956 = arith.addf %954, %955 : vector<8x128xf32>
    %957 = arith.mulf %946, %922 : vector<8x128xf32>
    %958 = arith.mulf %938, %948 : vector<8x128xf32>
    %959 = arith.addf %957, %958 : vector<8x128xf32>
    %960 = math.tanh %959 : vector<8x128xf32>
    %961 = arith.mulf %956, %960 : vector<8x128xf32>
    %c64_372 = arith.constant 64 : index
    %c0_373 = arith.constant 0 : index
    %962 = vector.load %arg8[%c64_372, %c0_373] : memref<128x1024xf32, #tpu.memory_space<vmem>>, vector<8x512xf32>
    %c56_374 = arith.constant 56 : index
    %c512_375 = arith.constant 512 : index
    %963 = vector.load %arg8[%c56_374, %c512_375] : memref<128x1024xf32, #tpu.memory_space<vmem>>, vector<8x512xf32>
    %964 = arith.addf %962, %963 : vector<8x512xf32>
    %965 = arith.truncf %961 : vector<8x128xf32> to vector<8x128xbf16>
    %cst_376 = arith.constant dense<0.000000e+00> : vector<8x512xf32>
    %966 = tpu.matmul %965, %662, %cst_376 {dimension_numbers = #tpu.dot_dimension_numbers<[1], [0], [0], [1], [0, 0, 1, 1], [], []>} : vector<8x128xbf16>, vector<128x512xbf16>, vector<8x512xf32> -> vector<8x512xf32>
    %967 = arith.addf %964, %966 : vector<8x512xf32>
    %968 = vector.extract_strided_slice %967 {offsets = [0, 0], sizes = [8, 128], strides = [1, 1]} : vector<8x512xf32> to vector<8x128xf32>
    %cst_377 = arith.constant 5.000000e-01 : f32
    %969 = vector.broadcast %cst_377 : f32 to vector<8x128xf32>
    %970 = arith.mulf %969, %968 : vector<8x128xf32>
    %971 = math.tanh %970 : vector<8x128xf32>
    %cst_378 = arith.constant 5.000000e-01 : f32
    %972 = vector.broadcast %cst_378 : f32 to vector<8x128xf32>
    %973 = arith.mulf %972, %971 : vector<8x128xf32>
    %cst_379 = arith.constant 5.000000e-01 : f32
    %974 = vector.broadcast %cst_379 : f32 to vector<8x128xf32>
    %975 = arith.addf %973, %974 : vector<8x128xf32>
    %976 = vector.extract_strided_slice %967 {offsets = [0, 128], sizes = [8, 128], strides = [1, 1]} : vector<8x512xf32> to vector<8x128xf32>
    %cst_380 = arith.constant 5.000000e-01 : f32
    %977 = vector.broadcast %cst_380 : f32 to vector<8x128xf32>
    %978 = arith.mulf %977, %976 : vector<8x128xf32>
    %979 = math.tanh %978 : vector<8x128xf32>
    %cst_381 = arith.constant 5.000000e-01 : f32
    %980 = vector.broadcast %cst_381 : f32 to vector<8x128xf32>
    %981 = arith.mulf %980, %979 : vector<8x128xf32>
    %cst_382 = arith.constant 5.000000e-01 : f32
    %982 = vector.broadcast %cst_382 : f32 to vector<8x128xf32>
    %983 = arith.addf %981, %982 : vector<8x128xf32>
    %984 = vector.extract_strided_slice %967 {offsets = [0, 256], sizes = [8, 128], strides = [1, 1]} : vector<8x512xf32> to vector<8x128xf32>
    %985 = math.tanh %984 : vector<8x128xf32>
    %986 = vector.extract_strided_slice %967 {offsets = [0, 384], sizes = [8, 128], strides = [1, 1]} : vector<8x512xf32> to vector<8x128xf32>
    %cst_383 = arith.constant 5.000000e-01 : f32
    %987 = vector.broadcast %cst_383 : f32 to vector<8x128xf32>
    %988 = arith.mulf %987, %986 : vector<8x128xf32>
    %989 = math.tanh %988 : vector<8x128xf32>
    %cst_384 = arith.constant 5.000000e-01 : f32
    %990 = vector.broadcast %cst_384 : f32 to vector<8x128xf32>
    %991 = arith.mulf %990, %989 : vector<8x128xf32>
    %cst_385 = arith.constant 5.000000e-01 : f32
    %992 = vector.broadcast %cst_385 : f32 to vector<8x128xf32>
    %993 = arith.addf %991, %992 : vector<8x128xf32>
    %994 = arith.mulf %983, %959 : vector<8x128xf32>
    %995 = arith.mulf %975, %985 : vector<8x128xf32>
    %996 = arith.addf %994, %995 : vector<8x128xf32>
    %997 = math.tanh %996 : vector<8x128xf32>
    %998 = arith.mulf %993, %997 : vector<8x128xf32>
    %c72_386 = arith.constant 72 : index
    %c0_387 = arith.constant 0 : index
    %999 = vector.load %arg8[%c72_386, %c0_387] : memref<128x1024xf32, #tpu.memory_space<vmem>>, vector<8x512xf32>
    %c48_388 = arith.constant 48 : index
    %c512_389 = arith.constant 512 : index
    %1000 = vector.load %arg8[%c48_388, %c512_389] : memref<128x1024xf32, #tpu.memory_space<vmem>>, vector<8x512xf32>
    %1001 = arith.addf %999, %1000 : vector<8x512xf32>
    %1002 = arith.truncf %998 : vector<8x128xf32> to vector<8x128xbf16>
    %cst_390 = arith.constant dense<0.000000e+00> : vector<8x512xf32>
    %1003 = tpu.matmul %1002, %662, %cst_390 {dimension_numbers = #tpu.dot_dimension_numbers<[1], [0], [0], [1], [0, 0, 1, 1], [], []>} : vector<8x128xbf16>, vector<128x512xbf16>, vector<8x512xf32> -> vector<8x512xf32>
    %1004 = arith.addf %1001, %1003 : vector<8x512xf32>
    %1005 = vector.extract_strided_slice %1004 {offsets = [0, 0], sizes = [8, 128], strides = [1, 1]} : vector<8x512xf32> to vector<8x128xf32>
    %cst_391 = arith.constant 5.000000e-01 : f32
    %1006 = vector.broadcast %cst_391 : f32 to vector<8x128xf32>
    %1007 = arith.mulf %1006, %1005 : vector<8x128xf32>
    %1008 = math.tanh %1007 : vector<8x128xf32>
    %cst_392 = arith.constant 5.000000e-01 : f32
    %1009 = vector.broadcast %cst_392 : f32 to vector<8x128xf32>
    %1010 = arith.mulf %1009, %1008 : vector<8x128xf32>
    %cst_393 = arith.constant 5.000000e-01 : f32
    %1011 = vector.broadcast %cst_393 : f32 to vector<8x128xf32>
    %1012 = arith.addf %1010, %1011 : vector<8x128xf32>
    %1013 = vector.extract_strided_slice %1004 {offsets = [0, 128], sizes = [8, 128], strides = [1, 1]} : vector<8x512xf32> to vector<8x128xf32>
    %cst_394 = arith.constant 5.000000e-01 : f32
    %1014 = vector.broadcast %cst_394 : f32 to vector<8x128xf32>
    %1015 = arith.mulf %1014, %1013 : vector<8x128xf32>
    %1016 = math.tanh %1015 : vector<8x128xf32>
    %cst_395 = arith.constant 5.000000e-01 : f32
    %1017 = vector.broadcast %cst_395 : f32 to vector<8x128xf32>
    %1018 = arith.mulf %1017, %1016 : vector<8x128xf32>
    %cst_396 = arith.constant 5.000000e-01 : f32
    %1019 = vector.broadcast %cst_396 : f32 to vector<8x128xf32>
    %1020 = arith.addf %1018, %1019 : vector<8x128xf32>
    %1021 = vector.extract_strided_slice %1004 {offsets = [0, 256], sizes = [8, 128], strides = [1, 1]} : vector<8x512xf32> to vector<8x128xf32>
    %1022 = math.tanh %1021 : vector<8x128xf32>
    %1023 = vector.extract_strided_slice %1004 {offsets = [0, 384], sizes = [8, 128], strides = [1, 1]} : vector<8x512xf32> to vector<8x128xf32>
    %cst_397 = arith.constant 5.000000e-01 : f32
    %1024 = vector.broadcast %cst_397 : f32 to vector<8x128xf32>
    %1025 = arith.mulf %1024, %1023 : vector<8x128xf32>
    %1026 = math.tanh %1025 : vector<8x128xf32>
    %cst_398 = arith.constant 5.000000e-01 : f32
    %1027 = vector.broadcast %cst_398 : f32 to vector<8x128xf32>
    %1028 = arith.mulf %1027, %1026 : vector<8x128xf32>
    %cst_399 = arith.constant 5.000000e-01 : f32
    %1029 = vector.broadcast %cst_399 : f32 to vector<8x128xf32>
    %1030 = arith.addf %1028, %1029 : vector<8x128xf32>
    %1031 = arith.mulf %1020, %996 : vector<8x128xf32>
    %1032 = arith.mulf %1012, %1022 : vector<8x128xf32>
    %1033 = arith.addf %1031, %1032 : vector<8x128xf32>
    %1034 = math.tanh %1033 : vector<8x128xf32>
    %1035 = arith.mulf %1030, %1034 : vector<8x128xf32>
    %c80_400 = arith.constant 80 : index
    %c0_401 = arith.constant 0 : index
    %1036 = vector.load %arg8[%c80_400, %c0_401] : memref<128x1024xf32, #tpu.memory_space<vmem>>, vector<8x512xf32>
    %c40_402 = arith.constant 40 : index
    %c512_403 = arith.constant 512 : index
    %1037 = vector.load %arg8[%c40_402, %c512_403] : memref<128x1024xf32, #tpu.memory_space<vmem>>, vector<8x512xf32>
    %1038 = arith.addf %1036, %1037 : vector<8x512xf32>
    %1039 = arith.truncf %1035 : vector<8x128xf32> to vector<8x128xbf16>
    %cst_404 = arith.constant dense<0.000000e+00> : vector<8x512xf32>
    %1040 = tpu.matmul %1039, %662, %cst_404 {dimension_numbers = #tpu.dot_dimension_numbers<[1], [0], [0], [1], [0, 0, 1, 1], [], []>} : vector<8x128xbf16>, vector<128x512xbf16>, vector<8x512xf32> -> vector<8x512xf32>
    %1041 = arith.addf %1038, %1040 : vector<8x512xf32>
    %1042 = vector.extract_strided_slice %1041 {offsets = [0, 0], sizes = [8, 128], strides = [1, 1]} : vector<8x512xf32> to vector<8x128xf32>
    %cst_405 = arith.constant 5.000000e-01 : f32
    %1043 = vector.broadcast %cst_405 : f32 to vector<8x128xf32>
    %1044 = arith.mulf %1043, %1042 : vector<8x128xf32>
    %1045 = math.tanh %1044 : vector<8x128xf32>
    %cst_406 = arith.constant 5.000000e-01 : f32
    %1046 = vector.broadcast %cst_406 : f32 to vector<8x128xf32>
    %1047 = arith.mulf %1046, %1045 : vector<8x128xf32>
    %cst_407 = arith.constant 5.000000e-01 : f32
    %1048 = vector.broadcast %cst_407 : f32 to vector<8x128xf32>
    %1049 = arith.addf %1047, %1048 : vector<8x128xf32>
    %1050 = vector.extract_strided_slice %1041 {offsets = [0, 128], sizes = [8, 128], strides = [1, 1]} : vector<8x512xf32> to vector<8x128xf32>
    %cst_408 = arith.constant 5.000000e-01 : f32
    %1051 = vector.broadcast %cst_408 : f32 to vector<8x128xf32>
    %1052 = arith.mulf %1051, %1050 : vector<8x128xf32>
    %1053 = math.tanh %1052 : vector<8x128xf32>
    %cst_409 = arith.constant 5.000000e-01 : f32
    %1054 = vector.broadcast %cst_409 : f32 to vector<8x128xf32>
    %1055 = arith.mulf %1054, %1053 : vector<8x128xf32>
    %cst_410 = arith.constant 5.000000e-01 : f32
    %1056 = vector.broadcast %cst_410 : f32 to vector<8x128xf32>
    %1057 = arith.addf %1055, %1056 : vector<8x128xf32>
    %1058 = vector.extract_strided_slice %1041 {offsets = [0, 256], sizes = [8, 128], strides = [1, 1]} : vector<8x512xf32> to vector<8x128xf32>
    %1059 = math.tanh %1058 : vector<8x128xf32>
    %1060 = vector.extract_strided_slice %1041 {offsets = [0, 384], sizes = [8, 128], strides = [1, 1]} : vector<8x512xf32> to vector<8x128xf32>
    %cst_411 = arith.constant 5.000000e-01 : f32
    %1061 = vector.broadcast %cst_411 : f32 to vector<8x128xf32>
    %1062 = arith.mulf %1061, %1060 : vector<8x128xf32>
    %1063 = math.tanh %1062 : vector<8x128xf32>
    %cst_412 = arith.constant 5.000000e-01 : f32
    %1064 = vector.broadcast %cst_412 : f32 to vector<8x128xf32>
    %1065 = arith.mulf %1064, %1063 : vector<8x128xf32>
    %cst_413 = arith.constant 5.000000e-01 : f32
    %1066 = vector.broadcast %cst_413 : f32 to vector<8x128xf32>
    %1067 = arith.addf %1065, %1066 : vector<8x128xf32>
    %1068 = arith.mulf %1057, %1033 : vector<8x128xf32>
    %1069 = arith.mulf %1049, %1059 : vector<8x128xf32>
    %1070 = arith.addf %1068, %1069 : vector<8x128xf32>
    %1071 = math.tanh %1070 : vector<8x128xf32>
    %1072 = arith.mulf %1067, %1071 : vector<8x128xf32>
    %c88_414 = arith.constant 88 : index
    %c0_415 = arith.constant 0 : index
    %1073 = vector.load %arg8[%c88_414, %c0_415] : memref<128x1024xf32, #tpu.memory_space<vmem>>, vector<8x512xf32>
    %c32_416 = arith.constant 32 : index
    %c512_417 = arith.constant 512 : index
    %1074 = vector.load %arg8[%c32_416, %c512_417] : memref<128x1024xf32, #tpu.memory_space<vmem>>, vector<8x512xf32>
    %1075 = arith.addf %1073, %1074 : vector<8x512xf32>
    %1076 = arith.truncf %1072 : vector<8x128xf32> to vector<8x128xbf16>
    %cst_418 = arith.constant dense<0.000000e+00> : vector<8x512xf32>
    %1077 = tpu.matmul %1076, %662, %cst_418 {dimension_numbers = #tpu.dot_dimension_numbers<[1], [0], [0], [1], [0, 0, 1, 1], [], []>} : vector<8x128xbf16>, vector<128x512xbf16>, vector<8x512xf32> -> vector<8x512xf32>
    %1078 = arith.addf %1075, %1077 : vector<8x512xf32>
    %1079 = vector.extract_strided_slice %1078 {offsets = [0, 0], sizes = [8, 128], strides = [1, 1]} : vector<8x512xf32> to vector<8x128xf32>
    %cst_419 = arith.constant 5.000000e-01 : f32
    %1080 = vector.broadcast %cst_419 : f32 to vector<8x128xf32>
    %1081 = arith.mulf %1080, %1079 : vector<8x128xf32>
    %1082 = math.tanh %1081 : vector<8x128xf32>
    %cst_420 = arith.constant 5.000000e-01 : f32
    %1083 = vector.broadcast %cst_420 : f32 to vector<8x128xf32>
    %1084 = arith.mulf %1083, %1082 : vector<8x128xf32>
    %cst_421 = arith.constant 5.000000e-01 : f32
    %1085 = vector.broadcast %cst_421 : f32 to vector<8x128xf32>
    %1086 = arith.addf %1084, %1085 : vector<8x128xf32>
    %1087 = vector.extract_strided_slice %1078 {offsets = [0, 128], sizes = [8, 128], strides = [1, 1]} : vector<8x512xf32> to vector<8x128xf32>
    %cst_422 = arith.constant 5.000000e-01 : f32
    %1088 = vector.broadcast %cst_422 : f32 to vector<8x128xf32>
    %1089 = arith.mulf %1088, %1087 : vector<8x128xf32>
    %1090 = math.tanh %1089 : vector<8x128xf32>
    %cst_423 = arith.constant 5.000000e-01 : f32
    %1091 = vector.broadcast %cst_423 : f32 to vector<8x128xf32>
    %1092 = arith.mulf %1091, %1090 : vector<8x128xf32>
    %cst_424 = arith.constant 5.000000e-01 : f32
    %1093 = vector.broadcast %cst_424 : f32 to vector<8x128xf32>
    %1094 = arith.addf %1092, %1093 : vector<8x128xf32>
    %1095 = vector.extract_strided_slice %1078 {offsets = [0, 256], sizes = [8, 128], strides = [1, 1]} : vector<8x512xf32> to vector<8x128xf32>
    %1096 = math.tanh %1095 : vector<8x128xf32>
    %1097 = vector.extract_strided_slice %1078 {offsets = [0, 384], sizes = [8, 128], strides = [1, 1]} : vector<8x512xf32> to vector<8x128xf32>
    %cst_425 = arith.constant 5.000000e-01 : f32
    %1098 = vector.broadcast %cst_425 : f32 to vector<8x128xf32>
    %1099 = arith.mulf %1098, %1097 : vector<8x128xf32>
    %1100 = math.tanh %1099 : vector<8x128xf32>
    %cst_426 = arith.constant 5.000000e-01 : f32
    %1101 = vector.broadcast %cst_426 : f32 to vector<8x128xf32>
    %1102 = arith.mulf %1101, %1100 : vector<8x128xf32>
    %cst_427 = arith.constant 5.000000e-01 : f32
    %1103 = vector.broadcast %cst_427 : f32 to vector<8x128xf32>
    %1104 = arith.addf %1102, %1103 : vector<8x128xf32>
    %1105 = arith.mulf %1094, %1070 : vector<8x128xf32>
    %1106 = arith.mulf %1086, %1096 : vector<8x128xf32>
    %1107 = arith.addf %1105, %1106 : vector<8x128xf32>
    %1108 = math.tanh %1107 : vector<8x128xf32>
    %1109 = arith.mulf %1104, %1108 : vector<8x128xf32>
    %c96_428 = arith.constant 96 : index
    %c0_429 = arith.constant 0 : index
    %1110 = vector.load %arg8[%c96_428, %c0_429] : memref<128x1024xf32, #tpu.memory_space<vmem>>, vector<8x512xf32>
    %c24_430 = arith.constant 24 : index
    %c512_431 = arith.constant 512 : index
    %1111 = vector.load %arg8[%c24_430, %c512_431] : memref<128x1024xf32, #tpu.memory_space<vmem>>, vector<8x512xf32>
    %1112 = arith.addf %1110, %1111 : vector<8x512xf32>
    %1113 = arith.truncf %1109 : vector<8x128xf32> to vector<8x128xbf16>
    %cst_432 = arith.constant dense<0.000000e+00> : vector<8x512xf32>
    %1114 = tpu.matmul %1113, %662, %cst_432 {dimension_numbers = #tpu.dot_dimension_numbers<[1], [0], [0], [1], [0, 0, 1, 1], [], []>} : vector<8x128xbf16>, vector<128x512xbf16>, vector<8x512xf32> -> vector<8x512xf32>
    %1115 = arith.addf %1112, %1114 : vector<8x512xf32>
    %1116 = vector.extract_strided_slice %1115 {offsets = [0, 0], sizes = [8, 128], strides = [1, 1]} : vector<8x512xf32> to vector<8x128xf32>
    %cst_433 = arith.constant 5.000000e-01 : f32
    %1117 = vector.broadcast %cst_433 : f32 to vector<8x128xf32>
    %1118 = arith.mulf %1117, %1116 : vector<8x128xf32>
    %1119 = math.tanh %1118 : vector<8x128xf32>
    %cst_434 = arith.constant 5.000000e-01 : f32
    %1120 = vector.broadcast %cst_434 : f32 to vector<8x128xf32>
    %1121 = arith.mulf %1120, %1119 : vector<8x128xf32>
    %cst_435 = arith.constant 5.000000e-01 : f32
    %1122 = vector.broadcast %cst_435 : f32 to vector<8x128xf32>
    %1123 = arith.addf %1121, %1122 : vector<8x128xf32>
    %1124 = vector.extract_strided_slice %1115 {offsets = [0, 128], sizes = [8, 128], strides = [1, 1]} : vector<8x512xf32> to vector<8x128xf32>
    %cst_436 = arith.constant 5.000000e-01 : f32
    %1125 = vector.broadcast %cst_436 : f32 to vector<8x128xf32>
    %1126 = arith.mulf %1125, %1124 : vector<8x128xf32>
    %1127 = math.tanh %1126 : vector<8x128xf32>
    %cst_437 = arith.constant 5.000000e-01 : f32
    %1128 = vector.broadcast %cst_437 : f32 to vector<8x128xf32>
    %1129 = arith.mulf %1128, %1127 : vector<8x128xf32>
    %cst_438 = arith.constant 5.000000e-01 : f32
    %1130 = vector.broadcast %cst_438 : f32 to vector<8x128xf32>
    %1131 = arith.addf %1129, %1130 : vector<8x128xf32>
    %1132 = vector.extract_strided_slice %1115 {offsets = [0, 256], sizes = [8, 128], strides = [1, 1]} : vector<8x512xf32> to vector<8x128xf32>
    %1133 = math.tanh %1132 : vector<8x128xf32>
    %1134 = vector.extract_strided_slice %1115 {offsets = [0, 384], sizes = [8, 128], strides = [1, 1]} : vector<8x512xf32> to vector<8x128xf32>
    %cst_439 = arith.constant 5.000000e-01 : f32
    %1135 = vector.broadcast %cst_439 : f32 to vector<8x128xf32>
    %1136 = arith.mulf %1135, %1134 : vector<8x128xf32>
    %1137 = math.tanh %1136 : vector<8x128xf32>
    %cst_440 = arith.constant 5.000000e-01 : f32
    %1138 = vector.broadcast %cst_440 : f32 to vector<8x128xf32>
    %1139 = arith.mulf %1138, %1137 : vector<8x128xf32>
    %cst_441 = arith.constant 5.000000e-01 : f32
    %1140 = vector.broadcast %cst_441 : f32 to vector<8x128xf32>
    %1141 = arith.addf %1139, %1140 : vector<8x128xf32>
    %1142 = arith.mulf %1131, %1107 : vector<8x128xf32>
    %1143 = arith.mulf %1123, %1133 : vector<8x128xf32>
    %1144 = arith.addf %1142, %1143 : vector<8x128xf32>
    %1145 = math.tanh %1144 : vector<8x128xf32>
    %1146 = arith.mulf %1141, %1145 : vector<8x128xf32>
    %c104_442 = arith.constant 104 : index
    %c0_443 = arith.constant 0 : index
    %1147 = vector.load %arg8[%c104_442, %c0_443] : memref<128x1024xf32, #tpu.memory_space<vmem>>, vector<8x512xf32>
    %c16_444 = arith.constant 16 : index
    %c512_445 = arith.constant 512 : index
    %1148 = vector.load %arg8[%c16_444, %c512_445] : memref<128x1024xf32, #tpu.memory_space<vmem>>, vector<8x512xf32>
    %1149 = arith.addf %1147, %1148 : vector<8x512xf32>
    %1150 = arith.truncf %1146 : vector<8x128xf32> to vector<8x128xbf16>
    %cst_446 = arith.constant dense<0.000000e+00> : vector<8x512xf32>
    %1151 = tpu.matmul %1150, %662, %cst_446 {dimension_numbers = #tpu.dot_dimension_numbers<[1], [0], [0], [1], [0, 0, 1, 1], [], []>} : vector<8x128xbf16>, vector<128x512xbf16>, vector<8x512xf32> -> vector<8x512xf32>
    %1152 = arith.addf %1149, %1151 : vector<8x512xf32>
    %1153 = vector.extract_strided_slice %1152 {offsets = [0, 0], sizes = [8, 128], strides = [1, 1]} : vector<8x512xf32> to vector<8x128xf32>
    %cst_447 = arith.constant 5.000000e-01 : f32
    %1154 = vector.broadcast %cst_447 : f32 to vector<8x128xf32>
    %1155 = arith.mulf %1154, %1153 : vector<8x128xf32>
    %1156 = math.tanh %1155 : vector<8x128xf32>
    %cst_448 = arith.constant 5.000000e-01 : f32
    %1157 = vector.broadcast %cst_448 : f32 to vector<8x128xf32>
    %1158 = arith.mulf %1157, %1156 : vector<8x128xf32>
    %cst_449 = arith.constant 5.000000e-01 : f32
    %1159 = vector.broadcast %cst_449 : f32 to vector<8x128xf32>
    %1160 = arith.addf %1158, %1159 : vector<8x128xf32>
    %1161 = vector.extract_strided_slice %1152 {offsets = [0, 128], sizes = [8, 128], strides = [1, 1]} : vector<8x512xf32> to vector<8x128xf32>
    %cst_450 = arith.constant 5.000000e-01 : f32
    %1162 = vector.broadcast %cst_450 : f32 to vector<8x128xf32>
    %1163 = arith.mulf %1162, %1161 : vector<8x128xf32>
    %1164 = math.tanh %1163 : vector<8x128xf32>
    %cst_451 = arith.constant 5.000000e-01 : f32
    %1165 = vector.broadcast %cst_451 : f32 to vector<8x128xf32>
    %1166 = arith.mulf %1165, %1164 : vector<8x128xf32>
    %cst_452 = arith.constant 5.000000e-01 : f32
    %1167 = vector.broadcast %cst_452 : f32 to vector<8x128xf32>
    %1168 = arith.addf %1166, %1167 : vector<8x128xf32>
    %1169 = vector.extract_strided_slice %1152 {offsets = [0, 256], sizes = [8, 128], strides = [1, 1]} : vector<8x512xf32> to vector<8x128xf32>
    %1170 = math.tanh %1169 : vector<8x128xf32>
    %1171 = vector.extract_strided_slice %1152 {offsets = [0, 384], sizes = [8, 128], strides = [1, 1]} : vector<8x512xf32> to vector<8x128xf32>
    %cst_453 = arith.constant 5.000000e-01 : f32
    %1172 = vector.broadcast %cst_453 : f32 to vector<8x128xf32>
    %1173 = arith.mulf %1172, %1171 : vector<8x128xf32>
    %1174 = math.tanh %1173 : vector<8x128xf32>
    %cst_454 = arith.constant 5.000000e-01 : f32
    %1175 = vector.broadcast %cst_454 : f32 to vector<8x128xf32>
    %1176 = arith.mulf %1175, %1174 : vector<8x128xf32>
    %cst_455 = arith.constant 5.000000e-01 : f32
    %1177 = vector.broadcast %cst_455 : f32 to vector<8x128xf32>
    %1178 = arith.addf %1176, %1177 : vector<8x128xf32>
    %1179 = arith.mulf %1168, %1144 : vector<8x128xf32>
    %1180 = arith.mulf %1160, %1170 : vector<8x128xf32>
    %1181 = arith.addf %1179, %1180 : vector<8x128xf32>
    %1182 = math.tanh %1181 : vector<8x128xf32>
    %1183 = arith.mulf %1178, %1182 : vector<8x128xf32>
    %c112_456 = arith.constant 112 : index
    %c0_457 = arith.constant 0 : index
    %1184 = vector.load %arg8[%c112_456, %c0_457] : memref<128x1024xf32, #tpu.memory_space<vmem>>, vector<8x512xf32>
    %c8_458 = arith.constant 8 : index
    %c512_459 = arith.constant 512 : index
    %1185 = vector.load %arg8[%c8_458, %c512_459] : memref<128x1024xf32, #tpu.memory_space<vmem>>, vector<8x512xf32>
    %1186 = arith.addf %1184, %1185 : vector<8x512xf32>
    %1187 = arith.truncf %1183 : vector<8x128xf32> to vector<8x128xbf16>
    %cst_460 = arith.constant dense<0.000000e+00> : vector<8x512xf32>
    %1188 = tpu.matmul %1187, %662, %cst_460 {dimension_numbers = #tpu.dot_dimension_numbers<[1], [0], [0], [1], [0, 0, 1, 1], [], []>} : vector<8x128xbf16>, vector<128x512xbf16>, vector<8x512xf32> -> vector<8x512xf32>
    %1189 = arith.addf %1186, %1188 : vector<8x512xf32>
    %1190 = vector.extract_strided_slice %1189 {offsets = [0, 0], sizes = [8, 128], strides = [1, 1]} : vector<8x512xf32> to vector<8x128xf32>
    %cst_461 = arith.constant 5.000000e-01 : f32
    %1191 = vector.broadcast %cst_461 : f32 to vector<8x128xf32>
    %1192 = arith.mulf %1191, %1190 : vector<8x128xf32>
    %1193 = math.tanh %1192 : vector<8x128xf32>
    %cst_462 = arith.constant 5.000000e-01 : f32
    %1194 = vector.broadcast %cst_462 : f32 to vector<8x128xf32>
    %1195 = arith.mulf %1194, %1193 : vector<8x128xf32>
    %cst_463 = arith.constant 5.000000e-01 : f32
    %1196 = vector.broadcast %cst_463 : f32 to vector<8x128xf32>
    %1197 = arith.addf %1195, %1196 : vector<8x128xf32>
    %1198 = vector.extract_strided_slice %1189 {offsets = [0, 128], sizes = [8, 128], strides = [1, 1]} : vector<8x512xf32> to vector<8x128xf32>
    %cst_464 = arith.constant 5.000000e-01 : f32
    %1199 = vector.broadcast %cst_464 : f32 to vector<8x128xf32>
    %1200 = arith.mulf %1199, %1198 : vector<8x128xf32>
    %1201 = math.tanh %1200 : vector<8x128xf32>
    %cst_465 = arith.constant 5.000000e-01 : f32
    %1202 = vector.broadcast %cst_465 : f32 to vector<8x128xf32>
    %1203 = arith.mulf %1202, %1201 : vector<8x128xf32>
    %cst_466 = arith.constant 5.000000e-01 : f32
    %1204 = vector.broadcast %cst_466 : f32 to vector<8x128xf32>
    %1205 = arith.addf %1203, %1204 : vector<8x128xf32>
    %1206 = vector.extract_strided_slice %1189 {offsets = [0, 256], sizes = [8, 128], strides = [1, 1]} : vector<8x512xf32> to vector<8x128xf32>
    %1207 = math.tanh %1206 : vector<8x128xf32>
    %1208 = vector.extract_strided_slice %1189 {offsets = [0, 384], sizes = [8, 128], strides = [1, 1]} : vector<8x512xf32> to vector<8x128xf32>
    %cst_467 = arith.constant 5.000000e-01 : f32
    %1209 = vector.broadcast %cst_467 : f32 to vector<8x128xf32>
    %1210 = arith.mulf %1209, %1208 : vector<8x128xf32>
    %1211 = math.tanh %1210 : vector<8x128xf32>
    %cst_468 = arith.constant 5.000000e-01 : f32
    %1212 = vector.broadcast %cst_468 : f32 to vector<8x128xf32>
    %1213 = arith.mulf %1212, %1211 : vector<8x128xf32>
    %cst_469 = arith.constant 5.000000e-01 : f32
    %1214 = vector.broadcast %cst_469 : f32 to vector<8x128xf32>
    %1215 = arith.addf %1213, %1214 : vector<8x128xf32>
    %1216 = arith.mulf %1205, %1181 : vector<8x128xf32>
    %1217 = arith.mulf %1197, %1207 : vector<8x128xf32>
    %1218 = arith.addf %1216, %1217 : vector<8x128xf32>
    %1219 = math.tanh %1218 : vector<8x128xf32>
    %1220 = arith.mulf %1215, %1219 : vector<8x128xf32>
    %c120_470 = arith.constant 120 : index
    %c0_471 = arith.constant 0 : index
    %1221 = vector.load %arg8[%c120_470, %c0_471] : memref<128x1024xf32, #tpu.memory_space<vmem>>, vector<8x512xf32>
    %c0_472 = arith.constant 0 : index
    %c512_473 = arith.constant 512 : index
    %1222 = vector.load %arg8[%c0_472, %c512_473] : memref<128x1024xf32, #tpu.memory_space<vmem>>, vector<8x512xf32>
    %1223 = arith.addf %1221, %1222 : vector<8x512xf32>
    %1224 = arith.truncf %1220 : vector<8x128xf32> to vector<8x128xbf16>
    %cst_474 = arith.constant dense<0.000000e+00> : vector<8x512xf32>
    %1225 = tpu.matmul %1224, %662, %cst_474 {dimension_numbers = #tpu.dot_dimension_numbers<[1], [0], [0], [1], [0, 0, 1, 1], [], []>} : vector<8x128xbf16>, vector<128x512xbf16>, vector<8x512xf32> -> vector<8x512xf32>
    %1226 = arith.addf %1223, %1225 : vector<8x512xf32>
    %1227 = vector.extract_strided_slice %1226 {offsets = [0, 0], sizes = [8, 128], strides = [1, 1]} : vector<8x512xf32> to vector<8x128xf32>
    %cst_475 = arith.constant 5.000000e-01 : f32
    %1228 = vector.broadcast %cst_475 : f32 to vector<8x128xf32>
    %1229 = arith.mulf %1228, %1227 : vector<8x128xf32>
    %1230 = math.tanh %1229 : vector<8x128xf32>
    %cst_476 = arith.constant 5.000000e-01 : f32
    %1231 = vector.broadcast %cst_476 : f32 to vector<8x128xf32>
    %1232 = arith.mulf %1231, %1230 : vector<8x128xf32>
    %cst_477 = arith.constant 5.000000e-01 : f32
    %1233 = vector.broadcast %cst_477 : f32 to vector<8x128xf32>
    %1234 = arith.addf %1232, %1233 : vector<8x128xf32>
    %1235 = vector.extract_strided_slice %1226 {offsets = [0, 128], sizes = [8, 128], strides = [1, 1]} : vector<8x512xf32> to vector<8x128xf32>
    %cst_478 = arith.constant 5.000000e-01 : f32
    %1236 = vector.broadcast %cst_478 : f32 to vector<8x128xf32>
    %1237 = arith.mulf %1236, %1235 : vector<8x128xf32>
    %1238 = math.tanh %1237 : vector<8x128xf32>
    %cst_479 = arith.constant 5.000000e-01 : f32
    %1239 = vector.broadcast %cst_479 : f32 to vector<8x128xf32>
    %1240 = arith.mulf %1239, %1238 : vector<8x128xf32>
    %cst_480 = arith.constant 5.000000e-01 : f32
    %1241 = vector.broadcast %cst_480 : f32 to vector<8x128xf32>
    %1242 = arith.addf %1240, %1241 : vector<8x128xf32>
    %1243 = vector.extract_strided_slice %1226 {offsets = [0, 256], sizes = [8, 128], strides = [1, 1]} : vector<8x512xf32> to vector<8x128xf32>
    %1244 = math.tanh %1243 : vector<8x128xf32>
    %1245 = vector.extract_strided_slice %1226 {offsets = [0, 384], sizes = [8, 128], strides = [1, 1]} : vector<8x512xf32> to vector<8x128xf32>
    %cst_481 = arith.constant 5.000000e-01 : f32
    %1246 = vector.broadcast %cst_481 : f32 to vector<8x128xf32>
    %1247 = arith.mulf %1246, %1245 : vector<8x128xf32>
    %1248 = math.tanh %1247 : vector<8x128xf32>
    %cst_482 = arith.constant 5.000000e-01 : f32
    %1249 = vector.broadcast %cst_482 : f32 to vector<8x128xf32>
    %1250 = arith.mulf %1249, %1248 : vector<8x128xf32>
    %cst_483 = arith.constant 5.000000e-01 : f32
    %1251 = vector.broadcast %cst_483 : f32 to vector<8x128xf32>
    %1252 = arith.addf %1250, %1251 : vector<8x128xf32>
    %1253 = arith.mulf %1242, %1218 : vector<8x128xf32>
    %1254 = arith.mulf %1234, %1244 : vector<8x128xf32>
    %1255 = arith.addf %1253, %1254 : vector<8x128xf32>
    %1256 = math.tanh %1255 : vector<8x128xf32>
    %1257 = arith.mulf %1252, %1256 : vector<8x128xf32>
    %1258 = vector.extract_strided_slice %1257 {offsets = [0, 0], sizes = [8, 64], strides = [1, 1]} : vector<8x128xf32> to vector<8x64xf32>
    %1259 = tpu.concatenate %1258, %702 in 1 : vector<8x64xf32>, vector<8x64xf32> -> vector<8x128xf32>
    %c3 = arith.constant 3 : index
    %c0_484 = arith.constant 0 : index
    %1260 = vector.load %arg1[%c3, %c0_484] : memref<4x1024xf32, #tpu.memory_space<vmem>>, vector<1x128xf32>
    %c3_485 = arith.constant 3 : index
    %c128 = arith.constant 128 : index
    %1261 = vector.load %arg1[%c3_485, %c128] : memref<4x1024xf32, #tpu.memory_space<vmem>>, vector<1x64xf32>
    %c3_486 = arith.constant 3 : index
    %c256 = arith.constant 256 : index
    %1262 = vector.load %arg1[%c3_486, %c256] : memref<4x1024xf32, #tpu.memory_space<vmem>>, vector<1x128xf32>
    %1263 = arith.truncf %1259 : vector<8x128xf32> to vector<8x128xbf16>
    %c0_487 = arith.constant 0 : index
    %c0_488 = arith.constant 0 : index
    %1264 = vector.load %arg4[%c0_487, %c0_488] : memref<128x320xbf16, #tpu.memory_space<vmem>>, vector<128x128xbf16>
    %cst_489 = arith.constant dense<0.000000e+00> : vector<8x128xf32>
    %1265 = tpu.matmul %1263, %1264, %cst_489 {dimension_numbers = #tpu.dot_dimension_numbers<[1], [0], [0], [1], [0, 0, 1, 1], [], []>} : vector<8x128xbf16>, vector<128x128xbf16>, vector<8x128xf32> -> vector<8x128xf32>
    %1266 = vector.broadcast %1260 : vector<1x128xf32> to vector<8x128xf32>
    %1267 = arith.addf %1265, %1266 : vector<8x128xf32>
    %cst_490 = arith.constant 0.000000e+00 : f32
    %1268 = vector.broadcast %cst_490 : f32 to vector<8x128xf32>
    %1269 = arith.maximumf %1267, %1268 : vector<8x128xf32>
    %1270 = arith.truncf %1269 : vector<8x128xf32> to vector<8x128xbf16>
    %c0_491 = arith.constant 0 : index
    %c128_492 = arith.constant 128 : index
    %1271 = vector.load %arg4[%c0_491, %c128_492] : memref<128x320xbf16, #tpu.memory_space<vmem>>, vector<128x64xbf16>
    %cst_493 = arith.constant dense<0.000000e+00> : vector<8x64xf32>
    %1272 = tpu.matmul %1270, %1271, %cst_493 {dimension_numbers = #tpu.dot_dimension_numbers<[1], [0], [0], [1], [0, 0, 1, 1], [], []>} : vector<8x128xbf16>, vector<128x64xbf16>, vector<8x64xf32> -> vector<8x64xf32>
    %1273 = vector.broadcast %1261 : vector<1x64xf32> to vector<8x64xf32>
    %1274 = arith.addf %1272, %1273 : vector<8x64xf32>
    %cst_494 = arith.constant 0.000000e+00 : f32
    %1275 = vector.broadcast %cst_494 : f32 to vector<8x64xf32>
    %1276 = arith.maximumf %1274, %1275 : vector<8x64xf32>
    %cst_495 = arith.constant 0.000000e+00 : f32
    %1277 = vector.broadcast %cst_495 : f32 to vector<8x64xf32>
    %1278 = tpu.concatenate %1276, %1277 in 1 : vector<8x64xf32>, vector<8x64xf32> -> vector<8x128xf32>
    %1279 = arith.truncf %1278 : vector<8x128xf32> to vector<8x128xbf16>
    %c0_496 = arith.constant 0 : index
    %c192 = arith.constant 192 : index
    %1280 = vector.load %arg4[%c0_496, %c192] : memref<128x320xbf16, #tpu.memory_space<vmem>>, vector<128x128xbf16>
    %cst_497 = arith.constant dense<0.000000e+00> : vector<8x128xf32>
    %1281 = tpu.matmul %1279, %1280, %cst_497 {dimension_numbers = #tpu.dot_dimension_numbers<[1], [0], [0], [1], [0, 0, 1, 1], [], []>} : vector<8x128xbf16>, vector<128x128xbf16>, vector<8x128xf32> -> vector<8x128xf32>
    %1282 = vector.broadcast %1262 : vector<1x128xf32> to vector<8x128xf32>
    %1283 = arith.addf %1281, %1282 : vector<8x128xf32>
    %c0_498 = arith.constant 0 : index
    %c0_499 = arith.constant 0 : index
    %1284 = vector.load %arg5[%c0_498, %c0_499] : memref<8x128xf32, #tpu.memory_space<vmem>>, vector<8x128xf32>
    tpu.vector_store %arg5[%c0_498, %c0_499], %1283 {strides = array<i32>} : memref<8x128xf32, #tpu.memory_space<vmem>>, vector<8x128xf32>,
    return
  }
}

</mosaic_0001>

<bundles_post_ra>
// kernel: bilstm_forward.1
= control target key start
LH: loop header
LB: loop body
LE: loop exit
PB: predicated region body
PF: predicated region fallthrough
CT: control target
= control target key end

     0   :  { %10 = vsyncpa [#allocation6], 0  ;;  %s7338_s18 = smov [#allocation5]   ;;  %s11214_s0 = inlined_call_operand.vmem [shape: f32[128,2], index: 0, kind: input, shape index: {}]   ;;  %s11215_s1 = inlined_call_operand.vmem [shape: f32[4,1024], index: 1, kind: input, shape index: {}]   ;;  %s11216_s2 = inlined_call_operand.vmem [shape: bf16[2,128,512], index: 2, kind: input, shape index: {}]   ;;  %s11217_s3 = inlined_call_operand.hbm [shape: bf16[128,1024], index: 3, kind: input, shape index: {}]   ;;  %s11218_s4 = inlined_call_operand.vmem [shape: bf16[128,320], index: 4, kind: input, shape index: {}]   ;;  %s11219_s5 = inlined_call_operand.vmem [shape: f32[8,128], index: 5, kind: output, shape index: {}]  }
   0x1   :  { %s22_s19 = sshll.u32 %s7338_s18, 4  ;;  %s23_s19 = int_to_ptr.vmem [resolvable:$true] %s22_s19 }
   0x2   :  { %s7324_s20 = scalar_lea.vmem %s23_s19, 8192  ;;  %p7329_p1 = scmp.lt.s32.totalorder %s23_s19, %s23_s19 }
   0x3   :  { %p7325_p0 = scmp.ne.s32.totalorder %s23_s19, %s7324_s20  ;;  %p7330_p2 = scmp.lt.s32.totalorder %s7324_s20, %s7324_s20 }
   0x5   :  { %p7331_p3 = por %p7330_p2, %p7329_p1 }
   0x7   :  { %p7332_p4 = pnand %p7331_p3, %p7325_p0 }
   0x9   :  { %7335 = shalt.err (!%p7332_p4)
}
   0xa   :  { %s7339_s21 = smov 512   ;;  %s7340_s22 = smov 32  }
   0xb   :  { %28 = dma.hbm_to_vmem [thread:$0]  %s11217_s3, 8192, %s23_s19, [#allocation6], %s7339_s21, %s7339_s21, %s7340_s22  }
   0xc   :  { %7336 = dma.done.wait [#allocation6], 8192  }
   0xd   :  { %7337 = vsyncadd [#allocation6], 4294959104  ;;  %v11220_v0 = vmov 0   ;;  %v7386_v1 = vld [vmem:[%s11216_s2 + $0xe4] ss:$16 sps:$4 sm:$0xff]   ;;  %v41_v27 = vld [vmem:[%s11214_s0 + $0x8] sm:$0xff]  ;;  %v65_v50 = vlaneseq }
   0xe   :  { %811 = vmatprep.mubr.bf16.mxu0 %v11220_v0  ;;  %852 = vmatprep.mubr.bf16.mxu1 %v11220_v0  ;;  %v7391_v2 = vld [vmem:[%s11216_s2 + $0xec] ss:$16 sps:$4 sm:$0xff]   ;;  %v7397_v3 = vld [vmem:[%s11216_s2 + $0xe0] ss:$16 sps:$4 sm:$0xff]   ;;  %v7402_v4 = vld [vmem:[%s11216_s2 + $0xe8] ss:$16 sps:$4 sm:$0xff]  }
   0xf   :  { %6729 = vset.pattern.permute.xlu1 %v11220_v0  ;;  %6727 = vset.pattern.permute.xlu0 %v11220_v0  ;;  %v7408_v5 = vld [vmem:[%s11216_s2 + $0xc4] ss:$16 sps:$4 sm:$0xff]   ;;  %v7415_v6 = vld [vmem:[%s11216_s2 + $0xcc] ss:$16 sps:$4 sm:$0xff]   ;;  %v7420_v7 = vld [vmem:[%s11216_s2 + $0xc0] ss:$16 sps:$4 sm:$0xff]  }
  0x10   :  { %779 = vmatprep.subr.bf16.mxu0 %v7386_v1  ;;  %820 = vmatprep.subr.bf16.mxu1 %v7391_v2  ;;  %v7426_v8 = vld [vmem:[%s11216_s2 + $0xc8] ss:$16 sps:$4 sm:$0xff]   ;;  %v7432_v9 = vld [vmem:[%s11216_s2 + $0xa4] ss:$16 sps:$4 sm:$0xff]   ;;  %v7437_v10 = vld [vmem:[%s11216_s2 + $0xac] ss:$16 sps:$4 sm:$0xff]  }
  0x11   :  { %780 = vmatpush1.bf16.msra.mxu0 %v7397_v3  ;;  %821 = vmatpush1.bf16.msra.mxu1 %v7402_v4  ;;  %v7442_v11 = vld [vmem:[%s11216_s2 + $0xa0] ss:$16 sps:$4 sm:$0xff]   ;;  %v7447_v12 = vld [vmem:[%s11216_s2 + $0xa8] ss:$16 sps:$4 sm:$0xff]   ;;  %v7454_v13 = vld [vmem:[%s11216_s2 + $0x84] ss:$16 sps:$4 sm:$0xff]  }
  0x12   :  { %781 = vmatprep.subr.bf16.mxu0 %v7408_v5  ;;  %822 = vmatprep.subr.bf16.mxu1 %v7415_v6  ;;  %v7461_v14 = vld [vmem:[%s11216_s2 + $0x8c] ss:$16 sps:$4 sm:$0xff]   ;;  %v7466_v15 = vld [vmem:[%s11216_s2 + $0x80] ss:$16 sps:$4 sm:$0xff]   ;;  %v7473_v16 = vld [vmem:[%s11216_s2 + $0x88] ss:$16 sps:$4 sm:$0xff]  }
  0x13   :  { %v7478_v17 = vld [vmem:[%s11216_s2 + $0x64] ss:$16 sps:$4 sm:$0xff]   ;;  %v7485_v18 = vld [vmem:[%s11216_s2 + $0x6c] ss:$16 sps:$4 sm:$0xff]   ;;  %v7490_v19 = vld [vmem:[%s11216_s2 + $0x60] ss:$16 sps:$4 sm:$0xff]   ;;  %51 = vperm.xlu1 %6729, %v41_v27  }
  0x14   :  { %v7495_v20 = vld [vmem:[%s11216_s2 + $0x68] ss:$16 sps:$4 sm:$0xff]   ;;  %v7502_v21 = vld [vmem:[%s11216_s2 + $0x44] ss:$16 sps:$4 sm:$0xff]   ;;  %v7509_v22 = vld [vmem:[%s11216_s2 + $0x4c] ss:$16 sps:$4 sm:$0xff]  }
  0x15   :  { %782 = vmatpush1.bf16.msra.mxu0 %v7420_v7  ;;  %823 = vmatpush1.bf16.msra.mxu1 %v7426_v8  ;;  %v7514_v23 = vld [vmem:[%s11216_s2 + $0x40] ss:$16 sps:$4 sm:$0xff]   ;;  %v7521_v24 = vld [vmem:[%s11216_s2 + $0x48] ss:$16 sps:$4 sm:$0xff]   ;;  %v7526_v25 = vld [vmem:[%s11216_s2 + $0x24] ss:$16 sps:$4 sm:$0xff]  }
  0x16   :  { %783 = vmatprep.subr.bf16.mxu0 %v7432_v9  ;;  %824 = vmatprep.subr.bf16.mxu1 %v7437_v10  ;;  %v7533_v26 = vld [vmem:[%s11216_s2 + $0x2c] ss:$16 sps:$4 sm:$0xff]   ;;  %v40_v28 = vld [vmem:[%s11214_s0] sm:$0xff]  ;;  %v7551_v30 = vld [vmem:[%s11216_s2 + $0x28] ss:$16 sps:$4 sm:$0xff]   ;;  %v7342_v35 = vmov 1  }
  0x17   :  { %46 = vperm.xlu0 %6727, %v40_v28   ;;  %v7546_v29 = vld [vmem:[%s11216_s2 + $0x20] ss:$16 sps:$4 sm:$0xff]   ;;  %v7558_v31 = vld [vmem:[%s11216_s2 + $0x4] ss:$16 sps:$4 sm:$0xff]   ;;  %v7563_v32 = vld [vmem:[%s11216_s2 + $0xc] ss:$16 sps:$4 sm:$0xff]   ;;  %6730 = vset.pattern.permute.xlu1 %v7342_v35 }
  0x18   :  { %v7568_v33 = vld [vmem:[%s11216_s2] ss:$16 sps:$4 sm:$0xff]   ;;  %v7573_v34 = vld [vmem:[%s11216_s2 + $0x8] ss:$16 sps:$4 sm:$0xff]   ;;  %106 = vperm.xlu1 %6730, %v41_v27   ;;  %v7662_v51 = vshrl.u32 %v65_v50, 7  ;;  %vm7344_vm0 = vmmov 0  }
  0x19   :  { %784 = vmatpush1.bf16.msra.mxu0 %v7442_v11  ;;  %825 = vmatpush1.bf16.msra.mxu1 %v7447_v12  ;;  %v42_v36 = vld [vmem:[%s11214_s0 + $0x10] sm:$0xff]  ;;  %v43_v37 = vld [vmem:[%s11214_s0 + $0x18] sm:$0xff]  ;;  %v223_v38 = vld [vmem:[%s11214_s0 + $0x20] sm:$0xff]  ;;  %vm6025_vm1 = vcmask 523264   ;;  %s7345_s27 = smov 64  }
  0x1a   :  { %785 = vmatprep.subr.bf16.mxu0 %v7454_v13  ;;  %826 = vmatprep.subr.bf16.mxu1 %v7461_v14  ;;  %v224_v39 = vld [vmem:[%s11214_s0 + $0x28] sm:$0xff]  ;;  %v225_v40 = vld [vmem:[%s11214_s0 + $0x30] sm:$0xff]  ;;  %v226_v41 = vld [vmem:[%s11214_s0 + $0x38] sm:$0xff]  ;;  %11345 = vst [vmem:[#allocation8_spill] sm:$0xff] %v7662_v51  ;;  %v7665_v52 = vsub.s32 0, %v7662_v51  ;;  %v7681_v58 = vsub.s32 1, %v7662_v51 }
  0x1b   :  { %6728 = vset.pattern.permute.xlu0 %v7342_v35  ;;  %v343_v42 = vld [vmem:[%s11214_s0 + $0x40] sm:$0xff]  ;;  %v344_v43 = vld [vmem:[%s11214_s0 + $0x48] sm:$0xff]  ;;  %v345_v44 = vld [vmem:[%s11214_s0 + $0x50] sm:$0xff]  ;;  %v7684_v59 = vsub.s32 2, %v7662_v51  ;;  %v7687_v60 = vsub.s32 3, %v7662_v51 }
  0x1c   :  { %102 = vperm.xlu0 %6728, %v40_v28   ;;  %6731 = vset.pattern.permute.xlu1 %v11220_v0  ;;  %v346_v45 = vld [vmem:[%s11214_s0 + $0x58] sm:$0xff]  ;;  %v463_v46 = vld [vmem:[%s11214_s0 + $0x60] sm:$0xff]  ;;  %v464_v47 = vld [vmem:[%s11214_s0 + $0x68] sm:$0xff]  ;;  %11346 = vst [vmem:[#allocation9_spill] sm:$0xff] %v7665_v52 }
  0x1d   :  { %786 = vmatpush1.bf16.msra.mxu0 %v7466_v15  ;;  %827 = vmatpush1.bf16.msra.mxu1 %v7473_v16  ;;  %v465_v48 = vld [vmem:[%s11214_s0 + $0x70] sm:$0xff]  ;;  %v466_v49 = vld [vmem:[%s11214_s0 + $0x78] sm:$0xff]  ;;  %v35_v53 = vld [vmem:[%s11215_s1] ss:$4 sm:$0xf]  ;;  %11347 = vst [vmem:[#allocation10_spill] sm:$0xff] %v7681_v58 }
  0x1e   :  { %787 = vmatprep.subr.bf16.mxu0 %v7478_v17  ;;  %828 = vmatprep.subr.bf16.mxu1 %v7485_v18  ;;  %v6431_v56 = vld [vmem:[%s11215_s1 + $0x10] ss:$4 sm:$0xf]  ;;  %v7678_v57 = vrot.slane %v35_v53, %v7665_v52  ;;  %11348 = vst [vmem:[#allocation11_spill] sm:$0xff] %v7684_v59  ;;  %11349 = vst [vmem:[#allocation12_spill] sm:$0xff] %v7687_v60 }
  0x1f   :  { %56 = vperm.xlu1 %6731, %v42_v36   ;;  %v7692_v62 = vrot.slane %v6431_v56, %v7665_v52  ;;  %vm6629_vm2 = vmpackc.low %vm6025_vm1, %vm6025_vm1 }
  0x20   :  { %110 = vperm.xlu0 %6728, %v42_v36  }
  0x21   :  { %788 = vmatpush1.bf16.msra.mxu0 %v7490_v19  ;;  %829 = vmatpush1.bf16.msra.mxu1 %v7495_v20 }
  0x22   :  { %789 = vmatprep.subr.bf16.mxu0 %v7502_v21  ;;  %830 = vmatprep.subr.bf16.mxu1 %v7509_v22 }
  0x23   :  { %61 = vperm.xlu1 %6731, %v43_v37  }
  0x24   :  { %114 = vperm.xlu0 %6728, %v43_v37  }
  0x25   :  { %790 = vmatpush1.bf16.msra.mxu0 %v7514_v23  ;;  %831 = vmatpush1.bf16.msra.mxu1 %v7521_v24 }
  0x26   :  { %791 = vmatprep.subr.bf16.mxu0 %v7526_v25  ;;  %832 = vmatprep.subr.bf16.mxu1 %v7533_v26 }
  0x27   :  { %229 = vperm.xlu1 %6731, %v223_v38  }
  0x28   :  { %264 = vperm.xlu0 %6728, %v223_v38  }
  0x29   :  { %792 = vmatpush1.bf16.msra.mxu0 %v7546_v29  ;;  %833 = vmatpush1.bf16.msra.mxu1 %v7551_v30 }
  0x2a   :  { %793 = vmatprep.subr.bf16.mxu0 %v7558_v31  ;;  %834 = vmatprep.subr.bf16.mxu1 %v7563_v32 }
  0x2b   :  { %234 = vperm.xlu1 %6731, %v224_v39  }
  0x2c   :  { %268 = vperm.xlu0 %6728, %v224_v39  }
  0x2d   :  { %794 = vmatpush1.bf16.msra.mxu0 %v7568_v33  ;;  %835 = vmatpush1.bf16.msra.mxu1 %v7573_v34 }
  0x2e   :  { %889 = vmatprep.subr.bf16.mxu0 %v7386_v1  ;;  %930 = vmatprep.subr.bf16.mxu1 %v7391_v2 }
  0x2f   :  { %239 = vperm.xlu1 %6731, %v225_v40  }
  0x30   :  { %812 = vmatmul.mubr.bf16.vlgmr.msra.gmra.mxu0 %v11220_v0  ;;  %853 = vmatmul.mubr.bf16.vlgmr.msra.gmra.mxu1 %v11220_v0 }
  0x31   :  { %890 = vmatpush1.bf16.msra.mxu0 %v7397_v3  ;;  %931 = vmatpush1.bf16.msra.mxu1 %v7402_v4  ;;  %v7701_v3 = vrot.slane %v6431_v56, %v7681_v58  ;;  %v7704_v4 = vrot.slane %v6431_v56, %v7684_v59 }
  0x32   :  { %891 = vmatprep.subr.bf16.mxu0 %v7408_v5  ;;  %932 = vmatprep.subr.bf16.mxu1 %v7415_v6  ;;  %v7707_v5 = vrot.slane %v6431_v56, %v7687_v60  ;;  %v7712_v6 = vld [vmem:[%s11215_s1 + $0x1] ss:$4 sm:$0xf] }
  0x33   :  { %921 = vmatprep.mubr.bf16.mxu0 %v11220_v0  ;;  %962 = vmatprep.mubr.bf16.mxu1 %v11220_v0 }
  0x34   :  { %272 = vperm.xlu0 %6728, %v225_v40   ;;  %244 = vperm.xlu1 %6731, %v226_v41  }
  0x35   :  { %892 = vmatpush1.bf16.msra.mxu0 %v7420_v7  ;;  %933 = vmatpush1.bf16.msra.mxu1 %v7426_v8  ;;  %v7715_v8 = vrot.slane %v35_v53, %v7681_v58 }
  0x36   :  { %893 = vmatprep.subr.bf16.mxu0 %v7432_v9  ;;  %934 = vmatprep.subr.bf16.mxu1 %v7437_v10  ;;  %v7718_v9 = vrot.slane %v35_v53, %v7684_v59  ;;  %v7721_v10 = vrot.slane %v35_v53, %v7687_v60 }
  0x38   :  { %276 = vperm.xlu0 %6728, %v226_v41   ;;  %349 = vperm.xlu1 %6731, %v343_v42  }
  0x39   :  { %894 = vmatpush1.bf16.msra.mxu0 %v7442_v11  ;;  %935 = vmatpush1.bf16.msra.mxu1 %v7447_v12 }
  0x3a   :  { %895 = vmatprep.subr.bf16.mxu0 %v7454_v13  ;;  %936 = vmatprep.subr.bf16.mxu1 %v7461_v14 }
  0x3c   :  { %384 = vperm.xlu0 %6728, %v343_v42   ;;  %354 = vperm.xlu1 %6731, %v344_v43  }
  0x3d   :  { %896 = vmatpush1.bf16.msra.mxu0 %v7466_v15  ;;  %937 = vmatpush1.bf16.msra.mxu1 %v7473_v16 }
  0x3e   :  { %897 = vmatprep.subr.bf16.mxu0 %v7478_v17  ;;  %938 = vmatprep.subr.bf16.mxu1 %v7485_v18  ;;  %v7729_v17 = vrot.slane %v7712_v6, %v7665_v52 }
  0x40   :  { %388 = vperm.xlu0 %6728, %v344_v43   ;;  %359 = vperm.xlu1 %6731, %v345_v44  }
  0x41   :  { %898 = vmatpush1.bf16.msra.mxu0 %v7490_v19  ;;  %939 = vmatpush1.bf16.msra.mxu1 %v7495_v20 }
  0x42   :  { %899 = vmatprep.subr.bf16.mxu0 %v7502_v21  ;;  %940 = vmatprep.subr.bf16.mxu1 %v7509_v22 }
  0x44   :  { %392 = vperm.xlu0 %6728, %v345_v44   ;;  %364 = vperm.xlu1 %6731, %v346_v45  }
  0x45   :  { %900 = vmatpush1.bf16.msra.mxu0 %v7514_v23  ;;  %941 = vmatpush1.bf16.msra.mxu1 %v7521_v24 }
  0x46   :  { %901 = vmatprep.subr.bf16.mxu0 %v7526_v25  ;;  %942 = vmatprep.subr.bf16.mxu1 %v7533_v26 }
  0x48   :  { %396 = vperm.xlu0 %6728, %v346_v45   ;;  %469 = vperm.xlu1 %6731, %v463_v46  }
  0x49   :  { %902 = vmatpush1.bf16.msra.mxu0 %v7546_v29  ;;  %943 = vmatpush1.bf16.msra.mxu1 %v7551_v30 }
  0x4a   :  { %903 = vmatprep.subr.bf16.mxu0 %v7558_v31  ;;  %944 = vmatprep.subr.bf16.mxu1 %v7563_v32 }
  0x4c   :  { %504 = vperm.xlu0 %6728, %v463_v46   ;;  %474 = vperm.xlu1 %6731, %v464_v47  }
  0x4d   :  { %904 = vmatpush1.bf16.msra.mxu0 %v7568_v33  ;;  %945 = vmatpush1.bf16.msra.mxu1 %v7573_v34 }
  0x4e   :  { %999 = vmatprep.subr.bf16.mxu0 %v7386_v1  ;;  %1040 = vmatprep.subr.bf16.mxu1 %v7391_v2 }
  0x50   :  { %508 = vperm.xlu0 %6728, %v464_v47   ;;  %479 = vperm.xlu1 %6731, %v465_v48  }
  0x54   :  { %512 = vperm.xlu0 %6728, %v465_v48   ;;  %484 = vperm.xlu1 %6731, %v466_v49  }
  0x58   :  { %516 = vperm.xlu0 %6728, %v466_v49  }
  0x8e   :  { %v7670_v54 = vpop.permute.xlu1 %51 }
  0x8f   :  { %v89_v61 = vmul.f32 %v7678_v57, %v7670_v54 }
  0x92   :  { %v7672_v55 = vpop.permute.xlu0 %46 }
  0x93   :  { %v7694_v63 = vpop.permute.xlu1 %106 }
  0x94   :  { %v142_v2 = vmul.f32 %v7692_v62, %v7694_v63 }
  0x96   :  { %v158_v7 = vadd.f32 %v142_v2, %v89_v61 }
  0x97   :  { %v7696_v1 = vpop.permute.xlu0 %102 }
  0x98   :  { %v7736_v22 = vadd.f32 %v7729_v17, %v158_v7 }
  0x9a   :  { %v57_v16 = vpop.permute.xlu1 %56 }
  0x9b   :  { %v111_v11 = vpop.permute.xlu0 %110  ;;  %v93_v18 = vmul.f32 %v7678_v57, %v57_v16  ;;  %v94_v19 = vmul.f32 %v7715_v8, %v57_v16  ;;  %v95_v20 = vmul.f32 %v7718_v9, %v57_v16  ;;  %v96_v21 = vmul.f32 %v7721_v10, %v57_v16 }
  0x9c   :  { %v146_v12 = vmul.f32 %v7692_v62, %v111_v11  ;;  %v147_v13 = vmul.f32 %v7701_v3, %v111_v11  ;;  %v148_v14 = vmul.f32 %v7704_v4, %v111_v11  ;;  %v149_v15 = vmul.f32 %v7707_v5, %v111_v11 }
  0x9e   :  { %v162_v27 = vadd.f32 %v146_v12, %v93_v18  ;;  %v7738_v28 = vadd.f32 %v148_v14, %v95_v20  ;;  %v7740_v35 = vadd.f32 %v147_v13, %v94_v19  ;;  %v7742_v36 = vadd.f32 %v149_v15, %v96_v21  ;;  %v62_v37 = vpop.permute.xlu1 %61 }
  0x9f   :  { %v115_v23 = vpop.permute.xlu0 %114  ;;  %v97_v42 = vmul.f32 %v7678_v57, %v62_v37  ;;  %v98_v43 = vmul.f32 %v7715_v8, %v62_v37  ;;  %v99_v44 = vmul.f32 %v7718_v9, %v62_v37  ;;  %v100_v45 = vmul.f32 %v7721_v10, %v62_v37 }
  0xa0   :  { %v150_v38 = vmul.f32 %v7692_v62, %v115_v23  ;;  %v151_v39 = vmul.f32 %v7701_v3, %v115_v23  ;;  %v152_v40 = vmul.f32 %v7704_v4, %v115_v23  ;;  %v153_v41 = vmul.f32 %v7707_v5, %v115_v23 }
  0xa1   :  { %v7753_v46 = vadd.f32 %v7729_v17, %v162_v27 }
  0xa2   :  { %v166_v48 = vadd.f32 %v150_v38, %v97_v42  ;;  %v7755_v49 = vadd.f32 %v152_v40, %v99_v44  ;;  %v7757_v50 = vadd.f32 %v151_v39, %v98_v43  ;;  %v7759_v53 = vadd.f32 %v153_v41, %v100_v45  ;;  %v230_v56 = vpop.permute.xlu1 %229 }
  0xa3   :  { %v265_v47 = vpop.permute.xlu0 %264  ;;  %v247_v12 = vmul.f32 %v230_v56, %v7678_v57  ;;  %v248_v13 = vmul.f32 %v230_v56, %v7715_v8  ;;  %v249_v14 = vmul.f32 %v230_v56, %v7718_v9  ;;  %v250_v15 = vmul.f32 %v230_v56, %v7721_v10 }
  0xa4   :  { %v279_v61 = vmul.f32 %v265_v47, %v7692_v62  ;;  %v280_v2 = vmul.f32 %v265_v47, %v7701_v3  ;;  %v281_v7 = vmul.f32 %v265_v47, %v7704_v4  ;;  %v282_v11 = vmul.f32 %v265_v47, %v7707_v5 }
  0xa5   :  { %v7770_v16 = vadd.f32 %v7729_v17, %v166_v48 }
  0xa6   :  { %v295_v19 = vadd.f32 %v279_v61, %v247_v12  ;;  %v7772_v20 = vadd.f32 %v281_v7, %v249_v14  ;;  %v7774_v21 = vadd.f32 %v280_v2, %v248_v13  ;;  %v7776_v23 = vadd.f32 %v282_v11, %v250_v15  ;;  %v235_v27 = vpop.permute.xlu1 %234 }
  0xa7   :  { %v269_v18 = vpop.permute.xlu0 %268  ;;  %v251_v41 = vmul.f32 %v235_v27, %v7678_v57  ;;  %v252_v42 = vmul.f32 %v235_v27, %v7715_v8  ;;  %v253_v43 = vmul.f32 %v235_v27, %v7718_v9  ;;  %v254_v44 = vmul.f32 %v235_v27, %v7721_v10 }
  0xa8   :  { %11350 = vst [vmem:[#allocation13_spill] sm:$0xff] %v7772_v20  ;;  %11351 = vst [vmem:[#allocation14_spill] sm:$0xff] %v7774_v21  ;;  %v283_v37 = vmul.f32 %v269_v18, %v7692_v62  ;;  %v284_v38 = vmul.f32 %v269_v18, %v7701_v3  ;;  %v285_v39 = vmul.f32 %v269_v18, %v7704_v4 }
  0xa9   :  { %11352 = vst [vmem:[#allocation15_spill] sm:$0xff] %v7776_v23  ;;  %v286_v40 = vmul.f32 %v269_v18, %v7707_v5  ;;  %v7787_v45 = vadd.f32 %v295_v19, %v7729_v17 }
  0xaa   :  { %v299_v48 = vadd.f32 %v283_v37, %v251_v41  ;;  %v7789_v56 = vadd.f32 %v285_v39, %v253_v43  ;;  %v7791_v61 = vadd.f32 %v284_v38, %v252_v42  ;;  %v240_v7 = vpop.permute.xlu1 %239 }
  0xab   :  { %v7793_v2 = vadd.f32 %v286_v40, %v254_v44  ;;  %v255_v15 = vmul.f32 %v240_v7, %v7678_v57  ;;  %v256_v18 = vmul.f32 %v240_v7, %v7715_v8  ;;  %v257_v19 = vmul.f32 %v240_v7, %v7718_v9 }
  0xac   :  { %11353 = vst [vmem:[#allocation16_spill] sm:$0xff] %v7789_v56  ;;  %11354 = vst [vmem:[#allocation17_spill] sm:$0xff] %v7791_v61  ;;  %v258_v27 = vmul.f32 %v240_v7, %v7721_v10  ;;  %v7804_v37 = vadd.f32 %v299_v48, %v7729_v17 }
  0xad   :  { %11355 = vst [vmem:[#allocation18_spill] sm:$0xff] %v7793_v2 }
  0xae   :  { %11356 = vst [vmem:[#allocation19_spill] sm:$0xff] %v7804_v37 }
  0xaf   :  { %v273_v47 = vpop.permute.xlu0 %272  ;;  %v245_v43 = vpop.permute.xlu1 %244 }
  0xb0   :  { %v287_v11 = vmul.f32 %v273_v47, %v7692_v62  ;;  %v288_v12 = vmul.f32 %v273_v47, %v7701_v3  ;;  %v289_v13 = vmul.f32 %v273_v47, %v7704_v4  ;;  %v290_v14 = vmul.f32 %v273_v47, %v7707_v5 }
  0xb1   :  { %v259_v48 = vmul.f32 %v245_v43, %v7678_v57  ;;  %v260_v52 = vmul.f32 %v245_v43, %v7715_v8 }
  0xb2   :  { %v303_v39 = vadd.f32 %v287_v11, %v255_v15  ;;  %v7806_v40 = vadd.f32 %v289_v13, %v257_v19  ;;  %v7808_v41 = vadd.f32 %v288_v12, %v256_v18  ;;  %v7810_v42 = vadd.f32 %v290_v14, %v258_v27 }
  0xb3   :  { %v277_v38 = vpop.permute.xlu0 %276  ;;  %v261_v11 = vmul.f32 %v245_v43, %v7718_v9  ;;  %v262_v12 = vmul.f32 %v245_v43, %v7721_v10 }
  0xb4   :  { %11357 = vst [vmem:[#allocation20_spill] sm:$0xff] %v7806_v40  ;;  %11358 = vst [vmem:[#allocation21_spill] sm:$0xff] %v7808_v41  ;;  %v291_v44 = vmul.f32 %v277_v38, %v7692_v62  ;;  %v292_v47 = vmul.f32 %v277_v38, %v7701_v3  ;;  %v293_v0 = vmul.f32 %v277_v38, %v7704_v4 }
  0xb5   :  { %11359 = vst [vmem:[#allocation22_spill] sm:$0xff] %v7810_v42  ;;  %v294_v7 = vmul.f32 %v277_v38, %v7707_v5  ;;  %v7821_v13 = vadd.f32 %v303_v39, %v7729_v17  ;;  %v350_v38 = vpop.permute.xlu1 %349 }
  0xb6   :  { %v307_v15 = vadd.f32 %v291_v44, %v259_v48  ;;  %v7823_v18 = vadd.f32 %v293_v0, %v261_v11  ;;  %v7825_v19 = vadd.f32 %v292_v47, %v260_v52  ;;  %v367_v39 = vmul.f32 %v350_v38, %v7678_v57 }
  0xb7   :  { %11360 = vst [vmem:[#allocation23_spill] sm:$0xff] %v7821_v13  ;;  %v385_v14 = vpop.permute.xlu0 %384  ;;  %v7827_v27 = vadd.f32 %v294_v7, %v262_v12  ;;  %v368_v41 = vmul.f32 %v350_v38, %v7715_v8  ;;  %v369_v0 = vmul.f32 %v350_v38, %v7718_v9  ;;  %v370_v52 = vmul.f32 %v350_v38, %v7721_v10 }
  0xb8   :  { %11361 = vst [vmem:[#allocation24_spill] sm:$0xff] %v7823_v18  ;;  %11362 = vst [vmem:[#allocation25_spill] sm:$0xff] %v7825_v19  ;;  %v399_v51 = vmul.f32 %v385_v14, %v7692_v62  ;;  %v400_v42 = vmul.f32 %v385_v14, %v7701_v3  ;;  %v401_v40 = vmul.f32 %v385_v14, %v7704_v4 }
  0xb9   :  { %11363 = vst [vmem:[#allocation26_spill] sm:$0xff] %v7827_v27  ;;  %v402_v43 = vmul.f32 %v385_v14, %v7707_v5  ;;  %v7838_v44 = vadd.f32 %v307_v15, %v7729_v17  ;;  %v355_v14 = vpop.permute.xlu1 %354 }
  0xba   :  { %v415_v7 = vadd.f32 %v399_v51, %v367_v39  ;;  %v7840_v48 = vadd.f32 %v401_v40, %v369_v0  ;;  %v7842_v11 = vadd.f32 %v400_v42, %v368_v41  ;;  %v371_v15 = vmul.f32 %v355_v14, %v7678_v57 }
  0xbb   :  { %11364 = vst [vmem:[#allocation27_spill] sm:$0xff] %v7838_v44  ;;  %v389_v47 = vpop.permute.xlu0 %388  ;;  %v7844_v12 = vadd.f32 %v402_v43, %v370_v52  ;;  %v372_v44 = vmul.f32 %v355_v14, %v7715_v8  ;;  %v373_v51 = vmul.f32 %v355_v14, %v7718_v9  ;;  %v374_v40 = vmul.f32 %v355_v14, %v7721_v10 }
  0xbc   :  { %11365 = vst [vmem:[#allocation28_spill] sm:$0xff] %v7840_v48  ;;  %11366 = vst [vmem:[#allocation29_spill] sm:$0xff] %v7842_v11  ;;  %v403_v27 = vmul.f32 %v389_v47, %v7692_v62  ;;  %v404_v18 = vmul.f32 %v389_v47, %v7701_v3  ;;  %v405_v19 = vmul.f32 %v389_v47, %v7704_v4 }
  0xbd   :  { %11367 = vst [vmem:[#allocation30_spill] sm:$0xff] %v7844_v12  ;;  %v406_v38 = vmul.f32 %v389_v47, %v7707_v5  ;;  %v7855_v41 = vadd.f32 %v415_v7, %v7729_v17  ;;  %v360_v47 = vpop.permute.xlu1 %359 }
  0xbe   :  { %v419_v43 = vadd.f32 %v403_v27, %v371_v15  ;;  %v7857_v39 = vadd.f32 %v405_v19, %v373_v51  ;;  %v7859_v0 = vadd.f32 %v404_v18, %v372_v44  ;;  %v375_v7 = vmul.f32 %v360_v47, %v7678_v57 }
  0xbf   :  { %11368 = vst [vmem:[#allocation31_spill] sm:$0xff] %v7855_v41  ;;  %v393_v42 = vpop.permute.xlu0 %392  ;;  %v7861_v52 = vadd.f32 %v406_v38, %v374_v40  ;;  %v376_v41 = vmul.f32 %v360_v47, %v7715_v8  ;;  %v377_v19 = vmul.f32 %v360_v47, %v7718_v9  ;;  %v378_v18 = vmul.f32 %v360_v47, %v7721_v10 }
  0xc0   :  { %11369 = vst [vmem:[#allocation32_spill] sm:$0xff] %v7857_v39  ;;  %11370 = vst [vmem:[#allocation33_spill] sm:$0xff] %v7859_v0  ;;  %v407_v12 = vmul.f32 %v393_v42, %v7692_v62  ;;  %v408_v48 = vmul.f32 %v393_v42, %v7701_v3  ;;  %v409_v11 = vmul.f32 %v393_v42, %v7704_v4 }
  0xc1   :  { %11371 = vst [vmem:[#allocation34_spill] sm:$0xff] %v7861_v52  ;;  %v410_v14 = vmul.f32 %v393_v42, %v7707_v5  ;;  %v7872_v27 = vadd.f32 %v419_v43, %v7729_v17  ;;  %v365_v42 = vpop.permute.xlu1 %364 }
  0xc2   :  { %v423_v38 = vadd.f32 %v407_v12, %v375_v7  ;;  %v7874_v15 = vadd.f32 %v409_v11, %v377_v19  ;;  %v7876_v51 = vadd.f32 %v408_v48, %v376_v41  ;;  %v379_v43 = vmul.f32 %v365_v42, %v7678_v57 }
  0xc3   :  { %11372 = vst [vmem:[#allocation35_spill] sm:$0xff] %v7872_v27  ;;  %v397_v44 = vpop.permute.xlu0 %396  ;;  %v7878_v40 = vadd.f32 %v410_v14, %v378_v18  ;;  %v380_v27 = vmul.f32 %v365_v42, %v7715_v8  ;;  %v381_v11 = vmul.f32 %v365_v42, %v7718_v9  ;;  %v382_v48 = vmul.f32 %v365_v42, %v7721_v10 }
  0xc4   :  { %11373 = vst [vmem:[#allocation36_spill] sm:$0xff] %v7874_v15  ;;  %11374 = vst [vmem:[#allocation37_spill] sm:$0xff] %v7876_v51  ;;  %v411_v52 = vmul.f32 %v397_v44, %v7692_v62  ;;  %v412_v39 = vmul.f32 %v397_v44, %v7701_v3  ;;  %v413_v0 = vmul.f32 %v397_v44, %v7704_v4 }
  0xc5   :  { %11375 = vst [vmem:[#allocation38_spill] sm:$0xff] %v7878_v40  ;;  %v414_v47 = vmul.f32 %v397_v44, %v7707_v5  ;;  %v7889_v12 = vadd.f32 %v423_v38, %v7729_v17  ;;  %v470_v44 = vpop.permute.xlu1 %469 }
  0xc6   :  { %v427_v14 = vadd.f32 %v411_v52, %v379_v43  ;;  %v7891_v7 = vadd.f32 %v413_v0, %v381_v11  ;;  %v7893_v19 = vadd.f32 %v412_v39, %v380_v27  ;;  %v487_v38 = vmul.f32 %v470_v44, %v7678_v57 }
  0xc7   :  { %11376 = vst [vmem:[#allocation39_spill] sm:$0xff] %v7889_v12  ;;  %v505_v41 = vpop.permute.xlu0 %504  ;;  %v7895_v18 = vadd.f32 %v414_v47, %v382_v48  ;;  %v488_v12 = vmul.f32 %v470_v44, %v7715_v8  ;;  %v489_v0 = vmul.f32 %v470_v44, %v7718_v9  ;;  %v490_v39 = vmul.f32 %v470_v44, %v7721_v10 }
  0xc8   :  { %11377 = vst [vmem:[#allocation40_spill] sm:$0xff] %v7891_v7  ;;  %11378 = vst [vmem:[#allocation41_spill] sm:$0xff] %v7893_v19  ;;  %v519_v40 = vmul.f32 %v505_v41, %v7692_v62  ;;  %v520_v15 = vmul.f32 %v505_v41, %v7701_v3  ;;  %v521_v51 = vmul.f32 %v505_v41, %v7704_v4 }
  0xc9   :  { %11379 = vst [vmem:[#allocation42_spill] sm:$0xff] %v7895_v18  ;;  %v522_v42 = vmul.f32 %v505_v41, %v7707_v5  ;;  %v7906_v52 = vadd.f32 %v427_v14, %v7729_v17  ;;  %v475_v41 = vpop.permute.xlu1 %474 }
  0xca   :  { %v535_v47 = vadd.f32 %v519_v40, %v487_v38  ;;  %v7908_v43 = vadd.f32 %v521_v51, %v489_v0  ;;  %v7910_v11 = vadd.f32 %v520_v15, %v488_v12  ;;  %v491_v14 = vmul.f32 %v475_v41, %v7678_v57 }
  0xcb   :  { %11380 = vst [vmem:[#allocation43_spill] sm:$0xff] %v7906_v52  ;;  %v509_v27 = vpop.permute.xlu0 %508  ;;  %v7912_v48 = vadd.f32 %v522_v42, %v490_v39  ;;  %v492_v52 = vmul.f32 %v475_v41, %v7715_v8  ;;  %v493_v51 = vmul.f32 %v475_v41, %v7718_v9  ;;  %v494_v15 = vmul.f32 %v475_v41, %v7721_v10 }
  0xcc   :  { %11381 = vst [vmem:[#allocation44_spill] sm:$0xff] %v7908_v43  ;;  %11382 = vst [vmem:[#allocation45_spill] sm:$0xff] %v7910_v11  ;;  %v523_v18 = vmul.f32 %v509_v27, %v7692_v62  ;;  %v524_v7 = vmul.f32 %v509_v27, %v7701_v3  ;;  %v525_v19 = vmul.f32 %v509_v27, %v7704_v4 }
  0xcd   :  { %11383 = vst [vmem:[#allocation46_spill] sm:$0xff] %v7912_v48  ;;  %v526_v44 = vmul.f32 %v509_v27, %v7707_v5  ;;  %v7923_v40 = vadd.f32 %v535_v47, %v7729_v17  ;;  %v480_v27 = vpop.permute.xlu1 %479 }
  0xce   :  { %v539_v42 = vadd.f32 %v523_v18, %v491_v14  ;;  %v7925_v38 = vadd.f32 %v525_v19, %v493_v51  ;;  %v7927_v0 = vadd.f32 %v524_v7, %v492_v52  ;;  %v495_v47 = vmul.f32 %v480_v27, %v7678_v57 }
  0xcf   :  { %11384 = vst [vmem:[#allocation47_spill] sm:$0xff] %v7923_v40  ;;  %v513_v12 = vpop.permute.xlu0 %512  ;;  %v7929_v39 = vadd.f32 %v526_v44, %v494_v15  ;;  %v496_v40 = vmul.f32 %v480_v27, %v7715_v8  ;;  %v497_v19 = vmul.f32 %v480_v27, %v7718_v9  ;;  %v498_v7 = vmul.f32 %v480_v27, %v7721_v10 }
  0xd0   :  { %11385 = vst [vmem:[#allocation48_spill] sm:$0xff] %v7925_v38  ;;  %11386 = vst [vmem:[#allocation49_spill] sm:$0xff] %v7927_v0  ;;  %v527_v48 = vmul.f32 %v513_v12, %v7692_v62  ;;  %v528_v43 = vmul.f32 %v513_v12, %v7701_v3  ;;  %v529_v11 = vmul.f32 %v513_v12, %v7704_v4 }
  0xd1   :  { %11387 = vst [vmem:[#allocation50_spill] sm:$0xff] %v7929_v39  ;;  %v530_v41 = vmul.f32 %v513_v12, %v7707_v5  ;;  %v7940_v18 = vadd.f32 %v539_v42, %v7729_v17  ;;  %v485_v12 = vpop.permute.xlu1 %484 }
  0xd2   :  { %v543_v44 = vadd.f32 %v527_v48, %v495_v47  ;;  %v7942_v14 = vadd.f32 %v529_v11, %v497_v19  ;;  %v7944_v51 = vadd.f32 %v528_v43, %v496_v40  ;;  %v499_v42 = vmul.f32 %v485_v12, %v7678_v57 }
  0xd3   :  { %11388 = vst [vmem:[#allocation51_spill] sm:$0xff] %v7940_v18  ;;  %v517_v52 = vpop.permute.xlu0 %516  ;;  %v7946_v15 = vadd.f32 %v530_v41, %v498_v7  ;;  %v500_v18 = vmul.f32 %v485_v12, %v7715_v8  ;;  %v501_v11 = vmul.f32 %v485_v12, %v7718_v9  ;;  %v502_v43 = vmul.f32 %v485_v12, %v7721_v10 }
  0xd4   :  { %11389 = vst [vmem:[#allocation52_spill] sm:$0xff] %v7942_v14  ;;  %11390 = vst [vmem:[#allocation53_spill] sm:$0xff] %v7944_v51  ;;  %v531_v39 = vmul.f32 %v517_v52, %v7692_v62  ;;  %v532_v38 = vmul.f32 %v517_v52, %v7701_v3  ;;  %v533_v0 = vmul.f32 %v517_v52, %v7704_v4 }
  0xd5   :  { %11391 = vst [vmem:[#allocation54_spill] sm:$0xff] %v7946_v15  ;;  %v534_v27 = vmul.f32 %v517_v52, %v7707_v5  ;;  %v7957_v48 = vadd.f32 %v543_v44, %v7729_v17  ;;  %v85_v52 = vmul.f32 %v7678_v57, %v7672_v55  ;;  %v138_v15 = vmul.f32 %v7692_v62, %v7696_v1 }
  0xd6   :  { %v547_v40 = vadd.f32 %v531_v39, %v499_v42  ;;  %v7959_v41 = vadd.f32 %v533_v0, %v501_v11  ;;  %v7961_v47 = vadd.f32 %v532_v38, %v500_v18  ;;  %v86_v44 = vmul.f32 %v7715_v8, %v7672_v55 }
  0xd7   :  { %11392 = vst [vmem:[#allocation55_spill] sm:$0xff] %v7957_v48  ;;  %v7963_v19 = vadd.f32 %v534_v27, %v502_v43  ;;  %v139_v0 = vmul.f32 %v7701_v3, %v7696_v1  ;;  %v154_v39 = vadd.f32 %v138_v15, %v85_v52  ;;  %v87_v38 = vmul.f32 %v7718_v9, %v7672_v55 }
  0xd8   :  { %11393 = vst [vmem:[#allocation56_spill] sm:$0xff] %v7959_v41  ;;  %11394 = vst [vmem:[#allocation57_spill] sm:$0xff] %v7961_v47  ;;  %v7966_v7 = vadd.f32 %v547_v40, %v7729_v17  ;;  %v140_v18 = vmul.f32 %v7704_v4, %v7696_v1  ;;  %v7982_v57 = vrot.slane %v7712_v6, %v7681_v58 }
  0xd9   :  { %11395 = vst [vmem:[#allocation58_spill] sm:$0xff] %v7963_v19  ;;  %v155_v12 = vadd.f32 %v139_v0, %v86_v44  ;;  %v191_v62 = vadd.f32 %v7729_v17, %v154_v39  ;;  %v7987_v15 = vrot.slane %v7712_v6, %v7684_v59  ;;  %v88_v44 = vmul.f32 %v7721_v10, %v7672_v55 }
  0xda   :  { %11396 = vst [vmem:[#allocation59_spill] sm:$0xff] %v7966_v7  ;;  %11397 = vst [vmem:[#allocation60_spill] sm:$0xff] %v7982_v57  ;;  %v156_v43 = vadd.f32 %v140_v18, %v87_v38  ;;  %v141_v0 = vmul.f32 %v7707_v5, %v7696_v1  ;;  %v7997_v47 = vrot.slane %v7712_v6, %v7687_v60  ;;  %v8120_v60 = vld [vmem:[%s11216_s2 + $0x44] ss:$16 sps:$4 sm:$0xff]   ;;  %v8126_v7 = vld [vmem:[%s11216_s2 + $0x4c] ss:$16 sps:$4 sm:$0xff]  }
  0xdb   :  { %11398 = vst [vmem:[#allocation61_spill] sm:$0xff] %v7987_v15  ;;  %v192_v40 = vadd.f32 %v7982_v57, %v155_v12 }
  0xdc   :  { %v193_v38 = vadd.f32 %v7987_v15, %v156_v43  ;;  %v157_v12 = vadd.f32 %v141_v0, %v88_v44  ;;  %11399 = vst [vmem:[#allocation62_spill] sm:$0xff] %v7997_v47 }
  0xde   :  { %v194_v55 = vadd.f32 %v7997_v47, %v157_v12  ;;  %v8016_v12 = vld [vmem:[%s11216_s2 + $0xe8] ss:$16 sps:$4 sm:$0xff]  }
  0xf0   :  { %v813_v27 = vpop.f32.mrf.mxu0  ;;  %v854_v42 = vpop.f32.mrf.mxu1 }
  0xf1   :  { %v861_v11 = vadd.f32 %v813_v27, %v191_v62  ;;  %v863_v59 = vadd.f32 %v854_v42, %v193_v38 }
  0xf2   :  { %v815_v52 = vpop.f32.mrf.mxu0  ;;  %v856_v19 = vpop.f32.mrf.mxu1 }
  0xf3   :  { %v865_v58 = vmul.f32 0.5, %v861_v11  ;;  %v862_v17 = vadd.f32 %v815_v52, %v192_v40  ;;  %v864_v1 = vadd.f32 %v856_v19, %v194_v55  ;;  %v8022_v55 = vld [vmem:[%s11216_s2 + $0xc4] ss:$16 sps:$4 sm:$0xff]  }
  0xf4   :  { %v817_v39 = vpop.f32.mrf.mxu0  ;;  %v858_v41 = vpop.f32.mrf.mxu1 }
  0xf5   :  { %6868 = vtanh.f32 %v865_v58  ;;  %v869_v18 = vmul.f32 0.5, %v862_v17  ;;  %v874_v11 = vmul.f32 0.5, %v864_v1  ;;  %v8028_v1 = vld [vmem:[%s11216_s2 + $0xcc] ss:$16 sps:$4 sm:$0xff]  }
  0xf6   :  { %v818_v62 = vpop.f32.mrf.mxu0  ;;  %v859_v27 = vpop.f32.mrf.mxu1 }
  0xf7   :  { %6870 = vtanh.f32 %v869_v18  ;;  %v8010_v27 = vld [vmem:[%s11216_s2 + $0xe0] ss:$16 sps:$4 sm:$0xff]  }
  0xf8   :  { %6872 = vtanh.f32 %v863_v59 }
  0xf9   :  { %6874 = vtanh.f32 %v874_v11  ;;  %v11401_v11 = vmov 0  }
 0x102   :  { %v6869_v40 = vpop.eup %6868 }
 0x103   :  { %v867_v41 = vmul.f32 0.5, %v6869_v40  ;;  %v8036_v40 = vld [vmem:[%s11216_s2 + $0xc0] ss:$16 sps:$4 sm:$0xff]  }
 0x104   :  { %v6871_v58 = vpop.eup %6870 }
 0x105   :  { %v868_v52 = vadd.f32 0.5, %v867_v41  ;;  %v871_v43 = vmul.f32 0.5, %v6871_v58  ;;  %v6873_v39 = vpop.eup %6872  ;;  %v8042_v41 = vld [vmem:[%s11216_s2 + $0xc8] ss:$16 sps:$4 sm:$0xff]   ;;  %v8048_v58 = vld [vmem:[%s11216_s2 + $0xa4] ss:$16 sps:$4 sm:$0xff]  }
 0x106   :  { %v6875_v6 = vpop.eup %6874 }
 0x107   :  { %v872_v17 = vadd.f32 0.5, %v871_v43  ;;  %v879_v38 = vmul.f32 %v6873_v39, %v868_v52  ;;  %v876_v59 = vmul.f32 0.5, %v6875_v6  ;;  %v8054_v52 = vld [vmem:[%s11216_s2 + $0xac] ss:$16 sps:$4 sm:$0xff]   ;;  %v8060_v43 = vld [vmem:[%s11216_s2 + $0xa0] ss:$16 sps:$4 sm:$0xff]  }
 0x108   :  { %v8072_v39 = vld [vmem:[%s11216_s2 + $0x84] ss:$16 sps:$4 sm:$0xff]   ;;  %v8090_v6 = vld [vmem:[%s11216_s2 + $0x88] ss:$16 sps:$4 sm:$0xff]  }
 0x109   :  { %v878_v42 = vmul.f32 0.0, %v872_v17  ;;  %v877_v0 = vadd.f32 0.5, %v876_v59  ;;  %v8066_v17 = vld [vmem:[%s11216_s2 + $0xa8] ss:$16 sps:$4 sm:$0xff]   ;;  %v8096_v59 = vld [vmem:[%s11216_s2 + $0x64] ss:$16 sps:$4 sm:$0xff]  }
 0x10b   :  { %v8000_v44 = vadd.f32 %v879_v38, %v878_v42  ;;  %v8078_v42 = vld [vmem:[%s11216_s2 + $0x8c] ss:$16 sps:$4 sm:$0xff]   ;;  %v8084_v38 = vld [vmem:[%s11216_s2 + $0x80] ss:$16 sps:$4 sm:$0xff]  }
 0x10d   :  { %6876 = vtanh.f32 %v8000_v44 }
 0x11a   :  { %v6877_v18 = vpop.eup %6876 }
 0x11b   :  { %v8003_v19 = vmul.f32 %v6877_v18, %v877_v0  ;;  %v8102_v0 = vld [vmem:[%s11216_s2 + $0x6c] ss:$16 sps:$4 sm:$0xff]   ;;  %v8108_v18 = vld [vmem:[%s11216_s2 + $0x60] ss:$16 sps:$4 sm:$0xff]  }
 0x11d   :  { %11400 = vst [vmem:[#allocation63_spill] sm:$0xff] %v8003_v19  ;;  %v888_v62 = vpack.c.bf16 %v8003_v19, %v8003_v19  ;;  %v8132_v19 = vld [vmem:[%s11216_s2 + $0x40] ss:$16 sps:$4 sm:$0xff]  }
 0x11f   :  { %922 = vmatmul.mubr.bf16.vlgmr.msra.gmra.mxu0 %v888_v62  ;;  %963 = vmatmul.mubr.bf16.vlgmr.msra.gmra.mxu1 %v888_v62  ;;  %v8114_v62 = vld [vmem:[%s11216_s2 + $0x68] ss:$16 sps:$4 sm:$0xff]  }
 0x120   :  { %1000 = vmatpush1.bf16.msra.mxu0 %v8010_v27  ;;  %1041 = vmatpush1.bf16.msra.mxu1 %v8016_v12 }
 0x121   :  { %1001 = vmatprep.subr.bf16.mxu0 %v8022_v55  ;;  %1042 = vmatprep.subr.bf16.mxu1 %v8028_v1 }
 0x122   :  { %1031 = vmatprep.mubr.bf16.mxu0 %v11401_v11  ;;  %1072 = vmatprep.mubr.bf16.mxu1 %v11401_v11 }
 0x124   :  { %1002 = vmatpush1.bf16.msra.mxu0 %v8036_v40  ;;  %1043 = vmatpush1.bf16.msra.mxu1 %v8042_v41 }
 0x125   :  { %1003 = vmatprep.subr.bf16.mxu0 %v8048_v58  ;;  %1044 = vmatprep.subr.bf16.mxu1 %v8054_v52 }
 0x128   :  { %1004 = vmatpush1.bf16.msra.mxu0 %v8060_v43  ;;  %1045 = vmatpush1.bf16.msra.mxu1 %v8066_v17 }
 0x129   :  { %1005 = vmatprep.subr.bf16.mxu0 %v8072_v39  ;;  %1046 = vmatprep.subr.bf16.mxu1 %v8078_v42 }
 0x12c   :  { %1006 = vmatpush1.bf16.msra.mxu0 %v8084_v38  ;;  %1047 = vmatpush1.bf16.msra.mxu1 %v8090_v6 }
 0x12d   :  { %1007 = vmatprep.subr.bf16.mxu0 %v8096_v59  ;;  %1048 = vmatprep.subr.bf16.mxu1 %v8102_v0 }
 0x130   :  { %1008 = vmatpush1.bf16.msra.mxu0 %v8108_v18  ;;  %1049 = vmatpush1.bf16.msra.mxu1 %v8114_v62 }
 0x131   :  { %1009 = vmatprep.subr.bf16.mxu0 %v8120_v60  ;;  %1050 = vmatprep.subr.bf16.mxu1 %v8126_v7 }
 0x134   :  { %1010 = vmatpush1.bf16.msra.mxu0 %v8132_v19  ;;  %1051 = vmatpush1.bf16.msra.mxu1 %v7521_v24  ;;  %v8147_v24 = vld [vmem:[%s11216_s2 + $0xe4] ss:$16 sps:$4 sm:$0xff]  }
 0x135   :  { %1011 = vmatprep.subr.bf16.mxu0 %v7526_v25  ;;  %1052 = vmatprep.subr.bf16.mxu1 %v7533_v26  ;;  %v8153_v25 = vld [vmem:[%s11216_s2 + $0xec] ss:$16 sps:$4 sm:$0xff]   ;;  %v90_v26 = vmul.f32 %v7715_v8, %v7670_v54 }
 0x138   :  { %1012 = vmatpush1.bf16.msra.mxu0 %v7546_v29  ;;  %1053 = vmatpush1.bf16.msra.mxu1 %v7551_v30  ;;  %v91_v29 = vmul.f32 %v7718_v9, %v7670_v54  ;;  %v92_v30 = vmul.f32 %v7721_v10, %v7670_v54 }
 0x139   :  { %1013 = vmatprep.subr.bf16.mxu0 %v7558_v31  ;;  %1054 = vmatprep.subr.bf16.mxu1 %v7563_v32  ;;  %v143_v31 = vmul.f32 %v7701_v3, %v7694_v63  ;;  %v144_v32 = vmul.f32 %v7704_v4, %v7694_v63 }
 0x13b   :  { %v159_v14 = vadd.f32 %v143_v31, %v90_v26 }
 0x13c   :  { %1014 = vmatpush1.bf16.msra.mxu0 %v7568_v33  ;;  %1055 = vmatpush1.bf16.msra.mxu1 %v7573_v34  ;;  %v145_v33 = vmul.f32 %v7707_v5, %v7694_v63  ;;  %v160_v34 = vadd.f32 %v144_v32, %v91_v29 }
 0x13d   :  { %1109 = vmatprep.subr.bf16.mxu0 %v8147_v24  ;;  %1150 = vmatprep.subr.bf16.mxu1 %v8153_v25  ;;  %v196_v9 = vadd.f32 %v7982_v57, %v159_v14 }
 0x13e   :  { %v161_v51 = vadd.f32 %v145_v33, %v92_v30  ;;  %v197_v3 = vadd.f32 %v7987_v15, %v160_v34 }
 0x140   :  { %v198_v29 = vadd.f32 %v7997_v47, %v161_v51 }
 0x1df   :  { %v923_v48 = vpop.f32.mrf.mxu0  ;;  %v964_v8 = vpop.f32.mrf.mxu1 }
 0x1e0   :  { %v971_v13 = vadd.f32 %v923_v48, %v7736_v22  ;;  %v973_v37 = vadd.f32 %v964_v8, %v197_v3  ;;  %v8212_v3 = vld [vmem:[%s11216_s2 + $0x24] ss:$16 sps:$4 sm:$0xff]  }
 0x1e1   :  { %v925_v2 = vpop.f32.mrf.mxu0  ;;  %v966_v54 = vpop.f32.mrf.mxu1 }
 0x1e2   :  { %v975_v10 = vmul.f32 0.5, %v971_v13  ;;  %v972_v56 = vadd.f32 %v925_v2, %v196_v9  ;;  %v974_v22 = vadd.f32 %v966_v54, %v198_v29  ;;  %v8242_v29 = vld [vmem:[%s11216_s2 + $0xc] ss:$16 sps:$4 sm:$0xff]  }
 0x1e3   :  { %v927_v61 = vpop.f32.mrf.mxu0  ;;  %v968_v4 = vpop.f32.mrf.mxu1 }
 0x1e4   :  { %6878 = vtanh.f32 %v975_v10  ;;  %v979_v63 = vmul.f32 0.5, %v972_v56  ;;  %v984_v48 = vmul.f32 0.5, %v974_v22  ;;  %v8218_v4 = vld [vmem:[%s11216_s2 + $0x2c] ss:$16 sps:$4 sm:$0xff]   ;;  %v8248_v22 = vld [vmem:[%s11216_s2] ss:$16 sps:$4 sm:$0xff]  }
 0x1e5   :  { %v928_v5 = vpop.f32.mrf.mxu0  ;;  %v969_v26 = vpop.f32.mrf.mxu1 }
 0x1e6   :  { %6880 = vtanh.f32 %v979_v63  ;;  %v8224_v63 = vld [vmem:[%s11216_s2 + $0x20] ss:$16 sps:$4 sm:$0xff]   ;;  %v8230_v5 = vld [vmem:[%s11216_s2 + $0x28] ss:$16 sps:$4 sm:$0xff]   ;;  %v8236_v26 = vld [vmem:[%s11216_s2 + $0x4] ss:$16 sps:$4 sm:$0xff]  }
 0x1e7   :  { %6882 = vtanh.f32 %v973_v37 }
 0x1e8   :  { %6884 = vtanh.f32 %v984_v48  ;;  %v8254_v48 = vld [vmem:[%s11216_s2 + $0x8] ss:$16 sps:$4 sm:$0xff]  }
 0x1f1   :  { %v6879_v14 = vpop.eup %6878 }
 0x1f2   :  { %v977_v30 = vmul.f32 0.5, %v6879_v14 }
 0x1f3   :  { %v6881_v31 = vpop.eup %6880 }
 0x1f4   :  { %v978_v13 = vadd.f32 0.5, %v977_v30  ;;  %v981_v32 = vmul.f32 0.5, %v6881_v31  ;;  %v6883_v2 = vpop.eup %6882 }
 0x1f5   :  { %v6885_v37 = vpop.eup %6884 }
 0x1f6   :  { %v982_v61 = vadd.f32 0.5, %v981_v32  ;;  %v989_v33 = vmul.f32 %v6883_v2, %v978_v13  ;;  %v986_v8 = vmul.f32 0.5, %v6885_v37  ;;  %v200_v13 = vadd.f32 %v7982_v57, %v7740_v35 }
 0x1f8   :  { %v988_v34 = vmul.f32 %v982_v61, %v8000_v44  ;;  %v987_v51 = vadd.f32 0.5, %v986_v8  ;;  %v8206_v44 = vld [vmem:[%s11216_s2 + $0x48] ss:$16 sps:$4 sm:$0xff]  }
 0x1fa   :  { %v8173_v56 = vadd.f32 %v989_v33, %v988_v34  ;;  %v201_v33 = vadd.f32 %v7987_v15, %v7738_v28 }
 0x1fc   :  { %6886 = vtanh.f32 %v8173_v56 }
 0x209   :  { %v6887_v9 = vpop.eup %6886 }
 0x20a   :  { %v8176_v54 = vmul.f32 %v6887_v9, %v987_v51 }
 0x20c   :  { %11402 = vst [vmem:[#allocation64_spill] sm:$0xff] %v8176_v54  ;;  %v998_v10 = vpack.c.bf16 %v8176_v54, %v8176_v54 }
 0x20e   :  { %1032 = vmatmul.mubr.bf16.vlgmr.msra.gmra.mxu0 %v998_v10  ;;  %1073 = vmatmul.mubr.bf16.vlgmr.msra.gmra.mxu1 %v998_v10 }
 0x20f   :  { %1110 = vmatpush1.bf16.msra.mxu0 %v8010_v27  ;;  %1151 = vmatpush1.bf16.msra.mxu1 %v8016_v12 }
 0x210   :  { %1111 = vmatprep.subr.bf16.mxu0 %v8022_v55  ;;  %1152 = vmatprep.subr.bf16.mxu1 %v8028_v1 }
 0x211   :  { %1141 = vmatprep.mubr.bf16.mxu0 %v11401_v11  ;;  %1182 = vmatprep.mubr.bf16.mxu1 %v11401_v11 }
 0x213   :  { %1112 = vmatpush1.bf16.msra.mxu0 %v8036_v40  ;;  %1153 = vmatpush1.bf16.msra.mxu1 %v8042_v41 }
 0x214   :  { %1113 = vmatprep.subr.bf16.mxu0 %v8048_v58  ;;  %1154 = vmatprep.subr.bf16.mxu1 %v8054_v52 }
 0x217   :  { %1114 = vmatpush1.bf16.msra.mxu0 %v8060_v43  ;;  %1155 = vmatpush1.bf16.msra.mxu1 %v8066_v17 }
 0x218   :  { %1115 = vmatprep.subr.bf16.mxu0 %v8072_v39  ;;  %1156 = vmatprep.subr.bf16.mxu1 %v8078_v42 }
 0x21b   :  { %1116 = vmatpush1.bf16.msra.mxu0 %v8084_v38  ;;  %1157 = vmatpush1.bf16.msra.mxu1 %v8090_v6 }
 0x21c   :  { %1117 = vmatprep.subr.bf16.mxu0 %v8096_v59  ;;  %1158 = vmatprep.subr.bf16.mxu1 %v8102_v0 }
 0x21f   :  { %1118 = vmatpush1.bf16.msra.mxu0 %v8108_v18  ;;  %1159 = vmatpush1.bf16.msra.mxu1 %v8114_v62 }
 0x220   :  { %1119 = vmatprep.subr.bf16.mxu0 %v8120_v60  ;;  %1160 = vmatprep.subr.bf16.mxu1 %v8126_v7 }
 0x223   :  { %1120 = vmatpush1.bf16.msra.mxu0 %v8132_v19  ;;  %1161 = vmatpush1.bf16.msra.mxu1 %v8206_v44 }
 0x224   :  { %1121 = vmatprep.subr.bf16.mxu0 %v8212_v3  ;;  %1162 = vmatprep.subr.bf16.mxu1 %v8218_v4 }
 0x227   :  { %1122 = vmatpush1.bf16.msra.mxu0 %v8224_v63  ;;  %1163 = vmatpush1.bf16.msra.mxu1 %v8230_v5 }
 0x228   :  { %1123 = vmatprep.subr.bf16.mxu0 %v8236_v26  ;;  %1164 = vmatprep.subr.bf16.mxu1 %v8242_v29 }
 0x22b   :  { %1124 = vmatpush1.bf16.msra.mxu0 %v8248_v22  ;;  %1165 = vmatpush1.bf16.msra.mxu1 %v8254_v48 }
 0x22c   :  { %1219 = vmatprep.subr.bf16.mxu0 %v8147_v24  ;;  %1260 = vmatprep.subr.bf16.mxu1 %v8153_v25 }
 0x2ce   :  { %v1033_v14 = vpop.f32.mrf.mxu0  ;;  %v1074_v30 = vpop.f32.mrf.mxu1 }
 0x2cf   :  { %v1081_v31 = vadd.f32 %v1033_v14, %v7753_v46  ;;  %v1083_v51 = vadd.f32 %v1074_v30, %v201_v33  ;;  %v202_v46 = vadd.f32 %v7997_v47, %v7742_v36 }
 0x2d0   :  { %v1035_v32 = vpop.f32.mrf.mxu0  ;;  %v1076_v2 = vpop.f32.mrf.mxu1 }
 0x2d1   :  { %v1085_v61 = vmul.f32 0.5, %v1081_v31  ;;  %v1082_v34 = vadd.f32 %v1035_v32, %v200_v13  ;;  %v1084_v35 = vadd.f32 %v1076_v2, %v202_v46  ;;  %v205_v46 = vadd.f32 %v7987_v15, %v7755_v49 }
 0x2d2   :  { %v1037_v37 = vpop.f32.mrf.mxu0  ;;  %v1078_v8 = vpop.f32.mrf.mxu1 }
 0x2d3   :  { %6888 = vtanh.f32 %v1085_v61  ;;  %v1089_v9 = vmul.f32 0.5, %v1082_v34  ;;  %v1094_v14 = vmul.f32 0.5, %v1084_v35  ;;  %v204_v8 = vadd.f32 %v7982_v57, %v7757_v50 }
 0x2d4   :  { %v1038_v10 = vpop.f32.mrf.mxu0  ;;  %v1079_v54 = vpop.f32.mrf.mxu1 }
 0x2d5   :  { %6890 = vtanh.f32 %v1089_v9 }
 0x2d6   :  { %6892 = vtanh.f32 %v1083_v51 }
 0x2d7   :  { %6894 = vtanh.f32 %v1094_v14 }
 0x2e0   :  { %v6889_v23 = vpop.eup %6888 }
 0x2e1   :  { %v1087_v31 = vmul.f32 0.5, %v6889_v23 }
 0x2e2   :  { %v6891_v20 = vpop.eup %6890 }
 0x2e3   :  { %v1088_v21 = vadd.f32 0.5, %v1087_v31  ;;  %v1091_v28 = vmul.f32 0.5, %v6891_v20  ;;  %v6893_v13 = vpop.eup %6892 }
 0x2e4   :  { %v6895_v54 = vpop.eup %6894 }
 0x2e5   :  { %v1092_v32 = vadd.f32 0.5, %v1091_v28  ;;  %v1099_v61 = vmul.f32 %v6893_v13, %v1088_v21  ;;  %v1096_v34 = vmul.f32 0.5, %v6895_v54 }
 0x2e7   :  { %v1098_v30 = vmul.f32 %v1092_v32, %v8173_v56  ;;  %v1097_v36 = vadd.f32 0.5, %v1096_v34 }
 0x2e9   :  { %v8267_v33 = vadd.f32 %v1099_v61, %v1098_v30 }
 0x2eb   :  { %6896 = vtanh.f32 %v8267_v33 }
 0x2f8   :  { %v6897_v2 = vpop.eup %6896 }
 0x2f9   :  { %v8270_v37 = vmul.f32 %v6897_v2, %v1097_v36 }
 0x2fb   :  { %v1108_v23 = vpack.c.bf16 %v8270_v37, %v8270_v37 }
 0x2fd   :  { %1142 = vmatmul.mubr.bf16.vlgmr.msra.gmra.mxu0 %v1108_v23  ;;  %1183 = vmatmul.mubr.bf16.vlgmr.msra.gmra.mxu1 %v1108_v23 }
 0x2fe   :  { %1220 = vmatpush1.bf16.msra.mxu0 %v8010_v27  ;;  %1261 = vmatpush1.bf16.msra.mxu1 %v8016_v12 }
 0x2ff   :  { %1221 = vmatprep.subr.bf16.mxu0 %v8022_v55  ;;  %1262 = vmatprep.subr.bf16.mxu1 %v8028_v1 }
 0x300   :  { %1251 = vmatprep.mubr.bf16.mxu0 %v11401_v11  ;;  %1292 = vmatprep.mubr.bf16.mxu1 %v11401_v11 }
 0x302   :  { %1222 = vmatpush1.bf16.msra.mxu0 %v8036_v40  ;;  %1263 = vmatpush1.bf16.msra.mxu1 %v8042_v41 }
 0x303   :  { %1223 = vmatprep.subr.bf16.mxu0 %v8048_v58  ;;  %1264 = vmatprep.subr.bf16.mxu1 %v8054_v52 }
 0x306   :  { %1224 = vmatpush1.bf16.msra.mxu0 %v8060_v43  ;;  %1265 = vmatpush1.bf16.msra.mxu1 %v8066_v17 }
 0x307   :  { %1225 = vmatprep.subr.bf16.mxu0 %v8072_v39  ;;  %1266 = vmatprep.subr.bf16.mxu1 %v8078_v42 }
 0x30a   :  { %1226 = vmatpush1.bf16.msra.mxu0 %v8084_v38  ;;  %1267 = vmatpush1.bf16.msra.mxu1 %v8090_v6 }
 0x30b   :  { %1227 = vmatprep.subr.bf16.mxu0 %v8096_v59  ;;  %1268 = vmatprep.subr.bf16.mxu1 %v8102_v0 }
 0x30e   :  { %1228 = vmatpush1.bf16.msra.mxu0 %v8108_v18  ;;  %1269 = vmatpush1.bf16.msra.mxu1 %v8114_v62 }
 0x30f   :  { %1229 = vmatprep.subr.bf16.mxu0 %v8120_v60  ;;  %1270 = vmatprep.subr.bf16.mxu1 %v8126_v7 }
 0x312   :  { %1230 = vmatpush1.bf16.msra.mxu0 %v8132_v19  ;;  %1271 = vmatpush1.bf16.msra.mxu1 %v8206_v44 }
 0x313   :  { %1231 = vmatprep.subr.bf16.mxu0 %v8212_v3  ;;  %1272 = vmatprep.subr.bf16.mxu1 %v8218_v4 }
 0x316   :  { %1232 = vmatpush1.bf16.msra.mxu0 %v8224_v63  ;;  %1273 = vmatpush1.bf16.msra.mxu1 %v8230_v5 }
 0x317   :  { %1233 = vmatprep.subr.bf16.mxu0 %v8236_v26  ;;  %1274 = vmatprep.subr.bf16.mxu1 %v8242_v29 }
 0x31a   :  { %1234 = vmatpush1.bf16.msra.mxu0 %v8248_v22  ;;  %1275 = vmatpush1.bf16.msra.mxu1 %v8254_v48 }
 0x31b   :  { %1329 = vmatprep.subr.bf16.mxu0 %v8147_v24  ;;  %1370 = vmatprep.subr.bf16.mxu1 %v8153_v25 }
 0x3bd   :  { %v1143_v20 = vpop.f32.mrf.mxu0  ;;  %v1184_v21 = vpop.f32.mrf.mxu1 }
 0x3be   :  { %v1191_v56 = vadd.f32 %v1143_v20, %v7770_v16  ;;  %v1193_v28 = vadd.f32 %v1184_v21, %v205_v46  ;;  %v206_v16 = vadd.f32 %v7997_v47, %v7759_v53 }
 0x3bf   :  { %v1145_v51 = vpop.f32.mrf.mxu0  ;;  %v1186_v9 = vpop.f32.mrf.mxu1 }
 0x3c0   :  { %v1195_v10 = vmul.f32 0.5, %v1191_v56  ;;  %v1192_v35 = vadd.f32 %v1145_v51, %v204_v8  ;;  %v1194_v50 = vadd.f32 %v1186_v9, %v206_v16 }
 0x3c1   :  { %v1147_v14 = vpop.f32.mrf.mxu0  ;;  %v1188_v31 = vpop.f32.mrf.mxu1 }
 0x3c2   :  { %6898 = vtanh.f32 %v1195_v10  ;;  %v1199_v13 = vmul.f32 0.5, %v1192_v35  ;;  %v1204_v30 = vmul.f32 0.5, %v1194_v50  ;;  %v11404_v50 = vld [vmem:[#allocation13_spill] sm:$0xff] }
 0x3c3   :  { %v1148_v32 = vpop.f32.mrf.mxu0  ;;  %v1189_v61 = vpop.f32.mrf.mxu1 }
 0x3c4   :  { %6900 = vtanh.f32 %v1199_v13 }
 0x3c5   :  { %6902 = vtanh.f32 %v1193_v28  ;;  %v11403_v28 = vld [vmem:[#allocation14_spill] sm:$0xff] }
 0x3c6   :  { %6904 = vtanh.f32 %v1204_v30  ;;  %v312_v13 = vadd.f32 %v11403_v28, %v7982_v57  ;;  %v313_v30 = vadd.f32 %v11404_v50, %v7987_v15 }
 0x3cf   :  { %v6899_v54 = vpop.eup %6898 }
 0x3d0   :  { %v1197_v34 = vmul.f32 0.5, %v6899_v54 }
 0x3d1   :  { %v6901_v36 = vpop.eup %6900 }
 0x3d2   :  { %v1198_v2 = vadd.f32 0.5, %v1197_v34  ;;  %v1201_v49 = vmul.f32 0.5, %v6901_v36  ;;  %v6903_v23 = vpop.eup %6902 }
 0x3d3   :  { %v6905_v51 = vpop.eup %6904 }
 0x3d4   :  { %v1202_v20 = vadd.f32 0.5, %v1201_v49  ;;  %v1209_v56 = vmul.f32 %v6903_v23, %v1198_v2  ;;  %v1206_v10 = vmul.f32 0.5, %v6905_v51 }
 0x3d6   :  { %v1208_v21 = vmul.f32 %v1202_v20, %v8267_v33  ;;  %v1207_v53 = vadd.f32 0.5, %v1206_v10 }
 0x3d8   :  { %v8316_v8 = vadd.f32 %v1209_v56, %v1208_v21 }
 0x3da   :  { %6906 = vtanh.f32 %v8316_v8 }
 0x3e7   :  { %v6907_v9 = vpop.eup %6906 }
 0x3e8   :  { %v8319_v46 = vmul.f32 %v6907_v9, %v1207_v53 }
 0x3ea   :  { %v1218_v35 = vpack.c.bf16 %v8319_v46, %v8319_v46 }
 0x3ec   :  { %1252 = vmatmul.mubr.bf16.vlgmr.msra.gmra.mxu0 %v1218_v35  ;;  %1293 = vmatmul.mubr.bf16.vlgmr.msra.gmra.mxu1 %v1218_v35 }
 0x3ed   :  { %1330 = vmatpush1.bf16.msra.mxu0 %v8010_v27  ;;  %1371 = vmatpush1.bf16.msra.mxu1 %v8016_v12 }
 0x3ee   :  { %1331 = vmatprep.subr.bf16.mxu0 %v8022_v55  ;;  %1372 = vmatprep.subr.bf16.mxu1 %v8028_v1 }
 0x3ef   :  { %1361 = vmatprep.mubr.bf16.mxu0 %v11401_v11  ;;  %1402 = vmatprep.mubr.bf16.mxu1 %v11401_v11 }
 0x3f1   :  { %1332 = vmatpush1.bf16.msra.mxu0 %v8036_v40  ;;  %1373 = vmatpush1.bf16.msra.mxu1 %v8042_v41 }
 0x3f2   :  { %1333 = vmatprep.subr.bf16.mxu0 %v8048_v58  ;;  %1374 = vmatprep.subr.bf16.mxu1 %v8054_v52 }
 0x3f5   :  { %1334 = vmatpush1.bf16.msra.mxu0 %v8060_v43  ;;  %1375 = vmatpush1.bf16.msra.mxu1 %v8066_v17 }
 0x3f6   :  { %1335 = vmatprep.subr.bf16.mxu0 %v8072_v39  ;;  %1376 = vmatprep.subr.bf16.mxu1 %v8078_v42 }
 0x3f9   :  { %1336 = vmatpush1.bf16.msra.mxu0 %v8084_v38  ;;  %1377 = vmatpush1.bf16.msra.mxu1 %v8090_v6 }
 0x3fa   :  { %1337 = vmatprep.subr.bf16.mxu0 %v8096_v59  ;;  %1378 = vmatprep.subr.bf16.mxu1 %v8102_v0 }
 0x3fd   :  { %1338 = vmatpush1.bf16.msra.mxu0 %v8108_v18  ;;  %1379 = vmatpush1.bf16.msra.mxu1 %v8114_v62 }
 0x3fe   :  { %1339 = vmatprep.subr.bf16.mxu0 %v8120_v60  ;;  %1380 = vmatprep.subr.bf16.mxu1 %v8126_v7 }
 0x401   :  { %1340 = vmatpush1.bf16.msra.mxu0 %v8132_v19  ;;  %1381 = vmatpush1.bf16.msra.mxu1 %v8206_v44 }
 0x402   :  { %1341 = vmatprep.subr.bf16.mxu0 %v8212_v3  ;;  %1382 = vmatprep.subr.bf16.mxu1 %v8218_v4 }
 0x405   :  { %1342 = vmatpush1.bf16.msra.mxu0 %v8224_v63  ;;  %1383 = vmatpush1.bf16.msra.mxu1 %v8230_v5 }
 0x406   :  { %1343 = vmatprep.subr.bf16.mxu0 %v8236_v26  ;;  %1384 = vmatprep.subr.bf16.mxu1 %v8242_v29 }
 0x409   :  { %1344 = vmatpush1.bf16.msra.mxu0 %v8248_v22  ;;  %1385 = vmatpush1.bf16.msra.mxu1 %v8254_v48 }
 0x40a   :  { %1439 = vmatprep.subr.bf16.mxu0 %v8147_v24  ;;  %1480 = vmatprep.subr.bf16.mxu1 %v8153_v25 }
 0x4ac   :  { %v1253_v33 = vpop.f32.mrf.mxu0  ;;  %v1294_v14 = vpop.f32.mrf.mxu1 }
 0x4ad   :  { %v1301_v31 = vadd.f32 %v1253_v33, %v7787_v45  ;;  %v1303_v2 = vadd.f32 %v1294_v14, %v313_v30  ;;  %v11405_v45 = vld [vmem:[#allocation15_spill] sm:$0xff] }
 0x4ae   :  { %v1255_v32 = vpop.f32.mrf.mxu0  ;;  %v1296_v61 = vpop.f32.mrf.mxu1  ;;  %v314_v56 = vadd.f32 %v11405_v45, %v7997_v47 }
 0x4af   :  { %v1305_v16 = vmul.f32 0.5, %v1301_v31  ;;  %v1302_v54 = vadd.f32 %v1255_v32, %v312_v13 }
 0x4b0   :  { %v1257_v34 = vpop.f32.mrf.mxu0  ;;  %v1298_v36 = vpop.f32.mrf.mxu1  ;;  %v1304_v21 = vadd.f32 %v1296_v61, %v314_v56 }
 0x4b1   :  { %6908 = vtanh.f32 %v1305_v16  ;;  %v1309_v49 = vmul.f32 0.5, %v1302_v54 }
 0x4b2   :  { %v1258_v23 = vpop.f32.mrf.mxu0  ;;  %v1299_v20 = vpop.f32.mrf.mxu1  ;;  %v1314_v51 = vmul.f32 0.5, %v1304_v21 }
 0x4b3   :  { %6910 = vtanh.f32 %v1309_v49  ;;  %v11407_v23 = vld [vmem:[#allocation17_spill] sm:$0xff] }
 0x4b4   :  { %6912 = vtanh.f32 %v1303_v2  ;;  %v11406_v2 = vld [vmem:[#allocation19_spill] sm:$0xff]  ;;  %v316_v20 = vadd.f32 %v11407_v23, %v7982_v57 }
 0x4b5   :  { %6914 = vtanh.f32 %v1314_v51  ;;  %v11408_v51 = vld [vmem:[#allocation16_spill] sm:$0xff] }
 0x4be   :  { %v6909_v10 = vpop.eup %6908 }
 0x4bf   :  { %v1307_v53 = vmul.f32 0.5, %v6909_v10  ;;  %v317_v10 = vadd.f32 %v11408_v51, %v7987_v15 }
 0x4c0   :  { %v6911_v9 = vpop.eup %6910 }
 0x4c1   :  { %v1308_v35 = vadd.f32 0.5, %v1307_v53  ;;  %v1311_v33 = vmul.f32 0.5, %v6911_v9  ;;  %v6913_v31 = vpop.eup %6912 }
 0x4c2   :  { %v6915_v16 = vpop.eup %6914 }
 0x4c3   :  { %v1312_v28 = vadd.f32 0.5, %v1311_v33  ;;  %v1319_v13 = vmul.f32 %v6913_v31, %v1308_v35  ;;  %v1316_v50 = vmul.f32 0.5, %v6915_v16 }
 0x4c5   :  { %v1318_v14 = vmul.f32 %v1312_v28, %v8316_v8  ;;  %v1317_v30 = vadd.f32 0.5, %v1316_v50 }
 0x4c7   :  { %v8365_v32 = vadd.f32 %v1319_v13, %v1318_v14  ;;  %v11409_v14 = vld [vmem:[#allocation18_spill] sm:$0xff] }
 0x4c8   :  { %v318_v16 = vadd.f32 %v11409_v14, %v7997_v47 }
 0x4c9   :  { %6916 = vtanh.f32 %v8365_v32 }
 0x4d6   :  { %v6917_v61 = vpop.eup %6916 }
 0x4d7   :  { %v8368_v54 = vmul.f32 %v6917_v61, %v1317_v30 }
 0x4d9   :  { %v1328_v34 = vpack.c.bf16 %v8368_v54, %v8368_v54 }
 0x4db   :  { %1362 = vmatmul.mubr.bf16.vlgmr.msra.gmra.mxu0 %v1328_v34  ;;  %1403 = vmatmul.mubr.bf16.vlgmr.msra.gmra.mxu1 %v1328_v34 }
 0x4dc   :  { %1440 = vmatpush1.bf16.msra.mxu0 %v8010_v27  ;;  %1481 = vmatpush1.bf16.msra.mxu1 %v8016_v12 }
 0x4dd   :  { %1441 = vmatprep.subr.bf16.mxu0 %v8022_v55  ;;  %1482 = vmatprep.subr.bf16.mxu1 %v8028_v1 }
 0x4de   :  { %1471 = vmatprep.mubr.bf16.mxu0 %v11401_v11  ;;  %1512 = vmatprep.mubr.bf16.mxu1 %v11401_v11 }
 0x4e0   :  { %1442 = vmatpush1.bf16.msra.mxu0 %v8036_v40  ;;  %1483 = vmatpush1.bf16.msra.mxu1 %v8042_v41 }
 0x4e1   :  { %1443 = vmatprep.subr.bf16.mxu0 %v8048_v58  ;;  %1484 = vmatprep.subr.bf16.mxu1 %v8054_v52 }
 0x4e4   :  { %1444 = vmatpush1.bf16.msra.mxu0 %v8060_v43  ;;  %1485 = vmatpush1.bf16.msra.mxu1 %v8066_v17 }
 0x4e5   :  { %1445 = vmatprep.subr.bf16.mxu0 %v8072_v39  ;;  %1486 = vmatprep.subr.bf16.mxu1 %v8078_v42 }
 0x4e8   :  { %1446 = vmatpush1.bf16.msra.mxu0 %v8084_v38  ;;  %1487 = vmatpush1.bf16.msra.mxu1 %v8090_v6 }
 0x4e9   :  { %1447 = vmatprep.subr.bf16.mxu0 %v8096_v59  ;;  %1488 = vmatprep.subr.bf16.mxu1 %v8102_v0 }
 0x4ec   :  { %1448 = vmatpush1.bf16.msra.mxu0 %v8108_v18  ;;  %1489 = vmatpush1.bf16.msra.mxu1 %v8114_v62 }
 0x4ed   :  { %1449 = vmatprep.subr.bf16.mxu0 %v8120_v60  ;;  %1490 = vmatprep.subr.bf16.mxu1 %v8126_v7 }
 0x4f0   :  { %1450 = vmatpush1.bf16.msra.mxu0 %v8132_v19  ;;  %1491 = vmatpush1.bf16.msra.mxu1 %v8206_v44 }
 0x4f1   :  { %1451 = vmatprep.subr.bf16.mxu0 %v8212_v3  ;;  %1492 = vmatprep.subr.bf16.mxu1 %v8218_v4 }
 0x4f4   :  { %1452 = vmatpush1.bf16.msra.mxu0 %v8224_v63  ;;  %1493 = vmatpush1.bf16.msra.mxu1 %v8230_v5 }
 0x4f5   :  { %1453 = vmatprep.subr.bf16.mxu0 %v8236_v26  ;;  %1494 = vmatprep.subr.bf16.mxu1 %v8242_v29 }
 0x4f8   :  { %1454 = vmatpush1.bf16.msra.mxu0 %v8248_v22  ;;  %1495 = vmatpush1.bf16.msra.mxu1 %v8254_v48 }
 0x4f9   :  { %1549 = vmatprep.subr.bf16.mxu0 %v8147_v24  ;;  %1590 = vmatprep.subr.bf16.mxu1 %v8153_v25 }
 0x59b   :  { %v1363_v8 = vpop.f32.mrf.mxu0  ;;  %v1404_v36 = vpop.f32.mrf.mxu1 }
 0x59c   :  { %v1411_v49 = vadd.f32 %v1363_v8, %v11406_v2  ;;  %v1413_v33 = vadd.f32 %v1404_v36, %v317_v10 }
 0x59d   :  { %v1365_v45 = vpop.f32.mrf.mxu0  ;;  %v1406_v56 = vpop.f32.mrf.mxu1 }
 0x59e   :  { %v1415_v21 = vmul.f32 0.5, %v1411_v49  ;;  %v1412_v53 = vadd.f32 %v1365_v45, %v316_v20  ;;  %v1414_v50 = vadd.f32 %v1406_v56, %v318_v16 }
 0x59f   :  { %v1367_v9 = vpop.f32.mrf.mxu0  ;;  %v1408_v35 = vpop.f32.mrf.mxu1 }
 0x5a0   :  { %6918 = vtanh.f32 %v1415_v21  ;;  %v1419_v31 = vmul.f32 0.5, %v1412_v53  ;;  %v1424_v30 = vmul.f32 0.5, %v1414_v50 }
 0x5a1   :  { %v1368_v28 = vpop.f32.mrf.mxu0  ;;  %v1409_v13 = vpop.f32.mrf.mxu1 }
 0x5a2   :  { %6920 = vtanh.f32 %v1419_v31  ;;  %v11410_v31 = vld [vmem:[#allocation23_spill] sm:$0xff]  ;;  %v11411_v13 = vld [vmem:[#allocation21_spill] sm:$0xff] }
 0x5a3   :  { %6922 = vtanh.f32 %v1413_v33  ;;  %v320_v14 = vadd.f32 %v11411_v13, %v7982_v57 }
 0x5a4   :  { %6924 = vtanh.f32 %v1424_v30 }
 0x5ad   :  { %v6919_v61 = vpop.eup %6918 }
 0x5ae   :  { %v1417_v34 = vmul.f32 0.5, %v6919_v61  ;;  %v11412_v61 = vld [vmem:[#allocation20_spill] sm:$0xff] }
 0x5af   :  { %v6921_v8 = vpop.eup %6920 }
 0x5b0   :  { %v1418_v2 = vadd.f32 0.5, %v1417_v34  ;;  %v1421_v49 = vmul.f32 0.5, %v6921_v8  ;;  %v6923_v23 = vpop.eup %6922  ;;  %v321_v34 = vadd.f32 %v11412_v61, %v7987_v15 }
 0x5b1   :  { %v6925_v51 = vpop.eup %6924 }
 0x5b2   :  { %v1422_v20 = vadd.f32 0.5, %v1421_v49  ;;  %v1429_v45 = vmul.f32 %v6923_v23, %v1418_v2  ;;  %v1426_v10 = vmul.f32 0.5, %v6925_v51  ;;  %v11413_v51 = vld [vmem:[#allocation22_spill] sm:$0xff] }
 0x5b4   :  { %v1428_v36 = vmul.f32 %v1422_v20, %v8365_v32  ;;  %v1427_v53 = vadd.f32 0.5, %v1426_v10  ;;  %v322_v10 = vadd.f32 %v11413_v51, %v7997_v47 }
 0x5b6   :  { %v8414_v21 = vadd.f32 %v1429_v45, %v1428_v36 }
 0x5b8   :  { %6926 = vtanh.f32 %v8414_v21 }
 0x5c5   :  { %v6927_v56 = vpop.eup %6926 }
 0x5c6   :  { %v8417_v9 = vmul.f32 %v6927_v56, %v1427_v53 }
 0x5c8   :  { %v1438_v35 = vpack.c.bf16 %v8417_v9, %v8417_v9 }
 0x5ca   :  { %1472 = vmatmul.mubr.bf16.vlgmr.msra.gmra.mxu0 %v1438_v35  ;;  %1513 = vmatmul.mubr.bf16.vlgmr.msra.gmra.mxu1 %v1438_v35 }
 0x5cb   :  { %1550 = vmatpush1.bf16.msra.mxu0 %v8010_v27  ;;  %1591 = vmatpush1.bf16.msra.mxu1 %v8016_v12 }
 0x5cc   :  { %1551 = vmatprep.subr.bf16.mxu0 %v8022_v55  ;;  %1592 = vmatprep.subr.bf16.mxu1 %v8028_v1 }
 0x5cd   :  { %1581 = vmatprep.mubr.bf16.mxu0 %v11401_v11  ;;  %1622 = vmatprep.mubr.bf16.mxu1 %v11401_v11 }
 0x5cf   :  { %1552 = vmatpush1.bf16.msra.mxu0 %v8036_v40  ;;  %1593 = vmatpush1.bf16.msra.mxu1 %v8042_v41 }
 0x5d0   :  { %1553 = vmatprep.subr.bf16.mxu0 %v8048_v58  ;;  %1594 = vmatprep.subr.bf16.mxu1 %v8054_v52 }
 0x5d3   :  { %1554 = vmatpush1.bf16.msra.mxu0 %v8060_v43  ;;  %1595 = vmatpush1.bf16.msra.mxu1 %v8066_v17 }
 0x5d4   :  { %1555 = vmatprep.subr.bf16.mxu0 %v8072_v39  ;;  %1596 = vmatprep.subr.bf16.mxu1 %v8078_v42 }
 0x5d7   :  { %1556 = vmatpush1.bf16.msra.mxu0 %v8084_v38  ;;  %1597 = vmatpush1.bf16.msra.mxu1 %v8090_v6 }
 0x5d8   :  { %1557 = vmatprep.subr.bf16.mxu0 %v8096_v59  ;;  %1598 = vmatprep.subr.bf16.mxu1 %v8102_v0 }
 0x5db   :  { %1558 = vmatpush1.bf16.msra.mxu0 %v8108_v18  ;;  %1599 = vmatpush1.bf16.msra.mxu1 %v8114_v62 }
 0x5dc   :  { %1559 = vmatprep.subr.bf16.mxu0 %v8120_v60  ;;  %1600 = vmatprep.subr.bf16.mxu1 %v8126_v7 }
 0x5df   :  { %1560 = vmatpush1.bf16.msra.mxu0 %v8132_v19  ;;  %1601 = vmatpush1.bf16.msra.mxu1 %v8206_v44 }
 0x5e0   :  { %1561 = vmatprep.subr.bf16.mxu0 %v8212_v3  ;;  %1602 = vmatprep.subr.bf16.mxu1 %v8218_v4 }
 0x5e3   :  { %1562 = vmatpush1.bf16.msra.mxu0 %v8224_v63  ;;  %1603 = vmatpush1.bf16.msra.mxu1 %v8230_v5 }
 0x5e4   :  { %1563 = vmatprep.subr.bf16.mxu0 %v8236_v26  ;;  %1604 = vmatprep.subr.bf16.mxu1 %v8242_v29 }
 0x5e7   :  { %1564 = vmatpush1.bf16.msra.mxu0 %v8248_v22  ;;  %1605 = vmatpush1.bf16.msra.mxu1 %v8254_v48 }
 0x5e8   :  { %1659 = vmatprep.subr.bf16.mxu0 %v8147_v24  ;;  %1700 = vmatprep.subr.bf16.mxu1 %v8153_v25 }
 0x68a   :  { %v1473_v32 = vpop.f32.mrf.mxu0  ;;  %v1514_v33 = vpop.f32.mrf.mxu1 }
 0x68b   :  { %v1521_v28 = vadd.f32 %v1473_v32, %v11410_v31  ;;  %v1523_v23 = vadd.f32 %v1514_v33, %v321_v34 }
 0x68c   :  { %v1475_v16 = vpop.f32.mrf.mxu0  ;;  %v1516_v50 = vpop.f32.mrf.mxu1 }
 0x68d   :  { %v1525_v30 = vmul.f32 0.5, %v1521_v28  ;;  %v1522_v8 = vadd.f32 %v1475_v16, %v320_v14  ;;  %v1524_v53 = vadd.f32 %v1516_v50, %v322_v10 }
 0x68e   :  { %v1477_v2 = vpop.f32.mrf.mxu0  ;;  %v1518_v49 = vpop.f32.mrf.mxu1 }
 0x68f   :  { %6928 = vtanh.f32 %v1525_v30  ;;  %v1529_v20 = vmul.f32 0.5, %v1522_v8  ;;  %v1534_v56 = vmul.f32 0.5, %v1524_v53 }
 0x690   :  { %v1478_v45 = vpop.f32.mrf.mxu0  ;;  %v1519_v36 = vpop.f32.mrf.mxu1 }
 0x691   :  { %6930 = vtanh.f32 %v1529_v20 }
 0x692   :  { %6932 = vtanh.f32 %v1523_v23 }
 0x693   :  { %6934 = vtanh.f32 %v1534_v56 }
 0x69c   :  { %v6929_v35 = vpop.eup %6928 }
 0x69d   :  { %v1527_v32 = vmul.f32 0.5, %v6929_v35 }
 0x69e   :  { %v6931_v31 = vpop.eup %6930 }
 0x69f   :  { %v1528_v28 = vadd.f32 0.5, %v1527_v32  ;;  %v1531_v13 = vmul.f32 0.5, %v6931_v31  ;;  %v6933_v14 = vpop.eup %6932 }
 0x6a0   :  { %v6935_v34 = vpop.eup %6934 }
 0x6a1   :  { %v1532_v16 = vadd.f32 0.5, %v1531_v13  ;;  %v1539_v30 = vmul.f32 %v6933_v14, %v1528_v28  ;;  %v1536_v8 = vmul.f32 0.5, %v6935_v34  ;;  %v8540_v34 = vld [vmem:[%s11216_s2 + $0xcc] ss:$16 sps:$4 sm:$0xff]  }
 0x6a3   :  { %v1538_v33 = vmul.f32 %v1532_v16, %v8414_v21  ;;  %v1537_v2 = vadd.f32 0.5, %v1536_v8  ;;  %v8548_v8 = vld [vmem:[%s11216_s2 + $0xc0] ss:$16 sps:$4 sm:$0xff]  }
 0x6a5   :  { %v8463_v61 = vadd.f32 %v1539_v30, %v1538_v33  ;;  %v8522_v30 = vld [vmem:[%s11216_s2 + $0xe0] ss:$16 sps:$4 sm:$0xff]   ;;  %v8528_v33 = vld [vmem:[%s11216_s2 + $0xe8] ss:$16 sps:$4 sm:$0xff]  }
 0x6a7   :  { %6936 = vtanh.f32 %v8463_v61 }
 0x6b4   :  { %v6937_v50 = vpop.eup %6936 }
 0x6b5   :  { %v8466_v49 = vmul.f32 %v6937_v50, %v1537_v2  ;;  %v8554_v2 = vld [vmem:[%s11216_s2 + $0xc8] ss:$16 sps:$4 sm:$0xff]   ;;  %v8560_v50 = vld [vmem:[%s11216_s2 + $0xa4] ss:$16 sps:$4 sm:$0xff]  }
 0x6b7   :  { %11414 = vst [vmem:[#allocation14_spill] sm:$0xff] %v8466_v49  ;;  %v1548_v23 = vpack.c.bf16 %v8466_v49, %v8466_v49  ;;  %v2563_v49 = vld [vmem:[#allocation5 + $0xd8] sm:$0xff] }
 0x6b9   :  { %1582 = vmatmul.mubr.bf16.vlgmr.msra.gmra.mxu0 %v1548_v23  ;;  %1623 = vmatmul.mubr.bf16.vlgmr.msra.gmra.mxu1 %v1548_v23  ;;  %v8566_v23 = vld [vmem:[%s11216_s2 + $0xac] ss:$16 sps:$4 sm:$0xff]  }
 0x6ba   :  { %1660 = vmatpush1.bf16.msra.mxu0 %v8010_v27  ;;  %1701 = vmatpush1.bf16.msra.mxu1 %v8016_v12  ;;  %v11416_v12 = vld [vmem:[#allocation25_spill] sm:$0xff] }
 0x6bb   :  { %1661 = vmatprep.subr.bf16.mxu0 %v8022_v55  ;;  %1702 = vmatprep.subr.bf16.mxu1 %v8028_v1  ;;  %v324_v55 = vadd.f32 %v11416_v12, %v7982_v57  ;;  %v8596_v12 = vld [vmem:[%s11216_s2 + $0x80] ss:$16 sps:$4 sm:$0xff]  }
 0x6bc   :  { %1691 = vmatprep.mubr.bf16.mxu0 %v11401_v11  ;;  %1732 = vmatprep.mubr.bf16.mxu1 %v11401_v11 }
 0x6be   :  { %1662 = vmatpush1.bf16.msra.mxu0 %v8036_v40  ;;  %1703 = vmatpush1.bf16.msra.mxu1 %v8042_v41 }
 0x6bf   :  { %1663 = vmatprep.subr.bf16.mxu0 %v8048_v58  ;;  %1704 = vmatprep.subr.bf16.mxu1 %v8054_v52  ;;  %v11417_v58 = vld [vmem:[#allocation24_spill] sm:$0xff] }
 0x6c0   :  { %v325_v52 = vadd.f32 %v11417_v58, %v7987_v15  ;;  %v8626_v58 = vld [vmem:[%s11216_s2 + $0x68] ss:$16 sps:$4 sm:$0xff]  }
 0x6c2   :  { %1664 = vmatpush1.bf16.msra.mxu0 %v8060_v43  ;;  %1705 = vmatpush1.bf16.msra.mxu1 %v8066_v17 }
 0x6c3   :  { %1665 = vmatprep.subr.bf16.mxu0 %v8072_v39  ;;  %1706 = vmatprep.subr.bf16.mxu1 %v8078_v42 }
 0x6c6   :  { %1666 = vmatpush1.bf16.msra.mxu0 %v8084_v38  ;;  %1707 = vmatpush1.bf16.msra.mxu1 %v8090_v6 }
 0x6c7   :  { %1667 = vmatprep.subr.bf16.mxu0 %v8096_v59  ;;  %1708 = vmatprep.subr.bf16.mxu1 %v8102_v0  ;;  %v11418_v0 = vld [vmem:[#allocation26_spill] sm:$0xff] }
 0x6ca   :  { %1668 = vmatpush1.bf16.msra.mxu0 %v8108_v18  ;;  %1709 = vmatpush1.bf16.msra.mxu1 %v8114_v62  ;;  %v326_v18 = vadd.f32 %v11418_v0, %v7997_v47 }
 0x6cb   :  { %1669 = vmatprep.subr.bf16.mxu0 %v8120_v60  ;;  %1710 = vmatprep.subr.bf16.mxu1 %v8126_v7 }
 0x6ce   :  { %1670 = vmatpush1.bf16.msra.mxu0 %v8132_v19  ;;  %1711 = vmatpush1.bf16.msra.mxu1 %v8206_v44  ;;  %v11415_v19 = vld [vmem:[#allocation27_spill] sm:$0xff] }
 0x6cf   :  { %1671 = vmatprep.subr.bf16.mxu0 %v8212_v3  ;;  %1712 = vmatprep.subr.bf16.mxu1 %v8218_v4 }
 0x6d2   :  { %1672 = vmatpush1.bf16.msra.mxu0 %v8224_v63  ;;  %1713 = vmatpush1.bf16.msra.mxu1 %v8230_v5 }
 0x6d3   :  { %1673 = vmatprep.subr.bf16.mxu0 %v8236_v26  ;;  %1714 = vmatprep.subr.bf16.mxu1 %v8242_v29 }
 0x6d6   :  { %1674 = vmatpush1.bf16.msra.mxu0 %v8248_v22  ;;  %1715 = vmatpush1.bf16.msra.mxu1 %v8254_v48 }
 0x6d7   :  { %1769 = vmatprep.subr.bf16.mxu0 %v8147_v24  ;;  %1810 = vmatprep.subr.bf16.mxu1 %v8153_v25 }
 0x779   :  { %v1583_v60 = vpop.f32.mrf.mxu0  ;;  %v1624_v7 = vpop.f32.mrf.mxu1 }
 0x77a   :  { %v1631_v27 = vadd.f32 %v1583_v60, %v11415_v19  ;;  %v1633_v42 = vadd.f32 %v1624_v7, %v325_v52  ;;  %v8572_v60 = vld [vmem:[%s11216_s2 + $0xa0] ss:$16 sps:$4 sm:$0xff]   ;;  %v8578_v7 = vld [vmem:[%s11216_s2 + $0xa8] ss:$16 sps:$4 sm:$0xff]   ;;  %v8584_v19 = vld [vmem:[%s11216_s2 + $0x84] ss:$16 sps:$4 sm:$0xff]  }
 0x77b   :  { %v1585_v1 = vpop.f32.mrf.mxu0  ;;  %v1626_v40 = vpop.f32.mrf.mxu1  ;;  %v8632_v52 = vld [vmem:[%s11216_s2 + $0x44] ss:$16 sps:$4 sm:$0xff]  }
 0x77c   :  { %v1635_v41 = vmul.f32 0.5, %v1631_v27  ;;  %v1632_v43 = vadd.f32 %v1585_v1, %v324_v55  ;;  %v1634_v62 = vadd.f32 %v1626_v40, %v326_v18  ;;  %v8590_v27 = vld [vmem:[%s11216_s2 + $0x8c] ss:$16 sps:$4 sm:$0xff]   ;;  %v8602_v55 = vld [vmem:[%s11216_s2 + $0x88] ss:$16 sps:$4 sm:$0xff]  }
 0x77d   :  { %v1587_v17 = vpop.f32.mrf.mxu0  ;;  %v1628_v39 = vpop.f32.mrf.mxu1  ;;  %v8608_v1 = vld [vmem:[%s11216_s2 + $0x64] ss:$16 sps:$4 sm:$0xff]   ;;  %v8614_v40 = vld [vmem:[%s11216_s2 + $0x6c] ss:$16 sps:$4 sm:$0xff]  }
 0x77e   :  { %6938 = vtanh.f32 %v1635_v41  ;;  %v1639_v38 = vmul.f32 0.5, %v1632_v43  ;;  %v1644_v24 = vmul.f32 0.5, %v1634_v62  ;;  %v8620_v41 = vld [vmem:[%s11216_s2 + $0x60] ss:$16 sps:$4 sm:$0xff]   ;;  %v8638_v43 = vld [vmem:[%s11216_s2 + $0x4c] ss:$16 sps:$4 sm:$0xff]  }
 0x77f   :  { %v1588_v6 = vpop.f32.mrf.mxu0  ;;  %v1629_v59 = vpop.f32.mrf.mxu1  ;;  %v8644_v17 = vld [vmem:[%s11216_s2 + $0x40] ss:$16 sps:$4 sm:$0xff]  }
 0x780   :  { %6940 = vtanh.f32 %v1639_v38  ;;  %v11422_v38 = vld [vmem:[#allocation28_spill] sm:$0xff] }
 0x781   :  { %6942 = vtanh.f32 %v1633_v42  ;;  %v433_v6 = vadd.f32 %v11422_v38, %v7987_v15  ;;  %v8721_v38 = vld [vmem:[%s11216_s2 + $0x2c] ss:$16 sps:$4 sm:$0xff]  }
 0x782   :  { %6944 = vtanh.f32 %v1644_v24 }
 0x78b   :  { %v6939_v25 = vpop.eup %6938 }
 0x78c   :  { %v1637_v21 = vmul.f32 0.5, %v6939_v25 }
 0x78d   :  { %v6941_v20 = vpop.eup %6940 }
 0x78e   :  { %v1638_v45 = vadd.f32 0.5, %v1637_v21  ;;  %v1641_v36 = vmul.f32 0.5, %v6941_v20  ;;  %v6943_v51 = vpop.eup %6942  ;;  %v11423_v20 = vld [vmem:[#allocation30_spill] sm:$0xff] }
 0x78f   :  { %v6945_v32 = vpop.eup %6944 }
 0x790   :  { %v1642_v10 = vadd.f32 0.5, %v1641_v36  ;;  %v1649_v53 = vmul.f32 %v6943_v51, %v1638_v45  ;;  %v1646_v31 = vmul.f32 0.5, %v6945_v32  ;;  %v434_v45 = vadd.f32 %v11423_v20, %v7997_v47  ;;  %v11425_v20 = vld [vmem:[#allocation35_spill] sm:$0xff] }
 0x792   :  { %v1648_v56 = vmul.f32 %v1642_v10, %v8463_v61  ;;  %v1647_v28 = vadd.f32 0.5, %v1646_v31  ;;  %v8534_v61 = vld [vmem:[%s11216_s2 + $0xc4] ss:$16 sps:$4 sm:$0xff]  }
 0x794   :  { %v8512_v35 = vadd.f32 %v1649_v53, %v1648_v56 }
 0x796   :  { %6946 = vtanh.f32 %v8512_v35 }
 0x7a3   :  { %v6947_v13 = vpop.eup %6946 }
 0x7a4   :  { %v8515_v14 = vmul.f32 %v6947_v13, %v1647_v28 }
 0x7a6   :  { %11419 = vst [vmem:[#allocation13_spill] sm:$0xff] %v8515_v14  ;;  %v1658_v16 = vpack.c.bf16 %v8515_v14, %v8515_v14 }
 0x7a8   :  { %1692 = vmatmul.mubr.bf16.vlgmr.msra.gmra.mxu0 %v1658_v16  ;;  %1733 = vmatmul.mubr.bf16.vlgmr.msra.gmra.mxu1 %v1658_v16 }
 0x7a9   :  { %1770 = vmatpush1.bf16.msra.mxu0 %v8522_v30  ;;  %1811 = vmatpush1.bf16.msra.mxu1 %v8528_v33 }
 0x7aa   :  { %1771 = vmatprep.subr.bf16.mxu0 %v8534_v61  ;;  %1812 = vmatprep.subr.bf16.mxu1 %v8540_v34 }
 0x7ab   :  { %1801 = vmatprep.mubr.bf16.mxu0 %v11401_v11  ;;  %1842 = vmatprep.mubr.bf16.mxu1 %v11401_v11 }
 0x7ad   :  { %1772 = vmatpush1.bf16.msra.mxu0 %v8548_v8  ;;  %1813 = vmatpush1.bf16.msra.mxu1 %v8554_v2 }
 0x7ae   :  { %1773 = vmatprep.subr.bf16.mxu0 %v8560_v50  ;;  %1814 = vmatprep.subr.bf16.mxu1 %v8566_v23 }
 0x7b1   :  { %1774 = vmatpush1.bf16.msra.mxu0 %v8572_v60  ;;  %1815 = vmatpush1.bf16.msra.mxu1 %v8578_v7 }
 0x7b2   :  { %1775 = vmatprep.subr.bf16.mxu0 %v8584_v19  ;;  %1816 = vmatprep.subr.bf16.mxu1 %v8590_v27 }
 0x7b5   :  { %1776 = vmatpush1.bf16.msra.mxu0 %v8596_v12  ;;  %1817 = vmatpush1.bf16.msra.mxu1 %v8602_v55 }
 0x7b6   :  { %1777 = vmatprep.subr.bf16.mxu0 %v8608_v1  ;;  %1818 = vmatprep.subr.bf16.mxu1 %v8614_v40 }
 0x7b9   :  { %1778 = vmatpush1.bf16.msra.mxu0 %v8620_v41  ;;  %1819 = vmatpush1.bf16.msra.mxu1 %v8626_v58 }
 0x7ba   :  { %1779 = vmatprep.subr.bf16.mxu0 %v8632_v52  ;;  %1820 = vmatprep.subr.bf16.mxu1 %v8638_v43 }
 0x7bd   :  { %1780 = vmatpush1.bf16.msra.mxu0 %v8644_v17  ;;  %1821 = vmatpush1.bf16.msra.mxu1 %v8206_v44  ;;  %v8659_v44 = vld [vmem:[%s11216_s2 + $0xe4] ss:$16 sps:$4 sm:$0xff]  }
 0x7be   :  { %1781 = vmatprep.subr.bf16.mxu0 %v8212_v3  ;;  %1822 = vmatprep.subr.bf16.mxu1 %v8218_v4  ;;  %v8665_v3 = vld [vmem:[%s11216_s2 + $0xec] ss:$16 sps:$4 sm:$0xff]  }
 0x7c1   :  { %1782 = vmatpush1.bf16.msra.mxu0 %v8224_v63  ;;  %1823 = vmatpush1.bf16.msra.mxu1 %v8230_v5  ;;  %v11420_v5 = vld [vmem:[#allocation31_spill] sm:$0xff] }
 0x7c2   :  { %1783 = vmatprep.subr.bf16.mxu0 %v8236_v26  ;;  %1824 = vmatprep.subr.bf16.mxu1 %v8242_v29  ;;  %v11421_v29 = vld [vmem:[#allocation29_spill] sm:$0xff] }
 0x7c5   :  { %1784 = vmatpush1.bf16.msra.mxu0 %v8248_v22  ;;  %1825 = vmatpush1.bf16.msra.mxu1 %v8254_v48  ;;  %v432_v22 = vadd.f32 %v11421_v29, %v7982_v57 }
 0x7c6   :  { %1879 = vmatprep.subr.bf16.mxu0 %v8659_v44  ;;  %1920 = vmatprep.subr.bf16.mxu1 %v8665_v3 }
 0x868   :  { %v1693_v4 = vpop.f32.mrf.mxu0  ;;  %v1734_v63 = vpop.f32.mrf.mxu1 }
 0x869   :  { %v1741_v26 = vadd.f32 %v1693_v4, %v11420_v5  ;;  %v1743_v62 = vadd.f32 %v1734_v63, %v433_v6  ;;  %v8727_v6 = vld [vmem:[%s11216_s2 + $0x20] ss:$16 sps:$4 sm:$0xff]  }
 0x86a   :  { %v1695_v48 = vpop.f32.mrf.mxu0  ;;  %v1736_v39 = vpop.f32.mrf.mxu1 }
 0x86b   :  { %v1745_v42 = vmul.f32 0.5, %v1741_v26  ;;  %v1742_v59 = vadd.f32 %v1695_v48, %v432_v22  ;;  %v1744_v36 = vadd.f32 %v1736_v39, %v434_v45 }
 0x86c   :  { %v1697_v0 = vpop.f32.mrf.mxu0  ;;  %v1738_v18 = vpop.f32.mrf.mxu1 }
 0x86d   :  { %6948 = vtanh.f32 %v1745_v42  ;;  %v1749_v24 = vmul.f32 0.5, %v1742_v59  ;;  %v1754_v51 = vmul.f32 0.5, %v1744_v36  ;;  %v8715_v42 = vld [vmem:[%s11216_s2 + $0x24] ss:$16 sps:$4 sm:$0xff]   ;;  %v8733_v59 = vld [vmem:[%s11216_s2 + $0x28] ss:$16 sps:$4 sm:$0xff]  }
 0x86e   :  { %v1698_v25 = vpop.f32.mrf.mxu0  ;;  %v1739_v21 = vpop.f32.mrf.mxu1  ;;  %v8739_v0 = vld [vmem:[%s11216_s2 + $0x4] ss:$16 sps:$4 sm:$0xff]   ;;  %v8745_v18 = vld [vmem:[%s11216_s2 + $0xc] ss:$16 sps:$4 sm:$0xff]  }
 0x86f   :  { %6950 = vtanh.f32 %v1749_v24  ;;  %v8757_v24 = vld [vmem:[%s11216_s2 + $0x8] ss:$16 sps:$4 sm:$0xff]  }
 0x870   :  { %6952 = vtanh.f32 %v1743_v62  ;;  %v8751_v62 = vld [vmem:[%s11216_s2] ss:$16 sps:$4 sm:$0xff]   ;;  %v11426_v36 = vld [vmem:[#allocation33_spill] sm:$0xff] }
 0x871   :  { %6954 = vtanh.f32 %v1754_v51  ;;  %v436_v51 = vadd.f32 %v11426_v36, %v7982_v57 }
 0x87a   :  { %v6949_v10 = vpop.eup %6948 }
 0x87b   :  { %v1747_v53 = vmul.f32 0.5, %v6949_v10 }
 0x87c   :  { %v6951_v56 = vpop.eup %6950 }
 0x87d   :  { %v1748_v32 = vadd.f32 0.5, %v1747_v53  ;;  %v1751_v31 = vmul.f32 0.5, %v6951_v56  ;;  %v6953_v28 = vpop.eup %6952 }
 0x87e   :  { %v6955_v5 = vpop.eup %6954 }
 0x87f   :  { %v1752_v13 = vadd.f32 0.5, %v1751_v31  ;;  %v1759_v16 = vmul.f32 %v6953_v28, %v1748_v32  ;;  %v1756_v26 = vmul.f32 0.5, %v6955_v5  ;;  %v11427_v32 = vld [vmem:[#allocation32_spill] sm:$0xff] }
 0x880   :  { %v437_v31 = vadd.f32 %v11427_v32, %v7987_v15 }
 0x881   :  { %v1758_v4 = vmul.f32 %v1752_v13, %v8512_v35  ;;  %v1757_v29 = vadd.f32 0.5, %v1756_v26  ;;  %v8709_v35 = vld [vmem:[%s11216_s2 + $0x48] ss:$16 sps:$4 sm:$0xff]  }
 0x883   :  { %v8676_v63 = vadd.f32 %v1759_v16, %v1758_v4 }
 0x885   :  { %6956 = vtanh.f32 %v8676_v63 }
 0x892   :  { %v6957_v22 = vpop.eup %6956 }
 0x893   :  { %v8679_v48 = vmul.f32 %v6957_v22, %v1757_v29  ;;  %v11428_v22 = vld [vmem:[#allocation34_spill] sm:$0xff] }
 0x895   :  { %11424 = vst [vmem:[#allocation15_spill] sm:$0xff] %v8679_v48  ;;  %v1768_v39 = vpack.c.bf16 %v8679_v48, %v8679_v48 }
 0x897   :  { %1802 = vmatmul.mubr.bf16.vlgmr.msra.gmra.mxu0 %v1768_v39  ;;  %1843 = vmatmul.mubr.bf16.vlgmr.msra.gmra.mxu1 %v1768_v39  ;;  %v438_v39 = vadd.f32 %v11428_v22, %v7997_v47 }
 0x898   :  { %1880 = vmatpush1.bf16.msra.mxu0 %v8522_v30  ;;  %1921 = vmatpush1.bf16.msra.mxu1 %v8528_v33 }
 0x899   :  { %1881 = vmatprep.subr.bf16.mxu0 %v8534_v61  ;;  %1922 = vmatprep.subr.bf16.mxu1 %v8540_v34 }
 0x89a   :  { %1911 = vmatprep.mubr.bf16.mxu0 %v11401_v11  ;;  %1952 = vmatprep.mubr.bf16.mxu1 %v11401_v11 }
 0x89c   :  { %1882 = vmatpush1.bf16.msra.mxu0 %v8548_v8  ;;  %1923 = vmatpush1.bf16.msra.mxu1 %v8554_v2 }
 0x89d   :  { %1883 = vmatprep.subr.bf16.mxu0 %v8560_v50  ;;  %1924 = vmatprep.subr.bf16.mxu1 %v8566_v23 }
 0x8a0   :  { %1884 = vmatpush1.bf16.msra.mxu0 %v8572_v60  ;;  %1925 = vmatpush1.bf16.msra.mxu1 %v8578_v7 }
 0x8a1   :  { %1885 = vmatprep.subr.bf16.mxu0 %v8584_v19  ;;  %1926 = vmatprep.subr.bf16.mxu1 %v8590_v27 }
 0x8a4   :  { %1886 = vmatpush1.bf16.msra.mxu0 %v8596_v12  ;;  %1927 = vmatpush1.bf16.msra.mxu1 %v8602_v55 }
 0x8a5   :  { %1887 = vmatprep.subr.bf16.mxu0 %v8608_v1  ;;  %1928 = vmatprep.subr.bf16.mxu1 %v8614_v40 }
 0x8a8   :  { %1888 = vmatpush1.bf16.msra.mxu0 %v8620_v41  ;;  %1929 = vmatpush1.bf16.msra.mxu1 %v8626_v58 }
 0x8a9   :  { %1889 = vmatprep.subr.bf16.mxu0 %v8632_v52  ;;  %1930 = vmatprep.subr.bf16.mxu1 %v8638_v43 }
 0x8ac   :  { %1890 = vmatpush1.bf16.msra.mxu0 %v8644_v17  ;;  %1931 = vmatpush1.bf16.msra.mxu1 %v8709_v35 }
 0x8ad   :  { %1891 = vmatprep.subr.bf16.mxu0 %v8715_v42  ;;  %1932 = vmatprep.subr.bf16.mxu1 %v8721_v38 }
 0x8b0   :  { %1892 = vmatpush1.bf16.msra.mxu0 %v8727_v6  ;;  %1933 = vmatpush1.bf16.msra.mxu1 %v8733_v59 }
 0x8b1   :  { %1893 = vmatprep.subr.bf16.mxu0 %v8739_v0  ;;  %1934 = vmatprep.subr.bf16.mxu1 %v8745_v18 }
 0x8b4   :  { %1894 = vmatpush1.bf16.msra.mxu0 %v8751_v62  ;;  %1935 = vmatpush1.bf16.msra.mxu1 %v8757_v24 }
 0x8b5   :  { %1989 = vmatprep.subr.bf16.mxu0 %v8659_v44  ;;  %2030 = vmatprep.subr.bf16.mxu1 %v8665_v3 }
 0x957   :  { %v1803_v25 = vpop.f32.mrf.mxu0  ;;  %v1844_v21 = vpop.f32.mrf.mxu1 }
 0x958   :  { %v1851_v45 = vadd.f32 %v1803_v25, %v11425_v20  ;;  %v1853_v4 = vadd.f32 %v1844_v21, %v437_v31 }
 0x959   :  { %v1805_v10 = vpop.f32.mrf.mxu0  ;;  %v1846_v53 = vpop.f32.mrf.mxu1 }
 0x95a   :  { %v1855_v56 = vmul.f32 0.5, %v1851_v45  ;;  %v1852_v28 = vadd.f32 %v1805_v10, %v436_v51  ;;  %v1854_v25 = vadd.f32 %v1846_v53, %v438_v39 }
 0x95b   :  { %v1807_v13 = vpop.f32.mrf.mxu0  ;;  %v1848_v16 = vpop.f32.mrf.mxu1 }
 0x95c   :  { %6958 = vtanh.f32 %v1855_v56  ;;  %v1859_v5 = vmul.f32 0.5, %v1852_v28  ;;  %v1864_v20 = vmul.f32 0.5, %v1854_v25 }
 0x95d   :  { %v1808_v26 = vpop.f32.mrf.mxu0  ;;  %v1849_v29 = vpop.f32.mrf.mxu1 }
 0x95e   :  { %6960 = vtanh.f32 %v1859_v5  ;;  %v11431_v29 = vld [vmem:[#allocation37_spill] sm:$0xff] }
 0x95f   :  { %6962 = vtanh.f32 %v1853_v4  ;;  %v440_v22 = vadd.f32 %v11431_v29, %v7982_v57 }
 0x960   :  { %6964 = vtanh.f32 %v1864_v20 }
 0x969   :  { %v6959_v36 = vpop.eup %6958 }
 0x96a   :  { %v1857_v45 = vmul.f32 0.5, %v6959_v36  ;;  %v11432_v36 = vld [vmem:[#allocation36_spill] sm:$0xff] }
 0x96b   :  { %v6961_v48 = vpop.eup %6960 }
 0x96c   :  { %v1858_v14 = vadd.f32 0.5, %v1857_v45  ;;  %v1861_v32 = vmul.f32 0.5, %v6961_v48  ;;  %v6963_v51 = vpop.eup %6962  ;;  %v11430_v48 = vld [vmem:[#allocation39_spill] sm:$0xff]  ;;  %v441_v45 = vadd.f32 %v11432_v36, %v7987_v15 }
 0x96d   :  { %v6965_v28 = vpop.eup %6964 }
 0x96e   :  { %v1862_v10 = vadd.f32 0.5, %v1861_v32  ;;  %v1869_v56 = vmul.f32 %v6963_v51, %v1858_v14  ;;  %v1866_v13 = vmul.f32 0.5, %v6965_v28 }
 0x970   :  { %v1868_v21 = vmul.f32 %v1862_v10, %v8676_v63  ;;  %v1867_v16 = vadd.f32 0.5, %v1866_v13 }
 0x972   :  { %v8770_v31 = vadd.f32 %v1869_v56, %v1868_v21 }
 0x974   :  { %6966 = vtanh.f32 %v8770_v31 }
 0x981   :  { %v6967_v53 = vpop.eup %6966 }
 0x982   :  { %v8773_v4 = vmul.f32 %v6967_v53, %v1867_v16  ;;  %v11433_v16 = vld [vmem:[#allocation38_spill] sm:$0xff] }
 0x983   :  { %v442_v53 = vadd.f32 %v11433_v16, %v7997_v47  ;;  %v11436_v16 = vld [vmem:[#allocation41_spill] sm:$0xff] }
 0x984   :  { %11429 = vst [vmem:[#allocation19_spill] sm:$0xff] %v8773_v4  ;;  %v1878_v5 = vpack.c.bf16 %v8773_v4, %v8773_v4 }
 0x986   :  { %1912 = vmatmul.mubr.bf16.vlgmr.msra.gmra.mxu0 %v1878_v5  ;;  %1953 = vmatmul.mubr.bf16.vlgmr.msra.gmra.mxu1 %v1878_v5 }
 0x987   :  { %1990 = vmatpush1.bf16.msra.mxu0 %v8522_v30  ;;  %2031 = vmatpush1.bf16.msra.mxu1 %v8528_v33 }
 0x988   :  { %1991 = vmatprep.subr.bf16.mxu0 %v8534_v61  ;;  %2032 = vmatprep.subr.bf16.mxu1 %v8540_v34 }
 0x989   :  { %2021 = vmatprep.mubr.bf16.mxu0 %v11401_v11  ;;  %2062 = vmatprep.mubr.bf16.mxu1 %v11401_v11 }
 0x98b   :  { %1992 = vmatpush1.bf16.msra.mxu0 %v8548_v8  ;;  %2033 = vmatpush1.bf16.msra.mxu1 %v8554_v2 }
 0x98c   :  { %1993 = vmatprep.subr.bf16.mxu0 %v8560_v50  ;;  %2034 = vmatprep.subr.bf16.mxu1 %v8566_v23 }
 0x98f   :  { %1994 = vmatpush1.bf16.msra.mxu0 %v8572_v60  ;;  %2035 = vmatpush1.bf16.msra.mxu1 %v8578_v7 }
 0x990   :  { %1995 = vmatprep.subr.bf16.mxu0 %v8584_v19  ;;  %2036 = vmatprep.subr.bf16.mxu1 %v8590_v27 }
 0x993   :  { %1996 = vmatpush1.bf16.msra.mxu0 %v8596_v12  ;;  %2037 = vmatpush1.bf16.msra.mxu1 %v8602_v55 }
 0x994   :  { %1997 = vmatprep.subr.bf16.mxu0 %v8608_v1  ;;  %2038 = vmatprep.subr.bf16.mxu1 %v8614_v40 }
 0x997   :  { %1998 = vmatpush1.bf16.msra.mxu0 %v8620_v41  ;;  %2039 = vmatpush1.bf16.msra.mxu1 %v8626_v58 }
 0x998   :  { %1999 = vmatprep.subr.bf16.mxu0 %v8632_v52  ;;  %2040 = vmatprep.subr.bf16.mxu1 %v8638_v43 }
 0x99b   :  { %2000 = vmatpush1.bf16.msra.mxu0 %v8644_v17  ;;  %2041 = vmatpush1.bf16.msra.mxu1 %v8709_v35 }
 0x99c   :  { %2001 = vmatprep.subr.bf16.mxu0 %v8715_v42  ;;  %2042 = vmatprep.subr.bf16.mxu1 %v8721_v38 }
 0x99f   :  { %2002 = vmatpush1.bf16.msra.mxu0 %v8727_v6  ;;  %2043 = vmatpush1.bf16.msra.mxu1 %v8733_v59 }
 0x9a0   :  { %2003 = vmatprep.subr.bf16.mxu0 %v8739_v0  ;;  %2044 = vmatprep.subr.bf16.mxu1 %v8745_v18 }
 0x9a3   :  { %2004 = vmatpush1.bf16.msra.mxu0 %v8751_v62  ;;  %2045 = vmatpush1.bf16.msra.mxu1 %v8757_v24 }
 0x9a4   :  { %2099 = vmatprep.subr.bf16.mxu0 %v8659_v44  ;;  %2140 = vmatprep.subr.bf16.mxu1 %v8665_v3 }
 0xa46   :  { %v1913_v14 = vpop.f32.mrf.mxu0  ;;  %v1954_v63 = vpop.f32.mrf.mxu1 }
 0xa47   :  { %v1961_v26 = vadd.f32 %v1913_v14, %v11430_v48  ;;  %v1963_v56 = vadd.f32 %v1954_v63, %v441_v45 }
 0xa48   :  { %v1915_v39 = vpop.f32.mrf.mxu0  ;;  %v1956_v25 = vpop.f32.mrf.mxu1 }
 0xa49   :  { %v1965_v20 = vmul.f32 0.5, %v1961_v26  ;;  %v1962_v32 = vadd.f32 %v1915_v39, %v440_v22  ;;  %v1964_v5 = vadd.f32 %v1956_v25, %v442_v53  ;;  %v444_v53 = vadd.f32 %v11436_v16, %v7982_v57 }
 0xa4a   :  { %v1917_v51 = vpop.f32.mrf.mxu0  ;;  %v1958_v10 = vpop.f32.mrf.mxu1 }
 0xa4b   :  { %6968 = vtanh.f32 %v1965_v20  ;;  %v1969_v21 = vmul.f32 0.5, %v1962_v32  ;;  %v1974_v14 = vmul.f32 0.5, %v1964_v5 }
 0xa4c   :  { %v1918_v28 = vpop.f32.mrf.mxu0  ;;  %v1959_v13 = vpop.f32.mrf.mxu1 }
 0xa4d   :  { %6970 = vtanh.f32 %v1969_v21  ;;  %v11435_v28 = vld [vmem:[#allocation43_spill] sm:$0xff] }
 0xa4e   :  { %6972 = vtanh.f32 %v1963_v56 }
 0xa4f   :  { %6974 = vtanh.f32 %v1974_v14 }
 0xa58   :  { %v6969_v48 = vpop.eup %6968 }
 0xa59   :  { %v1967_v26 = vmul.f32 0.5, %v6969_v48 }
 0xa5a   :  { %v6971_v29 = vpop.eup %6970 }
 0xa5b   :  { %v1968_v4 = vadd.f32 0.5, %v1967_v26  ;;  %v1971_v36 = vmul.f32 0.5, %v6971_v29  ;;  %v6973_v22 = vpop.eup %6972  ;;  %v11437_v26 = vld [vmem:[#allocation40_spill] sm:$0xff] }
 0xa5c   :  { %v6975_v32 = vpop.eup %6974  ;;  %v445_v29 = vadd.f32 %v11437_v26, %v7987_v15 }
 0xa5d   :  { %v1972_v39 = vadd.f32 0.5, %v1971_v36  ;;  %v1979_v20 = vmul.f32 %v6973_v22, %v1968_v4  ;;  %v1976_v51 = vmul.f32 0.5, %v6975_v32 }
 0xa5f   :  { %v1978_v63 = vmul.f32 %v1972_v39, %v8770_v31  ;;  %v1977_v10 = vadd.f32 0.5, %v1976_v51 }
 0xa61   :  { %v8819_v45 = vadd.f32 %v1979_v20, %v1978_v63 }
 0xa63   :  { %6976 = vtanh.f32 %v8819_v45 }
 0xa70   :  { %v6977_v25 = vpop.eup %6976 }
 0xa71   :  { %v8822_v56 = vmul.f32 %v6977_v25, %v1977_v10  ;;  %v11438_v10 = vld [vmem:[#allocation42_spill] sm:$0xff] }
 0xa72   :  { %v446_v25 = vadd.f32 %v11438_v10, %v7997_v47  ;;  %v11441_v10 = vld [vmem:[#allocation45_spill] sm:$0xff] }
 0xa73   :  { %11434 = vst [vmem:[#allocation17_spill] sm:$0xff] %v8822_v56  ;;  %v1988_v21 = vpack.c.bf16 %v8822_v56, %v8822_v56 }
 0xa75   :  { %2022 = vmatmul.mubr.bf16.vlgmr.msra.gmra.mxu0 %v1988_v21  ;;  %2063 = vmatmul.mubr.bf16.vlgmr.msra.gmra.mxu1 %v1988_v21 }
 0xa76   :  { %2100 = vmatpush1.bf16.msra.mxu0 %v8522_v30  ;;  %2141 = vmatpush1.bf16.msra.mxu1 %v8528_v33 }
 0xa77   :  { %2101 = vmatprep.subr.bf16.mxu0 %v8534_v61  ;;  %2142 = vmatprep.subr.bf16.mxu1 %v8540_v34 }
 0xa78   :  { %2131 = vmatprep.mubr.bf16.mxu0 %v11401_v11  ;;  %2172 = vmatprep.mubr.bf16.mxu1 %v11401_v11 }
 0xa7a   :  { %2102 = vmatpush1.bf16.msra.mxu0 %v8548_v8  ;;  %2143 = vmatpush1.bf16.msra.mxu1 %v8554_v2 }
 0xa7b   :  { %2103 = vmatprep.subr.bf16.mxu0 %v8560_v50  ;;  %2144 = vmatprep.subr.bf16.mxu1 %v8566_v23 }
 0xa7e   :  { %2104 = vmatpush1.bf16.msra.mxu0 %v8572_v60  ;;  %2145 = vmatpush1.bf16.msra.mxu1 %v8578_v7 }
 0xa7f   :  { %2105 = vmatprep.subr.bf16.mxu0 %v8584_v19  ;;  %2146 = vmatprep.subr.bf16.mxu1 %v8590_v27 }
 0xa82   :  { %2106 = vmatpush1.bf16.msra.mxu0 %v8596_v12  ;;  %2147 = vmatpush1.bf16.msra.mxu1 %v8602_v55 }
 0xa83   :  { %2107 = vmatprep.subr.bf16.mxu0 %v8608_v1  ;;  %2148 = vmatprep.subr.bf16.mxu1 %v8614_v40 }
 0xa86   :  { %2108 = vmatpush1.bf16.msra.mxu0 %v8620_v41  ;;  %2149 = vmatpush1.bf16.msra.mxu1 %v8626_v58 }
 0xa87   :  { %2109 = vmatprep.subr.bf16.mxu0 %v8632_v52  ;;  %2150 = vmatprep.subr.bf16.mxu1 %v8638_v43 }
 0xa8a   :  { %2110 = vmatpush1.bf16.msra.mxu0 %v8644_v17  ;;  %2151 = vmatpush1.bf16.msra.mxu1 %v8709_v35 }
 0xa8b   :  { %2111 = vmatprep.subr.bf16.mxu0 %v8715_v42  ;;  %2152 = vmatprep.subr.bf16.mxu1 %v8721_v38 }
 0xa8e   :  { %2112 = vmatpush1.bf16.msra.mxu0 %v8727_v6  ;;  %2153 = vmatpush1.bf16.msra.mxu1 %v8733_v59 }
 0xa8f   :  { %2113 = vmatprep.subr.bf16.mxu0 %v8739_v0  ;;  %2154 = vmatprep.subr.bf16.mxu1 %v8745_v18 }
 0xa92   :  { %2114 = vmatpush1.bf16.msra.mxu0 %v8751_v62  ;;  %2155 = vmatpush1.bf16.msra.mxu1 %v8757_v24 }
 0xa93   :  { %2209 = vmatprep.subr.bf16.mxu0 %v8659_v44  ;;  %2250 = vmatprep.subr.bf16.mxu1 %v8665_v3 }
 0xb35   :  { %v2023_v31 = vpop.f32.mrf.mxu0  ;;  %v2064_v4 = vpop.f32.mrf.mxu1 }
 0xb36   :  { %v2071_v13 = vadd.f32 %v2023_v31, %v11435_v28  ;;  %v2073_v20 = vadd.f32 %v2064_v4, %v445_v29 }
 0xb37   :  { %v2025_v5 = vpop.f32.mrf.mxu0  ;;  %v2066_v14 = vpop.f32.mrf.mxu1 }
 0xb38   :  { %v2075_v48 = vmul.f32 0.5, %v2071_v13  ;;  %v2072_v36 = vadd.f32 %v2025_v5, %v444_v53  ;;  %v2074_v21 = vadd.f32 %v2066_v14, %v446_v25  ;;  %v552_v25 = vadd.f32 %v11441_v10, %v7982_v57 }
 0xb39   :  { %v2027_v22 = vpop.f32.mrf.mxu0  ;;  %v2068_v39 = vpop.f32.mrf.mxu1 }
 0xb3a   :  { %6978 = vtanh.f32 %v2075_v48  ;;  %v2079_v63 = vmul.f32 0.5, %v2072_v36  ;;  %v2084_v31 = vmul.f32 0.5, %v2074_v21 }
 0xb3b   :  { %v2028_v32 = vpop.f32.mrf.mxu0  ;;  %v2069_v51 = vpop.f32.mrf.mxu1 }
 0xb3c   :  { %6980 = vtanh.f32 %v2079_v63  ;;  %v11440_v32 = vld [vmem:[#allocation47_spill] sm:$0xff] }
 0xb3d   :  { %6982 = vtanh.f32 %v2073_v20 }
 0xb3e   :  { %6984 = vtanh.f32 %v2084_v31 }
 0xb47   :  { %v6979_v28 = vpop.eup %6978 }
 0xb48   :  { %v2077_v13 = vmul.f32 0.5, %v6979_v28 }
 0xb49   :  { %v6981_v16 = vpop.eup %6980 }
 0xb4a   :  { %v2078_v56 = vadd.f32 0.5, %v2077_v13  ;;  %v2081_v26 = vmul.f32 0.5, %v6981_v16  ;;  %v6983_v53 = vpop.eup %6982  ;;  %v11442_v13 = vld [vmem:[#allocation44_spill] sm:$0xff] }
 0xb4b   :  { %v6985_v36 = vpop.eup %6984  ;;  %v553_v16 = vadd.f32 %v11442_v13, %v7987_v15 }
 0xb4c   :  { %v2082_v5 = vadd.f32 0.5, %v2081_v26  ;;  %v2089_v48 = vmul.f32 %v6983_v53, %v2078_v56  ;;  %v2086_v22 = vmul.f32 0.5, %v6985_v36 }
 0xb4e   :  { %v2088_v4 = vmul.f32 %v2082_v5, %v8819_v45  ;;  %v2087_v39 = vadd.f32 0.5, %v2086_v22 }
 0xb50   :  { %v8868_v29 = vadd.f32 %v2089_v48, %v2088_v4 }
 0xb52   :  { %6986 = vtanh.f32 %v8868_v29 }
 0xb5f   :  { %v6987_v14 = vpop.eup %6986 }
 0xb60   :  { %v8871_v20 = vmul.f32 %v6987_v14, %v2087_v39  ;;  %v11443_v39 = vld [vmem:[#allocation46_spill] sm:$0xff] }
 0xb61   :  { %v554_v14 = vadd.f32 %v11443_v39, %v7997_v47  ;;  %v11446_v39 = vld [vmem:[#allocation49_spill] sm:$0xff] }
 0xb62   :  { %11439 = vst [vmem:[#allocation16_spill] sm:$0xff] %v8871_v20  ;;  %v2098_v63 = vpack.c.bf16 %v8871_v20, %v8871_v20 }
 0xb64   :  { %2132 = vmatmul.mubr.bf16.vlgmr.msra.gmra.mxu0 %v2098_v63  ;;  %2173 = vmatmul.mubr.bf16.vlgmr.msra.gmra.mxu1 %v2098_v63 }
 0xb65   :  { %2210 = vmatpush1.bf16.msra.mxu0 %v8522_v30  ;;  %2251 = vmatpush1.bf16.msra.mxu1 %v8528_v33 }
 0xb66   :  { %2211 = vmatprep.subr.bf16.mxu0 %v8534_v61  ;;  %2252 = vmatprep.subr.bf16.mxu1 %v8540_v34 }
 0xb67   :  { %2241 = vmatprep.mubr.bf16.mxu0 %v11401_v11  ;;  %2282 = vmatprep.mubr.bf16.mxu1 %v11401_v11 }
 0xb69   :  { %2212 = vmatpush1.bf16.msra.mxu0 %v8548_v8  ;;  %2253 = vmatpush1.bf16.msra.mxu1 %v8554_v2 }
 0xb6a   :  { %2213 = vmatprep.subr.bf16.mxu0 %v8560_v50  ;;  %2254 = vmatprep.subr.bf16.mxu1 %v8566_v23 }
 0xb6d   :  { %2214 = vmatpush1.bf16.msra.mxu0 %v8572_v60  ;;  %2255 = vmatpush1.bf16.msra.mxu1 %v8578_v7 }
 0xb6e   :  { %2215 = vmatprep.subr.bf16.mxu0 %v8584_v19  ;;  %2256 = vmatprep.subr.bf16.mxu1 %v8590_v27 }
 0xb71   :  { %2216 = vmatpush1.bf16.msra.mxu0 %v8596_v12  ;;  %2257 = vmatpush1.bf16.msra.mxu1 %v8602_v55 }
 0xb72   :  { %2217 = vmatprep.subr.bf16.mxu0 %v8608_v1  ;;  %2258 = vmatprep.subr.bf16.mxu1 %v8614_v40 }
 0xb75   :  { %2218 = vmatpush1.bf16.msra.mxu0 %v8620_v41  ;;  %2259 = vmatpush1.bf16.msra.mxu1 %v8626_v58 }
 0xb76   :  { %2219 = vmatprep.subr.bf16.mxu0 %v8632_v52  ;;  %2260 = vmatprep.subr.bf16.mxu1 %v8638_v43 }
 0xb79   :  { %2220 = vmatpush1.bf16.msra.mxu0 %v8644_v17  ;;  %2261 = vmatpush1.bf16.msra.mxu1 %v8709_v35 }
 0xb7a   :  { %2221 = vmatprep.subr.bf16.mxu0 %v8715_v42  ;;  %2262 = vmatprep.subr.bf16.mxu1 %v8721_v38 }
 0xb7d   :  { %2222 = vmatpush1.bf16.msra.mxu0 %v8727_v6  ;;  %2263 = vmatpush1.bf16.msra.mxu1 %v8733_v59 }
 0xb7e   :  { %2223 = vmatprep.subr.bf16.mxu0 %v8739_v0  ;;  %2264 = vmatprep.subr.bf16.mxu1 %v8745_v18 }
 0xb81   :  { %2224 = vmatpush1.bf16.msra.mxu0 %v8751_v62  ;;  %2265 = vmatpush1.bf16.msra.mxu1 %v8757_v24 }
 0xb82   :  { %2319 = vmatprep.subr.bf16.mxu0 %v8659_v44  ;;  %2360 = vmatprep.subr.bf16.mxu1 %v8665_v3 }
 0xc24   :  { %v2133_v45 = vpop.f32.mrf.mxu0  ;;  %v2174_v56 = vpop.f32.mrf.mxu1 }
 0xc25   :  { %v2181_v51 = vadd.f32 %v2133_v45, %v11440_v32  ;;  %v2183_v48 = vadd.f32 %v2174_v56, %v553_v16 }
 0xc26   :  { %v2135_v21 = vpop.f32.mrf.mxu0  ;;  %v2176_v31 = vpop.f32.mrf.mxu1 }
 0xc27   :  { %v2185_v28 = vmul.f32 0.5, %v2181_v51  ;;  %v2182_v26 = vadd.f32 %v2135_v21, %v552_v25  ;;  %v2184_v63 = vadd.f32 %v2176_v31, %v554_v14  ;;  %v556_v14 = vadd.f32 %v11446_v39, %v7982_v57 }
 0xc28   :  { %v2137_v53 = vpop.f32.mrf.mxu0  ;;  %v2178_v5 = vpop.f32.mrf.mxu1 }
 0xc29   :  { %6988 = vtanh.f32 %v2185_v28  ;;  %v2189_v4 = vmul.f32 0.5, %v2182_v26  ;;  %v2194_v45 = vmul.f32 0.5, %v2184_v63 }
 0xc2a   :  { %v2138_v36 = vpop.f32.mrf.mxu0  ;;  %v2179_v22 = vpop.f32.mrf.mxu1 }
 0xc2b   :  { %6990 = vtanh.f32 %v2189_v4  ;;  %v11445_v36 = vld [vmem:[#allocation51_spill] sm:$0xff] }
 0xc2c   :  { %6992 = vtanh.f32 %v2183_v48 }
 0xc2d   :  { %6994 = vtanh.f32 %v2194_v45 }
 0xc36   :  { %v6989_v32 = vpop.eup %6988 }
 0xc37   :  { %v2187_v51 = vmul.f32 0.5, %v6989_v32 }
 0xc38   :  { %v6991_v10 = vpop.eup %6990 }
 0xc39   :  { %v2188_v20 = vadd.f32 0.5, %v2187_v51  ;;  %v2191_v13 = vmul.f32 0.5, %v6991_v10  ;;  %v6993_v25 = vpop.eup %6992  ;;  %v11447_v51 = vld [vmem:[#allocation48_spill] sm:$0xff] }
 0xc3a   :  { %v6995_v26 = vpop.eup %6994  ;;  %v557_v10 = vadd.f32 %v11447_v51, %v7987_v15 }
 0xc3b   :  { %v2192_v21 = vadd.f32 0.5, %v2191_v13  ;;  %v2199_v28 = vmul.f32 %v6993_v25, %v2188_v20  ;;  %v2196_v53 = vmul.f32 0.5, %v6995_v26  ;;  %v11448_v26 = vld [vmem:[#allocation50_spill] sm:$0xff] }
 0xc3d   :  { %v2198_v56 = vmul.f32 %v2192_v21, %v8868_v29  ;;  %v2197_v5 = vadd.f32 0.5, %v2196_v53  ;;  %v558_v53 = vadd.f32 %v11448_v26, %v7997_v47 }
 0xc3f   :  { %v8917_v16 = vadd.f32 %v2199_v28, %v2198_v56 }
 0xc41   :  { %6996 = vtanh.f32 %v8917_v16 }
 0xc4e   :  { %v6997_v31 = vpop.eup %6996 }
 0xc4f   :  { %v8920_v48 = vmul.f32 %v6997_v31, %v2197_v5 }
 0xc51   :  { %11444 = vst [vmem:[#allocation18_spill] sm:$0xff] %v8920_v48  ;;  %v2208_v4 = vpack.c.bf16 %v8920_v48, %v8920_v48  ;;  %v2571_v48 = vld [vmem:[#allocation5 + $0x118] sm:$0xff] }
 0xc53   :  { %2242 = vmatmul.mubr.bf16.vlgmr.msra.gmra.mxu0 %v2208_v4  ;;  %2283 = vmatmul.mubr.bf16.vlgmr.msra.gmra.mxu1 %v2208_v4 }
 0xc54   :  { %2320 = vmatpush1.bf16.msra.mxu0 %v8522_v30  ;;  %2361 = vmatpush1.bf16.msra.mxu1 %v8528_v33 }
 0xc55   :  { %2321 = vmatprep.subr.bf16.mxu0 %v8534_v61  ;;  %2362 = vmatprep.subr.bf16.mxu1 %v8540_v34 }
 0xc56   :  { %2351 = vmatprep.mubr.bf16.mxu0 %v11401_v11  ;;  %2392 = vmatprep.mubr.bf16.mxu1 %v11401_v11 }
 0xc58   :  { %2322 = vmatpush1.bf16.msra.mxu0 %v8548_v8  ;;  %2363 = vmatpush1.bf16.msra.mxu1 %v8554_v2 }
 0xc59   :  { %2323 = vmatprep.subr.bf16.mxu0 %v8560_v50  ;;  %2364 = vmatprep.subr.bf16.mxu1 %v8566_v23 }
 0xc5c   :  { %2324 = vmatpush1.bf16.msra.mxu0 %v8572_v60  ;;  %2365 = vmatpush1.bf16.msra.mxu1 %v8578_v7 }
 0xc5d   :  { %2325 = vmatprep.subr.bf16.mxu0 %v8584_v19  ;;  %2366 = vmatprep.subr.bf16.mxu1 %v8590_v27 }
 0xc60   :  { %2326 = vmatpush1.bf16.msra.mxu0 %v8596_v12  ;;  %2367 = vmatpush1.bf16.msra.mxu1 %v8602_v55 }
 0xc61   :  { %2327 = vmatprep.subr.bf16.mxu0 %v8608_v1  ;;  %2368 = vmatprep.subr.bf16.mxu1 %v8614_v40 }
 0xc64   :  { %2328 = vmatpush1.bf16.msra.mxu0 %v8620_v41  ;;  %2369 = vmatpush1.bf16.msra.mxu1 %v8626_v58 }
 0xc65   :  { %2329 = vmatprep.subr.bf16.mxu0 %v8632_v52  ;;  %2370 = vmatprep.subr.bf16.mxu1 %v8638_v43 }
 0xc68   :  { %2330 = vmatpush1.bf16.msra.mxu0 %v8644_v17  ;;  %2371 = vmatpush1.bf16.msra.mxu1 %v8709_v35 }
 0xc69   :  { %2331 = vmatprep.subr.bf16.mxu0 %v8715_v42  ;;  %2372 = vmatprep.subr.bf16.mxu1 %v8721_v38 }
 0xc6c   :  { %2332 = vmatpush1.bf16.msra.mxu0 %v8727_v6  ;;  %2373 = vmatpush1.bf16.msra.mxu1 %v8733_v59 }
 0xc6d   :  { %2333 = vmatprep.subr.bf16.mxu0 %v8739_v0  ;;  %2374 = vmatprep.subr.bf16.mxu1 %v8745_v18 }
 0xc70   :  { %2334 = vmatpush1.bf16.msra.mxu0 %v8751_v62  ;;  %2375 = vmatpush1.bf16.msra.mxu1 %v8757_v24 }
 0xc71   :  { %2429 = vmatprep.subr.bf16.mxu0 %v8659_v44  ;;  %2470 = vmatprep.subr.bf16.mxu1 %v8665_v3 }
 0xd13   :  { %v2243_v29 = vpop.f32.mrf.mxu0  ;;  %v2284_v20 = vpop.f32.mrf.mxu1 }
 0xd14   :  { %v2291_v22 = vadd.f32 %v2243_v29, %v11445_v36  ;;  %v2293_v44 = vadd.f32 %v2284_v20, %v557_v10 }
 0xd15   :  { %v2245_v63 = vpop.f32.mrf.mxu0  ;;  %v2286_v45 = vpop.f32.mrf.mxu1 }
 0xd16   :  { %v2295_v32 = vmul.f32 0.5, %v2291_v22  ;;  %v2292_v13 = vadd.f32 %v2245_v63, %v556_v14  ;;  %v2294_v5 = vadd.f32 %v2286_v45, %v558_v53 }
 0xd17   :  { %v2247_v25 = vpop.f32.mrf.mxu0  ;;  %v2288_v21 = vpop.f32.mrf.mxu1 }
 0xd18   :  { %6998 = vtanh.f32 %v2295_v32  ;;  %v2299_v28 = vmul.f32 0.5, %v2292_v13  ;;  %v2304_v31 = vmul.f32 0.5, %v2294_v5 }
 0xd19   :  { %v2248_v3 = vpop.f32.mrf.mxu0  ;;  %v2289_v56 = vpop.f32.mrf.mxu1 }
 0xd1a   :  { %7000 = vtanh.f32 %v2299_v28 }
 0xd1b   :  { %7002 = vtanh.f32 %v2293_v44 }
 0xd1c   :  { %7004 = vtanh.f32 %v2304_v31 }
 0xd25   :  { %v6999_v4 = vpop.eup %6998 }
 0xd26   :  { %v2297_v29 = vmul.f32 0.5, %v6999_v4 }
 0xd27   :  { %v7001_v36 = vpop.eup %7000 }
 0xd28   :  { %v2298_v22 = vadd.f32 0.5, %v2297_v29  ;;  %v2301_v39 = vmul.f32 0.5, %v7001_v36  ;;  %v7003_v14 = vpop.eup %7002 }
 0xd29   :  { %v7005_v10 = vpop.eup %7004 }
 0xd2a   :  { %v2302_v63 = vadd.f32 0.5, %v2301_v39  ;;  %v2309_v32 = vmul.f32 %v7003_v14, %v2298_v22  ;;  %v2306_v13 = vmul.f32 0.5, %v7005_v10  ;;  %v2584_v14 = vld [vmem:[#allocation5 + $0x180] sm:$0xff]  ;;  %v2589_v10 = vld [vmem:[#allocation5 + $0x1a8] sm:$0xff] }
 0xd2c   :  { %v2308_v20 = vmul.f32 %v2302_v63, %v8917_v16  ;;  %v2307_v25 = vadd.f32 0.5, %v2306_v13 }
 0xd2e   :  { %v8966_v51 = vadd.f32 %v2309_v32, %v2308_v20  ;;  %v2588_v32 = vld [vmem:[#allocation5 + $0x1a0] sm:$0xff]  ;;  %v2585_v20 = vld [vmem:[#allocation5 + $0x188] sm:$0xff] }
 0xd30   :  { %7006 = vtanh.f32 %v8966_v51 }
 0xd3d   :  { %v7007_v45 = vpop.eup %7006 }
 0xd3e   :  { %v8969_v21 = vmul.f32 %v7007_v45, %v2307_v25  ;;  %v9030_v45 = vcombine.high %v2584_v14, %v2588_v32 }
 0xd40   :  { %11449 = vst [vmem:[#allocation23_spill] sm:$0xff] %v8969_v21  ;;  %v2318_v44 = vpack.c.bf16 %v8969_v21, %v8969_v21  ;;  %v2583_v21 = vld [vmem:[#allocation5 + $0x178] sm:$0xff] }
 0xd42   :  { %2352 = vmatmul.mubr.bf16.vlgmr.msra.gmra.mxu0 %v2318_v44  ;;  %2393 = vmatmul.mubr.bf16.vlgmr.msra.gmra.mxu1 %v2318_v44  ;;  %v2576_v44 = vld [vmem:[#allocation5 + $0x140] sm:$0xff] }
 0xd43   :  { %2430 = vmatpush1.bf16.msra.mxu0 %v8522_v30  ;;  %2471 = vmatpush1.bf16.msra.mxu1 %v8528_v33  ;;  %v2592_v30 = vld [vmem:[#allocation5 + $0x1c0] sm:$0xff] }
 0xd44   :  { %2431 = vmatprep.subr.bf16.mxu0 %v8534_v61  ;;  %2472 = vmatprep.subr.bf16.mxu1 %v8540_v34  ;;  %v2596_v33 = vld [vmem:[#allocation5 + $0x1e0] sm:$0xff]  ;;  %v2593_v61 = vld [vmem:[#allocation5 + $0x1c8] sm:$0xff] }
 0xd45   :  { %2461 = vmatprep.mubr.bf16.mxu0 %v11401_v11  ;;  %2502 = vmatprep.mubr.bf16.mxu1 %v11401_v11  ;;  %v9005_v34 = vcombine.high %v2592_v30, %v2596_v33 }
 0xd47   :  { %2432 = vmatpush1.bf16.msra.mxu0 %v8548_v8  ;;  %2473 = vmatpush1.bf16.msra.mxu1 %v8554_v2  ;;  %v2597_v8 = vld [vmem:[#allocation5 + $0x1e8] sm:$0xff] }
 0xd48   :  { %2433 = vmatprep.subr.bf16.mxu0 %v8560_v50  ;;  %2474 = vmatprep.subr.bf16.mxu1 %v8566_v23  ;;  %v9007_v2 = vcombine.high %v2593_v61, %v2597_v8  ;;  %v9010_v50 = vcombine.low %v2592_v30, %v2596_v33  ;;  %v9012_v23 = vcombine.low %v2593_v61, %v2597_v8  ;;  %v2580_v30 = vld [vmem:[#allocation5 + $0x160] sm:$0xff]  ;;  %v2577_v33 = vld [vmem:[#allocation5 + $0x148] sm:$0xff] }
 0xd49   :  { %v2581_v61 = vld [vmem:[#allocation5 + $0x168] sm:$0xff]  ;;  %v9036_v8 = vcombine.low %v2584_v14, %v2588_v32  ;;  %v2540_v32 = vld [vmem:[#allocation5 + $0x20] sm:$0xff] }
 0xd4b   :  { %2434 = vmatpush1.bf16.msra.mxu0 %v8572_v60  ;;  %2475 = vmatpush1.bf16.msra.mxu1 %v8578_v7 }
 0xd4c   :  { %2435 = vmatprep.subr.bf16.mxu0 %v8584_v19  ;;  %2476 = vmatprep.subr.bf16.mxu1 %v8590_v27  ;;  %v11450_v19 = vld [vmem:[#allocation55_spill] sm:$0xff] }
 0xd4f   :  { %2436 = vmatpush1.bf16.msra.mxu0 %v8596_v12  ;;  %2477 = vmatpush1.bf16.msra.mxu1 %v8602_v55  ;;  %v11451_v12 = vld [vmem:[#allocation53_spill] sm:$0xff] }
 0xd50   :  { %2437 = vmatprep.subr.bf16.mxu0 %v8608_v1  ;;  %2478 = vmatprep.subr.bf16.mxu1 %v8614_v40  ;;  %v560_v55 = vadd.f32 %v11451_v12, %v7982_v57  ;;  %v2572_v12 = vld [vmem:[#allocation5 + $0x120] sm:$0xff]  ;;  %v2566_v57 = vld [vmem:[#allocation5 + $0xf0] sm:$0xff] }
 0xd53   :  { %2438 = vmatpush1.bf16.msra.mxu0 %v8620_v41  ;;  %2479 = vmatpush1.bf16.msra.mxu1 %v8626_v58  ;;  %v11452_v58 = vld [vmem:[#allocation52_spill] sm:$0xff] }
 0xd54   :  { %2439 = vmatprep.subr.bf16.mxu0 %v8632_v52  ;;  %2480 = vmatprep.subr.bf16.mxu1 %v8638_v43  ;;  %v561_v52 = vadd.f32 %v11452_v58, %v7987_v15  ;;  %v2562_v15 = vld [vmem:[#allocation5 + $0xd0] sm:$0xff] }
 0xd57   :  { %2440 = vmatpush1.bf16.msra.mxu0 %v8644_v17  ;;  %2481 = vmatpush1.bf16.msra.mxu1 %v8709_v35 }
 0xd58   :  { %2441 = vmatprep.subr.bf16.mxu0 %v8715_v42  ;;  %2482 = vmatprep.subr.bf16.mxu1 %v8721_v38 }
 0xd5b   :  { %2442 = vmatpush1.bf16.msra.mxu0 %v8727_v6  ;;  %2483 = vmatpush1.bf16.msra.mxu1 %v8733_v59 }
 0xd5c   :  { %2443 = vmatprep.subr.bf16.mxu0 %v8739_v0  ;;  %2484 = vmatprep.subr.bf16.mxu1 %v8745_v18  ;;  %v11453_v0 = vld [vmem:[#allocation54_spill] sm:$0xff] }
 0xd5d   :  { %v562_v18 = vadd.f32 %v11453_v0, %v7997_v47 }
 0xd5f   :  { %2444 = vmatpush1.bf16.msra.mxu0 %v8751_v62  ;;  %2485 = vmatpush1.bf16.msra.mxu1 %v8757_v24 }
 0xd60   :  { %2967 = vmatprep.subr.bf16.mxu0 %v9005_v34  ;;  %3020 = vmatprep.subr.bf16.mxu1 %v9007_v2 }
 0xe02   :  { %v2353_v60 = vpop.f32.mrf.mxu0  ;;  %v2394_v7 = vpop.f32.mrf.mxu1 }
 0xe03   :  { %v2401_v27 = vadd.f32 %v2353_v60, %v11450_v19  ;;  %v2403_v42 = vadd.f32 %v2394_v7, %v561_v52  ;;  %v9038_v60 = vcombine.low %v2585_v20, %v2589_v10  ;;  %v9042_v7 = vcombine.high %v2576_v44, %v2580_v30 }
 0xe04   :  { %v2355_v1 = vpop.f32.mrf.mxu0  ;;  %v2396_v40 = vpop.f32.mrf.mxu1  ;;  %v9044_v19 = vcombine.high %v2577_v33, %v2581_v61 }
 0xe05   :  { %v2405_v41 = vmul.f32 0.5, %v2401_v27  ;;  %v2402_v43 = vadd.f32 %v2355_v1, %v560_v55  ;;  %v2404_v62 = vadd.f32 %v2396_v40, %v562_v18  ;;  %v2568_v27 = vld [vmem:[#allocation5 + $0x100] sm:$0xff]  ;;  %v2569_v55 = vld [vmem:[#allocation5 + $0x108] sm:$0xff]  ;;  %v9050_v40 = vcombine.low %v2576_v44, %v2580_v30 }
 0xe06   :  { %v2357_v17 = vpop.f32.mrf.mxu0  ;;  %v2398_v35 = vpop.f32.mrf.mxu1  ;;  %v2573_v1 = vld [vmem:[#allocation5 + $0x128] sm:$0xff]  ;;  %v9056_v58 = vcombine.high %v2568_v27, %v2572_v12  ;;  %v2552_v18 = vld [vmem:[#allocation5 + $0x80] sm:$0xff] }
 0xe07   :  { %7008 = vtanh.f32 %v2405_v41  ;;  %v2409_v38 = vmul.f32 0.5, %v2402_v43  ;;  %v2414_v24 = vmul.f32 0.5, %v2404_v62  ;;  %v9052_v41 = vcombine.low %v2577_v33, %v2581_v61  ;;  %v2560_v43 = vld [vmem:[#allocation5 + $0xc0] sm:$0xff]  ;;  %v2561_v35 = vld [vmem:[#allocation5 + $0xc8] sm:$0xff]  ;;  %v2594_v61 = vld [vmem:[#allocation5 + $0x1d0] sm:$0xff] }
 0xe08   :  { %v2358_v6 = vpop.f32.mrf.mxu0  ;;  %v2399_v59 = vpop.f32.mrf.mxu1  ;;  %v9058_v52 = vcombine.high %v2569_v55, %v2573_v1  ;;  %v2564_v17 = vld [vmem:[#allocation5 + $0xe0] sm:$0xff] }
 0xe09   :  { %7010 = vtanh.f32 %v2409_v38  ;;  %v9062_v38 = vcombine.low %v2568_v27, %v2572_v12  ;;  %v9064_v6 = vcombine.low %v2569_v55, %v2573_v1  ;;  %v9068_v59 = vcombine.high %v2560_v43, %v2564_v17  ;;  %v2556_v62 = vld [vmem:[#allocation5 + $0xa0] sm:$0xff]  ;;  %v2598_v27 = vld [vmem:[#allocation5 + $0x1f0] sm:$0xff]  ;;  %v2595_v12 = vld [vmem:[#allocation5 + $0x1d8] sm:$0xff] }
 0xe0a   :  { %7012 = vtanh.f32 %v2403_v42  ;;  %v2565_v42 = vld [vmem:[#allocation5 + $0xe8] sm:$0xff]  ;;  %v2599_v55 = vld [vmem:[#allocation5 + $0x1f8] sm:$0xff] }
 0xe0b   :  { %7014 = vtanh.f32 %v2414_v24  ;;  %v9070_v0 = vcombine.high %v2561_v35, %v2565_v42  ;;  %v2553_v24 = vld [vmem:[#allocation5 + $0x88] sm:$0xff] }
 0xe14   :  { %v7009_v16 = vpop.eup %7008 }
 0xe15   :  { %v2407_v28 = vmul.f32 0.5, %v7009_v16  ;;  %v2557_v16 = vld [vmem:[#allocation5 + $0xa8] sm:$0xff] }
 0xe16   :  { %v7011_v3 = vpop.eup %7010 }
 0xe17   :  { %v2408_v56 = vadd.f32 0.5, %v2407_v28  ;;  %v2411_v26 = vmul.f32 0.5, %v7011_v3  ;;  %v7013_v53 = vpop.eup %7012  ;;  %v9074_v28 = vcombine.low %v2560_v43, %v2564_v17  ;;  %v9076_v3 = vcombine.low %v2561_v35, %v2565_v42  ;;  %v2586_v42 = vld [vmem:[#allocation5 + $0x190] sm:$0xff] }
 0xe18   :  { %v7015_v36 = vpop.eup %7014  ;;  %v9116_v17 = vcombine.high %v2594_v61, %v2598_v27  ;;  %v9118_v35 = vcombine.high %v2595_v12, %v2599_v55 }
 0xe19   :  { %v2412_v5 = vadd.f32 0.5, %v2411_v26  ;;  %v2419_v31 = vmul.f32 %v7013_v53, %v2408_v56  ;;  %v2416_v22 = vmul.f32 0.5, %v7015_v36  ;;  %v9080_v56 = vcombine.high %v2552_v18, %v2556_v62  ;;  %v2544_v53 = vld [vmem:[#allocation5 + $0x40] sm:$0xff] }
 0xe1a   :  { %v9082_v26 = vcombine.high %v2553_v24, %v2557_v16  ;;  %v9086_v36 = vcombine.low %v2552_v18, %v2556_v62  ;;  %11457 = vst [vmem:[#allocation27_spill] sm:$0xff] %v9118_v35  ;;  %v2590_v18 = vld [vmem:[#allocation5 + $0x1b0] sm:$0xff]  ;;  %v2587_v62 = vld [vmem:[#allocation5 + $0x198] sm:$0xff] }
 0xe1b   :  { %v2418_v4 = vmul.f32 %v2412_v5, %v8966_v51  ;;  %v2417_v39 = vadd.f32 0.5, %v2416_v22  ;;  %v9032_v51 = vcombine.high %v2585_v20, %v2589_v10  ;;  %v2548_v5 = vld [vmem:[#allocation5 + $0x60] sm:$0xff]  ;;  %v9088_v22 = vcombine.low %v2553_v24, %v2557_v16  ;;  %v2537_v20 = vld [vmem:[#allocation5 + $0x8] sm:$0xff]  ;;  %v2591_v24 = vld [vmem:[#allocation5 + $0x1b8] sm:$0xff] }
 0xe1c   :  { %11456 = vst [vmem:[#allocation22_spill] sm:$0xff] %v9086_v36  ;;  %v2541_v10 = vld [vmem:[#allocation5 + $0x28] sm:$0xff]  ;;  %v9122_v16 = vcombine.low %v2594_v61, %v2598_v27  ;;  %v9140_v61 = vcombine.low %v2586_v42, %v2590_v18  ;;  %v9142_v27 = vcombine.low %v2587_v62, %v2591_v24 }
 0xe1d   :  { %v9023_v29 = vadd.f32 %v2419_v31, %v2418_v4  ;;  %v2545_v31 = vld [vmem:[#allocation5 + $0x48] sm:$0xff]  ;;  %v9106_v33 = vcombine.high %v2537_v20, %v2541_v10  ;;  %v9112_v43 = vcombine.low %v2537_v20, %v2541_v10  ;;  %v2578_v20 = vld [vmem:[#allocation5 + $0x150] sm:$0xff] }
 0xe1e   :  { %v2549_v4 = vld [vmem:[#allocation5 + $0x68] sm:$0xff]  ;;  %11458 = vst [vmem:[#allocation25_spill] sm:$0xff] %v9122_v16  ;;  %v2582_v10 = vld [vmem:[#allocation5 + $0x170] sm:$0xff]  ;;  %11463 = vst [vmem:[#allocation31_spill] sm:$0xff] %v9142_v27 }
 0xe1f   :  { %11454 = vst [vmem:[#allocation21_spill] sm:$0xff] %v9023_v29  ;;  %7016 = vtanh.f32 %v9023_v29  ;;  %v9094_v14 = vcombine.high %v2545_v31, %v2549_v4  ;;  %v9100_v44 = vcombine.low %v2545_v31, %v2549_v4  ;;  %v11460_v31 = vld [vmem:[#allocation64_spill] sm:$0xff]  ;;  %v2575_v29 = vld [vmem:[#allocation5 + $0x138] sm:$0xff] }
 0xe20   :  { %v9166_v47 = vcombine.high %v2571_v48, %v2575_v29 }
 0xe22   :  { %11469 = vst [vmem:[#allocation32_spill] sm:$0xff] %v9166_v47 }
 0xe2c   :  { %v7017_v63 = vpop.eup %7016 }
 0xe2d   :  { %v9026_v13 = vmul.f32 %v7017_v63, %v2417_v39  ;;  %v9092_v39 = vcombine.high %v2544_v53, %v2548_v5  ;;  %v2536_v63 = vld [vmem:[#allocation5] sm:$0xff] }
 0xe2e   :  { %v9104_v30 = vcombine.high %v2536_v63, %v2540_v32  ;;  %v9110_v1 = vcombine.low %v2536_v63, %v2540_v32  ;;  %v9132_v63 = vcombine.high %v2586_v42, %v2590_v18  ;;  %v9134_v32 = vcombine.high %v2587_v62, %v2591_v24 }
 0xe2f   :  { %11455 = vst [vmem:[#allocation20_spill] sm:$0xff] %v9026_v13  ;;  %v2428_v25 = vpack.c.bf16 %v9026_v13, %v9026_v13  ;;  %v2579_v13 = vld [vmem:[#allocation5 + $0x158] sm:$0xff]  ;;  %v9154_v42 = vcombine.low %v2578_v20, %v2582_v10  ;;  %v9160_v62 = vpack.c.bf16 %v8319_v46, %v8270_v37  ;;  %v9174_v46 = vcombine.low %v2571_v48, %v2575_v29 }
 0xe30   :  { %11461 = vst [vmem:[#allocation24_spill] sm:$0xff] %v9132_v63  ;;  %11462 = vst [vmem:[#allocation26_spill] sm:$0xff] %v9134_v32  ;;  %v9156_v18 = vcombine.low %v2579_v13, %v2583_v21  ;;  %v9186_v48 = vcombine.low %v2562_v15, %v2566_v57 }
 0xe31   :  { %2462 = vmatmul.mubr.bf16.vlgmr.msra.gmra.mxu0 %v2428_v25  ;;  %2503 = vmatmul.mubr.bf16.vlgmr.msra.gmra.mxu1 %v2428_v25  ;;  %v9098_v25 = vcombine.low %v2544_v53, %v2548_v5  ;;  %v9124_v53 = vcombine.low %v2595_v12, %v2599_v55  ;;  %v11459_v5 = vld [vmem:[#allocation63_spill] sm:$0xff]  ;;  %v9146_v12 = vcombine.high %v2578_v20, %v2582_v10  ;;  %v2554_v20 = vld [vmem:[#allocation5 + $0x90] sm:$0xff] }
 0xe32   :  { %2968 = vmatpush1.bf16.msra.mxu0 %v9010_v50  ;;  %3021 = vmatpush1.bf16.msra.mxu1 %v9012_v23  ;;  %v9128_v4 = vpack.c.bf16 %v11460_v31, %v11459_v5  ;;  %v9148_v55 = vcombine.high %v2579_v13, %v2583_v21  ;;  %v2570_v5 = vld [vmem:[#allocation5 + $0x110] sm:$0xff]  ;;  %11466 = vst [vmem:[#allocation30_spill] sm:$0xff] %v9154_v42  ;;  %11467 = vst [vmem:[#allocation35_spill] sm:$0xff] %v9156_v18 }
 0xe33   :  { %2969 = vmatprep.subr.bf16.mxu0 %v9030_v45  ;;  %3022 = vmatprep.subr.bf16.mxu1 %v9032_v51  ;;  %11464 = vst [vmem:[#allocation29_spill] sm:$0xff] %v9146_v12  ;;  %v2574_v31 = vld [vmem:[#allocation5 + $0x130] sm:$0xff]  ;;  %11471 = vst [vmem:[#allocation39_spill] sm:$0xff] %v9174_v46  ;;  %v9178_v21 = vcombine.high %v2562_v15, %v2566_v57 }
 0xe34   :  { %2999 = vmatprep.mubr.bf16.mxu0 %v11401_v11  ;;  %3052 = vmatprep.mubr.bf16.mxu1 %v11401_v11  ;;  %11465 = vst [vmem:[#allocation28_spill] sm:$0xff] %v9148_v55  ;;  %v9164_v24 = vcombine.high %v2570_v5, %v2574_v31  ;;  %v9172_v37 = vcombine.low %v2570_v5, %v2574_v31  ;;  %v2558_v10 = vld [vmem:[#allocation5 + $0xb0] sm:$0xff] }
 0xe35   :  { %11472 = vst [vmem:[#allocation37_spill] sm:$0xff] %v9178_v21  ;;  %v9192_v5 = vcombine.high %v2554_v20, %v2558_v10  ;;  %v9198_v57 = vcombine.low %v2554_v20, %v2558_v10 }
 0xe36   :  { %2970 = vmatpush1.bf16.msra.mxu0 %v9036_v8  ;;  %3023 = vmatpush1.bf16.msra.mxu1 %v9038_v60  ;;  %11468 = vst [vmem:[#allocation33_spill] sm:$0xff] %v9164_v24  ;;  %11470 = vst [vmem:[#allocation34_spill] sm:$0xff] %v9172_v37 }
 0xe37   :  { %2971 = vmatprep.subr.bf16.mxu0 %v9042_v7  ;;  %3024 = vmatprep.subr.bf16.mxu1 %v9044_v19  ;;  %11475 = vst [vmem:[#allocation43_spill] sm:$0xff] %v9198_v57 }
 0xe3a   :  { %2972 = vmatpush1.bf16.msra.mxu0 %v9050_v40  ;;  %3025 = vmatpush1.bf16.msra.mxu1 %v9052_v41 }
 0xe3b   :  { %2973 = vmatprep.subr.bf16.mxu0 %v9056_v58  ;;  %3026 = vmatprep.subr.bf16.mxu1 %v9058_v52 }
 0xe3e   :  { %2974 = vmatpush1.bf16.msra.mxu0 %v9062_v38  ;;  %3027 = vmatpush1.bf16.msra.mxu1 %v9064_v6 }
 0xe3f   :  { %2975 = vmatprep.subr.bf16.mxu0 %v9068_v59  ;;  %3028 = vmatprep.subr.bf16.mxu1 %v9070_v0 }
 0xe42   :  { %2976 = vmatpush1.bf16.msra.mxu0 %v9074_v28  ;;  %3029 = vmatpush1.bf16.msra.mxu1 %v9076_v3 }
 0xe43   :  { %2977 = vmatprep.subr.bf16.mxu0 %v9080_v56  ;;  %3030 = vmatprep.subr.bf16.mxu1 %v9082_v26 }
 0xe46   :  { %2978 = vmatpush1.bf16.msra.mxu0 %v9086_v36  ;;  %3031 = vmatpush1.bf16.msra.mxu1 %v9088_v22 }
 0xe47   :  { %2979 = vmatprep.subr.bf16.mxu0 %v9092_v39  ;;  %3032 = vmatprep.subr.bf16.mxu1 %v9094_v14 }
 0xe4a   :  { %2980 = vmatpush1.bf16.msra.mxu0 %v9098_v25  ;;  %3033 = vmatpush1.bf16.msra.mxu1 %v9100_v44 }
 0xe4b   :  { %2981 = vmatprep.subr.bf16.mxu0 %v9104_v30  ;;  %3034 = vmatprep.subr.bf16.mxu1 %v9106_v33 }
 0xe4e   :  { %2982 = vmatpush1.bf16.msra.mxu0 %v9110_v1  ;;  %3035 = vmatpush1.bf16.msra.mxu1 %v9112_v43 }
 0xe4f   :  { %3073 = vmatprep.subr.bf16.mxu0 %v9116_v17  ;;  %3126 = vmatprep.subr.bf16.mxu1 %v9118_v35 }
 0xe51   :  { %3000 = vmatmul.mubr.bf16.vlgmr.msra.gmra.mxu0 %v9128_v4  ;;  %3053 = vmatmul.mubr.bf16.vlgmr.msra.gmra.mxu1 %v9128_v4 }
 0xe52   :  { %3074 = vmatpush1.bf16.msra.mxu0 %v9122_v16  ;;  %3127 = vmatpush1.bf16.msra.mxu1 %v9124_v53 }
 0xe53   :  { %3075 = vmatprep.subr.bf16.mxu0 %v9132_v63  ;;  %3128 = vmatprep.subr.bf16.mxu1 %v9134_v32 }
 0xe54   :  { %3009 = vmatprep.mubr.bf16.mxu0 %v11401_v11  ;;  %3062 = vmatprep.mubr.bf16.mxu1 %v11401_v11 }
 0xe56   :  { %3076 = vmatpush1.bf16.msra.mxu0 %v9140_v61  ;;  %3129 = vmatpush1.bf16.msra.mxu1 %v9142_v27  ;;  %v2567_v27 = vld [vmem:[#allocation5 + $0xf8] sm:$0xff] }
 0xe57   :  { %3077 = vmatprep.subr.bf16.mxu0 %v9146_v12  ;;  %3130 = vmatprep.subr.bf16.mxu1 %v9148_v55  ;;  %v9180_v13 = vcombine.high %v2563_v49, %v2567_v27  ;;  %v2555_v55 = vld [vmem:[#allocation5 + $0x98] sm:$0xff]  ;;  %v9188_v29 = vcombine.low %v2563_v49, %v2567_v27 }
 0xe58   :  { %v2559_v12 = vld [vmem:[#allocation5 + $0xb8] sm:$0xff] }
 0xe59   :  { %3010 = vmatmul.mubr.bf16.gmra.mxu0 %v9160_v62  ;;  %3063 = vmatmul.mubr.bf16.gmra.mxu1 %v9160_v62  ;;  %11473 = vst [vmem:[#allocation36_spill] sm:$0xff] %v9180_v13  ;;  %v9194_v31 = vcombine.high %v2555_v55, %v2559_v12  ;;  %v9200_v15 = vcombine.low %v2555_v55, %v2559_v12 }
 0xe5a   :  { %3078 = vmatpush1.bf16.msra.mxu0 %v9154_v42  ;;  %3131 = vmatpush1.bf16.msra.mxu1 %v9156_v18  ;;  %v2547_v18 = vld [vmem:[#allocation5 + $0x58] sm:$0xff] }
 0xe5b   :  { %3079 = vmatprep.subr.bf16.mxu0 %v9164_v24  ;;  %3132 = vmatprep.subr.bf16.mxu1 %v9166_v47  ;;  %11474 = vst [vmem:[#allocation38_spill] sm:$0xff] %v9194_v31  ;;  %v2546_v47 = vld [vmem:[#allocation5 + $0x50] sm:$0xff]  ;;  %v2551_v42 = vld [vmem:[#allocation5 + $0x78] sm:$0xff]  ;;  %11476 = vst [vmem:[#allocation41_spill] sm:$0xff] %v9200_v15 }
 0xe5c   :  { %3105 = vmatprep.mubr.bf16.mxu0 %v11401_v11  ;;  %3158 = vmatprep.mubr.bf16.mxu1 %v11401_v11  ;;  %v2550_v24 = vld [vmem:[#allocation5 + $0x70] sm:$0xff]  ;;  %v9206_v27 = vcombine.high %v2547_v18, %v2551_v42  ;;  %v9212_v12 = vcombine.low %v2547_v18, %v2551_v42  ;;  %v11488_v18 = vld [vmem:[#allocation29_spill] sm:$0xff] }
 0xe5d   :  { %v9204_v49 = vcombine.high %v2546_v47, %v2550_v24  ;;  %v9210_v20 = vcombine.low %v2546_v47, %v2550_v24  ;;  %v3215_v47 = vpack.c.bf16 %v8417_v9, %v8368_v54  ;;  %v11485_v54 = vld [vmem:[#allocation31_spill] sm:$0xff]  ;;  %v11486_v9 = vld [vmem:[#allocation14_spill] sm:$0xff] }
 0xe5e   :  { %3080 = vmatpush1.bf16.msra.mxu0 %v9172_v37  ;;  %3133 = vmatpush1.bf16.msra.mxu1 %v9174_v46  ;;  %11478 = vst [vmem:[#allocation42_spill] sm:$0xff] %v9206_v27  ;;  %v2539_v46 = vld [vmem:[#allocation5 + $0x18] sm:$0xff]  ;;  %11480 = vst [vmem:[#allocation45_spill] sm:$0xff] %v9212_v12  ;;  %v11490_v24 = vld [vmem:[#allocation30_spill] sm:$0xff] }
 0xe5f   :  { %3081 = vmatprep.subr.bf16.mxu0 %v9178_v21  ;;  %3134 = vmatprep.subr.bf16.mxu1 %v9180_v13  ;;  %11477 = vst [vmem:[#allocation40_spill] sm:$0xff] %v9204_v49  ;;  %v2538_v13 = vld [vmem:[#allocation5 + $0x10] sm:$0xff]  ;;  %v2543_v37 = vld [vmem:[#allocation5 + $0x38] sm:$0xff]  ;;  %11479 = vst [vmem:[#allocation47_spill] sm:$0xff] %v9210_v20 }
 0xe60   :  { %v2542_v21 = vld [vmem:[#allocation5 + $0x30] sm:$0xff]  ;;  %v9218_v10 = vcombine.high %v2539_v46, %v2543_v37 }
 0xe61   :  { %v9216_v55 = vcombine.high %v2538_v13, %v2542_v21 }
 0xe62   :  { %3082 = vmatpush1.bf16.msra.mxu0 %v9186_v48  ;;  %3135 = vmatpush1.bf16.msra.mxu1 %v9188_v29  ;;  %11482 = vst [vmem:[#allocation46_spill] sm:$0xff] %v9218_v10 }
 0xe63   :  { %3083 = vmatprep.subr.bf16.mxu0 %v9192_v5  ;;  %3136 = vmatprep.subr.bf16.mxu1 %v9194_v31  ;;  %11481 = vst [vmem:[#allocation44_spill] sm:$0xff] %v9216_v55  ;;  %v9222_v31 = vcombine.low %v2538_v13, %v2542_v21  ;;  %v11493_v21 = vld [vmem:[#allocation32_spill] sm:$0xff]  ;;  %v11494_v13 = vld [vmem:[#allocation34_spill] sm:$0xff] }
 0xe65   :  { %11483 = vst [vmem:[#allocation51_spill] sm:$0xff] %v9222_v31 }
 0xe66   :  { %3084 = vmatpush1.bf16.msra.mxu0 %v9198_v57  ;;  %3137 = vmatpush1.bf16.msra.mxu1 %v9200_v15  ;;  %v9224_v57 = vcombine.low %v2539_v46, %v2543_v37  ;;  %v11491_v37 = vld [vmem:[#allocation35_spill] sm:$0xff]  ;;  %v11492_v46 = vld [vmem:[#allocation33_spill] sm:$0xff] }
 0xe67   :  { %3085 = vmatprep.subr.bf16.mxu0 %v9204_v49  ;;  %3138 = vmatprep.subr.bf16.mxu1 %v9206_v27 }
 0xe68   :  { %11484 = vst [vmem:[#allocation49_spill] sm:$0xff] %v9224_v57 }
 0xe6a   :  { %3086 = vmatpush1.bf16.msra.mxu0 %v9210_v20  ;;  %3139 = vmatpush1.bf16.msra.mxu1 %v9212_v12 }
 0xe6b   :  { %3087 = vmatprep.subr.bf16.mxu0 %v9216_v55  ;;  %3140 = vmatprep.subr.bf16.mxu1 %v9218_v10 }
 0xe6e   :  { %3088 = vmatpush1.bf16.msra.mxu0 %v9222_v31  ;;  %3141 = vmatpush1.bf16.msra.mxu1 %v9224_v57 }
 0xe6f   :  { %3217 = vmatprep.subr.bf16.mxu0 %v9005_v34  ;;  %3270 = vmatprep.subr.bf16.mxu1 %v9007_v2 }
 0xe71   :  { %3106 = vmatmul.mubr.bf16.vlgmr.msra.gmra.mxu0 %v9128_v4  ;;  %3159 = vmatmul.mubr.bf16.vlgmr.msra.gmra.mxu1 %v9128_v4  ;;  %v11487_v4 = vld [vmem:[#allocation13_spill] sm:$0xff] }
 0xe72   :  { %3218 = vmatpush1.bf16.msra.mxu0 %v9010_v50  ;;  %3271 = vmatpush1.bf16.msra.mxu1 %v9012_v23  ;;  %v3216_v42 = vpack.c.bf16 %v11487_v4, %v11486_v9  ;;  %v11495_v9 = vld [vmem:[#allocation39_spill] sm:$0xff]  ;;  %v11496_v4 = vld [vmem:[#allocation37_spill] sm:$0xff] }
 0xe73   :  { %3219 = vmatprep.subr.bf16.mxu0 %v9030_v45  ;;  %3272 = vmatprep.subr.bf16.mxu1 %v9032_v51 }
 0xe74   :  { %3115 = vmatprep.mubr.bf16.mxu0 %v11401_v11  ;;  %3168 = vmatprep.mubr.bf16.mxu1 %v11401_v11 }
 0xe76   :  { %3220 = vmatpush1.bf16.msra.mxu0 %v9036_v8  ;;  %3273 = vmatpush1.bf16.msra.mxu1 %v9038_v60 }
 0xe77   :  { %3221 = vmatprep.subr.bf16.mxu0 %v9042_v7  ;;  %3274 = vmatprep.subr.bf16.mxu1 %v9044_v19 }
 0xe79   :  { %3116 = vmatmul.mubr.bf16.gmra.mxu0 %v9160_v62  ;;  %3169 = vmatmul.mubr.bf16.gmra.mxu1 %v9160_v62  ;;  %v11489_v62 = vld [vmem:[#allocation28_spill] sm:$0xff] }
 0xe7a   :  { %3222 = vmatpush1.bf16.msra.mxu0 %v9050_v40  ;;  %3275 = vmatpush1.bf16.msra.mxu1 %v9052_v41 }
 0xe7b   :  { %3223 = vmatprep.subr.bf16.mxu0 %v9056_v58  ;;  %3276 = vmatprep.subr.bf16.mxu1 %v9058_v52 }
 0xe7c   :  { %3249 = vmatprep.mubr.bf16.mxu0 %v11401_v11  ;;  %3302 = vmatprep.mubr.bf16.mxu1 %v11401_v11 }
 0xe7e   :  { %3224 = vmatpush1.bf16.msra.mxu0 %v9062_v38  ;;  %3277 = vmatpush1.bf16.msra.mxu1 %v9064_v6 }
 0xe7f   :  { %3225 = vmatprep.subr.bf16.mxu0 %v9068_v59  ;;  %3278 = vmatprep.subr.bf16.mxu1 %v9070_v0 }
 0xe82   :  { %3226 = vmatpush1.bf16.msra.mxu0 %v9074_v28  ;;  %3279 = vmatpush1.bf16.msra.mxu1 %v9076_v3 }
 0xe83   :  { %3227 = vmatprep.subr.bf16.mxu0 %v9080_v56  ;;  %3280 = vmatprep.subr.bf16.mxu1 %v9082_v26 }
 0xe86   :  { %3228 = vmatpush1.bf16.msra.mxu0 %v9086_v36  ;;  %3281 = vmatpush1.bf16.msra.mxu1 %v9088_v22 }
 0xe87   :  { %3229 = vmatprep.subr.bf16.mxu0 %v9092_v39  ;;  %3282 = vmatprep.subr.bf16.mxu1 %v9094_v14 }
 0xe8a   :  { %3230 = vmatpush1.bf16.msra.mxu0 %v9098_v25  ;;  %3283 = vmatpush1.bf16.msra.mxu1 %v9100_v44 }
 0xe8b   :  { %3231 = vmatprep.subr.bf16.mxu0 %v9104_v30  ;;  %3284 = vmatprep.subr.bf16.mxu1 %v9106_v33 }
 0xe8e   :  { %3232 = vmatpush1.bf16.msra.mxu0 %v9110_v1  ;;  %3285 = vmatpush1.bf16.msra.mxu1 %v9112_v43 }
 0xe8f   :  { %3323 = vmatprep.subr.bf16.mxu0 %v9116_v17  ;;  %3376 = vmatprep.subr.bf16.mxu1 %v9118_v35 }
 0xe91   :  { %3250 = vmatmul.mubr.bf16.vlgmr.msra.gmra.mxu0 %v3215_v47  ;;  %3303 = vmatmul.mubr.bf16.vlgmr.msra.gmra.mxu1 %v3215_v47 }
 0xe92   :  { %3324 = vmatpush1.bf16.msra.mxu0 %v9122_v16  ;;  %3377 = vmatpush1.bf16.msra.mxu1 %v9124_v53 }
 0xe93   :  { %3325 = vmatprep.subr.bf16.mxu0 %v9132_v63  ;;  %3378 = vmatprep.subr.bf16.mxu1 %v9134_v32 }
 0xe94   :  { %3259 = vmatprep.mubr.bf16.mxu0 %v11401_v11  ;;  %3312 = vmatprep.mubr.bf16.mxu1 %v11401_v11 }
 0xe96   :  { %3326 = vmatpush1.bf16.msra.mxu0 %v9140_v61  ;;  %3379 = vmatpush1.bf16.msra.mxu1 %v11485_v54 }
 0xe97   :  { %3327 = vmatprep.subr.bf16.mxu0 %v11488_v18  ;;  %3380 = vmatprep.subr.bf16.mxu1 %v11489_v62  ;;  %v11497_v62 = vld [vmem:[#allocation36_spill] sm:$0xff] }
 0xe99   :  { %3260 = vmatmul.mubr.bf16.gmra.mxu0 %v3216_v42  ;;  %3313 = vmatmul.mubr.bf16.gmra.mxu1 %v3216_v42 }
 0xe9a   :  { %3328 = vmatpush1.bf16.msra.mxu0 %v11490_v24  ;;  %3381 = vmatpush1.bf16.msra.mxu1 %v11491_v37 }
 0xe9b   :  { %3329 = vmatprep.subr.bf16.mxu0 %v11492_v46  ;;  %3382 = vmatprep.subr.bf16.mxu1 %v11493_v21  ;;  %v11498_v46 = vld [vmem:[#allocation38_spill] sm:$0xff]  ;;  %v11499_v21 = vld [vmem:[#allocation43_spill] sm:$0xff] }
 0xe9c   :  { %3355 = vmatprep.mubr.bf16.mxu0 %v11401_v11  ;;  %3408 = vmatprep.mubr.bf16.mxu1 %v11401_v11 }
 0xe9e   :  { %3330 = vmatpush1.bf16.msra.mxu0 %v11494_v13  ;;  %3383 = vmatpush1.bf16.msra.mxu1 %v11495_v9 }
 0xe9f   :  { %3331 = vmatprep.subr.bf16.mxu0 %v11496_v4  ;;  %3384 = vmatprep.subr.bf16.mxu1 %v11497_v62 }
 0xea2   :  { %3332 = vmatpush1.bf16.msra.mxu0 %v9186_v48  ;;  %3385 = vmatpush1.bf16.msra.mxu1 %v9188_v29 }
 0xea3   :  { %3333 = vmatprep.subr.bf16.mxu0 %v9192_v5  ;;  %3386 = vmatprep.subr.bf16.mxu1 %v11498_v46 }
 0xea6   :  { %3334 = vmatpush1.bf16.msra.mxu0 %v11499_v21  ;;  %3387 = vmatpush1.bf16.msra.mxu1 %v9200_v15 }
 0xea7   :  { %3335 = vmatprep.subr.bf16.mxu0 %v9204_v49  ;;  %3388 = vmatprep.subr.bf16.mxu1 %v9206_v27 }
 0xeaa   :  { %3336 = vmatpush1.bf16.msra.mxu0 %v9210_v20  ;;  %3389 = vmatpush1.bf16.msra.mxu1 %v9212_v12 }
 0xeab   :  { %3337 = vmatprep.subr.bf16.mxu0 %v9216_v55  ;;  %3390 = vmatprep.subr.bf16.mxu1 %v9218_v10 }
 0xeae   :  { %3338 = vmatpush1.bf16.msra.mxu0 %v9222_v31  ;;  %3391 = vmatpush1.bf16.msra.mxu1 %v9224_v57 }
 0xeaf   :  { %3467 = vmatprep.subr.bf16.mxu0 %v9005_v34  ;;  %3520 = vmatprep.subr.bf16.mxu1 %v9007_v2 }
 0xeb1   :  { %3356 = vmatmul.mubr.bf16.vlgmr.msra.gmra.mxu0 %v3215_v47  ;;  %3409 = vmatmul.mubr.bf16.vlgmr.msra.gmra.mxu1 %v3215_v47  ;;  %v11500_v47 = vld [vmem:[#allocation15_spill] sm:$0xff] }
 0xeb2   :  { %3468 = vmatpush1.bf16.msra.mxu0 %v9010_v50  ;;  %3521 = vmatpush1.bf16.msra.mxu1 %v9012_v23 }
 0xeb3   :  { %3469 = vmatprep.subr.bf16.mxu0 %v9030_v45  ;;  %3522 = vmatprep.subr.bf16.mxu1 %v9032_v51 }
 0xeb4   :  { %3365 = vmatprep.mubr.bf16.mxu0 %v11401_v11  ;;  %3418 = vmatprep.mubr.bf16.mxu1 %v11401_v11 }
 0xeb6   :  { %3470 = vmatpush1.bf16.msra.mxu0 %v9036_v8  ;;  %3523 = vmatpush1.bf16.msra.mxu1 %v9038_v60 }
 0xeb7   :  { %3471 = vmatprep.subr.bf16.mxu0 %v9042_v7  ;;  %3524 = vmatprep.subr.bf16.mxu1 %v9044_v19 }
 0xeb9   :  { %3366 = vmatmul.mubr.bf16.gmra.mxu0 %v3216_v42  ;;  %3419 = vmatmul.mubr.bf16.gmra.mxu1 %v3216_v42  ;;  %v11501_v42 = vld [vmem:[#allocation19_spill] sm:$0xff] }
 0xeba   :  { %3472 = vmatpush1.bf16.msra.mxu0 %v9050_v40  ;;  %3525 = vmatpush1.bf16.msra.mxu1 %v9052_v41 }
 0xebb   :  { %3473 = vmatprep.subr.bf16.mxu0 %v9056_v58  ;;  %3526 = vmatprep.subr.bf16.mxu1 %v9058_v52 }
 0xebc   :  { %3499 = vmatprep.mubr.bf16.mxu0 %v11401_v11  ;;  %3552 = vmatprep.mubr.bf16.mxu1 %v11401_v11 }
 0xebe   :  { %3474 = vmatpush1.bf16.msra.mxu0 %v9062_v38  ;;  %3527 = vmatpush1.bf16.msra.mxu1 %v9064_v6 }
 0xebf   :  { %3475 = vmatprep.subr.bf16.mxu0 %v9068_v59  ;;  %3528 = vmatprep.subr.bf16.mxu1 %v9070_v0 }
 0xec2   :  { %3476 = vmatpush1.bf16.msra.mxu0 %v9074_v28  ;;  %3529 = vmatpush1.bf16.msra.mxu1 %v9076_v3 }
 0xec3   :  { %3477 = vmatprep.subr.bf16.mxu0 %v9080_v56  ;;  %3530 = vmatprep.subr.bf16.mxu1 %v9082_v26 }
 0xec6   :  { %3478 = vmatpush1.bf16.msra.mxu0 %v9086_v36  ;;  %3531 = vmatpush1.bf16.msra.mxu1 %v9088_v22  ;;  %v3465_v36 = vpack.c.bf16 %v11501_v42, %v11500_v47  ;;  %v11502_v47 = vld [vmem:[#allocation17_spill] sm:$0xff]  ;;  %v11503_v42 = vld [vmem:[#allocation16_spill] sm:$0xff] }
 0xec7   :  { %3479 = vmatprep.subr.bf16.mxu0 %v9092_v39  ;;  %3532 = vmatprep.subr.bf16.mxu1 %v9094_v14 }
 0xeca   :  { %3480 = vmatpush1.bf16.msra.mxu0 %v9098_v25  ;;  %3533 = vmatpush1.bf16.msra.mxu1 %v9100_v44 }
 0xecb   :  { %3481 = vmatprep.subr.bf16.mxu0 %v9104_v30  ;;  %3534 = vmatprep.subr.bf16.mxu1 %v9106_v33 }
 0xece   :  { %3482 = vmatpush1.bf16.msra.mxu0 %v9110_v1  ;;  %3535 = vmatpush1.bf16.msra.mxu1 %v9112_v43 }
 0xecf   :  { %3573 = vmatprep.subr.bf16.mxu0 %v9116_v17  ;;  %3626 = vmatprep.subr.bf16.mxu1 %v9118_v35  ;;  %v3466_v35 = vpack.c.bf16 %v11503_v42, %v11502_v47 }
 0xed1   :  { %3500 = vmatmul.mubr.bf16.vlgmr.msra.gmra.mxu0 %v3465_v36  ;;  %3553 = vmatmul.mubr.bf16.vlgmr.msra.gmra.mxu1 %v3465_v36 }
 0xed2   :  { %3574 = vmatpush1.bf16.msra.mxu0 %v9122_v16  ;;  %3627 = vmatpush1.bf16.msra.mxu1 %v9124_v53  ;;  %v11504_v16 = vld [vmem:[#allocation28_spill] sm:$0xff] }
 0xed3   :  { %3575 = vmatprep.subr.bf16.mxu0 %v9132_v63  ;;  %3628 = vmatprep.subr.bf16.mxu1 %v9134_v32  ;;  %v11505_v32 = vld [vmem:[#allocation33_spill] sm:$0xff]  ;;  %v11506_v63 = vld [vmem:[#allocation32_spill] sm:$0xff] }
 0xed4   :  { %3509 = vmatprep.mubr.bf16.mxu0 %v11401_v11  ;;  %3562 = vmatprep.mubr.bf16.mxu1 %v11401_v11 }
 0xed6   :  { %3576 = vmatpush1.bf16.msra.mxu0 %v9140_v61  ;;  %3629 = vmatpush1.bf16.msra.mxu1 %v11485_v54 }
 0xed7   :  { %3577 = vmatprep.subr.bf16.mxu0 %v11488_v18  ;;  %3630 = vmatprep.subr.bf16.mxu1 %v11504_v16 }
 0xed9   :  { %3510 = vmatmul.mubr.bf16.gmra.mxu0 %v3466_v35  ;;  %3563 = vmatmul.mubr.bf16.gmra.mxu1 %v3466_v35 }
 0xeda   :  { %3578 = vmatpush1.bf16.msra.mxu0 %v11490_v24  ;;  %3631 = vmatpush1.bf16.msra.mxu1 %v11491_v37 }
 0xedb   :  { %3579 = vmatprep.subr.bf16.mxu0 %v11505_v32  ;;  %3632 = vmatprep.subr.bf16.mxu1 %v11506_v63 }
 0xedc   :  { %3605 = vmatprep.mubr.bf16.mxu0 %v11401_v11  ;;  %3658 = vmatprep.mubr.bf16.mxu1 %v11401_v11 }
 0xede   :  { %3580 = vmatpush1.bf16.msra.mxu0 %v11494_v13  ;;  %3633 = vmatpush1.bf16.msra.mxu1 %v11495_v9 }
 0xedf   :  { %3581 = vmatprep.subr.bf16.mxu0 %v11496_v4  ;;  %3634 = vmatprep.subr.bf16.mxu1 %v11497_v62 }
 0xee2   :  { %3582 = vmatpush1.bf16.msra.mxu0 %v9186_v48  ;;  %3635 = vmatpush1.bf16.msra.mxu1 %v9188_v29 }
 0xee3   :  { %3583 = vmatprep.subr.bf16.mxu0 %v9192_v5  ;;  %3636 = vmatprep.subr.bf16.mxu1 %v11498_v46 }
 0xee6   :  { %3584 = vmatpush1.bf16.msra.mxu0 %v11499_v21  ;;  %3637 = vmatpush1.bf16.msra.mxu1 %v9200_v15 }
 0xee7   :  { %3585 = vmatprep.subr.bf16.mxu0 %v9204_v49  ;;  %3638 = vmatprep.subr.bf16.mxu1 %v9206_v27  ;;  %v11507_v27 = vld [vmem:[#allocation59_spill] sm:$0xff] }
 0xeea   :  { %3586 = vmatpush1.bf16.msra.mxu0 %v9210_v20  ;;  %3639 = vmatpush1.bf16.msra.mxu1 %v9212_v12 }
 0xeeb   :  { %3587 = vmatprep.subr.bf16.mxu0 %v9216_v55  ;;  %3640 = vmatprep.subr.bf16.mxu1 %v9218_v10  ;;  %v11508_v55 = vld [vmem:[#allocation60_spill] sm:$0xff]  ;;  %v11509_v10 = vld [vmem:[#allocation57_spill] sm:$0xff] }
 0xeec   :  { %v564_v12 = vadd.f32 %v11509_v10, %v11508_v55 }
 0xeee   :  { %3588 = vmatpush1.bf16.msra.mxu0 %v9222_v31  ;;  %3641 = vmatpush1.bf16.msra.mxu1 %v9224_v57 }
 0xeef   :  { %3717 = vmatprep.subr.bf16.mxu0 %v9005_v34  ;;  %3770 = vmatprep.subr.bf16.mxu1 %v9007_v2  ;;  %v11510_v2 = vld [vmem:[#allocation61_spill] sm:$0xff] }
 0xef1   :  { %3606 = vmatmul.mubr.bf16.vlgmr.msra.gmra.mxu0 %v3465_v36  ;;  %3659 = vmatmul.mubr.bf16.vlgmr.msra.gmra.mxu1 %v3465_v36  ;;  %v2463_v47 = vpop.f32.mrf.mxu0  ;;  %v2504_v42 = vpop.f32.mrf.mxu1  ;;  %v11511_v36 = vld [vmem:[#allocation56_spill] sm:$0xff] }
 0xef2   :  { %v2511_v20 = vadd.f32 %v2463_v47, %v11507_v27  ;;  %3718 = vmatpush1.bf16.msra.mxu0 %v9010_v50  ;;  %3771 = vmatpush1.bf16.msra.mxu1 %v9012_v23  ;;  %v565_v57 = vadd.f32 %v11511_v36, %v11510_v2  ;;  %v11544_v47 = vld [vmem:[#allocation51_spill] sm:$0xff]  ;;  %v9526_v36 = vld [vmem:[%s11216_s2 + $0x1c4] ss:$16 sps:$4 sm:$0xff]  }
 0xef3   :  { %v2465_v31 = vpop.f32.mrf.mxu0  ;;  %v2506_v49 = vpop.f32.mrf.mxu1  ;;  %3719 = vmatprep.subr.bf16.mxu0 %v9030_v45  ;;  %3772 = vmatprep.subr.bf16.mxu1 %v9032_v51  ;;  %v9519_v2 = vld [vmem:[%s11216_s2 + $0x1e8] ss:$16 sps:$4 sm:$0xff]   ;;  %11548 = vst [vmem:[#allocation37_spill] sm:$0xff] %v9526_v36 }
 0xef4   :  { %v2515_v34 = vmul.f32 0.5, %v2511_v20  ;;  %v2512_v15 = vadd.f32 %v2465_v31, %v564_v12  ;;  %3615 = vmatprep.mubr.bf16.mxu0 %v11401_v11  ;;  %3668 = vmatprep.mubr.bf16.mxu1 %v11401_v11  ;;  %v2513_v27 = vadd.f32 %v2504_v42, %v565_v57  ;;  %v11545_v42 = vld [vmem:[#allocation49_spill] sm:$0xff]  ;;  %11547 = vst [vmem:[#allocation39_spill] sm:$0xff] %v9519_v2 }
 0xef5   :  { %v2467_v50 = vpop.f32.mrf.mxu0  ;;  %v2508_v23 = vpop.f32.mrf.mxu1 }
 0xef6   :  { %7018 = vtanh.f32 %v2515_v34  ;;  %v2519_v55 = vmul.f32 0.5, %v2512_v15  ;;  %3720 = vmatpush1.bf16.msra.mxu0 %v9036_v8  ;;  %3773 = vmatpush1.bf16.msra.mxu1 %v9038_v60  ;;  %v11512_v8 = vld [vmem:[#allocation62_spill] sm:$0xff]  ;;  %v9531_v50 = vld [vmem:[%s11216_s2 + $0x1cc] ss:$16 sps:$4 sm:$0xff]  }
 0xef7   :  { %v2468_v45 = vpop.f32.mrf.mxu0  ;;  %v2509_v51 = vpop.f32.mrf.mxu1  ;;  %3721 = vmatprep.subr.bf16.mxu0 %v9042_v7  ;;  %3774 = vmatprep.subr.bf16.mxu1 %v9044_v19  ;;  %v11513_v60 = vld [vmem:[#allocation58_spill] sm:$0xff]  ;;  %11549 = vst [vmem:[#allocation36_spill] sm:$0xff] %v9531_v50 }
 0xef8   :  { %7020 = vtanh.f32 %v2519_v55  ;;  %v566_v31 = vadd.f32 %v11513_v60, %v11512_v8  ;;  %v9514_v34 = vld [vmem:[%s11216_s2 + $0x1e0] ss:$16 sps:$4 sm:$0xff]   ;;  %v9549_v45 = vld [vmem:[%s11216_s2 + $0x1c8] ss:$16 sps:$4 sm:$0xff]   ;;  %v9556_v51 = vld [vmem:[%s11216_s2 + $0x1a4] ss:$16 sps:$4 sm:$0xff]  }
 0xef9   :  { %3616 = vmatmul.mubr.bf16.gmra.mxu0 %v3466_v35  ;;  %3669 = vmatmul.mubr.bf16.gmra.mxu1 %v3466_v35  ;;  %7022 = vtanh.f32 %v2513_v27  ;;  %v11518_v35 = vld [vmem:[#allocation27_spill] sm:$0xff]  ;;  %11546 = vst [vmem:[#allocation34_spill] sm:$0xff] %v9514_v34  ;;  %v9544_v55 = vld [vmem:[%s11216_s2 + $0x1c0] ss:$16 sps:$4 sm:$0xff]   ;;  %11553 = vst [vmem:[#allocation19_spill] sm:$0xff] %v9549_v45 }
 0xefa   :  { %3722 = vmatpush1.bf16.msra.mxu0 %v9050_v40  ;;  %3775 = vmatpush1.bf16.msra.mxu1 %v9052_v41  ;;  %v2514_v7 = vadd.f32 %v2506_v49, %v566_v31  ;;  %11552 = vst [vmem:[#allocation15_spill] sm:$0xff] %v9544_v55  ;;  %11554 = vst [vmem:[#allocation17_spill] sm:$0xff] %v9556_v51  ;;  %v9561_v8 = vld [vmem:[%s11216_s2 + $0x1ac] ss:$16 sps:$4 sm:$0xff]  }
 0xefb   :  { %3723 = vmatprep.subr.bf16.mxu0 %v9056_v58  ;;  %3776 = vmatprep.subr.bf16.mxu1 %v9058_v52  ;;  %11555 = vst [vmem:[#allocation16_spill] sm:$0xff] %v9561_v8 }
 0xefc   :  { %3749 = vmatprep.mubr.bf16.mxu0 %v11401_v11  ;;  %3802 = vmatprep.mubr.bf16.mxu1 %v11401_v11  ;;  %v2524_v19 = vmul.f32 0.5, %v2514_v7  ;;  %v9574_v7 = vld [vmem:[%s11216_s2 + $0x1a0] ss:$16 sps:$4 sm:$0xff]  }
 0xefd   :  { %11558 = vst [vmem:[#allocation32_spill] sm:$0xff] %v9574_v7 }
 0xefe   :  { %3724 = vmatpush1.bf16.msra.mxu0 %v9062_v38  ;;  %3777 = vmatpush1.bf16.msra.mxu1 %v9064_v6  ;;  %7024 = vtanh.f32 %v2524_v19  ;;  %v11514_v6 = vld [vmem:[#allocation22_spill] sm:$0xff]  ;;  %v9579_v19 = vld [vmem:[%s11216_s2 + $0x1a8] ss:$16 sps:$4 sm:$0xff]  }
 0xeff   :  { %3725 = vmatprep.subr.bf16.mxu0 %v9068_v59  ;;  %3778 = vmatprep.subr.bf16.mxu1 %v9070_v0  ;;  %11559 = vst [vmem:[#allocation59_spill] sm:$0xff] %v9579_v19 }
 0xf02   :  { %3726 = vmatpush1.bf16.msra.mxu0 %v9074_v28  ;;  %3779 = vmatpush1.bf16.msra.mxu1 %v9076_v3  ;;  %v11515_v3 = vld [vmem:[#allocation21_spill] sm:$0xff] }
 0xf03   :  { %v7019_v40 = vpop.eup %7018  ;;  %3727 = vmatprep.subr.bf16.mxu0 %v9080_v56  ;;  %3780 = vmatprep.subr.bf16.mxu1 %v9082_v26 }
 0xf04   :  { %v2517_v41 = vmul.f32 0.5, %v7019_v40 }
 0xf05   :  { %v7021_v58 = vpop.eup %7020 }
 0xf06   :  { %v2518_v52 = vadd.f32 0.5, %v2517_v41  ;;  %v2521_v38 = vmul.f32 0.5, %v7021_v58  ;;  %3728 = vmatpush1.bf16.msra.mxu0 %v11514_v6  ;;  %3781 = vmatpush1.bf16.msra.mxu1 %v9088_v22  ;;  %v7023_v59 = vpop.eup %7022  ;;  %v11516_v22 = vld [vmem:[#allocation18_spill] sm:$0xff]  ;;  %v9609_v6 = vld [vmem:[%s11216_s2 + $0x188] ss:$16 sps:$4 sm:$0xff]  }
 0xf07   :  { %3729 = vmatprep.subr.bf16.mxu0 %v9092_v39  ;;  %3782 = vmatprep.subr.bf16.mxu1 %v9094_v14  ;;  %v11517_v39 = vld [vmem:[#allocation23_spill] sm:$0xff]  ;;  %v9590_v58 = vld [vmem:[%s11216_s2 + $0x184] ss:$16 sps:$4 sm:$0xff]   ;;  %11563 = vst [vmem:[#allocation56_spill] sm:$0xff] %v9609_v6 }
 0xf08   :  { %v2522_v0 = vadd.f32 0.5, %v2521_v38  ;;  %v2529_v28 = vmul.f32 %v7023_v59, %v2518_v52  ;;  %v9432_v14 = vpack.c.bf16 %v11517_v39, %v11516_v22  ;;  %11560 = vst [vmem:[#allocation60_spill] sm:$0xff] %v9590_v58  ;;  %v9595_v52 = vld [vmem:[%s11216_s2 + $0x18c] ss:$16 sps:$4 sm:$0xff]   ;;  %v9604_v38 = vld [vmem:[%s11216_s2 + $0x180] ss:$16 sps:$4 sm:$0xff]  }
 0xf09   :  { %11561 = vst [vmem:[#allocation57_spill] sm:$0xff] %v9595_v52  ;;  %11562 = vst [vmem:[#allocation61_spill] sm:$0xff] %v9604_v38 }
 0xf0a   :  { %v2528_v56 = vmul.f32 %v2522_v0, %v11515_v3  ;;  %3730 = vmatpush1.bf16.msra.mxu0 %v9098_v25  ;;  %3783 = vmatpush1.bf16.msra.mxu1 %v9100_v44  ;;  %v11519_v25 = vld [vmem:[#allocation25_spill] sm:$0xff] }
 0xf0b   :  { %3731 = vmatprep.subr.bf16.mxu0 %v9104_v30  ;;  %3784 = vmatprep.subr.bf16.mxu1 %v9106_v33  ;;  %v7025_v44 = vpop.eup %7024  ;;  %v11520_v30 = vld [vmem:[#allocation24_spill] sm:$0xff]  ;;  %v11521_v33 = vld [vmem:[#allocation26_spill] sm:$0xff]  ;;  %v9625_v3 = vld [vmem:[%s11216_s2 + $0x16c] ss:$16 sps:$4 sm:$0xff]  }
 0xf0c   :  { %v2530_v26 = vadd.f32 %v2529_v28, %v2528_v56  ;;  %v9620_v28 = vld [vmem:[%s11216_s2 + $0x164] ss:$16 sps:$4 sm:$0xff]   ;;  %11566 = vst [vmem:[#allocation22_spill] sm:$0xff] %v9625_v3  ;;  %v9634_v56 = vld [vmem:[%s11216_s2 + $0x160] ss:$16 sps:$4 sm:$0xff]  }
 0xf0d   :  { %11565 = vst [vmem:[#allocation58_spill] sm:$0xff] %v9620_v28  ;;  %11567 = vst [vmem:[#allocation21_spill] sm:$0xff] %v9634_v56 }
 0xf0e   :  { %7026 = vtanh.f32 %v2530_v26  ;;  %3732 = vmatpush1.bf16.msra.mxu0 %v9110_v1  ;;  %3785 = vmatpush1.bf16.msra.mxu1 %v9112_v43  ;;  %v2526_v1 = vmul.f32 0.5, %v7025_v44  ;;  %v9639_v26 = vld [vmem:[%s11216_s2 + $0x168] ss:$16 sps:$4 sm:$0xff]  }
 0xf0f   :  { %3823 = vmatprep.subr.bf16.mxu0 %v9116_v17  ;;  %3876 = vmatprep.subr.bf16.mxu1 %v11518_v35  ;;  %11568 = vst [vmem:[#allocation18_spill] sm:$0xff] %v9639_v26  ;;  %v9655_v35 = vld [vmem:[%s11216_s2 + $0x14c] ss:$16 sps:$4 sm:$0xff]   ;;  %v9667_v44 = vld [vmem:[%s11216_s2 + $0x148] ss:$16 sps:$4 sm:$0xff]  }
 0xf10   :  { %11570 = vst [vmem:[#allocation27_spill] sm:$0xff] %v9655_v35  ;;  %11572 = vst [vmem:[#allocation24_spill] sm:$0xff] %v9667_v44 }
 0xf11   :  { %3750 = vmatmul.mubr.bf16.vlgmr.msra.gmra.mxu0 %v9432_v14  ;;  %3803 = vmatmul.mubr.bf16.vlgmr.msra.gmra.mxu1 %v9432_v14  ;;  %v9448_v43 = vpop.f32.mrf.mxu0  ;;  %v9450_v17 = vpop.f32.mrf.mxu1 }
 0xf12   :  { %3824 = vmatpush1.bf16.msra.mxu0 %v11519_v25  ;;  %3877 = vmatpush1.bf16.msra.mxu1 %v9124_v53  ;;  %11522 = vst [vmem:[#allocation48_spill] sm:$0xff] %v9448_v43  ;;  %11523 = vst [vmem:[#allocation50_spill] sm:$0xff] %v9450_v17  ;;  %v2527_v53 = vadd.f32 0.5, %v2526_v1  ;;  %v9662_v25 = vld [vmem:[%s11216_s2 + $0x140] ss:$16 sps:$4 sm:$0xff]  }
 0xf13   :  { %3825 = vmatprep.subr.bf16.mxu0 %v11520_v30  ;;  %3878 = vmatprep.subr.bf16.mxu1 %v11521_v33  ;;  %v9456_v15 = vpop.f32.mrf.mxu0  ;;  %v9458_v49 = vpop.f32.mrf.mxu1  ;;  %11571 = vst [vmem:[#allocation25_spill] sm:$0xff] %v9662_v25  ;;  %v9678_v1 = vld [vmem:[%s11216_s2 + $0x124] ss:$16 sps:$4 sm:$0xff]  }
 0xf14   :  { %3759 = vmatprep.mubr.bf16.mxu0 %v11401_v11  ;;  %3812 = vmatprep.mubr.bf16.mxu1 %v11401_v11  ;;  %11524 = vst [vmem:[#allocation55_spill] sm:$0xff] %v9456_v15  ;;  %11525 = vst [vmem:[#allocation53_spill] sm:$0xff] %v9458_v49  ;;  %v11591_v17 = vld [vmem:[#allocation10_spill] sm:$0xff]  ;;  %v11592_v43 = vld [vmem:[#allocation12_spill] sm:$0xff] }
 0xf16   :  { %3826 = vmatpush1.bf16.msra.mxu0 %v9140_v61  ;;  %3879 = vmatpush1.bf16.msra.mxu1 %v11485_v54  ;;  %v11531_v54 = vld [vmem:[#allocation41_spill] sm:$0xff] }
 0xf17   :  { %3827 = vmatprep.subr.bf16.mxu0 %v11488_v18  ;;  %3880 = vmatprep.subr.bf16.mxu1 %v11504_v16  ;;  %v11526_v16 = vld [vmem:[#allocation20_spill] sm:$0xff]  ;;  %11575 = vst [vmem:[#allocation41_spill] sm:$0xff] %v9678_v1 }
 0xf18   :  { %v11532_v18 = vld [vmem:[#allocation40_spill] sm:$0xff] }
 0xf1a   :  { %3828 = vmatpush1.bf16.msra.mxu0 %v11490_v24  ;;  %3881 = vmatpush1.bf16.msra.mxu1 %v11491_v37  ;;  %v11538_v37 = vld [vmem:[#allocation44_spill] sm:$0xff] }
 0xf1b   :  { %v7027_v57 = vpop.eup %7026  ;;  %3829 = vmatprep.subr.bf16.mxu0 %v11505_v32  ;;  %3882 = vmatprep.subr.bf16.mxu1 %v11506_v63  ;;  %v9469_v63 = vpop.f32.mrf.mxu0 }
 0xf1c   :  { %v2532_v61 = vmul.f32 %v7027_v57, %v2527_v53  ;;  %11527 = vst [vmem:[#allocation52_spill] sm:$0xff] %v9469_v63  ;;  %v9471_v32 = vpop.f32.mrf.mxu1  ;;  %v9683_v53 = vld [vmem:[%s11216_s2 + $0x12c] ss:$16 sps:$4 sm:$0xff]   ;;  %v9690_v57 = vld [vmem:[%s11216_s2 + $0x120] ss:$16 sps:$4 sm:$0xff]  }
 0xf1d   :  { %11528 = vst [vmem:[#allocation54_spill] sm:$0xff] %v9471_v32  ;;  %v9479_v12 = vpop.f32.mrf.mxu0  ;;  %11576 = vst [vmem:[#allocation40_spill] sm:$0xff] %v9683_v53 }
 0xf1e   :  { %3830 = vmatpush1.bf16.msra.mxu0 %v11494_v13  ;;  %3883 = vmatpush1.bf16.msra.mxu1 %v11495_v9  ;;  %v9463_v20 = vpack.c.bf16 %v2532_v61, %v11526_v16  ;;  %11529 = vst [vmem:[#allocation63_spill] sm:$0xff] %v9479_v12  ;;  %v9481_v10 = vpop.f32.mrf.mxu1  ;;  %v9503_v13 = vld [vmem:[%s11216_s2 + $0x1ec] ss:$16 sps:$4 sm:$0xff]   ;;  %v9695_v61 = vld [vmem:[%s11216_s2 + $0x128] ss:$16 sps:$4 sm:$0xff]  }
 0xf1f   :  { %3831 = vmatprep.subr.bf16.mxu0 %v11496_v4  ;;  %3884 = vmatprep.subr.bf16.mxu1 %v11497_v62  ;;  %11530 = vst [vmem:[#allocation64_spill] sm:$0xff] %v9481_v10  ;;  %v11533_v62 = vld [vmem:[#allocation42_spill] sm:$0xff]  ;;  %v9487_v24 = vpop.f32.mrf.mxu0  ;;  %11541 = vst [vmem:[#allocation29_spill] sm:$0xff] %v9503_v13 }
 0xf20   :  { %3760 = vmatmul.mubr.bf16.gmra.mxu0 %v9463_v20  ;;  %3813 = vmatmul.mubr.bf16.gmra.mxu1 %v9463_v20  ;;  %11534 = vst [vmem:[#allocation31_spill] sm:$0xff] %v9487_v24  ;;  %11577 = vst [vmem:[#allocation42_spill] sm:$0xff] %v9690_v57 }
 0xf21   :  { %3855 = vmatprep.mubr.bf16.mxu0 %v11401_v11  ;;  %3908 = vmatprep.mubr.bf16.mxu1 %v11401_v11  ;;  %v9505_v9 = vpop.f32.mrf.mxu0 }
 0xf22   :  { %3832 = vmatpush1.bf16.msra.mxu0 %v9186_v48  ;;  %3885 = vmatpush1.bf16.msra.mxu1 %v9188_v29  ;;  %v9489_v48 = vpop.f32.mrf.mxu1  ;;  %v11536_v29 = vld [vmem:[#allocation47_spill] sm:$0xff]  ;;  %11542 = vst [vmem:[#allocation30_spill] sm:$0xff] %v9505_v9 }
 0xf23   :  { %3833 = vmatprep.subr.bf16.mxu0 %v9192_v5  ;;  %3886 = vmatprep.subr.bf16.mxu1 %v11498_v46  ;;  %11535 = vst [vmem:[#allocation14_spill] sm:$0xff] %v9489_v48  ;;  %v11537_v5 = vld [vmem:[#allocation45_spill] sm:$0xff]  ;;  %v11539_v46 = vld [vmem:[#allocation46_spill] sm:$0xff]  ;;  %v9533_v23 = vpop.f32.mrf.mxu0  ;;  %11578 = vst [vmem:[#allocation47_spill] sm:$0xff] %v9695_v61 }
 0xf24   :  { %v9507_v4 = vpop.f32.mrf.mxu1  ;;  %11550 = vst [vmem:[#allocation38_spill] sm:$0xff] %v9533_v23 }
 0xf25   :  { %11543 = vst [vmem:[#allocation35_spill] sm:$0xff] %v9507_v4  ;;  %v9565_v60 = vpop.f32.mrf.mxu0 }
 0xf26   :  { %3834 = vmatpush1.bf16.msra.mxu0 %v11499_v21  ;;  %3887 = vmatpush1.bf16.msra.mxu1 %v11531_v54  ;;  %v9498_v21 = vld [vmem:[%s11216_s2 + $0x1e4] ss:$16 sps:$4 sm:$0xff]   ;;  %v9535_v27 = vpop.f32.mrf.mxu1  ;;  %11556 = vst [vmem:[#allocation28_spill] sm:$0xff] %v9565_v60 }
 0xf27   :  { %3835 = vmatprep.subr.bf16.mxu0 %v11532_v18  ;;  %3888 = vmatprep.subr.bf16.mxu1 %v11533_v62  ;;  %11540 = vst [vmem:[#allocation13_spill] sm:$0xff] %v9498_v21  ;;  %11551 = vst [vmem:[#allocation43_spill] sm:$0xff] %v9535_v27  ;;  %v9706_v54 = vld [vmem:[%s11216_s2 + $0x104] ss:$16 sps:$4 sm:$0xff]   ;;  %v9711_v18 = vld [vmem:[%s11216_s2 + $0x10c] ss:$16 sps:$4 sm:$0xff]  }
 0xf28   :  { %v9567_v31 = vpop.f32.mrf.mxu1  ;;  %11579 = vst [vmem:[#allocation45_spill] sm:$0xff] %v9706_v54  ;;  %11580 = vst [vmem:[#allocation44_spill] sm:$0xff] %v9711_v18  ;;  %v9718_v62 = vld [vmem:[%s11216_s2 + $0x100] ss:$16 sps:$4 sm:$0xff]  }
 0xf29   :  { %11557 = vst [vmem:[#allocation33_spill] sm:$0xff] %v9567_v31  ;;  %11581 = vst [vmem:[#allocation46_spill] sm:$0xff] %v9718_v62 }
 0xf2a   :  { %3836 = vmatpush1.bf16.msra.mxu0 %v11536_v29  ;;  %3889 = vmatpush1.bf16.msra.mxu1 %v11537_v5  ;;  %v9723_v29 = vld [vmem:[%s11216_s2 + $0x108] ss:$16 sps:$4 sm:$0xff]  }
 0xf2b   :  { %3837 = vmatprep.subr.bf16.mxu0 %v11538_v37  ;;  %3890 = vmatprep.subr.bf16.mxu1 %v11539_v46  ;;  %11582 = vst [vmem:[#allocation51_spill] sm:$0xff] %v9723_v29 }
 0xf2e   :  { %3838 = vmatpush1.bf16.msra.mxu0 %v11544_v47  ;;  %3891 = vmatpush1.bf16.msra.mxu1 %v11545_v42 }
 0xf2f   :  { %4166 = vmatprep.subr.bf16.mxu0 %v9498_v21  ;;  %4207 = vmatprep.subr.bf16.mxu1 %v9503_v13 }
 0xf31   :  { %3856 = vmatmul.mubr.bf16.vlgmr.msra.gmra.mxu0 %v9432_v14  ;;  %3909 = vmatmul.mubr.bf16.vlgmr.msra.gmra.mxu1 %v9432_v14  ;;  %v9581_v40 = vpop.f32.mrf.mxu0  ;;  %v9583_v41 = vpop.f32.mrf.mxu1  ;;  %v9650_v14 = vld [vmem:[%s11216_s2 + $0x144] ss:$16 sps:$4 sm:$0xff]  }
 0xf32   :  { %4167 = vmatpush1.bf16.msra.mxu0 %v9514_v34  ;;  %4208 = vmatpush1.bf16.msra.mxu1 %v9519_v2  ;;  %11569 = vst [vmem:[#allocation23_spill] sm:$0xff] %v9650_v14 }
 0xf33   :  { %4168 = vmatprep.subr.bf16.mxu0 %v9526_v36  ;;  %4209 = vmatprep.subr.bf16.mxu1 %v9531_v50  ;;  %v9611_v59 = vpop.f32.mrf.mxu0  ;;  %v9613_v0 = vpop.f32.mrf.mxu1 }
 0xf34   :  { %3865 = vmatprep.mubr.bf16.mxu0 %v11401_v11  ;;  %3918 = vmatprep.mubr.bf16.mxu1 %v11401_v11  ;;  %11564 = vst [vmem:[#allocation62_spill] sm:$0xff] %v9613_v0 }
 0xf35   :  { %v9641_v22 = vpop.f32.mrf.mxu0  ;;  %v9643_v39 = vpop.f32.mrf.mxu1 }
 0xf36   :  { %4169 = vmatpush1.bf16.msra.mxu0 %v9544_v55  ;;  %4210 = vmatpush1.bf16.msra.mxu1 %v9549_v45 }
 0xf37   :  { %4170 = vmatprep.subr.bf16.mxu0 %v9556_v51  ;;  %4211 = vmatprep.subr.bf16.mxu1 %v9561_v8  ;;  %v9669_v30 = vpop.f32.mrf.mxu0  ;;  %v9671_v33 = vpop.f32.mrf.mxu1 }
 0xf38   :  { %11573 = vst [vmem:[#allocation26_spill] sm:$0xff] %v9669_v30  ;;  %11574 = vst [vmem:[#allocation20_spill] sm:$0xff] %v9671_v33 }
 0xf39   :  { %3866 = vmatmul.mubr.bf16.gmra.mxu0 %v9463_v20  ;;  %3919 = vmatmul.mubr.bf16.gmra.mxu1 %v9463_v20  ;;  %v9697_v16 = vpop.f32.mrf.mxu0  ;;  %v9699_v20 = vpop.f32.mrf.mxu1 }
 0xf3a   :  { %4171 = vmatpush1.bf16.msra.mxu0 %v9574_v7  ;;  %4212 = vmatpush1.bf16.msra.mxu1 %v9579_v19 }
 0xf3b   :  { %4172 = vmatprep.subr.bf16.mxu0 %v9590_v58  ;;  %4213 = vmatprep.subr.bf16.mxu1 %v9595_v52  ;;  %v9725_v5 = vpop.f32.mrf.mxu0  ;;  %v9727_v37 = vpop.f32.mrf.mxu1 }
 0xf3c   :  { %4198 = vmatprep.mubr.bf16.mxu0 %v11401_v11  ;;  %4239 = vmatprep.mubr.bf16.mxu1 %v11401_v11 }
 0xf3d   :  { %v9733_v46 = vpop.f32.mrf.mxu0  ;;  %v9735_v47 = vpop.f32.mrf.mxu1 }
 0xf3e   :  { %4173 = vmatpush1.bf16.msra.mxu0 %v9604_v38  ;;  %4214 = vmatpush1.bf16.msra.mxu1 %v9609_v6 }
 0xf3f   :  { %4174 = vmatprep.subr.bf16.mxu0 %v9620_v28  ;;  %4215 = vmatprep.subr.bf16.mxu1 %v9625_v3  ;;  %v9743_v42 = vpop.f32.mrf.mxu0  ;;  %v9745_v33 = vpop.f32.mrf.mxu1 }
 0xf40   :  { %11583 = vst [vmem:[#allocation49_spill] sm:$0xff] %v9743_v42  ;;  %11584 = vst [vmem:[#allocation65_spill] sm:$0xff] %v9745_v33 }
 0xf42   :  { %4175 = vmatpush1.bf16.msra.mxu0 %v9634_v56  ;;  %4216 = vmatpush1.bf16.msra.mxu1 %v9639_v26 }
 0xf43   :  { %4176 = vmatprep.subr.bf16.mxu0 %v9650_v14  ;;  %4217 = vmatprep.subr.bf16.mxu1 %v9655_v35 }
 0xf46   :  { %4177 = vmatpush1.bf16.msra.mxu0 %v9662_v25  ;;  %4218 = vmatpush1.bf16.msra.mxu1 %v9667_v44 }
 0xf47   :  { %4178 = vmatprep.subr.bf16.mxu0 %v9678_v1  ;;  %4219 = vmatprep.subr.bf16.mxu1 %v9683_v53 }
 0xf4a   :  { %4179 = vmatpush1.bf16.msra.mxu0 %v9690_v57  ;;  %4220 = vmatpush1.bf16.msra.mxu1 %v9695_v61 }
 0xf4b   :  { %4180 = vmatprep.subr.bf16.mxu0 %v9706_v54  ;;  %4221 = vmatprep.subr.bf16.mxu1 %v9711_v18 }
 0xf4e   :  { %4181 = vmatpush1.bf16.msra.mxu0 %v9718_v62  ;;  %4222 = vmatpush1.bf16.msra.mxu1 %v9723_v29 }
 0xf4f   :  { %4283 = vmatprep.subr.bf16.mxu0 %v9498_v21  ;;  %4324 = vmatprep.subr.bf16.mxu1 %v9503_v13 }
 0xf51   :  { %4199 = vmatmul.mubr.bf16.vlgmr.msra.gmra.mxu0 %v11401_v11  ;;  %4240 = vmatmul.mubr.bf16.vlgmr.msra.gmra.mxu1 %v11401_v11  ;;  %v9751_v30 = vpop.f32.mrf.mxu0  ;;  %v9753_v31 = vpop.f32.mrf.mxu1 }
 0xf52   :  { %4284 = vmatpush1.bf16.msra.mxu0 %v9514_v34  ;;  %4325 = vmatpush1.bf16.msra.mxu1 %v9519_v2 }
 0xf53   :  { %4285 = vmatprep.subr.bf16.mxu0 %v9526_v36  ;;  %4326 = vmatprep.subr.bf16.mxu1 %v9531_v50  ;;  %v9759_v33 = vpop.f32.mrf.mxu0  ;;  %v9761_v42 = vpop.f32.mrf.mxu1  ;;  %v11590_v36 = vld [vmem:[#allocation11_spill] sm:$0xff] }
 0xf54   :  { %4315 = vmatprep.mubr.bf16.mxu0 %v11401_v11  ;;  %4356 = vmatprep.mubr.bf16.mxu1 %v11401_v11  ;;  %v11589_v11 = vld [vmem:[#allocation9_spill] sm:$0xff] }
 0xf55   :  { %v9767_v60 = vpop.f32.mrf.mxu0  ;;  %v9769_v10 = vpop.f32.mrf.mxu1 }
 0xf56   :  { %4286 = vmatpush1.bf16.msra.mxu0 %v9544_v55  ;;  %4327 = vmatpush1.bf16.msra.mxu1 %v9549_v45 }
 0xf57   :  { %4287 = vmatprep.subr.bf16.mxu0 %v9556_v51  ;;  %4328 = vmatprep.subr.bf16.mxu1 %v9561_v8  ;;  %v9775_v12 = vpop.f32.mrf.mxu0 }
 0xf58   :  { %11585 = vst [vmem:[#allocation66_spill] sm:$0xff] %v9775_v12 }
 0xf5a   :  { %4288 = vmatpush1.bf16.msra.mxu0 %v9574_v7  ;;  %4329 = vmatpush1.bf16.msra.mxu1 %v9579_v19  ;;  %v9777_v7 = vpop.f32.mrf.mxu1  ;;  %v6465_v19 = vld [vmem:[%s11215_s1 + $0x2] ss:$4 sm:$0xff] }
 0xf5b   :  { %4289 = vmatprep.subr.bf16.mxu0 %v9590_v58  ;;  %4330 = vmatprep.subr.bf16.mxu1 %v9595_v52  ;;  %11586 = vst [vmem:[#allocation67_spill] sm:$0xff] %v9777_v7  ;;  %v9783_v52 = vpop.f32.mrf.mxu0  ;;  %v9827_v50 = vrot.slane %v6465_v19, %v11589_v11  ;;  %v9830_v2 = vrot.slane %v6465_v19, %v11590_v36 }
 0xf5c   :  { %v9837_v15 = vrot.slane %v6465_v19, %v11591_v17  ;;  %v9840_v32 = vrot.slane %v6465_v19, %v11592_v43 }
 0xf5d   :  { %v9791_v7 = vpop.f32.mrf.mxu0 }
 0xf5e   :  { %4290 = vmatpush1.bf16.msra.mxu0 %v9604_v38  ;;  %4331 = vmatpush1.bf16.msra.mxu1 %v9609_v6  ;;  %v9785_v38 = vpop.f32.mrf.mxu1 }
 0xf5f   :  { %4291 = vmatprep.subr.bf16.mxu0 %v9620_v28  ;;  %4332 = vmatprep.subr.bf16.mxu1 %v9625_v3  ;;  %v11588_v28 = vld [vmem:[#allocation8_spill] sm:$0xff] }
 0xf60   :  { %v9793_v12 = vpop.f32.mrf.mxu1  ;;  %v2625_v6 = vsub.s32 4, %v11588_v28  ;;  %v2633_v58 = vsub.s32 6, %v11588_v28  ;;  %v2629_v8 = vsub.s32 5, %v11588_v28  ;;  %v2637_v51 = vsub.s32 7, %v11588_v28 }
 0xf62   :  { %4292 = vmatpush1.bf16.msra.mxu0 %v9634_v56  ;;  %4333 = vmatpush1.bf16.msra.mxu1 %v9639_v26  ;;  %v9832_v34 = vrot.slane %v6465_v19, %v2625_v6  ;;  %v9834_v49 = vrot.slane %v6465_v19, %v2633_v58  ;;  %v9842_v63 = vrot.slane %v6465_v19, %v2629_v8 }
 0xf63   :  { %4293 = vmatprep.subr.bf16.mxu0 %v9650_v14  ;;  %4334 = vmatprep.subr.bf16.mxu1 %v9655_v35  ;;  %v9799_v35 = vpop.f32.mrf.mxu0  ;;  %v9844_v28 = vrot.slane %v6465_v19, %v2637_v51 }
 0xf66   :  { %4294 = vmatpush1.bf16.msra.mxu0 %v9662_v25  ;;  %4335 = vmatpush1.bf16.msra.mxu1 %v9667_v44  ;;  %v9801_v25 = vpop.f32.mrf.mxu1 }
 0xf67   :  { %4295 = vmatprep.subr.bf16.mxu0 %v9678_v1  ;;  %4336 = vmatprep.subr.bf16.mxu1 %v9683_v53  ;;  %v9807_v53 = vpop.f32.mrf.mxu0 }
 0xf68   :  { %11587 = vst [vmem:[#allocation68_spill] sm:$0xff] %v9807_v53 }
 0xf6a   :  { %4296 = vmatpush1.bf16.msra.mxu0 %v9690_v57  ;;  %4337 = vmatpush1.bf16.msra.mxu1 %v9695_v61  ;;  %v9809_v57 = vpop.f32.mrf.mxu1 }
 0xf6b   :  { %4297 = vmatprep.subr.bf16.mxu0 %v9706_v54  ;;  %4338 = vmatprep.subr.bf16.mxu1 %v9711_v18 }
 0xf6e   :  { %4298 = vmatpush1.bf16.msra.mxu0 %v9718_v62  ;;  %4339 = vmatpush1.bf16.msra.mxu1 %v9723_v29 }
 0xf6f   :  { %4400 = vmatprep.subr.bf16.mxu0 %v9498_v21  ;;  %4441 = vmatprep.subr.bf16.mxu1 %v9503_v13 }
 0xf71   :  { %v9811_v61 = vpop.f32.mrf.mxu0  ;;  %v9813_v54 = vpop.f32.mrf.mxu1 }
 0xf73   :  { %v9815_v18 = vpop.f32.mrf.mxu0  ;;  %v9817_v1 = vpop.f32.mrf.mxu1 }
 0xf75   :  { %v3361_v44 = vpop.f32.mrf.mxu0  ;;  %v3414_v62 = vpop.f32.mrf.mxu1 }
 0xf77   :  { %v3363_v14 = vpop.f32.mrf.mxu0  ;;  %v3416_v29 = vpop.f32.mrf.mxu1 }
 0xf79   :  { %v3367_v26 = vpop.f32.mrf.mxu0  ;;  %v3420_v21 = vpop.f32.mrf.mxu1 }
 0xf7b   :  { %v3369_v56 = vpop.f32.mrf.mxu0  ;;  %v3422_v13 = vpop.f32.mrf.mxu1 }
 0xf7d   :  { %v3371_v3 = vpop.f32.mrf.mxu0  ;;  %v3424_v53 = vpop.f32.mrf.mxu1 }
 0xf7e   :  { %v3372_v9 = vadd.f32 %v3371_v3, %v9832_v34  ;;  %v3425_v36 = vadd.f32 %v3424_v53, %v9834_v49  ;;  %v3368_v3 = vadd.f32 %v3367_v26, %v9832_v34 }
 0xf7f   :  { %v3373_v45 = vpop.f32.mrf.mxu0  ;;  %v3426_v55 = vpop.f32.mrf.mxu1 }
 0xf80   :  { %v3374_v17 = vadd.f32 %v3373_v45, %v9842_v63  ;;  %v3427_v48 = vadd.f32 %v3426_v55, %v9844_v28 }
 0xf91   :  { %v3501_v4 = vpop.f32.mrf.mxu0  ;;  %v3554_v11 = vpop.f32.mrf.mxu1 }
 0xf92   :  { %v3502_v6 = vadd.f32 %v3501_v4, %v9827_v50  ;;  %v3555_v58 = vadd.f32 %v3554_v11, %v9830_v2  ;;  %v3421_v4 = vadd.f32 %v3420_v21, %v9834_v49 }
 0xf93   :  { %v3503_v43 = vpop.f32.mrf.mxu0  ;;  %v3556_v24 = vpop.f32.mrf.mxu1 }
 0xf94   :  { %v3504_v8 = vadd.f32 %v3503_v43, %v9837_v15  ;;  %v3557_v51 = vadd.f32 %v3556_v24, %v9840_v32  ;;  %v9854_v19 = vadd.f32 %v3502_v6, %v3372_v9  ;;  %v9856_v27 = vadd.f32 %v3555_v58, %v3425_v36 }
 0xf95   :  { %v3505_v53 = vpop.f32.mrf.mxu0  ;;  %v3558_v11 = vpop.f32.mrf.mxu1  ;;  %v3370_v24 = vadd.f32 %v3369_v56, %v9842_v63  ;;  %v3423_v9 = vadd.f32 %v3422_v13, %v9844_v28 }
 0xf96   :  { %11593 = vst [vmem:[#allocation8_spill] sm:$0xff] %v9854_v19  ;;  %11594 = vst [vmem:[#allocation9_spill] sm:$0xff] %v9856_v27  ;;  %v3506_v45 = vadd.f32 %v3505_v53, %v9827_v50  ;;  %v3559_v55 = vadd.f32 %v3558_v11, %v9830_v2  ;;  %v9862_v23 = vadd.f32 %v3504_v8, %v3374_v17  ;;  %v11684_v27 = vld [vmem:[#allocation51_spill] sm:$0xff]  ;;  %v11686_v19 = vld [vmem:[#allocation29_spill] sm:$0xff] }
 0xf97   :  { %v9864_v0 = vadd.f32 %v3557_v51, %v3427_v48  ;;  %v3507_v36 = vpop.f32.mrf.mxu0  ;;  %v3560_v6 = vpop.f32.mrf.mxu1  ;;  %v3362_v53 = vadd.f32 %v3361_v44, %v9832_v34  ;;  %v3415_v17 = vadd.f32 %v3414_v62, %v9834_v49 }
 0xf98   :  { %11595 = vst [vmem:[#allocation11_spill] sm:$0xff] %v9862_v23  ;;  %v3508_v26 = vadd.f32 %v3507_v36, %v9837_v15  ;;  %v3561_v21 = vadd.f32 %v3560_v6, %v9840_v32  ;;  %v9870_v58 = vadd.f32 %v3506_v45, %v3368_v3  ;;  %v9872_v43 = vadd.f32 %v3559_v55, %v3421_v4  ;;  %v11685_v23 = vld [vmem:[#allocation13_spill] sm:$0xff] }
 0xf99   :  { %11596 = vst [vmem:[#allocation10_spill] sm:$0xff] %v9864_v0  ;;  %v3511_v48 = vpop.f32.mrf.mxu0  ;;  %v3564_v8 = vpop.f32.mrf.mxu1  ;;  %v3364_v36 = vadd.f32 %v3363_v14, %v9842_v63  ;;  %v3417_v3 = vadd.f32 %v3416_v29, %v9844_v28  ;;  %v11683_v0 = vld [vmem:[#allocation46_spill] sm:$0xff] }
 0xf9a   :  { %11597 = vst [vmem:[#allocation12_spill] sm:$0xff] %v9870_v58  ;;  %11598 = vst [vmem:[#allocation69_spill] sm:$0xff] %v9872_v43  ;;  %v3512_v56 = vadd.f32 %v3511_v48, %v9827_v50  ;;  %v3565_v13 = vadd.f32 %v3564_v8, %v9830_v2  ;;  %v9878_v51 = vadd.f32 %v3508_v26, %v3370_v24  ;;  %v11682_v58 = vld [vmem:[#allocation44_spill] sm:$0xff] }
 0xf9b   :  { %v9880_v11 = vadd.f32 %v3561_v21, %v3423_v9  ;;  %v3513_v4 = vpop.f32.mrf.mxu0  ;;  %v3566_v45 = vpop.f32.mrf.mxu1  ;;  %v3358_v24 = vadd.f32 %v9811_v61, %v9832_v34  ;;  %v3411_v9 = vadd.f32 %v9813_v54, %v9834_v49 }
 0xf9c   :  { %11599 = vst [vmem:[#allocation70_spill] sm:$0xff] %v9878_v51  ;;  %v3514_v44 = vadd.f32 %v3513_v4, %v9837_v15  ;;  %v3567_v62 = vadd.f32 %v3566_v45, %v9840_v32  ;;  %v9886_v55 = vadd.f32 %v3512_v56, %v3362_v53  ;;  %v9888_v6 = vadd.f32 %v3565_v13, %v3415_v17  ;;  %v11681_v51 = vld [vmem:[#allocation45_spill] sm:$0xff] }
 0xf9d   :  { %11600 = vst [vmem:[#allocation71_spill] sm:$0xff] %v9880_v11  ;;  %v3515_v26 = vpop.f32.mrf.mxu0  ;;  %v3568_v14 = vpop.f32.mrf.mxu1  ;;  %v3360_v53 = vadd.f32 %v9815_v18, %v9842_v63  ;;  %v3413_v17 = vadd.f32 %v9817_v1, %v9844_v28  ;;  %v3266_v18 = vadd.f32 %v9799_v35, %v9827_v50  ;;  %v3319_v1 = vadd.f32 %v9801_v25, %v9830_v2 }
 0xf9e   :  { %11601 = vst [vmem:[#allocation72_spill] sm:$0xff] %v9886_v55  ;;  %11602 = vst [vmem:[#allocation73_spill] sm:$0xff] %v9888_v6  ;;  %v3516_v29 = vadd.f32 %v3515_v26, %v9827_v50  ;;  %v3569_v21 = vadd.f32 %v3568_v14, %v9830_v2  ;;  %v9896_v48 = vadd.f32 %v3514_v44, %v3364_v36 }
 0xf9f   :  { %v9898_v8 = vadd.f32 %v3567_v62, %v3417_v3  ;;  %v3517_v61 = vpop.f32.mrf.mxu0  ;;  %v3570_v56 = vpop.f32.mrf.mxu1  ;;  %v3262_v35 = vadd.f32 %v9783_v52, %v9827_v50 }
 0xfa0   :  { %11603 = vst [vmem:[#allocation74_spill] sm:$0xff] %v9896_v48  ;;  %v3518_v54 = vadd.f32 %v3517_v61, %v9837_v15  ;;  %v3571_v13 = vadd.f32 %v3570_v56, %v9840_v32  ;;  %v9906_v4 = vadd.f32 %v3516_v29, %v3358_v24  ;;  %v9908_v45 = vadd.f32 %v3569_v21, %v3411_v9 }
 0xfa1   :  { %11604 = vst [vmem:[#allocation75_spill] sm:$0xff] %v9898_v8  ;;  %v3321_v29 = vadd.f32 %v9809_v57, %v9840_v32  ;;  %v3315_v56 = vadd.f32 %v9785_v38, %v9830_v2  ;;  %v3264_v57 = vadd.f32 %v9791_v7, %v9837_v15 }
 0xfa2   :  { %11605 = vst [vmem:[#allocation76_spill] sm:$0xff] %v9906_v4  ;;  %11606 = vst [vmem:[#allocation77_spill] sm:$0xff] %v9908_v45  ;;  %v9910_v36 = vadd.f32 %v3518_v54, %v3360_v53  ;;  %v9912_v3 = vadd.f32 %v3571_v13, %v3413_v17 }
 0xfa4   :  { %11607 = vst [vmem:[#allocation78_spill] sm:$0xff] %v9910_v36  ;;  %11608 = vst [vmem:[#allocation79_spill] sm:$0xff] %v9912_v3  ;;  %v11651_v36 = vld [vmem:[#allocation50_spill] sm:$0xff] }
 0xfa5   :  { %v3055_v4 = vadd.f32 %v11651_v36, %v9830_v2 }
 0xfb1   :  { %v3607_v44 = vpop.f32.mrf.mxu0  ;;  %v3660_v62 = vpop.f32.mrf.mxu1 }
 0xfb2   :  { %v3608_v26 = vadd.f32 %v3607_v44, %v9832_v34  ;;  %v3661_v14 = vadd.f32 %v3660_v62, %v9834_v49  ;;  %v3317_v62 = vadd.f32 %v9793_v12, %v9840_v32 }
 0xfb3   :  { %v9920_v24 = vpop.f32.mrf.mxu0  ;;  %v3662_v9 = vpop.f32.mrf.mxu1 }
 0xfb4   :  { %11609 = vst [vmem:[#allocation80_spill] sm:$0xff] %v9920_v24  ;;  %v3663_v21 = vadd.f32 %v3662_v9, %v9844_v28  ;;  %v9925_v53 = vadd.f32 %v3608_v26, %v3266_v18  ;;  %v9927_v17 = vadd.f32 %v3661_v14, %v3319_v1  ;;  %v3256_v9 = vadd.f32 %v9767_v60, %v9827_v50 }
 0xfb5   :  { %v3611_v25 = vpop.f32.mrf.mxu0  ;;  %v3664_v61 = vpop.f32.mrf.mxu1 }
 0xfb6   :  { %11610 = vst [vmem:[#allocation81_spill] sm:$0xff] %v9925_v53  ;;  %11611 = vst [vmem:[#allocation82_spill] sm:$0xff] %v9927_v17  ;;  %v3612_v54 = vadd.f32 %v3611_v25, %v9832_v34  ;;  %v3665_v13 = vadd.f32 %v3664_v61, %v9834_v49  ;;  %v9935_v44 = vadd.f32 %v3663_v21, %v3321_v29  ;;  %v11687_v17 = vld [vmem:[#allocation63_spill] sm:$0xff] }
 0xfb7   :  { %v3613_v18 = vpop.f32.mrf.mxu0  ;;  %v3666_v1 = vpop.f32.mrf.mxu1  ;;  %v3309_v29 = vadd.f32 %v9769_v10, %v9830_v2  ;;  %v3008_v53 = vadd.f32 %v11687_v17, %v9837_v15 }
 0xfb8   :  { %11612 = vst [vmem:[#allocation83_spill] sm:$0xff] %v9935_v44  ;;  %v3614_v52 = vadd.f32 %v3613_v18, %v9842_v63  ;;  %v3667_v26 = vadd.f32 %v3666_v1, %v9844_v28  ;;  %v9943_v14 = vadd.f32 %v3612_v54, %v3262_v35  ;;  %v9945_v38 = vadd.f32 %v3665_v13, %v3315_v56 }
 0xfb9   :  { %v3617_v7 = vpop.f32.mrf.mxu0  ;;  %v3670_v21 = vpop.f32.mrf.mxu1  ;;  %v3252_v1 = vadd.f32 %v9751_v30, %v9827_v50 }
 0xfba   :  { %11613 = vst [vmem:[#allocation84_spill] sm:$0xff] %v9943_v14  ;;  %11614 = vst [vmem:[#allocation85_spill] sm:$0xff] %v9945_v38  ;;  %v3618_v12 = vadd.f32 %v3617_v7, %v9832_v34  ;;  %v3671_v25 = vadd.f32 %v3670_v21, %v9834_v49  ;;  %v9953_v61 = vadd.f32 %v3614_v52, %v3264_v57 }
 0xfbb   :  { %v9955_v18 = vadd.f32 %v3667_v26, %v3317_v62  ;;  %v9957_v35 = vpop.f32.mrf.mxu0  ;;  %v9959_v56 = vpop.f32.mrf.mxu1  ;;  %v3305_v7 = vadd.f32 %v9753_v31, %v9830_v2  ;;  %v3254_v52 = vadd.f32 %v9759_v33, %v9837_v15  ;;  %v3307_v26 = vadd.f32 %v9761_v42, %v9840_v32 }
 0xfbc   :  { %11615 = vst [vmem:[#allocation86_spill] sm:$0xff] %v9953_v61  ;;  %11617 = vst [vmem:[#allocation88_spill] sm:$0xff] %v9957_v35  ;;  %v9961_v54 = vadd.f32 %v3618_v12, %v3256_v9  ;;  %v9963_v60 = vadd.f32 %v3671_v25, %v3309_v29  ;;  %v3122_v33 = vadd.f32 %v9733_v46, %v9832_v34 }
 0xfbd   :  { %11616 = vst [vmem:[#allocation87_spill] sm:$0xff] %v9955_v18  ;;  %11618 = vst [vmem:[#allocation89_spill] sm:$0xff] %v9959_v56  ;;  %v3621_v13 = vpop.f32.mrf.mxu0  ;;  %v3674_v10 = vpop.f32.mrf.mxu1  ;;  %v3175_v42 = vadd.f32 %v9735_v47, %v9834_v49  ;;  %v3118_v46 = vadd.f32 %v9697_v16, %v9832_v34  ;;  %v3171_v47 = vadd.f32 %v9699_v20, %v9834_v49 }
 0xfbe   :  { %11619 = vst [vmem:[#allocation90_spill] sm:$0xff] %v9961_v54  ;;  %11620 = vst [vmem:[#allocation91_spill] sm:$0xff] %v9963_v60  ;;  %v3622_v57 = vadd.f32 %v3621_v13, %v9832_v34  ;;  %v3675_v62 = vadd.f32 %v3674_v10, %v9834_v49 }
 0xfbf   :  { %v3623_v9 = vpop.f32.mrf.mxu0  ;;  %v3676_v29 = vpop.f32.mrf.mxu1 }
 0xfc0   :  { %v3624_v21 = vadd.f32 %v3623_v9, %v9842_v63  ;;  %v3677_v12 = vadd.f32 %v3676_v29, %v9844_v28  ;;  %v9977_v30 = vadd.f32 %v3622_v57, %v3252_v1  ;;  %v9979_v25 = vadd.f32 %v3675_v62, %v3305_v7 }
 0xfc2   :  { %11621 = vst [vmem:[#allocation92_spill] sm:$0xff] %v9979_v25  ;;  %v9981_v31 = vadd.f32 %v3624_v21, %v3254_v52  ;;  %v9983_v13 = vadd.f32 %v3677_v12, %v3307_v26  ;;  %v3120_v12 = vadd.f32 %v9725_v5, %v9842_v63  ;;  %v3112_v5 = vadd.f32 %v9641_v22, %v9832_v34 }
 0xfc3   :  { %v3108_v22 = vadd.f32 %v9581_v40, %v9832_v34 }
 0xfc4   :  { %11622 = vst [vmem:[#allocation93_spill] sm:$0xff] %v9981_v31  ;;  %11623 = vst [vmem:[#allocation94_spill] sm:$0xff] %v9983_v13  ;;  %v11688_v31 = vld [vmem:[#allocation64_spill] sm:$0xff] }
 0xfd1   :  { %v3751_v10 = vpop.f32.mrf.mxu0  ;;  %v3804_v3 = vpop.f32.mrf.mxu1 }
 0xfd2   :  { %v3752_v9 = vadd.f32 %v3751_v10, %v9827_v50  ;;  %v3805_v29 = vadd.f32 %v3804_v3, %v9830_v2  ;;  %v3173_v10 = vadd.f32 %v9727_v37, %v9844_v28  ;;  %v3165_v37 = vadd.f32 %v9643_v39, %v9834_v49 }
 0xfd3   :  { %v9991_v1 = vpop.f32.mrf.mxu0  ;;  %v9993_v7 = vpop.f32.mrf.mxu1  ;;  %v3161_v39 = vadd.f32 %v9583_v41, %v9834_v49 }
 0xfd4   :  { %11624 = vst [vmem:[#allocation95_spill] sm:$0xff] %v9991_v1  ;;  %11625 = vst [vmem:[#allocation96_spill] sm:$0xff] %v9993_v7  ;;  %v9995_v57 = vadd.f32 %v3752_v9, %v3122_v33  ;;  %v9997_v62 = vadd.f32 %v3805_v29, %v3175_v42 }
 0xfd5   :  { %v3755_v52 = vpop.f32.mrf.mxu0  ;;  %v3808_v26 = vpop.f32.mrf.mxu1 }
 0xfd6   :  { %11626 = vst [vmem:[#allocation97_spill] sm:$0xff] %v9995_v57  ;;  %11627 = vst [vmem:[#allocation98_spill] sm:$0xff] %v9997_v62  ;;  %v3756_v21 = vadd.f32 %v3755_v52, %v9827_v50  ;;  %v3809_v3 = vadd.f32 %v3808_v26, %v9830_v2 }
 0xfd7   :  { %v3757_v33 = vpop.f32.mrf.mxu0  ;;  %v3810_v42 = vpop.f32.mrf.mxu1 }
 0xfd8   :  { %v3758_v9 = vadd.f32 %v3757_v33, %v9837_v15  ;;  %v3811_v29 = vadd.f32 %v3810_v42, %v9840_v32  ;;  %v10011_v16 = vadd.f32 %v3756_v21, %v3118_v46  ;;  %v10013_v7 = vadd.f32 %v3809_v3, %v3171_v47 }
 0xfda   :  { %11628 = vst [vmem:[#allocation99_spill] sm:$0xff] %v10011_v16  ;;  %11629 = vst [vmem:[#allocation100_spill] sm:$0xff] %v10013_v7  ;;  %v10015_v20 = vadd.f32 %v3758_v9, %v3120_v12  ;;  %v10017_v52 = vadd.f32 %v3811_v29, %v3173_v10  ;;  %v3110_v29 = vadd.f32 %v9611_v59, %v9842_v63  ;;  %v11641_v59 = vld [vmem:[#allocation38_spill] sm:$0xff] }
 0xfdc   :  { %11630 = vst [vmem:[#allocation101_spill] sm:$0xff] %v10015_v20  ;;  %11631 = vst [vmem:[#allocation102_spill] sm:$0xff] %v10017_v52 }
 0xfe0   :  { %v3761_v26 = vpop.f32.mrf.mxu0  ;;  %v3814_v62 = vpop.f32.mrf.mxu1 }
 0xfe1   :  { %v3762_v33 = vadd.f32 %v3761_v26, %v9827_v50  ;;  %v3815_v42 = vadd.f32 %v3814_v62, %v9830_v2  ;;  %v11636_v26 = vld [vmem:[#allocation62_spill] sm:$0xff] }
 0xfe2   :  { %v10025_v46 = vpop.f32.mrf.mxu0  ;;  %v10027_v47 = vpop.f32.mrf.mxu1 }
 0xfe3   :  { %11632 = vst [vmem:[#allocation103_spill] sm:$0xff] %v10025_v46  ;;  %11633 = vst [vmem:[#allocation104_spill] sm:$0xff] %v10027_v47  ;;  %v10029_v21 = vadd.f32 %v3762_v33, %v3112_v5  ;;  %v10031_v3 = vadd.f32 %v3815_v42, %v3165_v37  ;;  %v3163_v5 = vadd.f32 %v11636_v26, %v9844_v28  ;;  %v11642_v26 = vld [vmem:[#allocation43_spill] sm:$0xff] }
 0xfe4   :  { %v3765_v12 = vpop.f32.mrf.mxu0  ;;  %v3818_v10 = vpop.f32.mrf.mxu1  ;;  %v3016_v46 = vadd.f32 %v11641_v59, %v9827_v50  ;;  %v3069_v52 = vadd.f32 %v11642_v26, %v9830_v2  ;;  %v11644_v59 = vld [vmem:[#allocation14_spill] sm:$0xff] }
 0xfe5   :  { %11634 = vst [vmem:[#allocation105_spill] sm:$0xff] %v10029_v21  ;;  %11635 = vst [vmem:[#allocation106_spill] sm:$0xff] %v10031_v3  ;;  %v3766_v9 = vadd.f32 %v3765_v12, %v9827_v50  ;;  %v3819_v62 = vadd.f32 %v3818_v10, %v9830_v2  ;;  %v3065_v26 = vadd.f32 %v11644_v59, %v9830_v2 }
 0xfe6   :  { %v3767_v37 = vpop.f32.mrf.mxu0  ;;  %v3820_v33 = vpop.f32.mrf.mxu1 }
 0xfe7   :  { %v3768_v42 = vadd.f32 %v3767_v37, %v9837_v15  ;;  %v3821_v47 = vadd.f32 %v3820_v33, %v9840_v32  ;;  %v10045_v40 = vadd.f32 %v3766_v9, %v3108_v22  ;;  %v10047_v3 = vadd.f32 %v3819_v62, %v3161_v39 }
 0xfe9   :  { %11637 = vst [vmem:[#allocation62_spill] sm:$0xff] %v10045_v40  ;;  %11638 = vst [vmem:[#allocation107_spill] sm:$0xff] %v10047_v3  ;;  %v10049_v41 = vadd.f32 %v3768_v42, %v3110_v29  ;;  %v10051_v12 = vadd.f32 %v3821_v47, %v3163_v5  ;;  %v11643_v5 = vld [vmem:[#allocation31_spill] sm:$0xff] }
 0xfea   :  { %v3012_v42 = vadd.f32 %v11643_v5, %v9827_v50 }
 0xfeb   :  { %11639 = vst [vmem:[#allocation108_spill] sm:$0xff] %v10049_v41  ;;  %11640 = vst [vmem:[#allocation109_spill] sm:$0xff] %v10051_v12  ;;  %v11645_v12 = vld [vmem:[#allocation30_spill] sm:$0xff] }
 0xfec   :  { %v3014_v3 = vadd.f32 %v11645_v12, %v9837_v15 }
 0xff1   :  { %v3857_v10 = vpop.f32.mrf.mxu0  ;;  %v3910_v21 = vpop.f32.mrf.mxu1 }
 0xff2   :  { %v3858_v37 = vadd.f32 %v3857_v10, %v9832_v34  ;;  %v3911_v33 = vadd.f32 %v3910_v21, %v9834_v49 }
 0xff3   :  { %v10059_v22 = vpop.f32.mrf.mxu0  ;;  %v10061_v39 = vpop.f32.mrf.mxu1 }
 0xff4   :  { %v10063_v9 = vadd.f32 %v3858_v37, %v3016_v46  ;;  %v10065_v47 = vadd.f32 %v3911_v33, %v3069_v52  ;;  %v11646_v46 = vld [vmem:[#allocation35_spill] sm:$0xff] }
 0xff5   :  { %v3861_v62 = vpop.f32.mrf.mxu0  ;;  %v3914_v29 = vpop.f32.mrf.mxu1  ;;  %v3067_v37 = vadd.f32 %v11646_v46, %v9840_v32 }
 0xff6   :  { %v3862_v10 = vadd.f32 %v3861_v62, %v9832_v34  ;;  %v3915_v21 = vadd.f32 %v3914_v29, %v9834_v49  ;;  %v11647_v62 = vld [vmem:[#allocation52_spill] sm:$0xff]  ;;  %v11648_v29 = vld [vmem:[#allocation54_spill] sm:$0xff] }
 0xff7   :  { %v3863_v52 = vpop.f32.mrf.mxu0  ;;  %v3916_v33 = vpop.f32.mrf.mxu1  ;;  %v3006_v59 = vadd.f32 %v11647_v62, %v9827_v50  ;;  %v3059_v20 = vadd.f32 %v11648_v29, %v9830_v2 }
 0xff8   :  { %v3864_v41 = vadd.f32 %v3863_v52, %v9842_v63  ;;  %v3917_v40 = vadd.f32 %v3916_v33, %v9844_v28  ;;  %v10079_v5 = vadd.f32 %v3862_v10, %v3012_v42  ;;  %v10081_v7 = vadd.f32 %v3915_v21, %v3065_v26 }
 0xff9   :  { %v3867_v12 = vpop.f32.mrf.mxu0  ;;  %v3920_v16 = vpop.f32.mrf.mxu1 }
 0xffa   :  { %v3868_v46 = vadd.f32 %v3867_v12, %v9832_v34  ;;  %v3921_v57 = vadd.f32 %v3920_v16, %v9834_v49  ;;  %v10089_v1 = vadd.f32 %v3864_v41, %v3014_v3  ;;  %v10091_v52 = vadd.f32 %v3917_v40, %v3067_v37  ;;  %v11649_v12 = vld [vmem:[#allocation48_spill] sm:$0xff]  ;;  %v11650_v41 = vld [vmem:[#allocation55_spill] sm:$0xff] }
 0xffb   :  { %v10097_v10 = vpop.f32.mrf.mxu0  ;;  %v10099_v21 = vpop.f32.mrf.mxu1  ;;  %v3002_v16 = vadd.f32 %v11649_v12, %v9827_v50  ;;  %v3004_v37 = vadd.f32 %v11650_v41, %v9837_v15 }
 0xffc   :  { %v10093_v42 = vadd.f32 %v3868_v46, %v3006_v59  ;;  %v10095_v26 = vadd.f32 %v3921_v57, %v3059_v20  ;;  %v3870_v44 = vadd.f32 %v10097_v10, %v9842_v63  ;;  %v3923_v17 = vadd.f32 %v10099_v21, %v9844_v28 }
 0xffd   :  { %v3871_v33 = vpop.f32.mrf.mxu0  ;;  %v3924_v62 = vpop.f32.mrf.mxu1 }
 0xffe   :  { %v3872_v45 = vadd.f32 %v3871_v33, %v9832_v34  ;;  %v3925_v57 = vadd.f32 %v3924_v62, %v9834_v49  ;;  %v11652_v62 = vld [vmem:[#allocation53_spill] sm:$0xff]  ;;  %v4279_v61 = vadd.f32 %v3870_v44, %v3008_v53 }
 0xfff   :  { %v3873_v29 = vpop.f32.mrf.mxu0  ;;  %v3926_v40 = vpop.f32.mrf.mxu1  ;;  %v3057_v2 = vadd.f32 %v11652_v62, %v9840_v32  ;;  %v11659_v62 = vld [vmem:[#allocation15_spill] sm:$0xff] }
0x1000   :  { %v3874_v3 = vadd.f32 %v3873_v29, %v9842_v63  ;;  %v4002_v20 = vadd.f32 %v3872_v45, %v3002_v16  ;;  %v4004_v50 = vadd.f32 %v3925_v57, %v3055_v4  ;;  %v3927_v45 = vadd.f32 %v3926_v40, %v9844_v28 }
0x1002   :  { %v4003_v6 = vadd.f32 %v3874_v3, %v3004_v37  ;;  %v4005_v36 = vadd.f32 %v3927_v45, %v3057_v2  ;;  %v11658_v45 = vmov 0   ;;  %v11660_v2 = vld [vmem:[#allocation19_spill] sm:$0xff] }
0x1011   :  { %v4200_v59 = vpop.f32.mrf.mxu0  ;;  %v4241_v46 = vpop.f32.mrf.mxu1 }
0x1012   :  { %v4248_v8 = vadd.f32 %v4200_v59, %v4002_v20  ;;  %v4250_v11 = vadd.f32 %v4241_v46, %v4004_v50 }
0x1013   :  { %v4202_v34 = vpop.f32.mrf.mxu0  ;;  %v4243_v33 = vpop.f32.mrf.mxu1 }
0x1014   :  { %v4252_v48 = vmul.f32 0.5, %v4248_v8  ;;  %v4249_v12 = vadd.f32 %v4202_v34, %v4003_v6  ;;  %v4251_v16 = vadd.f32 %v4243_v33, %v4005_v36  ;;  %v11661_v36 = vld [vmem:[#allocation17_spill] sm:$0xff] }
0x1015   :  { %v4204_v29 = vpop.f32.mrf.mxu0  ;;  %v4245_v55 = vpop.f32.mrf.mxu1 }
0x1016   :  { %7028 = vtanh.f32 %v4252_v48  ;;  %v4256_v41 = vmul.f32 0.5, %v4249_v12  ;;  %v4261_v3 = vmul.f32 0.5, %v4251_v16  ;;  %v11654_v12 = vld [vmem:[#allocation34_spill] sm:$0xff]  ;;  %v11655_v29 = vld [vmem:[#allocation39_spill] sm:$0xff]  ;;  %v11662_v16 = vld [vmem:[#allocation16_spill] sm:$0xff] }
0x1017   :  { %v4205_v43 = vpop.f32.mrf.mxu0  ;;  %v4246_v49 = vpop.f32.mrf.mxu1 }
0x1018   :  { %7030 = vtanh.f32 %v4256_v41  ;;  %v11656_v41 = vld [vmem:[#allocation37_spill] sm:$0xff]  ;;  %v11657_v49 = vld [vmem:[#allocation36_spill] sm:$0xff] }
0x1019   :  { %7032 = vtanh.f32 %v4250_v11 }
0x101a   :  { %7034 = vtanh.f32 %v4261_v3  ;;  %v11663_v3 = vld [vmem:[#allocation32_spill] sm:$0xff] }
0x1023   :  { %v7029_v8 = vpop.eup %7028 }
0x1024   :  { %v4254_v4 = vmul.f32 0.5, %v7029_v8  ;;  %v11664_v8 = vld [vmem:[#allocation59_spill] sm:$0xff] }
0x1025   :  { %v7031_v6 = vpop.eup %7030 }
0x1026   :  { %v4255_v37 = vadd.f32 0.5, %v4254_v4  ;;  %v4258_v55 = vmul.f32 0.5, %v7031_v6  ;;  %v7033_v48 = vpop.eup %7032  ;;  %v11665_v4 = vld [vmem:[#allocation60_spill] sm:$0xff]  ;;  %v11666_v6 = vld [vmem:[#allocation57_spill] sm:$0xff] }
0x1027   :  { %v7035_v40 = vpop.eup %7034 }
0x1028   :  { %v4259_v57 = vadd.f32 0.5, %v4258_v55  ;;  %v4266_v43 = vmul.f32 %v7033_v48, %v4255_v37  ;;  %v4263_v46 = vmul.f32 0.5, %v7035_v40  ;;  %v11667_v37 = vld [vmem:[#allocation61_spill] sm:$0xff]  ;;  %v11668_v55 = vld [vmem:[#allocation56_spill] sm:$0xff]  ;;  %v11669_v48 = vld [vmem:[#allocation58_spill] sm:$0xff] }
0x1029   :  { %v11673_v40 = vld [vmem:[#allocation23_spill] sm:$0xff] }
0x102a   :  { %v4265_v20 = vmul.f32 0.0, %v4259_v57  ;;  %v4264_v11 = vadd.f32 0.5, %v4263_v46  ;;  %v11670_v57 = vld [vmem:[#allocation22_spill] sm:$0xff]  ;;  %v11674_v46 = vld [vmem:[#allocation27_spill] sm:$0xff] }
0x102c   :  { %v10113_v59 = vadd.f32 %v4266_v43, %v4265_v20  ;;  %v11671_v43 = vld [vmem:[#allocation21_spill] sm:$0xff]  ;;  %v11672_v20 = vld [vmem:[#allocation18_spill] sm:$0xff] }
0x102e   :  { %7036 = vtanh.f32 %v10113_v59 }
0x103b   :  { %v7037_v34 = vpop.eup %7036 }
0x103c   :  { %v10116_v33 = vmul.f32 %v7037_v34, %v4264_v11  ;;  %v11675_v11 = vld [vmem:[#allocation25_spill] sm:$0xff]  ;;  %v11676_v34 = vld [vmem:[#allocation24_spill] sm:$0xff] }
0x103e   :  { %11653 = vst [vmem:[#allocation38_spill] sm:$0xff] %v10116_v33  ;;  %v4282_v50 = vpack.c.bf16 %v10116_v33, %v10116_v33  ;;  %v11680_v33 = vld [vmem:[#allocation47_spill] sm:$0xff] }
0x1040   :  { %4316 = vmatmul.mubr.bf16.vlgmr.msra.gmra.mxu0 %v4282_v50  ;;  %4357 = vmatmul.mubr.bf16.vlgmr.msra.gmra.mxu1 %v4282_v50  ;;  %v11677_v50 = vld [vmem:[#allocation41_spill] sm:$0xff] }
0x1041   :  { %4401 = vmatpush1.bf16.msra.mxu0 %v11654_v12  ;;  %4442 = vmatpush1.bf16.msra.mxu1 %v11655_v29  ;;  %v11678_v12 = vld [vmem:[#allocation40_spill] sm:$0xff]  ;;  %v11679_v29 = vld [vmem:[#allocation42_spill] sm:$0xff] }
0x1042   :  { %4402 = vmatprep.subr.bf16.mxu0 %v11656_v41  ;;  %4443 = vmatprep.subr.bf16.mxu1 %v11657_v49 }
0x1043   :  { %4432 = vmatprep.mubr.bf16.mxu0 %v11658_v45  ;;  %4473 = vmatprep.mubr.bf16.mxu1 %v11658_v45 }
0x1045   :  { %4403 = vmatpush1.bf16.msra.mxu0 %v11659_v62  ;;  %4444 = vmatpush1.bf16.msra.mxu1 %v11660_v2 }
0x1046   :  { %4404 = vmatprep.subr.bf16.mxu0 %v11661_v36  ;;  %4445 = vmatprep.subr.bf16.mxu1 %v11662_v16 }
0x1049   :  { %4405 = vmatpush1.bf16.msra.mxu0 %v11663_v3  ;;  %4446 = vmatpush1.bf16.msra.mxu1 %v11664_v8 }
0x104a   :  { %4406 = vmatprep.subr.bf16.mxu0 %v11665_v4  ;;  %4447 = vmatprep.subr.bf16.mxu1 %v11666_v6 }
0x104d   :  { %4407 = vmatpush1.bf16.msra.mxu0 %v11667_v37  ;;  %4448 = vmatpush1.bf16.msra.mxu1 %v11668_v55 }
0x104e   :  { %4408 = vmatprep.subr.bf16.mxu0 %v11669_v48  ;;  %4449 = vmatprep.subr.bf16.mxu1 %v11670_v57 }
0x1051   :  { %4409 = vmatpush1.bf16.msra.mxu0 %v11671_v43  ;;  %4450 = vmatpush1.bf16.msra.mxu1 %v11672_v20 }
0x1052   :  { %4410 = vmatprep.subr.bf16.mxu0 %v11673_v40  ;;  %4451 = vmatprep.subr.bf16.mxu1 %v11674_v46 }
0x1055   :  { %4411 = vmatpush1.bf16.msra.mxu0 %v11675_v11  ;;  %4452 = vmatpush1.bf16.msra.mxu1 %v11676_v34 }
0x1056   :  { %4412 = vmatprep.subr.bf16.mxu0 %v11677_v50  ;;  %4453 = vmatprep.subr.bf16.mxu1 %v11678_v12 }
0x1059   :  { %4413 = vmatpush1.bf16.msra.mxu0 %v11679_v29  ;;  %4454 = vmatpush1.bf16.msra.mxu1 %v11680_v33 }
0x105a   :  { %4414 = vmatprep.subr.bf16.mxu0 %v11681_v51  ;;  %4455 = vmatprep.subr.bf16.mxu1 %v11682_v58 }
0x105d   :  { %4415 = vmatpush1.bf16.msra.mxu0 %v11683_v0  ;;  %4456 = vmatpush1.bf16.msra.mxu1 %v11684_v27 }
0x105e   :  { %4517 = vmatprep.subr.bf16.mxu0 %v11685_v23  ;;  %4558 = vmatprep.subr.bf16.mxu1 %v11686_v19 }
0x1100   :  { %v4317_v24 = vpop.f32.mrf.mxu0  ;;  %v4358_v18 = vpop.f32.mrf.mxu1 }
0x1101   :  { %v4365_v38 = vadd.f32 %v4317_v24, %v10093_v42  ;;  %v4367_v23 = vadd.f32 %v4358_v18, %v10095_v26  ;;  %v3061_v24 = vadd.f32 %v11688_v31, %v9840_v32 }
0x1102   :  { %v4319_v14 = vpop.f32.mrf.mxu0  ;;  %v4360_v56 = vpop.f32.mrf.mxu1 }
0x1103   :  { %v4369_v60 = vmul.f32 0.5, %v4365_v38  ;;  %v4366_v54 = vadd.f32 %v4319_v14, %v4279_v61  ;;  %v4281_v53 = vadd.f32 %v3923_v17, %v3061_v24  ;;  %v10171_v17 = vld [vmem:[%s11216_s2 + $0x1e0] ss:$16 sps:$4 sm:$0xff]  }
0x1104   :  { %v4321_v35 = vpop.f32.mrf.mxu0  ;;  %v4362_v13 = vpop.f32.mrf.mxu1 }
0x1105   :  { %7038 = vtanh.f32 %v4369_v60  ;;  %v4373_v19 = vmul.f32 0.5, %v4366_v54  ;;  %v4368_v44 = vadd.f32 %v4360_v56, %v4281_v53  ;;  %v10235_v53 = vld [vmem:[%s11216_s2 + $0x1c4] ss:$16 sps:$4 sm:$0xff]  }
0x1106   :  { %v4322_v25 = vpop.f32.mrf.mxu0  ;;  %v4363_v10 = vpop.f32.mrf.mxu1 }
0x1107   :  { %7040 = vtanh.f32 %v4373_v19  ;;  %v4378_v38 = vmul.f32 0.5, %v4368_v44  ;;  %v10241_v44 = vld [vmem:[%s11216_s2 + $0x1cc] ss:$16 sps:$4 sm:$0xff]  }
0x1108   :  { %7042 = vtanh.f32 %v4367_v23 }
0x1109   :  { %7044 = vtanh.f32 %v4378_v38  ;;  %v10249_v38 = vld [vmem:[%s11216_s2 + $0x1c0] ss:$16 sps:$4 sm:$0xff]  }
0x1112   :  { %v7039_v14 = vpop.eup %7038 }
0x1113   :  { %v4371_v61 = vmul.f32 0.5, %v7039_v14  ;;  %v10255_v14 = vld [vmem:[%s11216_s2 + $0x1c8] ss:$16 sps:$4 sm:$0xff]  }
0x1114   :  { %v7041_v35 = vpop.eup %7040 }
0x1115   :  { %v4372_v60 = vadd.f32 0.5, %v4371_v61  ;;  %v4375_v13 = vmul.f32 0.5, %v7041_v35  ;;  %v7043_v18 = vpop.eup %7042  ;;  %v10261_v61 = vld [vmem:[%s11216_s2 + $0x1a4] ss:$16 sps:$4 sm:$0xff]   ;;  %v10267_v35 = vld [vmem:[%s11216_s2 + $0x1ac] ss:$16 sps:$4 sm:$0xff]  }
0x1116   :  { %v7045_v31 = vpop.eup %7044 }
0x1117   :  { %v4376_v54 = vadd.f32 0.5, %v4375_v13  ;;  %v4383_v25 = vmul.f32 %v7043_v18, %v4372_v60  ;;  %v4380_v21 = vmul.f32 0.5, %v7045_v31  ;;  %v10273_v60 = vld [vmem:[%s11216_s2 + $0x1a0] ss:$16 sps:$4 sm:$0xff]   ;;  %v10279_v13 = vld [vmem:[%s11216_s2 + $0x1a8] ss:$16 sps:$4 sm:$0xff]  }
0x1118   :  { %v10285_v18 = vld [vmem:[%s11216_s2 + $0x184] ss:$16 sps:$4 sm:$0xff]   ;;  %v10315_v31 = vld [vmem:[%s11216_s2 + $0x16c] ss:$16 sps:$4 sm:$0xff]  }
0x1119   :  { %v4382_v42 = vmul.f32 %v4376_v54, %v10113_v59  ;;  %v4381_v23 = vadd.f32 0.5, %v4380_v21  ;;  %v10177_v59 = vld [vmem:[%s11216_s2 + $0x1e8] ss:$16 sps:$4 sm:$0xff]   ;;  %v10291_v54 = vld [vmem:[%s11216_s2 + $0x18c] ss:$16 sps:$4 sm:$0xff]  }
0x111a   :  { %v10321_v21 = vld [vmem:[%s11216_s2 + $0x160] ss:$16 sps:$4 sm:$0xff]  }
0x111b   :  { %v10165_v26 = vadd.f32 %v4383_v25, %v4382_v42  ;;  %v10297_v25 = vld [vmem:[%s11216_s2 + $0x180] ss:$16 sps:$4 sm:$0xff]   ;;  %v10303_v42 = vld [vmem:[%s11216_s2 + $0x188] ss:$16 sps:$4 sm:$0xff]  }
0x111d   :  { %7046 = vtanh.f32 %v10165_v26 }
0x112a   :  { %v7047_v56 = vpop.eup %7046 }
0x112b   :  { %v4386_v19 = vmul.f32 %v7047_v56, %v4381_v23  ;;  %v10327_v23 = vld [vmem:[%s11216_s2 + $0x168] ss:$16 sps:$4 sm:$0xff]   ;;  %v10333_v56 = vld [vmem:[%s11216_s2 + $0x144] ss:$16 sps:$4 sm:$0xff]  }
0x112d   :  { %v4399_v10 = vpack.c.bf16 %v4386_v19, %v4386_v19  ;;  %v10339_v19 = vld [vmem:[%s11216_s2 + $0x14c] ss:$16 sps:$4 sm:$0xff]  }
0x112f   :  { %4433 = vmatmul.mubr.bf16.vlgmr.msra.gmra.mxu0 %v4399_v10  ;;  %4474 = vmatmul.mubr.bf16.vlgmr.msra.gmra.mxu1 %v4399_v10  ;;  %v10345_v10 = vld [vmem:[%s11216_s2 + $0x140] ss:$16 sps:$4 sm:$0xff]  }
0x1130   :  { %4518 = vmatpush1.bf16.msra.mxu0 %v10171_v17  ;;  %4559 = vmatpush1.bf16.msra.mxu1 %v10177_v59 }
0x1131   :  { %4519 = vmatprep.subr.bf16.mxu0 %v11656_v41  ;;  %4560 = vmatprep.subr.bf16.mxu1 %v11657_v49  ;;  %v10213_v41 = vld [vmem:[%s11216_s2 + $0x1e4] ss:$16 sps:$4 sm:$0xff]   ;;  %v10219_v49 = vld [vmem:[%s11216_s2 + $0x1ec] ss:$16 sps:$4 sm:$0xff]  }
0x1132   :  { %4549 = vmatprep.mubr.bf16.mxu0 %v11658_v45  ;;  %4590 = vmatprep.mubr.bf16.mxu1 %v11658_v45 }
0x1134   :  { %4520 = vmatpush1.bf16.msra.mxu0 %v11659_v62  ;;  %4561 = vmatpush1.bf16.msra.mxu1 %v11660_v2 }
0x1135   :  { %4521 = vmatprep.subr.bf16.mxu0 %v11661_v36  ;;  %4562 = vmatprep.subr.bf16.mxu1 %v11662_v16 }
0x1138   :  { %4522 = vmatpush1.bf16.msra.mxu0 %v11663_v3  ;;  %4563 = vmatpush1.bf16.msra.mxu1 %v11664_v8 }
0x1139   :  { %4523 = vmatprep.subr.bf16.mxu0 %v11665_v4  ;;  %4564 = vmatprep.subr.bf16.mxu1 %v11666_v6 }
0x113c   :  { %4524 = vmatpush1.bf16.msra.mxu0 %v11667_v37  ;;  %4565 = vmatpush1.bf16.msra.mxu1 %v11668_v55 }
0x113d   :  { %4525 = vmatprep.subr.bf16.mxu0 %v11669_v48  ;;  %4566 = vmatprep.subr.bf16.mxu1 %v11670_v57 }
0x1140   :  { %4526 = vmatpush1.bf16.msra.mxu0 %v11671_v43  ;;  %4567 = vmatpush1.bf16.msra.mxu1 %v11672_v20 }
0x1141   :  { %4527 = vmatprep.subr.bf16.mxu0 %v11673_v40  ;;  %4568 = vmatprep.subr.bf16.mxu1 %v11674_v46 }
0x1144   :  { %4528 = vmatpush1.bf16.msra.mxu0 %v11675_v11  ;;  %4569 = vmatpush1.bf16.msra.mxu1 %v11676_v34 }
0x1145   :  { %4529 = vmatprep.subr.bf16.mxu0 %v11677_v50  ;;  %4570 = vmatprep.subr.bf16.mxu1 %v11678_v12 }
0x1148   :  { %4530 = vmatpush1.bf16.msra.mxu0 %v11679_v29  ;;  %4571 = vmatpush1.bf16.msra.mxu1 %v11680_v33 }
0x1149   :  { %4531 = vmatprep.subr.bf16.mxu0 %v11681_v51  ;;  %4572 = vmatprep.subr.bf16.mxu1 %v11682_v58 }
0x114c   :  { %4532 = vmatpush1.bf16.msra.mxu0 %v11683_v0  ;;  %4573 = vmatpush1.bf16.msra.mxu1 %v11684_v27 }
0x114d   :  { %4634 = vmatprep.subr.bf16.mxu0 %v10213_v41  ;;  %4675 = vmatprep.subr.bf16.mxu1 %v10219_v49 }
0x11ef   :  { %v4434_v51 = vpop.f32.mrf.mxu0  ;;  %v4475_v58 = vpop.f32.mrf.mxu1 }
0x11f0   :  { %v4482_v0 = vadd.f32 %v4434_v51, %v10079_v5  ;;  %v4484_v3 = vadd.f32 %v4475_v58, %v10081_v7  ;;  %v10351_v51 = vld [vmem:[%s11216_s2 + $0x148] ss:$16 sps:$4 sm:$0xff]   ;;  %v10357_v58 = vld [vmem:[%s11216_s2 + $0x124] ss:$16 sps:$4 sm:$0xff]  }
0x11f1   :  { %v4436_v33 = vpop.f32.mrf.mxu0  ;;  %v4477_v27 = vpop.f32.mrf.mxu1 }
0x11f2   :  { %v4486_v62 = vmul.f32 0.5, %v4482_v0  ;;  %v4483_v2 = vadd.f32 %v4436_v33, %v10089_v1  ;;  %v4485_v37 = vadd.f32 %v4477_v27, %v10091_v52  ;;  %v10363_v0 = vld [vmem:[%s11216_s2 + $0x12c] ss:$16 sps:$4 sm:$0xff]   ;;  %v10369_v33 = vld [vmem:[%s11216_s2 + $0x120] ss:$16 sps:$4 sm:$0xff]  }
0x11f3   :  { %v4438_v36 = vpop.f32.mrf.mxu0  ;;  %v4479_v16 = vpop.f32.mrf.mxu1  ;;  %v10375_v27 = vld [vmem:[%s11216_s2 + $0x128] ss:$16 sps:$4 sm:$0xff]  }
0x11f4   :  { %7048 = vtanh.f32 %v4486_v62  ;;  %v4490_v8 = vmul.f32 0.5, %v4483_v2  ;;  %v4495_v55 = vmul.f32 0.5, %v4485_v37  ;;  %v10381_v62 = vld [vmem:[%s11216_s2 + $0x104] ss:$16 sps:$4 sm:$0xff]   ;;  %v10387_v2 = vld [vmem:[%s11216_s2 + $0x10c] ss:$16 sps:$4 sm:$0xff]  }
0x11f5   :  { %v4439_v4 = vpop.f32.mrf.mxu0  ;;  %v4480_v6 = vpop.f32.mrf.mxu1  ;;  %v10393_v36 = vld [vmem:[%s11216_s2 + $0x100] ss:$16 sps:$4 sm:$0xff]   ;;  %v10399_v16 = vld [vmem:[%s11216_s2 + $0x108] ss:$16 sps:$4 sm:$0xff]  }
0x11f6   :  { %7050 = vtanh.f32 %v4490_v8  ;;  %v11689_v8 = vld [vmem:[#allocation28_spill] sm:$0xff] }
0x11f7   :  { %7052 = vtanh.f32 %v4484_v3  ;;  %v3860_v3 = vadd.f32 %v10059_v22, %v9842_v63  ;;  %v3018_v4 = vadd.f32 %v11689_v8, %v9837_v15 }
0x11f8   :  { %7054 = vtanh.f32 %v4495_v55 }
0x1201   :  { %v7049_v48 = vpop.eup %7048 }
0x1202   :  { %v4488_v5 = vmul.f32 0.5, %v7049_v48  ;;  %v4513_v48 = vadd.f32 %v3860_v3, %v3018_v4 }
0x1203   :  { %v7051_v57 = vpop.eup %7050 }
0x1204   :  { %v4489_v43 = vadd.f32 0.5, %v4488_v5  ;;  %v4492_v20 = vmul.f32 0.5, %v7051_v57  ;;  %v7053_v1 = vpop.eup %7052 }
0x1205   :  { %v7055_v34 = vpop.eup %7054 }
0x1206   :  { %v4493_v40 = vadd.f32 0.5, %v4492_v20  ;;  %v4500_v46 = vmul.f32 %v7053_v1, %v4489_v43  ;;  %v4497_v50 = vmul.f32 0.5, %v7055_v34 }
0x1208   :  { %v4499_v11 = vmul.f32 %v4493_v40, %v10165_v26  ;;  %v4498_v12 = vadd.f32 0.5, %v4497_v50  ;;  %v10309_v26 = vld [vmem:[%s11216_s2 + $0x164] ss:$16 sps:$4 sm:$0xff]   ;;  %v3913_v50 = vadd.f32 %v10061_v39, %v9844_v28 }
0x120a   :  { %v10227_v7 = vadd.f32 %v4500_v46, %v4499_v11 }
0x120c   :  { %7056 = vtanh.f32 %v10227_v7 }
0x1219   :  { %v7057_v52 = vpop.eup %7056 }
0x121a   :  { %v4503_v29 = vmul.f32 %v7057_v52, %v4498_v12  ;;  %v11690_v12 = vld [vmem:[#allocation33_spill] sm:$0xff] }
0x121c   :  { %v4516_v24 = vpack.c.bf16 %v4503_v29, %v4503_v29 }
0x121e   :  { %4550 = vmatmul.mubr.bf16.vlgmr.msra.gmra.mxu0 %v4516_v24  ;;  %4591 = vmatmul.mubr.bf16.vlgmr.msra.gmra.mxu1 %v4516_v24 }
0x121f   :  { %4635 = vmatpush1.bf16.msra.mxu0 %v10171_v17  ;;  %4676 = vmatpush1.bf16.msra.mxu1 %v10177_v59 }
0x1220   :  { %4636 = vmatprep.subr.bf16.mxu0 %v10235_v53  ;;  %4677 = vmatprep.subr.bf16.mxu1 %v10241_v44 }
0x1221   :  { %4666 = vmatprep.mubr.bf16.mxu0 %v11658_v45  ;;  %4707 = vmatprep.mubr.bf16.mxu1 %v11658_v45 }
0x1223   :  { %4637 = vmatpush1.bf16.msra.mxu0 %v10249_v38  ;;  %4678 = vmatpush1.bf16.msra.mxu1 %v10255_v14 }
0x1224   :  { %4638 = vmatprep.subr.bf16.mxu0 %v10261_v61  ;;  %4679 = vmatprep.subr.bf16.mxu1 %v10267_v35 }
0x1227   :  { %4639 = vmatpush1.bf16.msra.mxu0 %v10273_v60  ;;  %4680 = vmatpush1.bf16.msra.mxu1 %v10279_v13 }
0x1228   :  { %4640 = vmatprep.subr.bf16.mxu0 %v10285_v18  ;;  %4681 = vmatprep.subr.bf16.mxu1 %v10291_v54 }
0x122b   :  { %4641 = vmatpush1.bf16.msra.mxu0 %v10297_v25  ;;  %4682 = vmatpush1.bf16.msra.mxu1 %v10303_v42 }
0x122c   :  { %4642 = vmatprep.subr.bf16.mxu0 %v10309_v26  ;;  %4683 = vmatprep.subr.bf16.mxu1 %v10315_v31 }
0x122f   :  { %4643 = vmatpush1.bf16.msra.mxu0 %v10321_v21  ;;  %4684 = vmatpush1.bf16.msra.mxu1 %v10327_v23 }
0x1230   :  { %4644 = vmatprep.subr.bf16.mxu0 %v10333_v56  ;;  %4685 = vmatprep.subr.bf16.mxu1 %v10339_v19 }
0x1233   :  { %4645 = vmatpush1.bf16.msra.mxu0 %v10345_v10  ;;  %4686 = vmatpush1.bf16.msra.mxu1 %v10351_v51 }
0x1234   :  { %4646 = vmatprep.subr.bf16.mxu0 %v10357_v58  ;;  %4687 = vmatprep.subr.bf16.mxu1 %v10363_v0 }
0x1237   :  { %4647 = vmatpush1.bf16.msra.mxu0 %v10369_v33  ;;  %4688 = vmatpush1.bf16.msra.mxu1 %v10375_v27 }
0x1238   :  { %4648 = vmatprep.subr.bf16.mxu0 %v10381_v62  ;;  %4689 = vmatprep.subr.bf16.mxu1 %v10387_v2 }
0x123b   :  { %4649 = vmatpush1.bf16.msra.mxu0 %v10393_v36  ;;  %4690 = vmatpush1.bf16.msra.mxu1 %v10399_v16 }
0x123c   :  { %4751 = vmatprep.subr.bf16.mxu0 %v10213_v41  ;;  %4792 = vmatprep.subr.bf16.mxu1 %v10219_v49 }
0x12de   :  { %v4551_v6 = vpop.f32.mrf.mxu0  ;;  %v4592_v37 = vpop.f32.mrf.mxu1 }
0x12df   :  { %v4599_v55 = vadd.f32 %v4551_v6, %v10063_v9  ;;  %v4601_v46 = vadd.f32 %v4592_v37, %v10065_v47  ;;  %v3071_v9 = vadd.f32 %v11690_v12, %v9840_v32 }
0x12e0   :  { %v4553_v5 = vpop.f32.mrf.mxu0  ;;  %v4594_v57 = vpop.f32.mrf.mxu1 }
0x12e1   :  { %v4603_v43 = vmul.f32 0.5, %v4599_v55  ;;  %v4600_v20 = vadd.f32 %v4553_v5, %v4513_v48  ;;  %v4515_v52 = vadd.f32 %v3913_v50, %v3071_v9  ;;  %v11691_v9 = vld [vmem:[#allocation93_spill] sm:$0xff] }
0x12e2   :  { %v4555_v1 = vpop.f32.mrf.mxu0  ;;  %v4596_v40 = vpop.f32.mrf.mxu1 }
0x12e3   :  { %7058 = vtanh.f32 %v4603_v43  ;;  %v4607_v11 = vmul.f32 0.5, %v4600_v20  ;;  %v4602_v29 = vadd.f32 %v4594_v57, %v4515_v52 }
0x12e4   :  { %v4556_v34 = vpop.f32.mrf.mxu0  ;;  %v4597_v22 = vpop.f32.mrf.mxu1 }
0x12e5   :  { %7060 = vtanh.f32 %v4607_v11  ;;  %v4612_v24 = vmul.f32 0.5, %v4602_v29 }
0x12e6   :  { %7062 = vtanh.f32 %v4601_v46 }
0x12e7   :  { %7064 = vtanh.f32 %v4612_v24 }
0x12f0   :  { %v7059_v3 = vpop.eup %7058 }
0x12f1   :  { %v4605_v8 = vmul.f32 0.5, %v7059_v3  ;;  %v11692_v3 = vld [vmem:[#allocation92_spill] sm:$0xff] }
0x12f2   :  { %v7061_v4 = vpop.eup %7060 }
0x12f3   :  { %v4606_v6 = vadd.f32 0.5, %v4605_v8  ;;  %v4609_v55 = vmul.f32 0.5, %v7061_v4  ;;  %v7063_v47 = vpop.eup %7062 }
0x12f4   :  { %v7065_v43 = vpop.eup %7064 }
0x12f5   :  { %v4610_v37 = vadd.f32 0.5, %v4609_v55  ;;  %v4617_v48 = vmul.f32 %v7063_v47, %v4606_v6  ;;  %v4614_v20 = vmul.f32 0.5, %v7065_v43  ;;  %v11693_v47 = vld [vmem:[#allocation94_spill] sm:$0xff] }
0x12f7   :  { %v4616_v5 = vmul.f32 %v4610_v37, %v10227_v7  ;;  %v4615_v1 = vadd.f32 0.5, %v4614_v20 }
0x12f9   :  { %v10415_v39 = vadd.f32 %v4617_v48, %v4616_v5 }
0x12fb   :  { %7066 = vtanh.f32 %v10415_v39 }
0x1308   :  { %v7067_v57 = vpop.eup %7066 }
0x1309   :  { %v4620_v40 = vmul.f32 %v7067_v57, %v4615_v1 }
0x130b   :  { %v4633_v46 = vpack.c.bf16 %v4620_v40, %v4620_v40 }
0x130d   :  { %4667 = vmatmul.mubr.bf16.vlgmr.msra.gmra.mxu0 %v4633_v46  ;;  %4708 = vmatmul.mubr.bf16.vlgmr.msra.gmra.mxu1 %v4633_v46 }
0x130e   :  { %4752 = vmatpush1.bf16.msra.mxu0 %v10171_v17  ;;  %4793 = vmatpush1.bf16.msra.mxu1 %v10177_v59 }
0x130f   :  { %4753 = vmatprep.subr.bf16.mxu0 %v10235_v53  ;;  %4794 = vmatprep.subr.bf16.mxu1 %v10241_v44 }
0x1310   :  { %4783 = vmatprep.mubr.bf16.mxu0 %v11658_v45  ;;  %4824 = vmatprep.mubr.bf16.mxu1 %v11658_v45 }
0x1312   :  { %4754 = vmatpush1.bf16.msra.mxu0 %v10249_v38  ;;  %4795 = vmatpush1.bf16.msra.mxu1 %v10255_v14 }
0x1313   :  { %4755 = vmatprep.subr.bf16.mxu0 %v10261_v61  ;;  %4796 = vmatprep.subr.bf16.mxu1 %v10267_v35 }
0x1316   :  { %4756 = vmatpush1.bf16.msra.mxu0 %v10273_v60  ;;  %4797 = vmatpush1.bf16.msra.mxu1 %v10279_v13 }
0x1317   :  { %4757 = vmatprep.subr.bf16.mxu0 %v10285_v18  ;;  %4798 = vmatprep.subr.bf16.mxu1 %v10291_v54 }
0x131a   :  { %4758 = vmatpush1.bf16.msra.mxu0 %v10297_v25  ;;  %4799 = vmatpush1.bf16.msra.mxu1 %v10303_v42 }
0x131b   :  { %4759 = vmatprep.subr.bf16.mxu0 %v10309_v26  ;;  %4800 = vmatprep.subr.bf16.mxu1 %v10315_v31 }
0x131e   :  { %4760 = vmatpush1.bf16.msra.mxu0 %v10321_v21  ;;  %4801 = vmatpush1.bf16.msra.mxu1 %v10327_v23 }
0x131f   :  { %4761 = vmatprep.subr.bf16.mxu0 %v10333_v56  ;;  %4802 = vmatprep.subr.bf16.mxu1 %v10339_v19 }
0x1322   :  { %4762 = vmatpush1.bf16.msra.mxu0 %v10345_v10  ;;  %4803 = vmatpush1.bf16.msra.mxu1 %v10351_v51 }
0x1323   :  { %4763 = vmatprep.subr.bf16.mxu0 %v10357_v58  ;;  %4804 = vmatprep.subr.bf16.mxu1 %v10363_v0 }
0x1326   :  { %4764 = vmatpush1.bf16.msra.mxu0 %v10369_v33  ;;  %4805 = vmatpush1.bf16.msra.mxu1 %v10375_v27 }
0x1327   :  { %4765 = vmatprep.subr.bf16.mxu0 %v10381_v62  ;;  %4806 = vmatprep.subr.bf16.mxu1 %v10387_v2 }
0x132a   :  { %4766 = vmatpush1.bf16.msra.mxu0 %v10393_v36  ;;  %4807 = vmatpush1.bf16.msra.mxu1 %v10399_v16 }
0x132b   :  { %4868 = vmatprep.subr.bf16.mxu0 %v10213_v41  ;;  %4909 = vmatprep.subr.bf16.mxu1 %v10219_v49 }
0x13cd   :  { %v4668_v7 = vpop.f32.mrf.mxu0  ;;  %v4709_v11 = vpop.f32.mrf.mxu1 }
0x13ce   :  { %v4716_v34 = vadd.f32 %v4668_v7, %v9977_v30  ;;  %v4718_v8 = vadd.f32 %v4709_v11, %v11692_v3 }
0x13cf   :  { %v4670_v22 = vpop.f32.mrf.mxu0  ;;  %v4711_v50 = vpop.f32.mrf.mxu1 }
0x13d0   :  { %v4720_v12 = vmul.f32 0.5, %v4716_v34  ;;  %v4717_v52 = vadd.f32 %v4670_v22, %v11691_v9  ;;  %v4719_v37 = vadd.f32 %v4711_v50, %v11693_v47 }
0x13d1   :  { %v4672_v29 = vpop.f32.mrf.mxu0  ;;  %v4713_v24 = vpop.f32.mrf.mxu1 }
0x13d2   :  { %7068 = vtanh.f32 %v4720_v12  ;;  %v4724_v4 = vmul.f32 0.5, %v4717_v52  ;;  %v4729_v48 = vmul.f32 0.5, %v4719_v37  ;;  %v11695_v24 = vld [vmem:[#allocation66_spill] sm:$0xff] }
0x13d3   :  { %v4673_v6 = vpop.f32.mrf.mxu0  ;;  %v4714_v55 = vpop.f32.mrf.mxu1  ;;  %v3258_v3 = vadd.f32 %v11695_v24, %v9837_v15 }
0x13d4   :  { %7070 = vtanh.f32 %v4724_v4  ;;  %v11696_v6 = vld [vmem:[#allocation90_spill] sm:$0xff] }
0x13d5   :  { %7072 = vtanh.f32 %v4718_v8 }
0x13d6   :  { %7074 = vtanh.f32 %v4729_v48 }
0x13df   :  { %v7069_v5 = vpop.eup %7068 }
0x13e0   :  { %v4722_v30 = vmul.f32 0.5, %v7069_v5 }
0x13e1   :  { %v7071_v43 = vpop.eup %7070 }
0x13e2   :  { %v4723_v20 = vadd.f32 0.5, %v4722_v30  ;;  %v4726_v1 = vmul.f32 0.5, %v7071_v43  ;;  %v7073_v57 = vpop.eup %7072 }
0x13e3   :  { %v7075_v34 = vpop.eup %7074 }
0x13e4   :  { %v4727_v40 = vadd.f32 0.5, %v4726_v1  ;;  %v4734_v46 = vmul.f32 %v7073_v57, %v4723_v20  ;;  %v4731_v22 = vmul.f32 0.5, %v7075_v34  ;;  %v11697_v1 = vld [vmem:[#allocation91_spill] sm:$0xff]  ;;  %v11698_v34 = vld [vmem:[#allocation89_spill] sm:$0xff] }
0x13e6   :  { %v4733_v7 = vmul.f32 %v4727_v40, %v10415_v39  ;;  %v4732_v12 = vadd.f32 0.5, %v4731_v22  ;;  %v11694_v39 = vld [vmem:[#allocation88_spill] sm:$0xff]  ;;  %v3673_v22 = vadd.f32 %v11698_v34, %v9844_v28 }
0x13e7   :  { %v3620_v29 = vadd.f32 %v11694_v39, %v9842_v63 }
0x13e8   :  { %v10457_v11 = vadd.f32 %v4734_v46, %v4733_v7 }
0x13e9   :  { %v4747_v47 = vadd.f32 %v3620_v29, %v3258_v3 }
0x13ea   :  { %7076 = vtanh.f32 %v10457_v11 }
0x13f7   :  { %v7077_v50 = vpop.eup %7076 }
0x13f8   :  { %v4737_v9 = vmul.f32 %v7077_v50, %v4732_v12  ;;  %v11699_v12 = vld [vmem:[#allocation67_spill] sm:$0xff] }
0x13f9   :  { %v3311_v50 = vadd.f32 %v11699_v12, %v9840_v32 }
0x13fa   :  { %v4750_v52 = vpack.c.bf16 %v4737_v9, %v4737_v9 }
0x13fb   :  { %v4749_v9 = vadd.f32 %v3673_v22, %v3311_v50  ;;  %v11701_v50 = vld [vmem:[#allocation86_spill] sm:$0xff] }
0x13fc   :  { %4784 = vmatmul.mubr.bf16.vlgmr.msra.gmra.mxu0 %v4750_v52  ;;  %4825 = vmatmul.mubr.bf16.vlgmr.msra.gmra.mxu1 %v4750_v52 }
0x13fd   :  { %4869 = vmatpush1.bf16.msra.mxu0 %v10171_v17  ;;  %4910 = vmatpush1.bf16.msra.mxu1 %v10177_v59 }
0x13fe   :  { %4870 = vmatprep.subr.bf16.mxu0 %v10235_v53  ;;  %4911 = vmatprep.subr.bf16.mxu1 %v10241_v44 }
0x13ff   :  { %4900 = vmatprep.mubr.bf16.mxu0 %v11658_v45  ;;  %4941 = vmatprep.mubr.bf16.mxu1 %v11658_v45 }
0x1401   :  { %4871 = vmatpush1.bf16.msra.mxu0 %v10249_v38  ;;  %4912 = vmatpush1.bf16.msra.mxu1 %v10255_v14 }
0x1402   :  { %4872 = vmatprep.subr.bf16.mxu0 %v10261_v61  ;;  %4913 = vmatprep.subr.bf16.mxu1 %v10267_v35 }
0x1405   :  { %4873 = vmatpush1.bf16.msra.mxu0 %v10273_v60  ;;  %4914 = vmatpush1.bf16.msra.mxu1 %v10279_v13 }
0x1406   :  { %4874 = vmatprep.subr.bf16.mxu0 %v10285_v18  ;;  %4915 = vmatprep.subr.bf16.mxu1 %v10291_v54 }
0x1409   :  { %4875 = vmatpush1.bf16.msra.mxu0 %v10297_v25  ;;  %4916 = vmatpush1.bf16.msra.mxu1 %v10303_v42 }
0x140a   :  { %4876 = vmatprep.subr.bf16.mxu0 %v10309_v26  ;;  %4917 = vmatprep.subr.bf16.mxu1 %v10315_v31 }
0x140d   :  { %4877 = vmatpush1.bf16.msra.mxu0 %v10321_v21  ;;  %4918 = vmatpush1.bf16.msra.mxu1 %v10327_v23 }
0x140e   :  { %4878 = vmatprep.subr.bf16.mxu0 %v10333_v56  ;;  %4919 = vmatprep.subr.bf16.mxu1 %v10339_v19 }
0x1411   :  { %4879 = vmatpush1.bf16.msra.mxu0 %v10345_v10  ;;  %4920 = vmatpush1.bf16.msra.mxu1 %v10351_v51 }
0x1412   :  { %4880 = vmatprep.subr.bf16.mxu0 %v10357_v58  ;;  %4921 = vmatprep.subr.bf16.mxu1 %v10363_v0 }
0x1415   :  { %4881 = vmatpush1.bf16.msra.mxu0 %v10369_v33  ;;  %4922 = vmatpush1.bf16.msra.mxu1 %v10375_v27 }
0x1416   :  { %4882 = vmatprep.subr.bf16.mxu0 %v10381_v62  ;;  %4923 = vmatprep.subr.bf16.mxu1 %v10387_v2 }
0x1419   :  { %4883 = vmatpush1.bf16.msra.mxu0 %v10393_v36  ;;  %4924 = vmatpush1.bf16.msra.mxu1 %v10399_v16 }
0x141a   :  { %4985 = vmatprep.subr.bf16.mxu0 %v10213_v41  ;;  %5026 = vmatprep.subr.bf16.mxu1 %v10219_v49 }
0x14bc   :  { %v4785_v8 = vpop.f32.mrf.mxu0  ;;  %v4826_v4 = vpop.f32.mrf.mxu1 }
0x14bd   :  { %v4833_v55 = vadd.f32 %v4785_v8, %v11696_v6  ;;  %v4835_v57 = vadd.f32 %v4826_v4, %v11697_v1 }
0x14be   :  { %v4787_v37 = vpop.f32.mrf.mxu0  ;;  %v4828_v48 = vpop.f32.mrf.mxu1 }
0x14bf   :  { %v4837_v5 = vmul.f32 0.5, %v4833_v55  ;;  %v4834_v30 = vadd.f32 %v4787_v37, %v4747_v47  ;;  %v4836_v52 = vadd.f32 %v4828_v48, %v4749_v9 }
0x14c0   :  { %v4789_v43 = vpop.f32.mrf.mxu0  ;;  %v4830_v20 = vpop.f32.mrf.mxu1 }
0x14c1   :  { %7078 = vtanh.f32 %v4837_v5  ;;  %v4841_v40 = vmul.f32 0.5, %v4834_v30  ;;  %v4846_v39 = vmul.f32 0.5, %v4836_v52 }
0x14c2   :  { %v4790_v46 = vpop.f32.mrf.mxu0  ;;  %v4831_v7 = vpop.f32.mrf.mxu1 }
0x14c3   :  { %7080 = vtanh.f32 %v4841_v40  ;;  %v11700_v46 = vld [vmem:[#allocation84_spill] sm:$0xff] }
0x14c4   :  { %7082 = vtanh.f32 %v4835_v57 }
0x14c5   :  { %7084 = vtanh.f32 %v4846_v39 }
0x14ce   :  { %v7079_v29 = vpop.eup %7078 }
0x14cf   :  { %v4839_v24 = vmul.f32 0.5, %v7079_v29  ;;  %v11702_v29 = vld [vmem:[#allocation85_spill] sm:$0xff] }
0x14d0   :  { %v7081_v3 = vpop.eup %7080 }
0x14d1   :  { %v4840_v8 = vadd.f32 0.5, %v4839_v24  ;;  %v4843_v6 = vmul.f32 0.5, %v7081_v3  ;;  %v7083_v4 = vpop.eup %7082 }
0x14d2   :  { %v7085_v30 = vpop.eup %7084 }
0x14d3   :  { %v4844_v55 = vadd.f32 0.5, %v4843_v6  ;;  %v4851_v47 = vmul.f32 %v7083_v4, %v4840_v8  ;;  %v4848_v43 = vmul.f32 0.5, %v7085_v30  ;;  %v11703_v4 = vld [vmem:[#allocation87_spill] sm:$0xff] }
0x14d5   :  { %v4850_v37 = vmul.f32 %v4844_v55, %v10457_v11  ;;  %v4849_v20 = vadd.f32 0.5, %v4848_v43 }
0x14d7   :  { %v10505_v5 = vadd.f32 %v4851_v47, %v4850_v37 }
0x14d9   :  { %7086 = vtanh.f32 %v10505_v5 }
0x14e6   :  { %v7087_v48 = vpop.eup %7086 }
0x14e7   :  { %v4854_v1 = vmul.f32 %v7087_v48, %v4849_v20 }
0x14e9   :  { %v4867_v57 = vpack.c.bf16 %v4854_v1, %v4854_v1 }
0x14eb   :  { %4901 = vmatmul.mubr.bf16.vlgmr.msra.gmra.mxu0 %v4867_v57  ;;  %4942 = vmatmul.mubr.bf16.vlgmr.msra.gmra.mxu1 %v4867_v57 }
0x14ec   :  { %4986 = vmatpush1.bf16.msra.mxu0 %v10171_v17  ;;  %5027 = vmatpush1.bf16.msra.mxu1 %v10177_v59 }
0x14ed   :  { %4987 = vmatprep.subr.bf16.mxu0 %v10235_v53  ;;  %5028 = vmatprep.subr.bf16.mxu1 %v10241_v44 }
0x14ee   :  { %5017 = vmatprep.mubr.bf16.mxu0 %v11658_v45  ;;  %5058 = vmatprep.mubr.bf16.mxu1 %v11658_v45 }
0x14f0   :  { %4988 = vmatpush1.bf16.msra.mxu0 %v10249_v38  ;;  %5029 = vmatpush1.bf16.msra.mxu1 %v10255_v14 }
0x14f1   :  { %4989 = vmatprep.subr.bf16.mxu0 %v10261_v61  ;;  %5030 = vmatprep.subr.bf16.mxu1 %v10267_v35 }
0x14f4   :  { %4990 = vmatpush1.bf16.msra.mxu0 %v10273_v60  ;;  %5031 = vmatpush1.bf16.msra.mxu1 %v10279_v13 }
0x14f5   :  { %4991 = vmatprep.subr.bf16.mxu0 %v10285_v18  ;;  %5032 = vmatprep.subr.bf16.mxu1 %v10291_v54 }
0x14f8   :  { %4992 = vmatpush1.bf16.msra.mxu0 %v10297_v25  ;;  %5033 = vmatpush1.bf16.msra.mxu1 %v10303_v42 }
0x14f9   :  { %4993 = vmatprep.subr.bf16.mxu0 %v10309_v26  ;;  %5034 = vmatprep.subr.bf16.mxu1 %v10315_v31 }
0x14fc   :  { %4994 = vmatpush1.bf16.msra.mxu0 %v10321_v21  ;;  %5035 = vmatpush1.bf16.msra.mxu1 %v10327_v23 }
0x14fd   :  { %4995 = vmatprep.subr.bf16.mxu0 %v10333_v56  ;;  %5036 = vmatprep.subr.bf16.mxu1 %v10339_v19 }
0x1500   :  { %4996 = vmatpush1.bf16.msra.mxu0 %v10345_v10  ;;  %5037 = vmatpush1.bf16.msra.mxu1 %v10351_v51 }
0x1501   :  { %4997 = vmatprep.subr.bf16.mxu0 %v10357_v58  ;;  %5038 = vmatprep.subr.bf16.mxu1 %v10363_v0 }
0x1504   :  { %4998 = vmatpush1.bf16.msra.mxu0 %v10369_v33  ;;  %5039 = vmatpush1.bf16.msra.mxu1 %v10375_v27 }
0x1505   :  { %4999 = vmatprep.subr.bf16.mxu0 %v10381_v62  ;;  %5040 = vmatprep.subr.bf16.mxu1 %v10387_v2 }
0x1508   :  { %5000 = vmatpush1.bf16.msra.mxu0 %v10393_v36  ;;  %5041 = vmatpush1.bf16.msra.mxu1 %v10399_v16 }
0x1509   :  { %5102 = vmatprep.subr.bf16.mxu0 %v10213_v41  ;;  %5143 = vmatprep.subr.bf16.mxu1 %v10219_v49 }
0x15ab   :  { %v4902_v11 = vpop.f32.mrf.mxu0  ;;  %v4943_v40 = vpop.f32.mrf.mxu1 }
0x15ac   :  { %v4950_v7 = vadd.f32 %v4902_v11, %v11700_v46  ;;  %v4952_v24 = vadd.f32 %v4943_v40, %v11702_v29 }
0x15ad   :  { %v4904_v34 = vpop.f32.mrf.mxu0  ;;  %v4945_v22 = vpop.f32.mrf.mxu1 }
0x15ae   :  { %v4954_v12 = vmul.f32 0.5, %v4950_v7  ;;  %v4951_v9 = vadd.f32 %v4904_v34, %v11701_v50  ;;  %v4953_v55 = vadd.f32 %v4945_v22, %v11703_v4 }
0x15af   :  { %v4906_v52 = vpop.f32.mrf.mxu0  ;;  %v4947_v39 = vpop.f32.mrf.mxu1 }
0x15b0   :  { %7088 = vtanh.f32 %v4954_v12  ;;  %v4958_v3 = vmul.f32 0.5, %v4951_v9  ;;  %v4963_v47 = vmul.f32 0.5, %v4953_v55  ;;  %v11705_v39 = vld [vmem:[#allocation68_spill] sm:$0xff] }
0x15b1   :  { %v4907_v8 = vpop.f32.mrf.mxu0  ;;  %v4948_v6 = vpop.f32.mrf.mxu1  ;;  %v3268_v29 = vadd.f32 %v11705_v39, %v9837_v15 }
0x15b2   :  { %7090 = vtanh.f32 %v4958_v3  ;;  %v11706_v8 = vld [vmem:[#allocation81_spill] sm:$0xff] }
0x15b3   :  { %7092 = vtanh.f32 %v4952_v24 }
0x15b4   :  { %7094 = vtanh.f32 %v4963_v47 }
0x15bd   :  { %v7089_v37 = vpop.eup %7088 }
0x15be   :  { %v4956_v30 = vmul.f32 0.5, %v7089_v37 }
0x15bf   :  { %v7091_v43 = vpop.eup %7090 }
0x15c0   :  { %v4957_v20 = vadd.f32 0.5, %v4956_v30  ;;  %v4960_v48 = vmul.f32 0.5, %v7091_v43  ;;  %v7093_v1 = vpop.eup %7092 }
0x15c1   :  { %v7095_v7 = vpop.eup %7094 }
0x15c2   :  { %v4961_v57 = vadd.f32 0.5, %v4960_v48  ;;  %v4968_v11 = vmul.f32 %v7093_v1, %v4957_v20  ;;  %v4965_v34 = vmul.f32 0.5, %v7095_v7  ;;  %v11707_v48 = vld [vmem:[#allocation82_spill] sm:$0xff]  ;;  %v11708_v7 = vld [vmem:[#allocation83_spill] sm:$0xff] }
0x15c4   :  { %v4967_v46 = vmul.f32 %v4961_v57, %v10505_v5  ;;  %v4966_v12 = vadd.f32 0.5, %v4965_v34  ;;  %v11704_v5 = vld [vmem:[#allocation80_spill] sm:$0xff] }
0x15c5   :  { %v3610_v52 = vadd.f32 %v11704_v5, %v9842_v63 }
0x15c6   :  { %v10547_v40 = vadd.f32 %v4968_v11, %v4967_v46 }
0x15c7   :  { %v4981_v4 = vadd.f32 %v3610_v52, %v3268_v29 }
0x15c8   :  { %7096 = vtanh.f32 %v10547_v40 }
0x15d5   :  { %v7097_v22 = vpop.eup %7096 }
0x15d6   :  { %v4971_v50 = vmul.f32 %v7097_v22, %v4966_v12 }
0x15d8   :  { %v4984_v9 = vpack.c.bf16 %v4971_v50, %v4971_v50 }
0x15da   :  { %5018 = vmatmul.mubr.bf16.vlgmr.msra.gmra.mxu0 %v4984_v9  ;;  %5059 = vmatmul.mubr.bf16.vlgmr.msra.gmra.mxu1 %v4984_v9 }
0x15db   :  { %5103 = vmatpush1.bf16.msra.mxu0 %v10171_v17  ;;  %5144 = vmatpush1.bf16.msra.mxu1 %v10177_v59 }
0x15dc   :  { %5104 = vmatprep.subr.bf16.mxu0 %v10235_v53  ;;  %5145 = vmatprep.subr.bf16.mxu1 %v10241_v44 }
0x15dd   :  { %5134 = vmatprep.mubr.bf16.mxu0 %v11658_v45  ;;  %5175 = vmatprep.mubr.bf16.mxu1 %v11658_v45 }
0x15df   :  { %5105 = vmatpush1.bf16.msra.mxu0 %v10249_v38  ;;  %5146 = vmatpush1.bf16.msra.mxu1 %v10255_v14 }
0x15e0   :  { %5106 = vmatprep.subr.bf16.mxu0 %v10261_v61  ;;  %5147 = vmatprep.subr.bf16.mxu1 %v10267_v35 }
0x15e3   :  { %5107 = vmatpush1.bf16.msra.mxu0 %v10273_v60  ;;  %5148 = vmatpush1.bf16.msra.mxu1 %v10279_v13 }
0x15e4   :  { %5108 = vmatprep.subr.bf16.mxu0 %v10285_v18  ;;  %5149 = vmatprep.subr.bf16.mxu1 %v10291_v54 }
0x15e7   :  { %5109 = vmatpush1.bf16.msra.mxu0 %v10297_v25  ;;  %5150 = vmatpush1.bf16.msra.mxu1 %v10303_v42 }
0x15e8   :  { %5110 = vmatprep.subr.bf16.mxu0 %v10309_v26  ;;  %5151 = vmatprep.subr.bf16.mxu1 %v10315_v31 }
0x15eb   :  { %5111 = vmatpush1.bf16.msra.mxu0 %v10321_v21  ;;  %5152 = vmatpush1.bf16.msra.mxu1 %v10327_v23 }
0x15ec   :  { %5112 = vmatprep.subr.bf16.mxu0 %v10333_v56  ;;  %5153 = vmatprep.subr.bf16.mxu1 %v10339_v19 }
0x15ef   :  { %5113 = vmatpush1.bf16.msra.mxu0 %v10345_v10  ;;  %5154 = vmatpush1.bf16.msra.mxu1 %v10351_v51 }
0x15f0   :  { %5114 = vmatprep.subr.bf16.mxu0 %v10357_v58  ;;  %5155 = vmatprep.subr.bf16.mxu1 %v10363_v0 }
0x15f3   :  { %5115 = vmatpush1.bf16.msra.mxu0 %v10369_v33  ;;  %5156 = vmatpush1.bf16.msra.mxu1 %v10375_v27 }
0x15f4   :  { %5116 = vmatprep.subr.bf16.mxu0 %v10381_v62  ;;  %5157 = vmatprep.subr.bf16.mxu1 %v10387_v2 }
0x15f7   :  { %5117 = vmatpush1.bf16.msra.mxu0 %v10393_v36  ;;  %5158 = vmatpush1.bf16.msra.mxu1 %v10399_v16 }
0x15f8   :  { %5219 = vmatprep.subr.bf16.mxu0 %v10213_v41  ;;  %5260 = vmatprep.subr.bf16.mxu1 %v10219_v49 }
0x169a   :  { %v5019_v24 = vpop.f32.mrf.mxu0  ;;  %v5060_v3 = vpop.f32.mrf.mxu1 }
0x169b   :  { %v5067_v6 = vadd.f32 %v5019_v24, %v11706_v8  ;;  %v5069_v1 = vadd.f32 %v5060_v3, %v11707_v48 }
0x169c   :  { %v5021_v55 = vpop.f32.mrf.mxu0  ;;  %v5062_v47 = vpop.f32.mrf.mxu1 }
0x169d   :  { %v5071_v37 = vmul.f32 0.5, %v5067_v6  ;;  %v5068_v30 = vadd.f32 %v5021_v55, %v4981_v4  ;;  %v5070_v34 = vadd.f32 %v5062_v47, %v11708_v7 }
0x169e   :  { %v5023_v43 = vpop.f32.mrf.mxu0  ;;  %v5064_v20 = vpop.f32.mrf.mxu1 }
0x169f   :  { %7098 = vtanh.f32 %v5071_v37  ;;  %v5075_v57 = vmul.f32 0.5, %v5068_v30  ;;  %v5080_v12 = vmul.f32 0.5, %v5070_v34  ;;  %v11711_v34 = vld [vmem:[#allocation9_spill] sm:$0xff] }
0x16a0   :  { %v5024_v11 = vpop.f32.mrf.mxu0  ;;  %v5065_v46 = vpop.f32.mrf.mxu1 }
0x16a1   :  { %7100 = vtanh.f32 %v5075_v57  ;;  %v11710_v57 = vld [vmem:[#allocation11_spill] sm:$0xff] }
0x16a2   :  { %7102 = vtanh.f32 %v5069_v1 }
0x16a3   :  { %7104 = vtanh.f32 %v5080_v12 }
0x16ac   :  { %v7099_v22 = vpop.eup %7098 }
0x16ad   :  { %v5073_v50 = vmul.f32 0.5, %v7099_v22 }
0x16ae   :  { %v7101_v9 = vpop.eup %7100 }
0x16af   :  { %v5074_v5 = vadd.f32 0.5, %v5073_v50  ;;  %v5077_v52 = vmul.f32 0.5, %v7101_v9  ;;  %v7103_v39 = vpop.eup %7102 }
0x16b0   :  { %v7105_v6 = vpop.eup %7104 }
0x16b1   :  { %v5078_v29 = vadd.f32 0.5, %v5077_v52  ;;  %v5085_v24 = vmul.f32 %v7103_v39, %v5074_v5  ;;  %v5082_v4 = vmul.f32 0.5, %v7105_v6 }
0x16b3   :  { %v5084_v8 = vmul.f32 %v5078_v29, %v10547_v40  ;;  %v5083_v55 = vadd.f32 0.5, %v5082_v4  ;;  %v11709_v40 = vld [vmem:[#allocation8_spill] sm:$0xff] }
0x16b5   :  { %v10592_v3 = vadd.f32 %v5085_v24, %v5084_v8 }
0x16b7   :  { %7106 = vtanh.f32 %v10592_v3 }
0x16c4   :  { %v7107_v47 = vpop.eup %7106 }
0x16c5   :  { %v5088_v37 = vmul.f32 %v7107_v47, %v5083_v55 }
0x16c7   :  { %v5101_v30 = vpack.c.bf16 %v5088_v37, %v5088_v37 }
0x16c9   :  { %5135 = vmatmul.mubr.bf16.vlgmr.msra.gmra.mxu0 %v5101_v30  ;;  %5176 = vmatmul.mubr.bf16.vlgmr.msra.gmra.mxu1 %v5101_v30 }
0x16ca   :  { %5220 = vmatpush1.bf16.msra.mxu0 %v10171_v17  ;;  %5261 = vmatpush1.bf16.msra.mxu1 %v10177_v59 }
0x16cb   :  { %5221 = vmatprep.subr.bf16.mxu0 %v10235_v53  ;;  %5262 = vmatprep.subr.bf16.mxu1 %v10241_v44 }
0x16cc   :  { %5251 = vmatprep.mubr.bf16.mxu0 %v11658_v45  ;;  %5292 = vmatprep.mubr.bf16.mxu1 %v11658_v45 }
0x16ce   :  { %5222 = vmatpush1.bf16.msra.mxu0 %v10249_v38  ;;  %5263 = vmatpush1.bf16.msra.mxu1 %v10255_v14 }
0x16cf   :  { %5223 = vmatprep.subr.bf16.mxu0 %v10261_v61  ;;  %5264 = vmatprep.subr.bf16.mxu1 %v10267_v35 }
0x16d2   :  { %5224 = vmatpush1.bf16.msra.mxu0 %v10273_v60  ;;  %5265 = vmatpush1.bf16.msra.mxu1 %v10279_v13 }
0x16d3   :  { %5225 = vmatprep.subr.bf16.mxu0 %v10285_v18  ;;  %5266 = vmatprep.subr.bf16.mxu1 %v10291_v54 }
0x16d6   :  { %5226 = vmatpush1.bf16.msra.mxu0 %v10297_v25  ;;  %5267 = vmatpush1.bf16.msra.mxu1 %v10303_v42 }
0x16d7   :  { %5227 = vmatprep.subr.bf16.mxu0 %v10309_v26  ;;  %5268 = vmatprep.subr.bf16.mxu1 %v10315_v31 }
0x16da   :  { %5228 = vmatpush1.bf16.msra.mxu0 %v10321_v21  ;;  %5269 = vmatpush1.bf16.msra.mxu1 %v10327_v23 }
0x16db   :  { %5229 = vmatprep.subr.bf16.mxu0 %v10333_v56  ;;  %5270 = vmatprep.subr.bf16.mxu1 %v10339_v19 }
0x16de   :  { %5230 = vmatpush1.bf16.msra.mxu0 %v10345_v10  ;;  %5271 = vmatpush1.bf16.msra.mxu1 %v10351_v51 }
0x16df   :  { %5231 = vmatprep.subr.bf16.mxu0 %v10357_v58  ;;  %5272 = vmatprep.subr.bf16.mxu1 %v10363_v0 }
0x16e2   :  { %5232 = vmatpush1.bf16.msra.mxu0 %v10369_v33  ;;  %5273 = vmatpush1.bf16.msra.mxu1 %v10375_v27 }
0x16e3   :  { %5233 = vmatprep.subr.bf16.mxu0 %v10381_v62  ;;  %5274 = vmatprep.subr.bf16.mxu1 %v10387_v2 }
0x16e6   :  { %5234 = vmatpush1.bf16.msra.mxu0 %v10393_v36  ;;  %5275 = vmatpush1.bf16.msra.mxu1 %v10399_v16 }
0x16e7   :  { %5336 = vmatprep.subr.bf16.mxu0 %v10213_v41  ;;  %5377 = vmatprep.subr.bf16.mxu1 %v10219_v49  ;;  %v11712_v41 = vld [vmem:[#allocation10_spill] sm:$0xff] }
0x1789   :  { %v5136_v17 = vpop.f32.mrf.mxu0  ;;  %v5177_v59 = vpop.f32.mrf.mxu1 }
0x178a   :  { %v5184_v43 = vadd.f32 %v5136_v17, %v11709_v40  ;;  %v5186_v12 = vadd.f32 %v5177_v59, %v11711_v34 }
0x178b   :  { %v5138_v20 = vpop.f32.mrf.mxu0  ;;  %v5179_v48 = vpop.f32.mrf.mxu1 }
0x178c   :  { %v5188_v1 = vmul.f32 0.5, %v5184_v43  ;;  %v5185_v11 = vadd.f32 %v5138_v20, %v11710_v57  ;;  %v5187_v49 = vadd.f32 %v5179_v48, %v11712_v41  ;;  %v10640_v48 = vld [vmem:[%s11216_s2 + $0x1e0] ss:$16 sps:$4 sm:$0xff]   ;;  %v10710_v41 = vld [vmem:[%s11216_s2 + $0x1cc] ss:$16 sps:$4 sm:$0xff]  }
0x178d   :  { %v5140_v46 = vpop.f32.mrf.mxu0  ;;  %v5181_v7 = vpop.f32.mrf.mxu1 }
0x178e   :  { %7108 = vtanh.f32 %v5188_v1  ;;  %v5192_v22 = vmul.f32 0.5, %v5185_v11  ;;  %v5197_v5 = vmul.f32 0.5, %v5187_v49  ;;  %v10718_v49 = vld [vmem:[%s11216_s2 + $0x1c0] ss:$16 sps:$4 sm:$0xff]  }
0x178f   :  { %v5141_v50 = vpop.f32.mrf.mxu0  ;;  %v5182_v9 = vpop.f32.mrf.mxu1 }
0x1790   :  { %7110 = vtanh.f32 %v5192_v22  ;;  %v10704_v9 = vld [vmem:[%s11216_s2 + $0x1c4] ss:$16 sps:$4 sm:$0xff]  }
0x1791   :  { %7112 = vtanh.f32 %v5186_v12 }
0x1792   :  { %7114 = vtanh.f32 %v5197_v5  ;;  %v10724_v5 = vld [vmem:[%s11216_s2 + $0x1c8] ss:$16 sps:$4 sm:$0xff]  }
0x179b   :  { %v7109_v52 = vpop.eup %7108 }
0x179c   :  { %v5190_v39 = vmul.f32 0.5, %v7109_v52  ;;  %v10730_v52 = vld [vmem:[%s11216_s2 + $0x1a4] ss:$16 sps:$4 sm:$0xff]  }
0x179d   :  { %v7111_v29 = vpop.eup %7110 }
0x179e   :  { %v5191_v24 = vadd.f32 0.5, %v5190_v39  ;;  %v5194_v8 = vmul.f32 0.5, %v7111_v29  ;;  %v7113_v6 = vpop.eup %7112  ;;  %v10736_v39 = vld [vmem:[%s11216_s2 + $0x1ac] ss:$16 sps:$4 sm:$0xff]   ;;  %v10742_v29 = vld [vmem:[%s11216_s2 + $0x1a0] ss:$16 sps:$4 sm:$0xff]  }
0x179f   :  { %v7115_v30 = vpop.eup %7114 }
0x17a0   :  { %v5195_v4 = vadd.f32 0.5, %v5194_v8  ;;  %v5202_v55 = vmul.f32 %v7113_v6, %v5191_v24  ;;  %v5199_v17 = vmul.f32 0.5, %v7115_v30  ;;  %v10748_v24 = vld [vmem:[%s11216_s2 + $0x1a8] ss:$16 sps:$4 sm:$0xff]   ;;  %v10754_v8 = vld [vmem:[%s11216_s2 + $0x184] ss:$16 sps:$4 sm:$0xff]  }
0x17a1   :  { %v10760_v6 = vld [vmem:[%s11216_s2 + $0x18c] ss:$16 sps:$4 sm:$0xff]   ;;  %v10790_v30 = vld [vmem:[%s11216_s2 + $0x160] ss:$16 sps:$4 sm:$0xff]  }
0x17a2   :  { %v5201_v47 = vmul.f32 %v5195_v4, %v10592_v3  ;;  %v5200_v59 = vadd.f32 0.5, %v5199_v17  ;;  %v10646_v3 = vld [vmem:[%s11216_s2 + $0x1e8] ss:$16 sps:$4 sm:$0xff]   ;;  %v10766_v4 = vld [vmem:[%s11216_s2 + $0x180] ss:$16 sps:$4 sm:$0xff]  }
0x17a3   :  { %v10796_v17 = vld [vmem:[%s11216_s2 + $0x168] ss:$16 sps:$4 sm:$0xff]  }
0x17a4   :  { %v10634_v37 = vadd.f32 %v5202_v55, %v5201_v47  ;;  %v10772_v55 = vld [vmem:[%s11216_s2 + $0x188] ss:$16 sps:$4 sm:$0xff]   ;;  %v10778_v47 = vld [vmem:[%s11216_s2 + $0x164] ss:$16 sps:$4 sm:$0xff]  }
0x17a6   :  { %7116 = vtanh.f32 %v10634_v37 }
0x17b3   :  { %v7117_v40 = vpop.eup %7116 }
0x17b4   :  { %v5205_v43 = vmul.f32 %v7117_v40, %v5200_v59  ;;  %v10802_v59 = vld [vmem:[%s11216_s2 + $0x144] ss:$16 sps:$4 sm:$0xff]   ;;  %v10808_v40 = vld [vmem:[%s11216_s2 + $0x14c] ss:$16 sps:$4 sm:$0xff]  }
0x17b6   :  { %v5218_v20 = vpack.c.bf16 %v5205_v43, %v5205_v43  ;;  %v10814_v43 = vld [vmem:[%s11216_s2 + $0x140] ss:$16 sps:$4 sm:$0xff]  }
0x17b8   :  { %5252 = vmatmul.mubr.bf16.vlgmr.msra.gmra.mxu0 %v5218_v20  ;;  %5293 = vmatmul.mubr.bf16.vlgmr.msra.gmra.mxu1 %v5218_v20  ;;  %v10820_v20 = vld [vmem:[%s11216_s2 + $0x148] ss:$16 sps:$4 sm:$0xff]  }
0x17b9   :  { %5337 = vmatpush1.bf16.msra.mxu0 %v10640_v48  ;;  %5378 = vmatpush1.bf16.msra.mxu1 %v10646_v3 }
0x17ba   :  { %5338 = vmatprep.subr.bf16.mxu0 %v10235_v53  ;;  %5379 = vmatprep.subr.bf16.mxu1 %v10241_v44  ;;  %v10682_v53 = vld [vmem:[%s11216_s2 + $0x1e4] ss:$16 sps:$4 sm:$0xff]   ;;  %v10688_v44 = vld [vmem:[%s11216_s2 + $0x1ec] ss:$16 sps:$4 sm:$0xff]  }
0x17bb   :  { %5368 = vmatprep.mubr.bf16.mxu0 %v11658_v45  ;;  %5409 = vmatprep.mubr.bf16.mxu1 %v11658_v45 }
0x17bd   :  { %5339 = vmatpush1.bf16.msra.mxu0 %v10249_v38  ;;  %5380 = vmatpush1.bf16.msra.mxu1 %v10255_v14 }
0x17be   :  { %5340 = vmatprep.subr.bf16.mxu0 %v10261_v61  ;;  %5381 = vmatprep.subr.bf16.mxu1 %v10267_v35  ;;  %v11713_v61 = vld [vmem:[#allocation12_spill] sm:$0xff] }
0x17c1   :  { %5341 = vmatpush1.bf16.msra.mxu0 %v10273_v60  ;;  %5382 = vmatpush1.bf16.msra.mxu1 %v10279_v13 }
0x17c2   :  { %5342 = vmatprep.subr.bf16.mxu0 %v10285_v18  ;;  %5383 = vmatprep.subr.bf16.mxu1 %v10291_v54  ;;  %v11714_v54 = vld [vmem:[#allocation70_spill] sm:$0xff] }
0x17c5   :  { %5343 = vmatpush1.bf16.msra.mxu0 %v10297_v25  ;;  %5384 = vmatpush1.bf16.msra.mxu1 %v10303_v42 }
0x17c6   :  { %5344 = vmatprep.subr.bf16.mxu0 %v10309_v26  ;;  %5385 = vmatprep.subr.bf16.mxu1 %v10315_v31  ;;  %v11715_v31 = vld [vmem:[#allocation69_spill] sm:$0xff] }
0x17c9   :  { %5345 = vmatpush1.bf16.msra.mxu0 %v10321_v21  ;;  %5386 = vmatpush1.bf16.msra.mxu1 %v10327_v23 }
0x17ca   :  { %5346 = vmatprep.subr.bf16.mxu0 %v10333_v56  ;;  %5387 = vmatprep.subr.bf16.mxu1 %v10339_v19 }
0x17cd   :  { %5347 = vmatpush1.bf16.msra.mxu0 %v10345_v10  ;;  %5388 = vmatpush1.bf16.msra.mxu1 %v10351_v51  ;;  %v11716_v10 = vld [vmem:[#allocation71_spill] sm:$0xff] }
0x17ce   :  { %5348 = vmatprep.subr.bf16.mxu0 %v10357_v58  ;;  %5389 = vmatprep.subr.bf16.mxu1 %v10363_v0 }
0x17d1   :  { %5349 = vmatpush1.bf16.msra.mxu0 %v10369_v33  ;;  %5390 = vmatpush1.bf16.msra.mxu1 %v10375_v27 }
0x17d2   :  { %5350 = vmatprep.subr.bf16.mxu0 %v10381_v62  ;;  %5391 = vmatprep.subr.bf16.mxu1 %v10387_v2 }
0x17d5   :  { %5351 = vmatpush1.bf16.msra.mxu0 %v10393_v36  ;;  %5392 = vmatpush1.bf16.msra.mxu1 %v10399_v16 }
0x17d6   :  { %5453 = vmatprep.subr.bf16.mxu0 %v10682_v53  ;;  %5494 = vmatprep.subr.bf16.mxu1 %v10688_v44 }
0x1878   :  { %v5253_v38 = vpop.f32.mrf.mxu0  ;;  %v5294_v14 = vpop.f32.mrf.mxu1 }
0x1879   :  { %v5301_v35 = vadd.f32 %v5253_v38, %v11713_v61  ;;  %v5303_v21 = vadd.f32 %v5294_v14, %v11715_v31  ;;  %v10826_v38 = vld [vmem:[%s11216_s2 + $0x124] ss:$16 sps:$4 sm:$0xff]   ;;  %v10832_v14 = vld [vmem:[%s11216_s2 + $0x12c] ss:$16 sps:$4 sm:$0xff]   ;;  %v10838_v61 = vld [vmem:[%s11216_s2 + $0x120] ss:$16 sps:$4 sm:$0xff]  }
0x187a   :  { %v5255_v60 = vpop.f32.mrf.mxu0  ;;  %v5296_v13 = vpop.f32.mrf.mxu1 }
0x187b   :  { %v5305_v18 = vmul.f32 0.5, %v5301_v35  ;;  %v5302_v25 = vadd.f32 %v5255_v60, %v11714_v54  ;;  %v5304_v51 = vadd.f32 %v5296_v13, %v11716_v10  ;;  %v10844_v35 = vld [vmem:[%s11216_s2 + $0x128] ss:$16 sps:$4 sm:$0xff]   ;;  %v10850_v60 = vld [vmem:[%s11216_s2 + $0x104] ss:$16 sps:$4 sm:$0xff]  }
0x187c   :  { %v5257_v42 = vpop.f32.mrf.mxu0  ;;  %v5298_v26 = vpop.f32.mrf.mxu1  ;;  %v10856_v13 = vld [vmem:[%s11216_s2 + $0x10c] ss:$16 sps:$4 sm:$0xff]   ;;  %v10868_v54 = vld [vmem:[%s11216_s2 + $0x108] ss:$16 sps:$4 sm:$0xff]  }
0x187d   :  { %7118 = vtanh.f32 %v5305_v18  ;;  %v5309_v23 = vmul.f32 0.5, %v5302_v25  ;;  %v5314_v58 = vmul.f32 0.5, %v5304_v51  ;;  %v10862_v18 = vld [vmem:[%s11216_s2 + $0x100] ss:$16 sps:$4 sm:$0xff]  }
0x187e   :  { %v5258_v56 = vpop.f32.mrf.mxu0  ;;  %v5299_v19 = vpop.f32.mrf.mxu1  ;;  %v11717_v26 = vld [vmem:[#allocation72_spill] sm:$0xff] }
0x187f   :  { %7120 = vtanh.f32 %v5309_v23  ;;  %v11718_v19 = vld [vmem:[#allocation74_spill] sm:$0xff] }
0x1880   :  { %7122 = vtanh.f32 %v5303_v21 }
0x1881   :  { %7124 = vtanh.f32 %v5314_v58 }
0x188a   :  { %v7119_v0 = vpop.eup %7118 }
0x188b   :  { %v5307_v33 = vmul.f32 0.5, %v7119_v0  ;;  %v11719_v0 = vld [vmem:[#allocation73_spill] sm:$0xff] }
0x188c   :  { %v7121_v27 = vpop.eup %7120 }
0x188d   :  { %v5308_v62 = vadd.f32 0.5, %v5307_v33  ;;  %v5311_v2 = vmul.f32 0.5, %v7121_v27  ;;  %v7123_v36 = vpop.eup %7122 }
0x188e   :  { %v7125_v46 = vpop.eup %7124 }
0x188f   :  { %v5312_v16 = vadd.f32 0.5, %v5311_v2  ;;  %v5319_v1 = vmul.f32 %v7123_v36, %v5308_v62  ;;  %v5316_v7 = vmul.f32 0.5, %v7125_v46  ;;  %v11720_v36 = vld [vmem:[#allocation75_spill] sm:$0xff] }
0x1891   :  { %v5318_v57 = vmul.f32 %v5312_v16, %v10634_v37  ;;  %v5317_v34 = vadd.f32 0.5, %v5316_v7  ;;  %v10784_v37 = vld [vmem:[%s11216_s2 + $0x16c] ss:$16 sps:$4 sm:$0xff]  }
0x1893   :  { %v10696_v11 = vadd.f32 %v5319_v1, %v5318_v57 }
0x1895   :  { %7126 = vtanh.f32 %v10696_v11 }
0x18a2   :  { %v7127_v12 = vpop.eup %7126 }
0x18a3   :  { %v5322_v22 = vmul.f32 %v7127_v12, %v5317_v34 }
0x18a5   :  { %v5335_v50 = vpack.c.bf16 %v5322_v22, %v5322_v22 }
0x18a7   :  { %5369 = vmatmul.mubr.bf16.vlgmr.msra.gmra.mxu0 %v5335_v50  ;;  %5410 = vmatmul.mubr.bf16.vlgmr.msra.gmra.mxu1 %v5335_v50 }
0x18a8   :  { %5454 = vmatpush1.bf16.msra.mxu0 %v10640_v48  ;;  %5495 = vmatpush1.bf16.msra.mxu1 %v10646_v3 }
0x18a9   :  { %5455 = vmatprep.subr.bf16.mxu0 %v10704_v9  ;;  %5496 = vmatprep.subr.bf16.mxu1 %v10710_v41 }
0x18aa   :  { %5485 = vmatprep.mubr.bf16.mxu0 %v11658_v45  ;;  %5526 = vmatprep.mubr.bf16.mxu1 %v11658_v45 }
0x18ac   :  { %5456 = vmatpush1.bf16.msra.mxu0 %v10718_v49  ;;  %5497 = vmatpush1.bf16.msra.mxu1 %v10724_v5 }
0x18ad   :  { %5457 = vmatprep.subr.bf16.mxu0 %v10730_v52  ;;  %5498 = vmatprep.subr.bf16.mxu1 %v10736_v39 }
0x18b0   :  { %5458 = vmatpush1.bf16.msra.mxu0 %v10742_v29  ;;  %5499 = vmatpush1.bf16.msra.mxu1 %v10748_v24 }
0x18b1   :  { %5459 = vmatprep.subr.bf16.mxu0 %v10754_v8  ;;  %5500 = vmatprep.subr.bf16.mxu1 %v10760_v6 }
0x18b4   :  { %5460 = vmatpush1.bf16.msra.mxu0 %v10766_v4  ;;  %5501 = vmatpush1.bf16.msra.mxu1 %v10772_v55 }
0x18b5   :  { %5461 = vmatprep.subr.bf16.mxu0 %v10778_v47  ;;  %5502 = vmatprep.subr.bf16.mxu1 %v10784_v37 }
0x18b8   :  { %5462 = vmatpush1.bf16.msra.mxu0 %v10790_v30  ;;  %5503 = vmatpush1.bf16.msra.mxu1 %v10796_v17 }
0x18b9   :  { %5463 = vmatprep.subr.bf16.mxu0 %v10802_v59  ;;  %5504 = vmatprep.subr.bf16.mxu1 %v10808_v40 }
0x18bc   :  { %5464 = vmatpush1.bf16.msra.mxu0 %v10814_v43  ;;  %5505 = vmatpush1.bf16.msra.mxu1 %v10820_v20 }
0x18bd   :  { %5465 = vmatprep.subr.bf16.mxu0 %v10826_v38  ;;  %5506 = vmatprep.subr.bf16.mxu1 %v10832_v14 }
0x18c0   :  { %5466 = vmatpush1.bf16.msra.mxu0 %v10838_v61  ;;  %5507 = vmatpush1.bf16.msra.mxu1 %v10844_v35 }
0x18c1   :  { %5467 = vmatprep.subr.bf16.mxu0 %v10850_v60  ;;  %5508 = vmatprep.subr.bf16.mxu1 %v10856_v13 }
0x18c4   :  { %5468 = vmatpush1.bf16.msra.mxu0 %v10862_v18  ;;  %5509 = vmatpush1.bf16.msra.mxu1 %v10868_v54 }
0x18c5   :  { %5570 = vmatprep.subr.bf16.mxu0 %v10682_v53  ;;  %5611 = vmatprep.subr.bf16.mxu1 %v10688_v44 }
0x1967   :  { %v5370_v25 = vpop.f32.mrf.mxu0  ;;  %v5411_v42 = vpop.f32.mrf.mxu1 }
0x1968   :  { %v5418_v31 = vadd.f32 %v5370_v25, %v11717_v26  ;;  %v5420_v33 = vadd.f32 %v5411_v42, %v11719_v0 }
0x1969   :  { %v5372_v21 = vpop.f32.mrf.mxu0  ;;  %v5413_v23 = vpop.f32.mrf.mxu1 }
0x196a   :  { %v5422_v56 = vmul.f32 0.5, %v5418_v31  ;;  %v5419_v10 = vadd.f32 %v5372_v21, %v11718_v19  ;;  %v5421_v16 = vadd.f32 %v5413_v23, %v11720_v36 }
0x196b   :  { %v5374_v51 = vpop.f32.mrf.mxu0  ;;  %v5415_v58 = vpop.f32.mrf.mxu1 }
0x196c   :  { %7128 = vtanh.f32 %v5422_v56  ;;  %v5426_v27 = vmul.f32 0.5, %v5419_v10  ;;  %v5431_v1 = vmul.f32 0.5, %v5421_v16  ;;  %v11721_v58 = vld [vmem:[#allocation76_spill] sm:$0xff] }
0x196d   :  { %v5375_v62 = vpop.f32.mrf.mxu0  ;;  %v5416_v2 = vpop.f32.mrf.mxu1 }
0x196e   :  { %7130 = vtanh.f32 %v5426_v27  ;;  %v11722_v2 = vld [vmem:[#allocation78_spill] sm:$0xff] }
0x196f   :  { %7132 = vtanh.f32 %v5420_v33 }
0x1970   :  { %7134 = vtanh.f32 %v5431_v1 }
0x1979   :  { %v7129_v57 = vpop.eup %7128 }
0x197a   :  { %v5424_v46 = vmul.f32 0.5, %v7129_v57  ;;  %v11723_v57 = vld [vmem:[#allocation77_spill] sm:$0xff] }
0x197b   :  { %v7131_v7 = vpop.eup %7130 }
0x197c   :  { %v5425_v34 = vadd.f32 0.5, %v5424_v46  ;;  %v5428_v12 = vmul.f32 0.5, %v7131_v7  ;;  %v7133_v22 = vpop.eup %7132 }
0x197d   :  { %v7135_v31 = vpop.eup %7134 }
0x197e   :  { %v5429_v50 = vadd.f32 0.5, %v5428_v12  ;;  %v5436_v25 = vmul.f32 %v7133_v22, %v5425_v34  ;;  %v5433_v21 = vmul.f32 0.5, %v7135_v31  ;;  %v11724_v22 = vld [vmem:[#allocation79_spill] sm:$0xff] }
0x1980   :  { %v5435_v26 = vmul.f32 %v5429_v50, %v10696_v11  ;;  %v5434_v56 = vadd.f32 0.5, %v5433_v21 }
0x1982   :  { %v10878_v42 = vadd.f32 %v5436_v25, %v5435_v26 }
0x1984   :  { %7136 = vtanh.f32 %v10878_v42 }
0x1991   :  { %v7137_v23 = vpop.eup %7136 }
0x1992   :  { %v5439_v19 = vmul.f32 %v7137_v23, %v5434_v56 }
0x1994   :  { %v5452_v10 = vpack.c.bf16 %v5439_v19, %v5439_v19 }
0x1996   :  { %5486 = vmatmul.mubr.bf16.vlgmr.msra.gmra.mxu0 %v5452_v10  ;;  %5527 = vmatmul.mubr.bf16.vlgmr.msra.gmra.mxu1 %v5452_v10 }
0x1997   :  { %5571 = vmatpush1.bf16.msra.mxu0 %v10640_v48  ;;  %5612 = vmatpush1.bf16.msra.mxu1 %v10646_v3 }
0x1998   :  { %5572 = vmatprep.subr.bf16.mxu0 %v10704_v9  ;;  %5613 = vmatprep.subr.bf16.mxu1 %v10710_v41 }
0x1999   :  { %5602 = vmatprep.mubr.bf16.mxu0 %v11658_v45  ;;  %5643 = vmatprep.mubr.bf16.mxu1 %v11658_v45 }
0x199b   :  { %5573 = vmatpush1.bf16.msra.mxu0 %v10718_v49  ;;  %5614 = vmatpush1.bf16.msra.mxu1 %v10724_v5 }
0x199c   :  { %5574 = vmatprep.subr.bf16.mxu0 %v10730_v52  ;;  %5615 = vmatprep.subr.bf16.mxu1 %v10736_v39 }
0x199f   :  { %5575 = vmatpush1.bf16.msra.mxu0 %v10742_v29  ;;  %5616 = vmatpush1.bf16.msra.mxu1 %v10748_v24 }
0x19a0   :  { %5576 = vmatprep.subr.bf16.mxu0 %v10754_v8  ;;  %5617 = vmatprep.subr.bf16.mxu1 %v10760_v6 }
0x19a3   :  { %5577 = vmatpush1.bf16.msra.mxu0 %v10766_v4  ;;  %5618 = vmatpush1.bf16.msra.mxu1 %v10772_v55 }
0x19a4   :  { %5578 = vmatprep.subr.bf16.mxu0 %v10778_v47  ;;  %5619 = vmatprep.subr.bf16.mxu1 %v10784_v37 }
0x19a7   :  { %5579 = vmatpush1.bf16.msra.mxu0 %v10790_v30  ;;  %5620 = vmatpush1.bf16.msra.mxu1 %v10796_v17 }
0x19a8   :  { %5580 = vmatprep.subr.bf16.mxu0 %v10802_v59  ;;  %5621 = vmatprep.subr.bf16.mxu1 %v10808_v40 }
0x19ab   :  { %5581 = vmatpush1.bf16.msra.mxu0 %v10814_v43  ;;  %5622 = vmatpush1.bf16.msra.mxu1 %v10820_v20 }
0x19ac   :  { %5582 = vmatprep.subr.bf16.mxu0 %v10826_v38  ;;  %5623 = vmatprep.subr.bf16.mxu1 %v10832_v14 }
0x19af   :  { %5583 = vmatpush1.bf16.msra.mxu0 %v10838_v61  ;;  %5624 = vmatpush1.bf16.msra.mxu1 %v10844_v35 }
0x19b0   :  { %5584 = vmatprep.subr.bf16.mxu0 %v10850_v60  ;;  %5625 = vmatprep.subr.bf16.mxu1 %v10856_v13 }
0x19b3   :  { %5585 = vmatpush1.bf16.msra.mxu0 %v10862_v18  ;;  %5626 = vmatpush1.bf16.msra.mxu1 %v10868_v54 }
0x19b4   :  { %5687 = vmatprep.subr.bf16.mxu0 %v10682_v53  ;;  %5728 = vmatprep.subr.bf16.mxu1 %v10688_v44 }
0x1a56   :  { %v5487_v11 = vpop.f32.mrf.mxu0  ;;  %v5528_v51 = vpop.f32.mrf.mxu1 }
0x1a57   :  { %v5535_v0 = vadd.f32 %v5487_v11, %v11721_v58  ;;  %v5537_v46 = vadd.f32 %v5528_v51, %v11723_v57 }
0x1a58   :  { %v5489_v33 = vpop.f32.mrf.mxu0  ;;  %v5530_v27 = vpop.f32.mrf.mxu1 }
0x1a59   :  { %v5539_v62 = vmul.f32 0.5, %v5535_v0  ;;  %v5536_v36 = vadd.f32 %v5489_v33, %v11722_v2  ;;  %v5538_v50 = vadd.f32 %v5530_v27, %v11724_v22 }
0x1a5a   :  { %v5491_v16 = vpop.f32.mrf.mxu0  ;;  %v5532_v1 = vpop.f32.mrf.mxu1 }
0x1a5b   :  { %7138 = vtanh.f32 %v5539_v62  ;;  %v5543_v7 = vmul.f32 0.5, %v5536_v36  ;;  %v5548_v25 = vmul.f32 0.5, %v5538_v50  ;;  %v11726_v1 = vld [vmem:[#allocation49_spill] sm:$0xff] }
0x1a5c   :  { %v5492_v34 = vpop.f32.mrf.mxu0  ;;  %v5533_v12 = vpop.f32.mrf.mxu1  ;;  %v3124_v57 = vadd.f32 %v11726_v1, %v9842_v63 }
0x1a5d   :  { %7140 = vtanh.f32 %v5543_v7  ;;  %v11727_v34 = vld [vmem:[#allocation97_spill] sm:$0xff] }
0x1a5e   :  { %7142 = vtanh.f32 %v5537_v46 }
0x1a5f   :  { %7144 = vtanh.f32 %v5548_v25 }
0x1a68   :  { %v7139_v26 = vpop.eup %7138 }
0x1a69   :  { %v5541_v31 = vmul.f32 0.5, %v7139_v26 }
0x1a6a   :  { %v7141_v21 = vpop.eup %7140 }
0x1a6b   :  { %v5542_v56 = vadd.f32 0.5, %v5541_v31  ;;  %v5545_v23 = vmul.f32 0.5, %v7141_v21  ;;  %v7143_v19 = vpop.eup %7142 }
0x1a6c   :  { %v7145_v0 = vpop.eup %7144 }
0x1a6d   :  { %v5546_v10 = vadd.f32 0.5, %v5545_v23  ;;  %v5553_v11 = vmul.f32 %v7143_v19, %v5542_v56  ;;  %v5550_v33 = vmul.f32 0.5, %v7145_v0  ;;  %v11728_v23 = vld [vmem:[#allocation98_spill] sm:$0xff]  ;;  %v11729_v0 = vld [vmem:[#allocation96_spill] sm:$0xff] }
0x1a6f   :  { %v5552_v58 = vmul.f32 %v5546_v10, %v10878_v42  ;;  %v5551_v62 = vadd.f32 0.5, %v5550_v33  ;;  %v11725_v42 = vld [vmem:[#allocation95_spill] sm:$0xff]  ;;  %v3807_v33 = vadd.f32 %v11729_v0, %v9840_v32 }
0x1a70   :  { %v3754_v16 = vadd.f32 %v11725_v42, %v9837_v15 }
0x1a71   :  { %v10920_v51 = vadd.f32 %v5553_v11, %v5552_v58 }
0x1a72   :  { %v5566_v22 = vadd.f32 %v3754_v16, %v3124_v57 }
0x1a73   :  { %7146 = vtanh.f32 %v10920_v51 }
0x1a80   :  { %v7147_v27 = vpop.eup %7146 }
0x1a81   :  { %v5556_v2 = vmul.f32 %v7147_v27, %v5551_v62  ;;  %v11730_v62 = vld [vmem:[#allocation65_spill] sm:$0xff] }
0x1a82   :  { %v3177_v27 = vadd.f32 %v11730_v62, %v9844_v28 }
0x1a83   :  { %v5569_v36 = vpack.c.bf16 %v5556_v2, %v5556_v2 }
0x1a84   :  { %v5568_v2 = vadd.f32 %v3807_v33, %v3177_v27  ;;  %v11732_v27 = vld [vmem:[#allocation101_spill] sm:$0xff] }
0x1a85   :  { %5603 = vmatmul.mubr.bf16.vlgmr.msra.gmra.mxu0 %v5569_v36  ;;  %5644 = vmatmul.mubr.bf16.vlgmr.msra.gmra.mxu1 %v5569_v36 }
0x1a86   :  { %5688 = vmatpush1.bf16.msra.mxu0 %v10640_v48  ;;  %5729 = vmatpush1.bf16.msra.mxu1 %v10646_v3 }
0x1a87   :  { %5689 = vmatprep.subr.bf16.mxu0 %v10704_v9  ;;  %5730 = vmatprep.subr.bf16.mxu1 %v10710_v41 }
0x1a88   :  { %5719 = vmatprep.mubr.bf16.mxu0 %v11658_v45  ;;  %5760 = vmatprep.mubr.bf16.mxu1 %v11658_v45 }
0x1a8a   :  { %5690 = vmatpush1.bf16.msra.mxu0 %v10718_v49  ;;  %5731 = vmatpush1.bf16.msra.mxu1 %v10724_v5 }
0x1a8b   :  { %5691 = vmatprep.subr.bf16.mxu0 %v10730_v52  ;;  %5732 = vmatprep.subr.bf16.mxu1 %v10736_v39 }
0x1a8e   :  { %5692 = vmatpush1.bf16.msra.mxu0 %v10742_v29  ;;  %5733 = vmatpush1.bf16.msra.mxu1 %v10748_v24 }
0x1a8f   :  { %5693 = vmatprep.subr.bf16.mxu0 %v10754_v8  ;;  %5734 = vmatprep.subr.bf16.mxu1 %v10760_v6 }
0x1a92   :  { %5694 = vmatpush1.bf16.msra.mxu0 %v10766_v4  ;;  %5735 = vmatpush1.bf16.msra.mxu1 %v10772_v55 }
0x1a93   :  { %5695 = vmatprep.subr.bf16.mxu0 %v10778_v47  ;;  %5736 = vmatprep.subr.bf16.mxu1 %v10784_v37 }
0x1a96   :  { %5696 = vmatpush1.bf16.msra.mxu0 %v10790_v30  ;;  %5737 = vmatpush1.bf16.msra.mxu1 %v10796_v17 }
0x1a97   :  { %5697 = vmatprep.subr.bf16.mxu0 %v10802_v59  ;;  %5738 = vmatprep.subr.bf16.mxu1 %v10808_v40 }
0x1a9a   :  { %5698 = vmatpush1.bf16.msra.mxu0 %v10814_v43  ;;  %5739 = vmatpush1.bf16.msra.mxu1 %v10820_v20 }
0x1a9b   :  { %5699 = vmatprep.subr.bf16.mxu0 %v10826_v38  ;;  %5740 = vmatprep.subr.bf16.mxu1 %v10832_v14 }
0x1a9e   :  { %5700 = vmatpush1.bf16.msra.mxu0 %v10838_v61  ;;  %5741 = vmatpush1.bf16.msra.mxu1 %v10844_v35 }
0x1a9f   :  { %5701 = vmatprep.subr.bf16.mxu0 %v10850_v60  ;;  %5742 = vmatprep.subr.bf16.mxu1 %v10856_v13 }
0x1aa2   :  { %5702 = vmatpush1.bf16.msra.mxu0 %v10862_v18  ;;  %5743 = vmatpush1.bf16.msra.mxu1 %v10868_v54 }
0x1aa3   :  { %5804 = vmatprep.subr.bf16.mxu0 %v10682_v53  ;;  %5845 = vmatprep.subr.bf16.mxu1 %v10688_v44 }
0x1b45   :  { %v5604_v46 = vpop.f32.mrf.mxu0  ;;  %v5645_v7 = vpop.f32.mrf.mxu1 }
0x1b46   :  { %v5652_v12 = vadd.f32 %v5604_v46, %v11727_v34  ;;  %v5654_v19 = vadd.f32 %v5645_v7, %v11728_v23 }
0x1b47   :  { %v5606_v50 = vpop.f32.mrf.mxu0  ;;  %v5647_v25 = vpop.f32.mrf.mxu1 }
0x1b48   :  { %v5656_v26 = vmul.f32 0.5, %v5652_v12  ;;  %v5653_v31 = vadd.f32 %v5606_v50, %v5566_v22  ;;  %v5655_v36 = vadd.f32 %v5647_v25, %v5568_v2 }
0x1b49   :  { %v5608_v21 = vpop.f32.mrf.mxu0  ;;  %v5649_v56 = vpop.f32.mrf.mxu1 }
0x1b4a   :  { %7148 = vtanh.f32 %v5656_v26  ;;  %v5660_v10 = vmul.f32 0.5, %v5653_v31  ;;  %v5665_v42 = vmul.f32 0.5, %v5655_v36 }
0x1b4b   :  { %v5609_v11 = vpop.f32.mrf.mxu0  ;;  %v5650_v58 = vpop.f32.mrf.mxu1 }
0x1b4c   :  { %7150 = vtanh.f32 %v5660_v10  ;;  %v11731_v11 = vld [vmem:[#allocation99_spill] sm:$0xff] }
0x1b4d   :  { %7152 = vtanh.f32 %v5654_v19 }
0x1b4e   :  { %7154 = vtanh.f32 %v5665_v42 }
0x1b57   :  { %v7149_v16 = vpop.eup %7148 }
0x1b58   :  { %v5658_v1 = vmul.f32 0.5, %v7149_v16  ;;  %v11733_v16 = vld [vmem:[#allocation100_spill] sm:$0xff] }
0x1b59   :  { %v7151_v57 = vpop.eup %7150 }
0x1b5a   :  { %v5659_v46 = vadd.f32 0.5, %v5658_v1  ;;  %v5662_v34 = vmul.f32 0.5, %v7151_v57  ;;  %v7153_v7 = vpop.eup %7152 }
0x1b5b   :  { %v7155_v31 = vpop.eup %7154 }
0x1b5c   :  { %v5663_v12 = vadd.f32 0.5, %v5662_v34  ;;  %v5670_v22 = vmul.f32 %v7153_v7, %v5659_v46  ;;  %v5667_v21 = vmul.f32 0.5, %v7155_v31 }
0x1b5e   :  { %v5669_v50 = vmul.f32 %v5663_v12, %v10920_v51  ;;  %v5668_v56 = vadd.f32 0.5, %v5667_v21 }
0x1b60   :  { %v10968_v26 = vadd.f32 %v5670_v22, %v5669_v50 }
0x1b62   :  { %7156 = vtanh.f32 %v10968_v26 }
0x1b6f   :  { %v7157_v25 = vpop.eup %7156 }
0x1b70   :  { %v5673_v23 = vmul.f32 %v7157_v25, %v5668_v56 }
0x1b72   :  { %v5686_v19 = vpack.c.bf16 %v5673_v23, %v5673_v23 }
0x1b74   :  { %5720 = vmatmul.mubr.bf16.vlgmr.msra.gmra.mxu0 %v5686_v19  ;;  %5761 = vmatmul.mubr.bf16.vlgmr.msra.gmra.mxu1 %v5686_v19 }
0x1b75   :  { %5805 = vmatpush1.bf16.msra.mxu0 %v10640_v48  ;;  %5846 = vmatpush1.bf16.msra.mxu1 %v10646_v3 }
0x1b76   :  { %5806 = vmatprep.subr.bf16.mxu0 %v10704_v9  ;;  %5847 = vmatprep.subr.bf16.mxu1 %v10710_v41 }
0x1b77   :  { %5836 = vmatprep.mubr.bf16.mxu0 %v11658_v45  ;;  %5877 = vmatprep.mubr.bf16.mxu1 %v11658_v45 }
0x1b79   :  { %5807 = vmatpush1.bf16.msra.mxu0 %v10718_v49  ;;  %5848 = vmatpush1.bf16.msra.mxu1 %v10724_v5 }
0x1b7a   :  { %5808 = vmatprep.subr.bf16.mxu0 %v10730_v52  ;;  %5849 = vmatprep.subr.bf16.mxu1 %v10736_v39 }
0x1b7d   :  { %5809 = vmatpush1.bf16.msra.mxu0 %v10742_v29  ;;  %5850 = vmatpush1.bf16.msra.mxu1 %v10748_v24 }
0x1b7e   :  { %5810 = vmatprep.subr.bf16.mxu0 %v10754_v8  ;;  %5851 = vmatprep.subr.bf16.mxu1 %v10760_v6 }
0x1b81   :  { %5811 = vmatpush1.bf16.msra.mxu0 %v10766_v4  ;;  %5852 = vmatpush1.bf16.msra.mxu1 %v10772_v55 }
0x1b82   :  { %5812 = vmatprep.subr.bf16.mxu0 %v10778_v47  ;;  %5853 = vmatprep.subr.bf16.mxu1 %v10784_v37 }
0x1b85   :  { %5813 = vmatpush1.bf16.msra.mxu0 %v10790_v30  ;;  %5854 = vmatpush1.bf16.msra.mxu1 %v10796_v17 }
0x1b86   :  { %5814 = vmatprep.subr.bf16.mxu0 %v10802_v59  ;;  %5855 = vmatprep.subr.bf16.mxu1 %v10808_v40 }
0x1b89   :  { %5815 = vmatpush1.bf16.msra.mxu0 %v10814_v43  ;;  %5856 = vmatpush1.bf16.msra.mxu1 %v10820_v20 }
0x1b8a   :  { %5816 = vmatprep.subr.bf16.mxu0 %v10826_v38  ;;  %5857 = vmatprep.subr.bf16.mxu1 %v10832_v14 }
0x1b8d   :  { %5817 = vmatpush1.bf16.msra.mxu0 %v10838_v61  ;;  %5858 = vmatpush1.bf16.msra.mxu1 %v10844_v35 }
0x1b8e   :  { %5818 = vmatprep.subr.bf16.mxu0 %v10850_v60  ;;  %5859 = vmatprep.subr.bf16.mxu1 %v10856_v13 }
0x1b91   :  { %5819 = vmatpush1.bf16.msra.mxu0 %v10862_v18  ;;  %5860 = vmatpush1.bf16.msra.mxu1 %v10868_v54 }
0x1b92   :  { %5921 = vmatprep.subr.bf16.mxu0 %v10682_v53  ;;  %5962 = vmatprep.subr.bf16.mxu1 %v10688_v44  ;;  %v11734_v53 = vld [vmem:[#allocation102_spill] sm:$0xff] }
0x1c34   :  { %v5721_v51 = vpop.f32.mrf.mxu0  ;;  %v5762_v10 = vpop.f32.mrf.mxu1 }
0x1c35   :  { %v5769_v58 = vadd.f32 %v5721_v51, %v11731_v11  ;;  %v5771_v1 = vadd.f32 %v5762_v10, %v11733_v16 }
0x1c36   :  { %v5723_v0 = vpop.f32.mrf.mxu0  ;;  %v5764_v33 = vpop.f32.mrf.mxu1 }
0x1c37   :  { %v5773_v62 = vmul.f32 0.5, %v5769_v58  ;;  %v5770_v2 = vadd.f32 %v5723_v0, %v11732_v27  ;;  %v5772_v44 = vadd.f32 %v5764_v33, %v11734_v53  ;;  %v6829_v53 = vld [vmem:[%s11218_s4 + $0x90] ss:$12 sps:$4 sm:$0xff]  }
0x1c38   :  { %v5725_v36 = vpop.f32.mrf.mxu0  ;;  %v5766_v42 = vpop.f32.mrf.mxu1 }
0x1c39   :  { %7158 = vtanh.f32 %v5773_v62  ;;  %v5777_v57 = vmul.f32 0.5, %v5770_v2  ;;  %v5782_v7 = vmul.f32 0.5, %v5772_v44  ;;  %v6830_v44 = vld [vmem:[%s11218_s4 + $0x78] ss:$12 sps:$4 sm:$0xff]  }
0x1c3a   :  { %v5726_v46 = vpop.f32.mrf.mxu0  ;;  %v5767_v34 = vpop.f32.mrf.mxu1 }
0x1c3b   :  { %7160 = vtanh.f32 %v5777_v57  ;;  %v6828_v46 = vld [vmem:[%s11218_s4 + $0xa8] ss:$12 sps:$4 sm:$0xff]   ;;  %v7343_v34 = vmov 0.0  }
0x1c3c   :  { %7162 = vtanh.f32 %v5771_v1 }
0x1c3d   :  { %7164 = vtanh.f32 %v5782_v7  ;;  %v6831_v7 = vld [vmem:[%s11218_s4 + $0x60] ss:$12 sps:$4 sm:$0xff]  }
0x1c46   :  { %v7159_v12 = vpop.eup %7158 }
0x1c47   :  { %v5775_v22 = vmul.f32 0.5, %v7159_v12  ;;  %v6832_v12 = vld [vmem:[%s11218_s4 + $0x48] ss:$12 sps:$4 sm:$0xff]  }
0x1c48   :  { %v7161_v50 = vpop.eup %7160 }
0x1c49   :  { %v5776_v31 = vadd.f32 0.5, %v5775_v22  ;;  %v5779_v21 = vmul.f32 0.5, %v7161_v50  ;;  %v7163_v56 = vpop.eup %7162  ;;  %v6833_v22 = vld [vmem:[%s11218_s4 + $0x30] ss:$12 sps:$4 sm:$0xff]   ;;  %v6834_v50 = vld [vmem:[%s11218_s4 + $0x18] ss:$12 sps:$4 sm:$0xff]  }
0x1c4a   :  { %v7165_v10 = vpop.eup %7164 }
0x1c4b   :  { %v5780_v25 = vadd.f32 0.5, %v5779_v21  ;;  %v5787_v23 = vmul.f32 %v7163_v56, %v5776_v31  ;;  %v5784_v11 = vmul.f32 0.5, %v7165_v10  ;;  %v6835_v31 = vld [vmem:[%s11218_s4] ss:$12 sps:$4 sm:$0xff]  }
0x1c4c   :  { %v6836_v21 = vld [vmem:[%s11218_s4 + $0xac] ss:$12 sps:$4 sm:$0xff]   ;;  %v6837_v56 = vld [vmem:[%s11218_s4 + $0x94] ss:$12 sps:$4 sm:$0xff]  }
0x1c4d   :  { %v5786_v19 = vmul.f32 %v5780_v25, %v10968_v26  ;;  %v5785_v58 = vadd.f32 0.5, %v5784_v11  ;;  %v6838_v25 = vld [vmem:[%s11218_s4 + $0x7c] ss:$12 sps:$4 sm:$0xff]  }
0x1c4f   :  { %v11010_v51 = vadd.f32 %v5787_v23, %v5786_v19  ;;  %v6839_v23 = vld [vmem:[%s11218_s4 + $0x64] ss:$12 sps:$4 sm:$0xff]   ;;  %v6840_v19 = vld [vmem:[%s11218_s4 + $0x4c] ss:$12 sps:$4 sm:$0xff]  }
0x1c51   :  { %7166 = vtanh.f32 %v11010_v51 }
0x1c5e   :  { %v7167_v0 = vpop.eup %7166 }
0x1c5f   :  { %v5790_v33 = vmul.f32 %v7167_v0, %v5785_v58  ;;  %v11741_v58 = vld [vmem:[#allocation62_spill] sm:$0xff] }
0x1c61   :  { %v5803_v62 = vpack.c.bf16 %v5790_v33, %v5790_v33 }
0x1c63   :  { %5837 = vmatmul.mubr.bf16.vlgmr.msra.gmra.mxu0 %v5803_v62  ;;  %5878 = vmatmul.mubr.bf16.vlgmr.msra.gmra.mxu1 %v5803_v62 }
0x1c64   :  { %5922 = vmatpush1.bf16.msra.mxu0 %v10640_v48  ;;  %5963 = vmatpush1.bf16.msra.mxu1 %v10646_v3  ;;  %v11736_v3 = vld [vmem:[#allocation26_spill] sm:$0xff] }
0x1c65   :  { %5923 = vmatprep.subr.bf16.mxu0 %v10704_v9  ;;  %5964 = vmatprep.subr.bf16.mxu1 %v10710_v41  ;;  %v3114_v9 = vadd.f32 %v11736_v3, %v9842_v63 }
0x1c66   :  { %5953 = vmatprep.mubr.bf16.mxu0 %v11658_v45  ;;  %5994 = vmatprep.mubr.bf16.mxu1 %v11658_v45  ;;  %v11735_v45 = vld [vmem:[#allocation103_spill] sm:$0xff] }
0x1c67   :  { %v3764_v48 = vadd.f32 %v11735_v45, %v9837_v15 }
0x1c68   :  { %5924 = vmatpush1.bf16.msra.mxu0 %v10718_v49  ;;  %5965 = vmatpush1.bf16.msra.mxu1 %v10724_v5  ;;  %v11737_v5 = vld [vmem:[#allocation105_spill] sm:$0xff] }
0x1c69   :  { %5925 = vmatprep.subr.bf16.mxu0 %v10730_v52  ;;  %5966 = vmatprep.subr.bf16.mxu1 %v10736_v39  ;;  %v5800_v39 = vadd.f32 %v3764_v48, %v3114_v9  ;;  %v11742_v48 = vld [vmem:[#allocation108_spill] sm:$0xff] }
0x1c6c   :  { %5926 = vmatpush1.bf16.msra.mxu0 %v10742_v29  ;;  %5967 = vmatpush1.bf16.msra.mxu1 %v10748_v24 }
0x1c6d   :  { %5927 = vmatprep.subr.bf16.mxu0 %v10754_v8  ;;  %5968 = vmatprep.subr.bf16.mxu1 %v10760_v6 }
0x1c70   :  { %5928 = vmatpush1.bf16.msra.mxu0 %v10766_v4  ;;  %5969 = vmatpush1.bf16.msra.mxu1 %v10772_v55 }
0x1c71   :  { %5929 = vmatprep.subr.bf16.mxu0 %v10778_v47  ;;  %5970 = vmatprep.subr.bf16.mxu1 %v10784_v37  ;;  %v11738_v47 = vld [vmem:[#allocation106_spill] sm:$0xff] }
0x1c74   :  { %5930 = vmatpush1.bf16.msra.mxu0 %v10790_v30  ;;  %5971 = vmatpush1.bf16.msra.mxu1 %v10796_v17 }
0x1c75   :  { %5931 = vmatprep.subr.bf16.mxu0 %v10802_v59  ;;  %5972 = vmatprep.subr.bf16.mxu1 %v10808_v40  ;;  %v11739_v59 = vld [vmem:[#allocation104_spill] sm:$0xff] }
0x1c76   :  { %v3817_v63 = vadd.f32 %v11739_v59, %v9840_v32  ;;  %v11740_v40 = vld [vmem:[#allocation20_spill] sm:$0xff] }
0x1c78   :  { %5932 = vmatpush1.bf16.msra.mxu0 %v10814_v43  ;;  %5973 = vmatpush1.bf16.msra.mxu1 %v10820_v20  ;;  %v3167_v43 = vadd.f32 %v11740_v40, %v9844_v28 }
0x1c79   :  { %5933 = vmatprep.subr.bf16.mxu0 %v10826_v38  ;;  %5974 = vmatprep.subr.bf16.mxu1 %v10832_v14 }
0x1c7a   :  { %v5802_v20 = vadd.f32 %v3817_v63, %v3167_v43 }
0x1c7c   :  { %5934 = vmatpush1.bf16.msra.mxu0 %v10838_v61  ;;  %5975 = vmatpush1.bf16.msra.mxu1 %v10844_v35 }
0x1c7d   :  { %5935 = vmatprep.subr.bf16.mxu0 %v10850_v60  ;;  %5976 = vmatprep.subr.bf16.mxu1 %v10856_v13 }
0x1c80   :  { %5936 = vmatpush1.bf16.msra.mxu0 %v10862_v18  ;;  %5977 = vmatpush1.bf16.msra.mxu1 %v10868_v54 }
0x1c81   :  { %6659 = vmatprep.subr.bf16.mxu0 %v7343_v34  ;;  %6679 = vmatprep.subr.bf16.mxu1 %v7343_v34 }
0x1d23   :  { %v5838_v41 = vpop.f32.mrf.mxu0  ;;  %v5879_v49 = vpop.f32.mrf.mxu1 }
0x1d24   :  { %v5886_v52 = vadd.f32 %v5838_v41, %v11737_v5  ;;  %v5888_v37 = vadd.f32 %v5879_v49, %v11738_v47  ;;  %v11743_v49 = vld [vmem:[#allocation107_spill] sm:$0xff] }
0x1d25   :  { %v5840_v29 = vpop.f32.mrf.mxu0  ;;  %v5881_v24 = vpop.f32.mrf.mxu1 }
0x1d26   :  { %v5890_v8 = vmul.f32 0.5, %v5886_v52  ;;  %v5887_v6 = vadd.f32 %v5840_v29, %v5800_v39  ;;  %v5889_v38 = vadd.f32 %v5881_v24, %v5802_v20  ;;  %v11744_v24 = vld [vmem:[#allocation109_spill] sm:$0xff] }
0x1d27   :  { %v5842_v4 = vpop.f32.mrf.mxu0  ;;  %v5883_v55 = vpop.f32.mrf.mxu1 }
0x1d28   :  { %7168 = vtanh.f32 %v5890_v8  ;;  %v5894_v30 = vmul.f32 0.5, %v5887_v6  ;;  %v5899_v14 = vmul.f32 0.5, %v5889_v38 }
0x1d29   :  { %v5843_v17 = vpop.f32.mrf.mxu0  ;;  %v5884_v15 = vpop.f32.mrf.mxu1 }
0x1d2a   :  { %7170 = vtanh.f32 %v5894_v30 }
0x1d2b   :  { %7172 = vtanh.f32 %v5888_v37 }
0x1d2c   :  { %7174 = vtanh.f32 %v5899_v14 }
0x1d35   :  { %v7169_v61 = vpop.eup %7168 }
0x1d36   :  { %v5892_v35 = vmul.f32 0.5, %v7169_v61 }
0x1d37   :  { %v7171_v60 = vpop.eup %7170 }
0x1d38   :  { %v5893_v13 = vadd.f32 0.5, %v5892_v35  ;;  %v5896_v18 = vmul.f32 0.5, %v7171_v60  ;;  %v7173_v54 = vpop.eup %7172  ;;  %v11745_v35 = vld [vmem:[#allocation38_spill] sm:$0xff] }
0x1d39   :  { %v7175_v28 = vpop.eup %7174 }
0x1d3a   :  { %v5897_v26 = vadd.f32 0.5, %v5896_v18  ;;  %v5904_v27 = vmul.f32 %v7173_v54, %v5893_v13  ;;  %v5901_v36 = vmul.f32 0.5, %v7175_v28  ;;  %v6842_v18 = vld [vmem:[%s11218_s4 + $0x1c] ss:$12 sps:$4 sm:$0xff]   ;;  %v6843_v54 = vld [vmem:[%s11218_s4 + $0x4] ss:$12 sps:$4 sm:$0xff]  }
0x1d3b   :  { %v6850_v28 = vld [vmem:[%s11218_s4 + $0x7c] ss:$12 sps:$4 sm:$0xff]  }
0x1d3c   :  { %v5903_v2 = vmul.f32 %v5897_v26, %v11010_v51  ;;  %v5902_v42 = vadd.f32 0.5, %v5901_v36  ;;  %v6841_v51 = vld [vmem:[%s11218_s4 + $0x34] ss:$12 sps:$4 sm:$0xff]   ;;  %v6844_v26 = vld [vmem:[%s11218_s4 + $0xac] ss:$12 sps:$4 sm:$0xff]  }
0x1d3d   :  { %6364 = vrot.lane.b32.xlu1 %v6844_v26, %s7345_s27  ;;  %v6852_v36 = vld [vmem:[%s11218_s4 + $0x80] ss:$12 sps:$4 sm:$0xff]  }
0x1d3e   :  { %v11056_v32 = vadd.f32 %v5904_v27, %v5903_v2  ;;  %v6846_v27 = vld [vmem:[%s11218_s4 + $0xb0] ss:$12 sps:$4 sm:$0xff]   ;;  %v6847_v2 = vld [vmem:[%s11218_s4 + $0x94] ss:$12 sps:$4 sm:$0xff]  }
0x1d3f   :  { %6366 = vrot.lane.b32.xlu0 %v6846_v27, %s7345_s27 }
0x1d40   :  { %7176 = vtanh.f32 %v11056_v32 }
0x1d41   :  { %6360 = vrot.lane.b32.xlu1 %v6847_v2, %s7345_s27 }
0x1d45   :  { %6356 = vrot.lane.b32.xlu1 %v6850_v28, %s7345_s27 }
0x1d4d   :  { %v7177_v16 = vpop.eup %7176 }
0x1d4e   :  { %v5907_v1 = vmul.f32 %v7177_v16, %v5902_v42  ;;  %v6853_v42 = vld [vmem:[%s11218_s4 + $0x64] ss:$12 sps:$4 sm:$0xff]   ;;  %v6855_v16 = vld [vmem:[%s11218_s4 + $0x68] ss:$12 sps:$4 sm:$0xff]  }
0x1d4f   :  { %6352 = vrot.lane.b32.xlu1 %v6853_v42, %s7345_s27 }
0x1d50   :  { %v5920_v57 = vpack.c.bf16 %v5907_v1, %v5907_v1  ;;  %v6856_v1 = vld [vmem:[%s11218_s4 + $0x4c] ss:$12 sps:$4 sm:$0xff]  }
0x1d52   :  { %5954 = vmatmul.mubr.bf16.vlgmr.msra.gmra.mxu0 %v5920_v57  ;;  %5995 = vmatmul.mubr.bf16.vlgmr.msra.gmra.mxu1 %v5920_v57  ;;  %v6858_v57 = vld [vmem:[%s11218_s4 + $0x50] ss:$12 sps:$4 sm:$0xff]  }
0x1d53   :  { %6660 = vmatpush3.bf16.msra.mxu0 %v6828_v46  ;;  %6675 = vmatprep.mubr.msk.bf16.mxu0 %vm7344_vm0, %v7343_v34  ;;  %v6859_v46 = vld [vmem:[%s11218_s4 + $0x34] ss:$12 sps:$4 sm:$0xff]  }
0x1d54   :  { %6661 = vmatprep.subr.bf16.mxu0 %v7343_v34  ;;  %6695 = vmatprep.mubr.msk.bf16.mxu1 %vm7344_vm0, %v7343_v34 }
0x1d55   :  { %6680 = vmatpush3.bf16.msra.mxu1 %v6836_v21  ;;  %6348 = vrot.lane.b32.xlu1 %v6856_v1, %s7345_s27 }
0x1d56   :  { %6681 = vmatprep.subr.bf16.mxu1 %v7343_v34 }
0x1d57   :  { %6662 = vmatpush3.bf16.msra.mxu0 %v6829_v53  ;;  %v6861_v53 = vld [vmem:[%s11218_s4 + $0x38] ss:$12 sps:$4 sm:$0xff]  }
0x1d58   :  { %6663 = vmatprep.subr.bf16.mxu0 %v7343_v34 }
0x1d59   :  { %6682 = vmatpush3.bf16.msra.mxu1 %v6837_v56  ;;  %6344 = vrot.lane.b32.xlu1 %v6859_v46, %s7345_s27  ;;  %v6594_v56 = vld [vmem:[%s11215_s1 + $0x3] ss:$0 sm:$0xff] }
0x1d5a   :  { %6683 = vmatprep.subr.bf16.mxu1 %v7343_v34 }
0x1d5b   :  { %6664 = vmatpush3.bf16.msra.mxu0 %v6830_v44  ;;  %v6862_v44 = vld [vmem:[%s11218_s4 + $0x1c] ss:$12 sps:$4 sm:$0xff]  }
0x1d5c   :  { %6665 = vmatprep.subr.bf16.mxu0 %v7343_v34 }
0x1d5d   :  { %6684 = vmatpush3.bf16.msra.mxu1 %v6838_v25  ;;  %6340 = vrot.lane.b32.xlu1 %v6862_v44, %s7345_s27 }
0x1d5e   :  { %6685 = vmatprep.subr.bf16.mxu1 %v7343_v34 }
0x1d5f   :  { %6666 = vmatpush3.bf16.msra.mxu0 %v6831_v7  ;;  %v6864_v7 = vld [vmem:[%s11218_s4 + $0x20] ss:$12 sps:$4 sm:$0xff]  }
0x1d60   :  { %6667 = vmatprep.subr.bf16.mxu0 %v7343_v34 }
0x1d61   :  { %6686 = vmatpush3.bf16.msra.mxu1 %v6839_v23 }
0x1d62   :  { %6687 = vmatprep.subr.bf16.mxu1 %v7343_v34 }
0x1d63   :  { %6668 = vmatpush3.bf16.msra.mxu0 %v6832_v12  ;;  %v6865_v12 = vld [vmem:[%s11218_s4 + $0x4] ss:$12 sps:$4 sm:$0xff]  }
0x1d64   :  { %6669 = vmatprep.subr.bf16.mxu0 %v7343_v34  ;;  %6336 = vrot.lane.b32.xlu1 %v6865_v12, %s7345_s27 }
0x1d65   :  { %6688 = vmatpush3.bf16.msra.mxu1 %v6840_v19 }
0x1d66   :  { %6689 = vmatprep.subr.bf16.mxu1 %v7343_v34 }
0x1d67   :  { %6670 = vmatpush3.bf16.msra.mxu0 %v6833_v22  ;;  %v6867_v22 = vld [vmem:[%s11218_s4 + $0x8] ss:$12 sps:$4 sm:$0xff]  }
0x1d68   :  { %6671 = vmatprep.subr.bf16.mxu0 %v7343_v34 }
0x1d69   :  { %6690 = vmatpush3.bf16.msra.mxu1 %v6841_v51 }
0x1d6a   :  { %6691 = vmatprep.subr.bf16.mxu1 %v7343_v34 }
0x1d6b   :  { %6672 = vmatpush3.bf16.msra.mxu0 %v6834_v50 }
0x1d6c   :  { %6673 = vmatprep.subr.bf16.mxu0 %v7343_v34 }
0x1d6d   :  { %6692 = vmatpush3.bf16.msra.mxu1 %v6842_v18 }
0x1d6e   :  { %6693 = vmatprep.subr.bf16.mxu1 %v7343_v34 }
0x1d6f   :  { %6674 = vmatpush3.bf16.msra.mxu0 %v6835_v31 }
0x1d70   :  { %6699 = vmatprep.subr.bf16.mxu0 %v7343_v34 }
0x1d71   :  { %6694 = vmatpush3.bf16.msra.mxu1 %v6843_v54 }
0x1daf   :  { %v6365_v50 = vpop.permute.xlu1 %6364 }
0x1db1   :  { %v6367_v31 = vpop.permute.xlu0 %6366 }
0x1db2   :  { %v6376_v21 = vsel %vm6025_vm1, %v6365_v50, %v6367_v31 }
0x1db3   :  { %v6361_v25 = vpop.permute.xlu1 %6360 }
0x1e12   :  { %v5955_v10 = vpop.f32.mrf.mxu0  ;;  %v5996_v11 = vpop.f32.mrf.mxu1 }
0x1e13   :  { %v6003_v0 = vadd.f32 %v5955_v10, %v11741_v58  ;;  %v6005_v5 = vadd.f32 %v5996_v11, %v11743_v49 }
0x1e14   :  { %v5957_v33 = vpop.f32.mrf.mxu0  ;;  %v5998_v62 = vpop.f32.mrf.mxu1 }
0x1e15   :  { %v6007_v45 = vmul.f32 0.5, %v6003_v0  ;;  %v6004_v3 = vadd.f32 %v5957_v33, %v11742_v48  ;;  %v6006_v8 = vadd.f32 %v5998_v62, %v11744_v24  ;;  %v6357_v0 = vpop.permute.xlu1 %6356 }
0x1e16   :  { %v5959_v9 = vpop.f32.mrf.mxu0  ;;  %v6000_v41 = vpop.f32.mrf.mxu1 }
0x1e17   :  { %7178 = vtanh.f32 %v6007_v45  ;;  %v6011_v52 = vmul.f32 0.5, %v6004_v3  ;;  %v6016_v6 = vmul.f32 0.5, %v6006_v8 }
0x1e18   :  { %v5960_v39 = vpop.f32.mrf.mxu0  ;;  %v6001_v29 = vpop.f32.mrf.mxu1 }
0x1e19   :  { %7180 = vtanh.f32 %v6011_v52  ;;  %v6353_v9 = vpop.permute.xlu1 %6352 }
0x1e1a   :  { %7182 = vtanh.f32 %v6005_v5 }
0x1e1b   :  { %7184 = vtanh.f32 %v6016_v6 }
0x1e1d   :  { %v6349_v5 = vpop.permute.xlu1 %6348 }
0x1e21   :  { %v6345_v29 = vpop.permute.xlu1 %6344 }
0x1e24   :  { %v7179_v4 = vpop.eup %7178 }
0x1e25   :  { %v6009_v55 = vmul.f32 0.5, %v7179_v4  ;;  %v6341_v6 = vpop.permute.xlu1 %6340 }
0x1e26   :  { %v7181_v47 = vpop.eup %7180 }
0x1e27   :  { %v6010_v37 = vadd.f32 0.5, %v6009_v55  ;;  %v6013_v30 = vmul.f32 0.5, %v7181_v47  ;;  %v7183_v17 = vpop.eup %7182 }
0x1e28   :  { %v7185_v43 = vpop.eup %7184 }
0x1e29   :  { %v6014_v15 = vadd.f32 0.5, %v6013_v30  ;;  %v6021_v59 = vmul.f32 %v7183_v17, %v6010_v37  ;;  %v6018_v20 = vmul.f32 0.5, %v7185_v43  ;;  %v6337_v47 = vpop.permute.xlu1 %6336  ;;  %v6603_v17 = vld [vmem:[%s11215_s1 + $0x7] ss:$0 sm:$0xff] }
0x1e2b   :  { %v6020_v63 = vmul.f32 %v6014_v15, %v11056_v32  ;;  %v6019_v38 = vadd.f32 0.5, %v6018_v20  ;;  %v6849_v32 = vld [vmem:[%s11218_s4 + $0x98] ss:$12 sps:$4 sm:$0xff]  }
0x1e2c   :  { %6362 = vrot.lane.b32.xlu0 %v6849_v32, %s7345_s27 }
0x1e2d   :  { %v6022_v40 = vadd.f32 %v6021_v59, %v6020_v63 }
0x1e2f   :  { %7186 = vtanh.f32 %v6022_v40 }
0x1e30   :  { %6358 = vrot.lane.b32.xlu0 %v6852_v36, %s7345_s27 }
0x1e34   :  { %6354 = vrot.lane.b32.xlu0 %v6855_v16, %s7345_s27 }
0x1e38   :  { %6350 = vrot.lane.b32.xlu0 %v6858_v57, %s7345_s27 }
0x1e3c   :  { %v7187_v14 = vpop.eup %7186  ;;  %6346 = vrot.lane.b32.xlu0 %v6861_v53, %s7345_s27 }
0x1e3d   :  { %v6024_v61 = vmul.f32 %v7187_v14, %v6019_v38 }
0x1e3f   :  { %v6026_v60 = vsel %vm6025_vm1, %v6024_v61, %v11745_v35 }
0x1e40   :  { %v6030_v13 = vpack.c.bf16 %v6026_v60, %v6026_v60  ;;  %6342 = vrot.lane.b32.xlu0 %v6864_v7, %s7345_s27 }
0x1e42   :  { %6676 = vmatmul.mubr.bf16.vlgmr.msra.gmra.mxu0 %v6030_v13 }
0x1e43   :  { %6715 = vmatprep.mubr.msk.bf16.mxu0 %vm7344_vm0, %v7343_v34  ;;  %6700 = vmatpush3.bf16.msra.mxu0 %v6376_v21 }
0x1e44   :  { %6338 = vrot.lane.b32.xlu0 %v6867_v22, %s7345_s27  ;;  %6701 = vmatprep.subr.bf16.mxu0 %v7343_v34 }
0x1e9e   :  { %v6363_v23 = vpop.permute.xlu0 %6362 }
0x1e9f   :  { %v6375_v51 = vsel %vm6025_vm1, %v6361_v25, %v6363_v23 }
0x1ea0   :  { %6702 = vmatpush3.bf16.msra.mxu0 %v6375_v51 }
0x1ea1   :  { %6703 = vmatprep.subr.bf16.mxu0 %v7343_v34 }
0x1ea2   :  { %v6359_v33 = vpop.permute.xlu0 %6358 }
0x1ea3   :  { %v6374_v45 = vsel %vm6025_vm1, %v6357_v0, %v6359_v33 }
0x1ea4   :  { %6704 = vmatpush3.bf16.msra.mxu0 %v6374_v45 }
0x1ea5   :  { %6705 = vmatprep.subr.bf16.mxu0 %v7343_v34 }
0x1ea6   :  { %v6355_v41 = vpop.permute.xlu0 %6354 }
0x1ea7   :  { %v6373_v49 = vsel %vm6025_vm1, %v6353_v9, %v6355_v41 }
0x1ea8   :  { %6706 = vmatpush3.bf16.msra.mxu0 %v6373_v49 }
0x1ea9   :  { %6707 = vmatprep.subr.bf16.mxu0 %v7343_v34 }
0x1eaa   :  { %v6351_v52 = vpop.permute.xlu0 %6350 }
0x1eab   :  { %v6372_v39 = vsel %vm6025_vm1, %v6349_v5, %v6351_v52 }
0x1eac   :  { %6708 = vmatpush3.bf16.msra.mxu0 %v6372_v39 }
0x1ead   :  { %6709 = vmatprep.subr.bf16.mxu0 %v7343_v34 }
0x1eae   :  { %v6347_v24 = vpop.permute.xlu0 %6346 }
0x1eaf   :  { %v6371_v8 = vsel %vm6025_vm1, %v6345_v29, %v6347_v24 }
0x1eb0   :  { %6710 = vmatpush3.bf16.msra.mxu0 %v6371_v8 }
0x1eb1   :  { %6711 = vmatprep.subr.bf16.mxu0 %v7343_v34 }
0x1eb2   :  { %v6343_v4 = vpop.permute.xlu0 %6342 }
0x1eb3   :  { %v6370_v55 = vsel %vm6025_vm1, %v6341_v6, %v6343_v4 }
0x1eb4   :  { %6712 = vmatpush3.bf16.msra.mxu0 %v6370_v55 }
0x1eb5   :  { %6713 = vmatprep.subr.bf16.mxu0 %v7343_v34  ;;  %v6612_v34 = vld [vmem:[%s11215_s1 + $0xb] ss:$0 sm:$0xff] }
0x1eb6   :  { %v6339_v37 = vpop.permute.xlu0 %6338 }
0x1eb7   :  { %v6369_v30 = vsel %vm6025_vm1, %v6337_v47, %v6339_v37 }
0x1eb8   :  { %6714 = vmatpush3.bf16.msra.mxu0 %v6369_v30 }
0x1f02   :  { %v6133_v19 = vpop.f32.mrf.mxu0 }
0x1f03   :  { %v6134_v10 = vadd.f32 %v6594_v56, %v6133_v19 }
0x1f04   :  { %v6677_v11 = vpop.f32.mrf.mxu0 }
0x1f05   :  { %v6139_v58 = vmax.f32 %v6134_v10, 0.0 }
0x1f06   :  { %v6136_v62 = vpop.f32.mrf.mxu0 }
0x1f07   :  { %v6140_v48 = vpack.c.bf16 %v6139_v58, %v6139_v58 }
0x1f08   :  { %v6678_v3 = vpop.f32.mrf.mxu0 }
0x1f09   :  { %6696 = vmatmul.mubr.bf16.vlgmr.msra.gmra.mxu1 %v6140_v48 }
0x1fc9   :  { %v6243_v15 = vpop.f32.mrf.mxu1 }
0x1fca   :  { %v6244_v59 = vadd.f32 %v6603_v17, %v6243_v15 }
0x1fcb   :  { %v6697_v63 = vpop.f32.mrf.mxu1 }
0x1fcc   :  { %v6249_v40 = vmax.f32 %v6244_v59, 0.0 }
0x1fcd   :  { %v6246_v43 = vpop.f32.mrf.mxu1 }
0x1fce   :  { %v6630_v20 = vpack.c.bf16 %v6249_v40, %v6249_v40 }
0x1fcf   :  { %v6698_v38 = vpop.f32.mrf.mxu1 }
0x1fd0   :  { %6716 = vmatmul.mubr.msk.bf16.vlgmr.msra.gmra.mxu0 %vm6629_vm2, %v6630_v20 }
0x2090   :  { %v6419_v14 = vpop.f32.mrf.mxu0 }
0x2091   :  { %v6420_v61 = vadd.f32 %v6612_v34, %v6419_v14 }
0x2092   :  { %v6717_v35 = vpop.f32.mrf.mxu0 }
0x2093   :  { %6425 = vst [vmem:[%s11219_s5] sm:$0xff] %v6420_v61 }
0x2094   :  { %v6422_v60 = vpop.f32.mrf.mxu0 }
0x2096   :  { %v6718_v13 = vpop.f32.mrf.mxu0 }
0x2097   :  { %6430 = vsyncpa [#allocation6], 1 }

</bundles_post_ra>
